<compile_context>
chip_gen: v7x
topology: tpu7x:2x2x1
jax: 0.10.0
libtpu: 0.0.40
codegen_flags: <defaults>
</compile_context>

<pallas_src>
import functools
import math

import jax
import jax.numpy as jnp
import numpy as np
from jax.experimental import pallas as pl
from jax.experimental.pallas import tpu as pltpu

LANE = 128
# Explicit per-step VMEM budget for the buffers we size (inputs dbl-buffered,
# padded-activation scratch, weights, outputs).  Chosen so the total scoped VMEM
# stays well under v7x's 64 MiB physical VMEM (v5e/v6e have 128 MiB).
_VMEM_TILE_BUDGET = 24 * 1024 * 1024
_VMEM_LIMIT_BYTES = 48 * 1024 * 1024


def _round_up(v, m):
    return (v + m - 1) // m * m


def _pad_axis(x, target, axis):
    if x.shape[axis] == target:
        return x
    widths = [(0, 0)] * x.ndim
    widths[axis] = (0, target - x.shape[axis])
    return jnp.pad(x, widths)


# ---------------------------------------------------------------------------
# Kernel 1: BatchNorm batch statistics -> per-channel (scale, shift)
#   Only used for the very first bn1 (on the network input); every other BN's
#   statistics are produced by the preceding conv kernel's fused epilogue.
# ---------------------------------------------------------------------------

def _bn_stats_kernel(x_ref, gamma_ref, beta_ref, scale_ref, shift_ref,
                     sum_ref, ssq_ref, *, inv_count, eps):
    i = pl.program_id(0)

    @pl.when(i == 0)
    def _():
        sum_ref[...] = jnp.zeros_like(sum_ref)
        ssq_ref[...] = jnp.zeros_like(ssq_ref)

    x = x_ref[...].astype(jnp.float32)          # (H, W, C)
    c = x.shape[-1]
    x2 = x.reshape(-1, c)                       # (H*W, C)
    sum_ref[...] += jnp.sum(x2, axis=0, keepdims=True)
    ssq_ref[...] += jnp.sum(x2 * x2, axis=0, keepdims=True)

    @pl.when(i == pl.num_programs(0) - 1)
    def _():
        mean = sum_ref[...] * inv_count
        var = jnp.maximum(ssq_ref[...] * inv_count - mean * mean, 0.0)  # biased var
        inv = jax.lax.rsqrt(var + eps)
        scale = gamma_ref[...].astype(jnp.float32) * inv
        scale_ref[...] = scale
        shift_ref[...] = beta_ref[...].astype(jnp.float32) - mean * scale


def bn_scale_shift(x, gamma, beta, eps=1e-5):
    """x: (N, H, W, Cp) NHWC (channel padded). gamma/beta: (1, Cp)."""
    n, h, w, c = x.shape
    count = n * h * w
    kernel = functools.partial(_bn_stats_kernel, inv_count=1.0 / count, eps=eps)
    scale, shift = pl.pallas_call(
        kernel,
        grid=(n,),
        in_specs=[pl.BlockSpec((None, h, w, c), lambda i: (i, 0, 0, 0)),
                  pl.BlockSpec((1, c), lambda i: (0, 0)),
                  pl.BlockSpec((1, c), lambda i: (0, 0))],
        out_specs=[pl.BlockSpec((1, c), lambda i: (0, 0)),
                   pl.BlockSpec((1, c), lambda i: (0, 0))],
        out_shape=[jax.ShapeDtypeStruct((1, c), jnp.float32),
                   jax.ShapeDtypeStruct((1, c), jnp.float32)],
        scratch_shapes=[pltpu.VMEM((1, c), jnp.float32),
                        pltpu.VMEM((1, c), jnp.float32)],
        compiler_params=pltpu.CompilerParams(dimension_semantics=("arbitrary",)),
        cost_estimate=pl.CostEstimate(flops=3 * count * c, transcendentals=c,
                                      bytes_accessed=(x.size + 6 * c) * 4),
    )(x, gamma, beta)
    return scale, shift


def _finalize_scale_shift(psum, pssq, gamma, beta, count, eps=1e-5):
    """Tiny per-channel follow-up on the conv-epilogue partial stats.
    psum/pssq: (n_batch_tiles, n_cout_tiles, 1, tco); gamma/beta: (1, Cp)."""
    s = jnp.sum(psum, axis=0).reshape(1, -1)
    ss = jnp.sum(pssq, axis=0).reshape(1, -1)
    mean = s / count
    var = jnp.maximum(ss / count - mean * mean, 0.0)   # biased variance, clamped
    inv = jax.lax.rsqrt(var + eps)
    scale = gamma * inv
    shift = beta - mean * scale
    return scale, shift


# ---------------------------------------------------------------------------
# Kernel 2: fused [BN-apply + ReLU] -> 3x3 conv (9 accumulated bf16 matmuls)
#            [+ fused 1x1 shortcut conv] [+ fused residual add]
#            [+ fused per-channel sum / sum-of-squares of the output (next BN)]
# ---------------------------------------------------------------------------

def _fused_conv_kernel(*refs, stride, hin, win, ho, wo, bt,
                       has_short, has_res, has_stats):
    it = iter(refs)
    x_ref = next(it)                              # (bt, hin, win, Cin)   f32
    scale_ref = next(it)                          # (1, Cin)              f32
    shift_ref = next(it)                          # (1, Cin)              f32
    w_ref = next(it)                              # (3, 3, Cin, tco)      bf16
    ws_ref = next(it) if has_short else None      # (Cin, tco)            bf16
    r_ref = next(it) if has_res else None         # (bt, ho, wo, tco)     f32
    o_ref = next(it)                              # (bt, ho, wo, tco)     f32
    os_ref = next(it) if has_short else None      # (bt, ho, wo, tco)     f32
    psum_ref = next(it) if has_stats else None    # (1, 1, 1, tco)        f32
    pssq_ref = next(it) if has_stats else None    # (1, 1, 1, tco)        f32
    apad_ref = next(it)                           # (bt, hin+2, win+2, Cin) scratch

    j = pl.program_id(1)
    cpin = x_ref.shape[-1]
    tco = o_ref.shape[-1]
    hp, wp = hin + 2, win + 2
    m = bt * ho * wo

    # relu(bn(x)), spatially zero-padded, built ONCE per batch tile and reused
    # across all cout tiles (j is the inner, "arbitrary" grid axis).
    @pl.when(j == 0)
    def _():
        # Zero only the 1-pixel ring; the interior is fully overwritten below.
        # (Done every batch tile so it is also correct under megacore sharding.)
        zr = jnp.zeros((bt, 1, wp, cpin), apad_ref.dtype)
        zc = jnp.zeros((bt, hp, 1, cpin), apad_ref.dtype)
        apad_ref[:, 0:1, :, :] = zr
        apad_ref[:, hp - 1:hp, :, :] = zr
        apad_ref[:, :, 0:1, :] = zc
        apad_ref[:, :, wp - 1:wp, :] = zc
        x = x_ref[...].astype(jnp.float32)
        scale = scale_ref[...].reshape(1, 1, 1, cpin)
        shift = shift_ref[...].reshape(1, 1, 1, cpin)
        a = jnp.maximum(x * scale + shift, 0.0)
        apad_ref[:, 1:1 + hin, 1:1 + win, :] = a.astype(apad_ref.dtype)

    def tap(ky, kx):
        if stride == 1:
            return apad_ref[:, pl.ds(ky, ho), pl.ds(kx, wo), :]
        return apad_ref[:, pl.ds(ky, ho, stride=stride),
                        pl.ds(kx, wo, stride=stride), :]

    # 3x3 conv = 9 accumulated bf16 matmuls over shifted windows (no HBM im2col).
    acc = jnp.zeros((m, tco), jnp.float32)
    a_center = None
    for ky in range(3):
        for kx in range(3):
            a_tap = tap(ky, kx).reshape(m, cpin).astype(jnp.bfloat16)
            if has_short and ky == 1 and kx == 1:
                a_center = a_tap                       # reuse for the 1x1 shortcut
            acc = acc + jnp.dot(a_tap, w_ref[ky, kx],
                                preferred_element_type=jnp.float32)

    if has_res:
        acc = acc + r_ref[...].astype(jnp.float32).reshape(m, tco)
    o_ref[...] = acc.reshape(bt, ho, wo, tco).astype(o_ref.dtype)

    if has_stats:
        # Partial per-channel batch statistics of this output tile; finalized
        # (mean/var/scale/shift) by a tiny wrapper-side follow-up.
        psum_ref[...] = jnp.sum(acc, axis=0, keepdims=True).reshape(1, 1, 1, tco)
        pssq_ref[...] = jnp.sum(acc * acc, axis=0, keepdims=True).reshape(1, 1, 1, tco)

    if has_short:
        # 1x1 shortcut conv on relu(bn1(x)) with the same stride = center tap.
        sc = jnp.dot(a_center, ws_ref[...], preferred_element_type=jnp.float32)
        os_ref[...] = sc.reshape(bt, ho, wo, tco).astype(os_ref.dtype)


def fused_conv3x3(x, scale, shift, w, *, stride, w_short=None, residual=None,
                  want_stats=False):
    """x: (N, H, W, Cpin) f32.  w: (3, 3, Cpin, Cpout) bf16.
    Returns (out, shortcut_out_or_None, (psum, pssq)_or_None)."""
    n, hin, win, cpin = x.shape
    cpout = w.shape[-1]
    ho = (hin - 1) // stride + 1
    wo = (win - 1) // stride + 1
    # NOTE: on v5e (4x128x128 MXU) tco=128 is always enough; 256 fills the
    # 256-wide MXU of v6e/v7x when the channel count allows.
    tco = 256 if cpout % 256 == 0 else 128
    n_co = cpout // tco
    has_short = w_short is not None
    has_res = residual is not None
    hp, wp = hin + 2, win + 2

    # Batch tile: largest divisor of N whose per-step working set fits the VMEM
    # budget (sized for v7x's 64 MiB; v5e/v6e have more headroom).
    def _tile_bytes(bt_):
        x_b = 2 * bt_ * hin * win * cpin * 4                       # dbl-buffered input
        ap_b = bt_ * hp * _round_up(wp, 8) * cpin * 4              # apad scratch (f32 bound)
        w_b = 2 * 9 * cpin * tco * 2 + (2 * cpin * tco * 2 if has_short else 0)
        o_b = 2 * bt_ * ho * wo * tco * 4 * (1 + int(has_short))
        r_b = 2 * bt_ * ho * wo * tco * 4 if has_res else 0
        return x_b + ap_b + w_b + o_b + r_b
    bt = 1
    for cand in range(1, n + 1):
        if n % cand == 0 and _tile_bytes(cand) <= _VMEM_TILE_BUDGET:
            bt = cand
    n_bt = n // bt

    # Strided (stride=2) sublane slicing stays on the proven f32 path; plain
    # stride-1 taps use a bf16 scratch (half the VMEM / tap-load bytes).  Taps
    # are cast to bf16 for the MXU in both cases.
    apad_dtype = jnp.bfloat16 if stride == 1 else jnp.float32

    kernel = functools.partial(_fused_conv_kernel, stride=stride, hin=hin, win=win,
                               ho=ho, wo=wo, bt=bt, has_short=has_short,
                               has_res=has_res, has_stats=want_stats)

    in_specs = [
        pl.BlockSpec((bt, hin, win, cpin), lambda b, j: (b, 0, 0, 0)),
        pl.BlockSpec((1, cpin), lambda b, j: (0, 0)),
        pl.BlockSpec((1, cpin), lambda b, j: (0, 0)),
        pl.BlockSpec((3, 3, cpin, tco), lambda b, j: (0, 0, 0, j)),
    ]
    args = [x, scale, shift, w]
    if has_short:
        in_specs.append(pl.BlockSpec((cpin, tco), lambda b, j: (0, j)))
        args.append(w_short)
    if has_res:
        in_specs.append(pl.BlockSpec((bt, ho, wo, tco), lambda b, j: (b, 0, 0, j)))
        args.append(residual)

    out_specs = [pl.BlockSpec((bt, ho, wo, tco), lambda b, j: (b, 0, 0, j))]
    out_shapes = [jax.ShapeDtypeStruct((n, ho, wo, cpout), jnp.float32)]
    if has_short:
        out_specs.append(pl.BlockSpec((bt, ho, wo, tco), lambda b, j: (b, 0, 0, j)))
        out_shapes.append(jax.ShapeDtypeStruct((n, ho, wo, cpout), jnp.float32))
    if want_stats:
        for _ in range(2):
            out_specs.append(pl.BlockSpec((1, 1, 1, tco), lambda b, j: (b, j, 0, 0)))
            out_shapes.append(jax.ShapeDtypeStruct((n_bt, n_co, 1, tco), jnp.float32))

    flops = 2 * n * ho * wo * 9 * cpin * cpout
    if has_short:
        flops += 2 * n * ho * wo * cpin * cpout
    bytes_accessed = (4 * n * hin * win * cpin                     # input, read once
                      + 2 * n_bt * 9 * cpin * cpout                # bf16 weights per batch tile
                      + (2 * n_bt * cpin * cpout if has_short else 0)
                      + 4 * n * ho * wo * cpout * (2 if has_short else 1)
                      + (4 * n * ho * wo * cpout if has_res else 0)
                      + (8 * n_bt * cpout if want_stats else 0)
                      + 8 * cpin)

    outs = pl.pallas_call(
        kernel,
        grid=(n_bt, n_co),
        in_specs=in_specs,
        out_specs=out_specs,
        out_shape=out_shapes,
        scratch_shapes=[pltpu.VMEM((bt, hp, wp, cpin), apad_dtype)],
        compiler_params=pltpu.CompilerParams(
            # batch tiles megacore-shardable (v7x); cout axis must stay sequential
            # because the padded activation built at j==0 is reused for j>0.
            dimension_semantics=("parallel", "arbitrary"),
            vmem_limit_bytes=_VMEM_LIMIT_BYTES),
        cost_estimate=pl.CostEstimate(flops=int(flops), transcendentals=0,
                                      bytes_accessed=int(bytes_accessed)),
    )(*args)

    pos = 1
    short_out = None
    if has_short:
        short_out = outs[pos]
        pos += 1
    stats = (outs[pos], outs[pos + 1]) if want_stats else None
    return outs[0], short_out, stats


# ---------------------------------------------------------------------------
# BasicBlock / NetworkBlock forward (NHWC, channel-padded to 128 lanes)
# ---------------------------------------------------------------------------

def prepare_block_params(p, cin):
    """Kernel-ready params: NHWC weight layout, channels zero-padded to 128,
    conv weights stored as bf16 (halves weight DMA; MXU runs bf16 x bf16 -> f32)."""
    cout = p["w_conv1"].shape[0]
    cpin = _round_up(cin, LANE)
    cpout = _round_up(cout, LANE)
    q = {"stride": p["stride"], "equal_in_out": cin == cout}
    # gamma/beta zero-padded -> padded channels have scale=shift=0 and stay exactly 0.
    q["bn1_gamma"] = _pad_axis(p["bn1_gamma"].reshape(1, -1), cpin, 1)
    q["bn1_beta"] = _pad_axis(p["bn1_beta"].reshape(1, -1), cpin, 1)
    q["bn2_gamma"] = _pad_axis(p["bn2_gamma"].reshape(1, -1), cpout, 1)
    q["bn2_beta"] = _pad_axis(p["bn2_beta"].reshape(1, -1), cpout, 1)
    w1 = jnp.transpose(p["w_conv1"], (2, 3, 1, 0))          # (3,3,Cin,Cout)
    q["w1"] = _pad_axis(_pad_axis(w1, cpin, 2), cpout, 3).astype(jnp.bfloat16)
    w2 = jnp.transpose(p["w_conv2"], (2, 3, 1, 0))
    q["w2"] = _pad_axis(_pad_axis(w2, cpout, 2), cpout, 3).astype(jnp.bfloat16)
    if "w_short" in p:
        ws = p["w_short"][:, :, 0, 0].T                      # (Cin, Cout)
        q["w_short"] = _pad_axis(_pad_axis(ws, cpin, 0), cpout, 1).astype(jnp.bfloat16)
    return q


def network_block_forward(x_nchw, params):
    x = jnp.transpose(x_nchw, (0, 2, 3, 1)).astype(jnp.float32)   # NCHW -> NHWC
    cin = x.shape[-1]
    x = _pad_axis(x, _round_up(cin, LANE), 3)
    n = x.shape[0]

    qs = []
    for p in params:
        qs.append(prepare_block_params(p, cin))
        cin = p["w_conv1"].shape[0]

    # Only the very first bn1 needs a standalone statistics pass over HBM; every
    # later BN's stats come fused out of the conv that produced its input.
    scale, shift = bn_scale_shift(x, qs[0]["bn1_gamma"], qs[0]["bn1_beta"])

    for idx, q in enumerate(qs):
        stride = q["stride"]
        if q["equal_in_out"]:
            h, _, st1 = fused_conv3x3(x, scale, shift, q["w1"], stride=stride,
                                      want_stats=True)
            res = x                                           # identity shortcut
        else:
            h, res, st1 = fused_conv3x3(x, scale, shift, q["w1"], stride=stride,
                                        w_short=q["w_short"], want_stats=True)
        count1 = n * h.shape[1] * h.shape[2]
        scale2, shift2 = _finalize_scale_shift(st1[0], st1[1],
                                               q["bn2_gamma"], q["bn2_beta"], count1)

        last = idx == len(qs) - 1
        # dropout(p=0.0) between relu(bn2) and conv2 is the identity.
        out, _, st_next = fused_conv3x3(h, scale2, shift2, q["w2"], stride=1,
                                        residual=res, want_stats=not last)
        if not last:
            nq = qs[idx + 1]
            count2 = n * out.shape[1] * out.shape[2]
            scale, shift = _finalize_scale_shift(st_next[0], st_next[1],
                                                 nq["bn1_gamma"], nq["bn1_beta"],
                                                 count2)
        x = out

    cout = params[-1]["w_conv1"].shape[0]
    return jnp.transpose(x[..., :cout], (0, 3, 1, 2))              # NHWC -> NCHW


# ---------------------------------------------------------------------------
# Deterministic parameter initialization (shapes from the module __init__)
# ---------------------------------------------------------------------------

def _bf16_round(x):
    # Round weights to bf16-representable f32 values so the kernel's bf16 weight
    # cast is exact and the f32 reference consumes identical weight values.
    return x.astype(jnp.bfloat16).astype(jnp.float32)


def init_network_block(key, nb_layers, in_planes, out_planes, stride):
    params = []
    for i in range(nb_layers):
        ip = in_planes if i == 0 else out_planes
        s = stride if i == 0 else 1
        key, k1, k2, k3 = jax.random.split(key, 4)
        n = 3 * 3 * out_planes
        p = dict(
            bn1_gamma=jnp.ones((ip,), jnp.float32),
            bn1_beta=jnp.zeros((ip,), jnp.float32),
            w_conv1=_bf16_round(jax.random.normal(k1, (out_planes, ip, 3, 3), jnp.float32)
                                * math.sqrt(2.0 / n)),
            bn2_gamma=jnp.ones((out_planes,), jnp.float32),
            bn2_beta=jnp.zeros((out_planes,), jnp.float32),
            w_conv2=_bf16_round(jax.random.normal(k2, (out_planes, out_planes, 3, 3),
                                                  jnp.float32) * math.sqrt(2.0 / n)),
            stride=s,
        )
        if ip != out_planes:
            p["w_short"] = _bf16_round(
                jax.random.normal(k3, (out_planes, ip, 1, 1), jnp.float32)
                * math.sqrt(2.0 / out_planes))
        params.append(p)
    return params


# ---------------------------------------------------------------------------
# Pure-JAX reference (correctness check, f32 HIGHEST precision)
# ---------------------------------------------------------------------------

def _ref_bn_relu(x, g, b):
    mean = x.mean(axis=(0, 1, 2), keepdims=True)
    var = x.var(axis=(0, 1, 2), keepdims=True)    # biased, as in BN training normalization
    return jnp.maximum((x - mean) / jnp.sqrt(var + 1e-5) * g + b, 0.0)


def _ref_conv(x_nhwc, w_oihw, stride):
    kh, kw = w_oihw.shape[2], w_oihw.shape[3]
    return jax.lax.conv_general_dilated(
        x_nhwc, jnp.transpose(w_oihw, (2, 3, 1, 0)),
        window_strides=(stride, stride),
        padding=((kh // 2, kh // 2), (kw // 2, kw // 2)),
        dimension_numbers=("NHWC", "HWIO", "NHWC"),
        precision=jax.lax.Precision.HIGHEST)


def network_block_ref(x_nchw, params):
    x = jnp.transpose(x_nchw, (0, 2, 3, 1))
    for p in params:
        cin, cout = x.shape[-1], p["w_conv1"].shape[0]
        o = _ref_bn_relu(x, p["bn1_gamma"], p["bn1_beta"])
        h = _ref_conv(o, p["w_conv1"], p["stride"])
        h = _ref_bn_relu(h, p["bn2_gamma"], p["bn2_beta"])
        res = x if cin == cout else _ref_conv(o, p["w_short"], p["stride"])
        x = _ref_conv(h, p["w_conv2"], 1) + res
    return jnp.transpose(x, (0, 3, 1, 2))


# ---------------------------------------------------------------------------

if __name__ == "__main__":
    # NetworkBlock(nb_layers=2, in_planes=4, out_planes=8, block=BasicBlock, stride=2, dropRate=0.0)
    nb_layers, in_planes, out_planes, stride = 2, 4, 8, 2

    key = jax.random.PRNGKey(0)
    x_nchw = jax.random.normal(key, (2, in_planes, 16, 16), jnp.float32)
    params = init_network_block(jax.random.PRNGKey(1), nb_layers, in_planes, out_planes, stride)

    fwd = jax.jit(lambda xx: network_block_forward(xx, params))
    out = jax.block_until_ready(fwd(x_nchw))
    assert out.shape == (2, out_planes, 8, 8), out.shape

    ref = jax.block_until_ready(network_block_ref(x_nchw, params))
    # Tolerance sized for bf16 MXU inputs vs. the f32 HIGHEST-precision reference:
    # weights are bf16-representable, so the remaining gap is activation rounding
    # (~0.1% per conv) compounded over two stacked pre-activation blocks.
    np.testing.assert_allclose(np.asarray(out), np.asarray(ref), rtol=5e-2, atol=4e-2)

    print("KERNEL_OK")
</pallas_src>

<mosaic_0001>
module attributes {stable_mosaic.version = 11 : i64} {
  func.func @_bn_stats_kernel(%arg0: i32, %arg1: memref<1x16x16x128xf32, #tpu.memory_space<vmem>>, %arg2: memref<1x128xf32, #tpu.memory_space<vmem>>, %arg3: memref<1x128xf32, #tpu.memory_space<vmem>>, %arg4: memref<1x128xf32, #tpu.memory_space<vmem>>, %arg5: memref<1x128xf32, #tpu.memory_space<vmem>>, %arg6: memref<1x128xf32, #tpu.memory_space<vmem>>, %arg7: memref<1x128xf32, #tpu.memory_space<vmem>>) attributes {dimension_semantics = [#tpu.dimension_semantics<arbitrary>], iteration_bounds = array<i64: 2>, scalar_prefetch = 0 : i64, scratch_operands = 2 : i64, tpu.core_type = #tpu.core_type<tc>, window_params = [{transform_indices = @transform_0, window_bounds = array<i64: 1, 16, 16, 128>}, {pipeline_mode = #tpu.pipeline_mode<synchronous>, transform_indices = @transform_1, window_bounds = array<i64: 1, 128>}, {pipeline_mode = #tpu.pipeline_mode<synchronous>, transform_indices = @transform_2, window_bounds = array<i64: 1, 128>}, {pipeline_mode = #tpu.pipeline_mode<synchronous>, transform_indices = @transform_3, window_bounds = array<i64: 1, 128>}, {pipeline_mode = #tpu.pipeline_mode<synchronous>, transform_indices = @transform_4, window_bounds = array<i64: 1, 128>}]} {
    %c0_i32 = arith.constant 0 : i32
    %0 = arith.cmpi eq, %arg0, %c0_i32 : i32
    %1 = arith.extui %0 : i1 to i32
    %c0_i32_0 = arith.constant 0 : i32
    %2 = arith.cmpi ne, %1, %c0_i32_0 : i32
    scf.if %2 {
      %cst_14 = arith.constant 0.000000e+00 : f32
      %20 = vector.broadcast %cst_14 : f32 to vector<1x128xf32>
      %c0_15 = arith.constant 0 : index
      %c0_16 = arith.constant 0 : index
      %21 = vector.load %arg6[%c0_15, %c0_16] : memref<1x128xf32, #tpu.memory_space<vmem>>, vector<1x128xf32>
      tpu.vector_store %arg6[%c0_15, %c0_16], %20 {strides = array<i32>} : memref<1x128xf32, #tpu.memory_space<vmem>>, vector<1x128xf32>,
      %cst_17 = arith.constant 0.000000e+00 : f32
      %22 = vector.broadcast %cst_17 : f32 to vector<1x128xf32>
      %c0_18 = arith.constant 0 : index
      %c0_19 = arith.constant 0 : index
      %23 = vector.load %arg7[%c0_18, %c0_19] : memref<1x128xf32, #tpu.memory_space<vmem>>, vector<1x128xf32>
      tpu.vector_store %arg7[%c0_18, %c0_19], %22 {strides = array<i32>} : memref<1x128xf32, #tpu.memory_space<vmem>>, vector<1x128xf32>,
    } else {
    }
    %c0 = arith.constant 0 : index
    %c0_1 = arith.constant 0 : index
    %c0_2 = arith.constant 0 : index
    %c0_3 = arith.constant 0 : index
    %3 = vector.load %arg1[%c0, %c0_1, %c0_2, %c0_3] : memref<1x16x16x128xf32, #tpu.memory_space<vmem>>, vector<1x16x16x128xf32>
    %4 = vector.shape_cast %3 : vector<1x16x16x128xf32> to vector<16x16x128xf32>
    %5 = vector.shape_cast %4 : vector<16x16x128xf32> to vector<256x128xf32>
    %c0_4 = arith.constant 0 : index
    %c0_5 = arith.constant 0 : index
    %6 = vector.load %arg6[%c0_4, %c0_5] : memref<1x128xf32, #tpu.memory_space<vmem>>, vector<1x128xf32>
    %cst = arith.constant dense<0.000000e+00> : vector<128xf32>
    %7 = vector.multi_reduction <add>, %5, %cst [0] : vector<256x128xf32> to vector<128xf32>
    %8 = vector.shape_cast %7 : vector<128xf32> to vector<1x128xf32>
    %9 = arith.addf %6, %8 : vector<1x128xf32>
    %c0_6 = arith.constant 0 : index
    %c0_7 = arith.constant 0 : index
    %10 = vector.load %arg6[%c0_6, %c0_7] : memref<1x128xf32, #tpu.memory_space<vmem>>, vector<1x128xf32>
    tpu.vector_store %arg6[%c0_6, %c0_7], %9 {strides = array<i32>} : memref<1x128xf32, #tpu.memory_space<vmem>>, vector<1x128xf32>,
    %c0_8 = arith.constant 0 : index
    %c0_9 = arith.constant 0 : index
    %11 = vector.load %arg7[%c0_8, %c0_9] : memref<1x128xf32, #tpu.memory_space<vmem>>, vector<1x128xf32>
    %12 = arith.mulf %5, %5 : vector<256x128xf32>
    %cst_10 = arith.constant dense<0.000000e+00> : vector<128xf32>
    %13 = vector.multi_reduction <add>, %12, %cst_10 [0] : vector<256x128xf32> to vector<128xf32>
    %14 = vector.shape_cast %13 : vector<128xf32> to vector<1x128xf32>
    %15 = arith.addf %11, %14 : vector<1x128xf32>
    %c0_11 = arith.constant 0 : index
    %c0_12 = arith.constant 0 : index
    %16 = vector.load %arg7[%c0_11, %c0_12] : memref<1x128xf32, #tpu.memory_space<vmem>>, vector<1x128xf32>
    tpu.vector_store %arg7[%c0_11, %c0_12], %15 {strides = array<i32>} : memref<1x128xf32, #tpu.memory_space<vmem>>, vector<1x128xf32>,
    %c1_i32 = arith.constant 1 : i32
    %17 = arith.cmpi eq, %arg0, %c1_i32 : i32
    %18 = arith.extui %17 : i1 to i32
    %c0_i32_13 = arith.constant 0 : i32
    %19 = arith.cmpi ne, %18, %c0_i32_13 : i32
    scf.if %19 {
      %c0_14 = arith.constant 0 : index
      %c0_15 = arith.constant 0 : index
      %20 = vector.load %arg6[%c0_14, %c0_15] : memref<1x128xf32, #tpu.memory_space<vmem>>, vector<1x128xf32>
      %cst_16 = arith.constant 0.001953125 : f32
      %21 = vector.broadcast %cst_16 : f32 to vector<1x128xf32>
      %22 = arith.mulf %20, %21 : vector<1x128xf32>
      %c0_17 = arith.constant 0 : index
      %c0_18 = arith.constant 0 : index
      %23 = vector.load %arg7[%c0_17, %c0_18] : memref<1x128xf32, #tpu.memory_space<vmem>>, vector<1x128xf32>
      %cst_19 = arith.constant 0.001953125 : f32
      %24 = vector.broadcast %cst_19 : f32 to vector<1x128xf32>
      %25 = arith.mulf %23, %24 : vector<1x128xf32>
      %26 = arith.mulf %22, %22 : vector<1x128xf32>
      %27 = arith.subf %25, %26 : vector<1x128xf32>
      %cst_20 = arith.constant 0.000000e+00 : f32
      %28 = vector.broadcast %cst_20 : f32 to vector<1x128xf32>
      %29 = arith.maximumf %27, %28 : vector<1x128xf32>
      %cst_21 = arith.constant 9.99999974E-6 : f32
      %30 = vector.broadcast %cst_21 : f32 to vector<1x128xf32>
      %31 = arith.addf %29, %30 : vector<1x128xf32>
      %32 = math.rsqrt %31 : vector<1x128xf32>
      %c0_22 = arith.constant 0 : index
      %c0_23 = arith.constant 0 : index
      %33 = vector.load %arg2[%c0_22, %c0_23] : memref<1x128xf32, #tpu.memory_space<vmem>>, vector<1x128xf32>
      %34 = arith.mulf %33, %32 : vector<1x128xf32>
      %c0_24 = arith.constant 0 : index
      %c0_25 = arith.constant 0 : index
      %35 = vector.load %arg4[%c0_24, %c0_25] : memref<1x128xf32, #tpu.memory_space<vmem>>, vector<1x128xf32>
      tpu.vector_store %arg4[%c0_24, %c0_25], %34 {strides = array<i32>} : memref<1x128xf32, #tpu.memory_space<vmem>>, vector<1x128xf32>,
      %c0_26 = arith.constant 0 : index
      %c0_27 = arith.constant 0 : index
      %36 = vector.load %arg3[%c0_26, %c0_27] : memref<1x128xf32, #tpu.memory_space<vmem>>, vector<1x128xf32>
      %37 = arith.mulf %22, %34 : vector<1x128xf32>
      %38 = arith.subf %36, %37 : vector<1x128xf32>
      %c0_28 = arith.constant 0 : index
      %c0_29 = arith.constant 0 : index
      %39 = vector.load %arg5[%c0_28, %c0_29] : memref<1x128xf32, #tpu.memory_space<vmem>>, vector<1x128xf32>
      tpu.vector_store %arg5[%c0_28, %c0_29], %38 {strides = array<i32>} : memref<1x128xf32, #tpu.memory_space<vmem>>, vector<1x128xf32>,
    } else {
    }
    return
  }
  func.func @transform_0(%arg0: i32) -> (i32, i32, i32, i32) {
    %c0_i32 = arith.constant 0 : i32
    %c0_i32_0 = arith.constant 0 : i32
    %c0_i32_1 = arith.constant 0 : i32
    %c0_i32_2 = arith.constant 0 : i32
    return %arg0, %c0_i32, %c0_i32_0, %c0_i32_1 : i32, i32, i32, i32
  }
  func.func @transform_1(%arg0: i32) -> (i32, i32) {
    %c0_i32 = arith.constant 0 : i32
    %c0_i32_0 = arith.constant 0 : i32
    %c0_i32_1 = arith.constant 0 : i32
    return %c0_i32, %c0_i32_0 : i32, i32
  }
  func.func @transform_2(%arg0: i32) -> (i32, i32) {
    %c0_i32 = arith.constant 0 : i32
    %c0_i32_0 = arith.constant 0 : i32
    %c0_i32_1 = arith.constant 0 : i32
    return %c0_i32, %c0_i32_0 : i32, i32
  }
  func.func @transform_3(%arg0: i32) -> (i32, i32) {
    %c0_i32 = arith.constant 0 : i32
    %c0_i32_0 = arith.constant 0 : i32
    %c0_i32_1 = arith.constant 0 : i32
    return %c0_i32, %c0_i32_0 : i32, i32
  }
  func.func @transform_4(%arg0: i32) -> (i32, i32) {
    %c0_i32 = arith.constant 0 : i32
    %c0_i32_0 = arith.constant 0 : i32
    %c0_i32_1 = arith.constant 0 : i32
    return %c0_i32, %c0_i32_0 : i32, i32
  }
}

module attributes {stable_mosaic.version = 11 : i64} {
  func.func @_fused_conv_kernel(%arg0: i32, %arg1: i32, %arg2: memref<2x16x16x128xf32, #tpu.memory_space<vmem>>, %arg3: memref<1x128xf32, #tpu.memory_space<vmem>>, %arg4: memref<1x128xf32, #tpu.memory_space<vmem>>, %arg5: memref<3x3x128x128xbf16, #tpu.memory_space<vmem>>, %arg6: memref<128x128xbf16, #tpu.memory_space<vmem>>, %arg7: memref<2x8x8x128xf32, #tpu.memory_space<vmem>>, %arg8: memref<2x8x8x128xf32, #tpu.memory_space<vmem>>, %arg9: memref<1x1x1x128xf32, #tpu.memory_space<vmem>>, %arg10: memref<1x1x1x128xf32, #tpu.memory_space<vmem>>, %arg11: memref<2x18x18x128xf32, #tpu.memory_space<vmem>>) attributes {dimension_semantics = [#tpu.dimension_semantics<parallel>, #tpu.dimension_semantics<arbitrary>], iteration_bounds = array<i64: 1, 1>, scalar_prefetch = 0 : i64, scratch_operands = 1 : i64, tpu.core_type = #tpu.core_type<tc>, window_params = [{transform_indices = @transform_0, window_bounds = array<i64: 2, 16, 16, 128>}, {pipeline_mode = #tpu.pipeline_mode<synchronous>, transform_indices = @transform_1, window_bounds = array<i64: 1, 128>}, {pipeline_mode = #tpu.pipeline_mode<synchronous>, transform_indices = @transform_2, window_bounds = array<i64: 1, 128>}, {transform_indices = @transform_3, window_bounds = array<i64: 3, 3, 128, 128>}, {transform_indices = @transform_4, window_bounds = array<i64: 128, 128>}, {transform_indices = @transform_5, window_bounds = array<i64: 2, 8, 8, 128>}, {transform_indices = @transform_6, window_bounds = array<i64: 2, 8, 8, 128>}, {transform_indices = @transform_7, window_bounds = array<i64: 1, 1, 1, 128>}, {transform_indices = @transform_8, window_bounds = array<i64: 1, 1, 1, 128>}]} {
    %c0_i32 = arith.constant 0 : i32
    %0 = arith.cmpi eq, %arg1, %c0_i32 : i32
    %1 = arith.extui %0 : i1 to i32
    %c0_i32_0 = arith.constant 0 : i32
    %2 = arith.cmpi ne, %1, %c0_i32_0 : i32
    scf.if %2 {
      %cst_100 = arith.constant 0.000000e+00 : f32
      %82 = vector.broadcast %cst_100 : f32 to vector<2x1x18x128xf32>
      %cst_101 = arith.constant 0.000000e+00 : f32
      %83 = vector.broadcast %cst_101 : f32 to vector<2x18x1x128xf32>
      %c0_102 = arith.constant 0 : index
      %c0_103 = arith.constant 0 : index
      %c0_104 = arith.constant 0 : index
      %c0_105 = arith.constant 0 : index
      %84 = vector.load %arg11[%c0_102, %c0_103, %c0_104, %c0_105] : memref<2x18x18x128xf32, #tpu.memory_space<vmem>>, vector<2x1x18x128xf32>
      tpu.vector_store %arg11[%c0_102, %c0_103, %c0_104, %c0_105], %82 {strides = array<i32>} : memref<2x18x18x128xf32, #tpu.memory_space<vmem>>, vector<2x1x18x128xf32>,
      %c0_106 = arith.constant 0 : index
      %c17 = arith.constant 17 : index
      %c0_107 = arith.constant 0 : index
      %c0_108 = arith.constant 0 : index
      %85 = vector.load %arg11[%c0_106, %c17, %c0_107, %c0_108] : memref<2x18x18x128xf32, #tpu.memory_space<vmem>>, vector<2x1x18x128xf32>
      tpu.vector_store %arg11[%c0_106, %c17, %c0_107, %c0_108], %82 {strides = array<i32>} : memref<2x18x18x128xf32, #tpu.memory_space<vmem>>, vector<2x1x18x128xf32>,
      %c0_109 = arith.constant 0 : index
      %c0_110 = arith.constant 0 : index
      %c0_111 = arith.constant 0 : index
      %c0_112 = arith.constant 0 : index
      %86 = vector.load %arg11[%c0_109, %c0_110, %c0_111, %c0_112] : memref<2x18x18x128xf32, #tpu.memory_space<vmem>>, vector<2x18x1x128xf32>
      tpu.vector_store %arg11[%c0_109, %c0_110, %c0_111, %c0_112], %83 {strides = array<i32>} : memref<2x18x18x128xf32, #tpu.memory_space<vmem>>, vector<2x18x1x128xf32>,
      %c0_113 = arith.constant 0 : index
      %c0_114 = arith.constant 0 : index
      %c17_115 = arith.constant 17 : index
      %c0_116 = arith.constant 0 : index
      %87 = vector.load %arg11[%c0_113, %c0_114, %c17_115, %c0_116] : memref<2x18x18x128xf32, #tpu.memory_space<vmem>>, vector<2x18x1x128xf32>
      tpu.vector_store %arg11[%c0_113, %c0_114, %c17_115, %c0_116], %83 {strides = array<i32>} : memref<2x18x18x128xf32, #tpu.memory_space<vmem>>, vector<2x18x1x128xf32>,
      %c0_117 = arith.constant 0 : index
      %c0_118 = arith.constant 0 : index
      %c0_119 = arith.constant 0 : index
      %c0_120 = arith.constant 0 : index
      %88 = vector.load %arg2[%c0_117, %c0_118, %c0_119, %c0_120] : memref<2x16x16x128xf32, #tpu.memory_space<vmem>>, vector<2x16x16x128xf32>
      %c0_121 = arith.constant 0 : index
      %c0_122 = arith.constant 0 : index
      %89 = vector.load %arg3[%c0_121, %c0_122] : memref<1x128xf32, #tpu.memory_space<vmem>>, vector<1x128xf32>
      %90 = vector.shape_cast %89 : vector<1x128xf32> to vector<1x1x1x128xf32>
      %c0_123 = arith.constant 0 : index
      %c0_124 = arith.constant 0 : index
      %91 = vector.load %arg4[%c0_123, %c0_124] : memref<1x128xf32, #tpu.memory_space<vmem>>, vector<1x128xf32>
      %92 = vector.shape_cast %91 : vector<1x128xf32> to vector<1x1x1x128xf32>
      %93 = vector.broadcast %90 : vector<1x1x1x128xf32> to vector<2x16x16x128xf32>
      %94 = arith.mulf %88, %93 : vector<2x16x16x128xf32>
      %95 = vector.broadcast %92 : vector<1x1x1x128xf32> to vector<2x16x16x128xf32>
      %96 = arith.addf %94, %95 : vector<2x16x16x128xf32>
      %cst_125 = arith.constant 0.000000e+00 : f32
      %97 = vector.broadcast %cst_125 : f32 to vector<2x16x16x128xf32>
      %98 = arith.maximumf %96, %97 : vector<2x16x16x128xf32>
      %c0_126 = arith.constant 0 : index
      %c1_127 = arith.constant 1 : index
      %c1_128 = arith.constant 1 : index
      %c0_129 = arith.constant 0 : index
      %99 = vector.load %arg11[%c0_126, %c1_127, %c1_128, %c0_129] : memref<2x18x18x128xf32, #tpu.memory_space<vmem>>, vector<2x16x16x128xf32>
      tpu.vector_store %arg11[%c0_126, %c1_127, %c1_128, %c0_129], %98 {strides = array<i32>} : memref<2x18x18x128xf32, #tpu.memory_space<vmem>>, vector<2x16x16x128xf32>,
    } else {
    }
    %cst = arith.constant 0.000000e+00 : f32
    %3 = vector.broadcast %cst : f32 to vector<128x128xf32>
    %c0 = arith.constant 0 : index
    %c0_1 = arith.constant 0 : index
    %c0_2 = arith.constant 0 : index
    %c0_3 = arith.constant 0 : index
    %4 = tpu.strided_load %arg11[%c0, %c0_1, %c0_2, %c0_3] {strides = array<i32: 1, 2, 2, 1>} : memref<2x18x18x128xf32, #tpu.memory_space<vmem>>, vector<2x8x8x128xf32>
    %5 = vector.shape_cast %4 : vector<2x8x8x128xf32> to vector<128x128xf32>
    %6 = arith.truncf %5 : vector<128x128xf32> to vector<128x128xbf16>
    %c0_4 = arith.constant 0 : index
    %c0_5 = arith.constant 0 : index
    %c0_6 = arith.constant 0 : index
    %c0_7 = arith.constant 0 : index
    %7 = vector.load %arg5[%c0_4, %c0_5, %c0_6, %c0_7] : memref<3x3x128x128xbf16, #tpu.memory_space<vmem>>, vector<1x1x128x128xbf16>
    %8 = vector.shape_cast %7 : vector<1x1x128x128xbf16> to vector<128x128xbf16>
    %cst_8 = arith.constant dense<0.000000e+00> : vector<128x128xf32>
    %9 = tpu.matmul %6, %8, %cst_8 {dimension_numbers = #tpu.dot_dimension_numbers<[1], [0], [0], [1], [0, 0, 1, 1], [], []>} : vector<128x128xbf16>, vector<128x128xbf16>, vector<128x128xf32> -> vector<128x128xf32>
    %10 = arith.addf %3, %9 : vector<128x128xf32>
    %c0_9 = arith.constant 0 : index
    %c0_10 = arith.constant 0 : index
    %c1 = arith.constant 1 : index
    %c0_11 = arith.constant 0 : index
    %11 = tpu.strided_load %arg11[%c0_9, %c0_10, %c1, %c0_11] {strides = array<i32: 1, 2, 2, 1>} : memref<2x18x18x128xf32, #tpu.memory_space<vmem>>, vector<2x8x8x128xf32>
    %12 = vector.shape_cast %11 : vector<2x8x8x128xf32> to vector<128x128xf32>
    %13 = arith.truncf %12 : vector<128x128xf32> to vector<128x128xbf16>
    %c0_12 = arith.constant 0 : index
    %c1_13 = arith.constant 1 : index
    %c0_14 = arith.constant 0 : index
    %c0_15 = arith.constant 0 : index
    %14 = vector.load %arg5[%c0_12, %c1_13, %c0_14, %c0_15] : memref<3x3x128x128xbf16, #tpu.memory_space<vmem>>, vector<1x1x128x128xbf16>
    %15 = vector.shape_cast %14 : vector<1x1x128x128xbf16> to vector<128x128xbf16>
    %cst_16 = arith.constant dense<0.000000e+00> : vector<128x128xf32>
    %16 = tpu.matmul %13, %15, %cst_16 {dimension_numbers = #tpu.dot_dimension_numbers<[1], [0], [0], [1], [0, 0, 1, 1], [], []>} : vector<128x128xbf16>, vector<128x128xbf16>, vector<128x128xf32> -> vector<128x128xf32>
    %17 = arith.addf %10, %16 : vector<128x128xf32>
    %c0_17 = arith.constant 0 : index
    %c0_18 = arith.constant 0 : index
    %c2 = arith.constant 2 : index
    %c0_19 = arith.constant 0 : index
    %18 = tpu.strided_load %arg11[%c0_17, %c0_18, %c2, %c0_19] {strides = array<i32: 1, 2, 2, 1>} : memref<2x18x18x128xf32, #tpu.memory_space<vmem>>, vector<2x8x8x128xf32>
    %19 = vector.shape_cast %18 : vector<2x8x8x128xf32> to vector<128x128xf32>
    %20 = arith.truncf %19 : vector<128x128xf32> to vector<128x128xbf16>
    %c0_20 = arith.constant 0 : index
    %c2_21 = arith.constant 2 : index
    %c0_22 = arith.constant 0 : index
    %c0_23 = arith.constant 0 : index
    %21 = vector.load %arg5[%c0_20, %c2_21, %c0_22, %c0_23] : memref<3x3x128x128xbf16, #tpu.memory_space<vmem>>, vector<1x1x128x128xbf16>
    %22 = vector.shape_cast %21 : vector<1x1x128x128xbf16> to vector<128x128xbf16>
    %cst_24 = arith.constant dense<0.000000e+00> : vector<128x128xf32>
    %23 = tpu.matmul %20, %22, %cst_24 {dimension_numbers = #tpu.dot_dimension_numbers<[1], [0], [0], [1], [0, 0, 1, 1], [], []>} : vector<128x128xbf16>, vector<128x128xbf16>, vector<128x128xf32> -> vector<128x128xf32>
    %24 = arith.addf %17, %23 : vector<128x128xf32>
    %c0_25 = arith.constant 0 : index
    %c1_26 = arith.constant 1 : index
    %c0_27 = arith.constant 0 : index
    %c0_28 = arith.constant 0 : index
    %25 = tpu.strided_load %arg11[%c0_25, %c1_26, %c0_27, %c0_28] {strides = array<i32: 1, 2, 2, 1>} : memref<2x18x18x128xf32, #tpu.memory_space<vmem>>, vector<2x8x8x128xf32>
    %26 = vector.shape_cast %25 : vector<2x8x8x128xf32> to vector<128x128xf32>
    %27 = arith.truncf %26 : vector<128x128xf32> to vector<128x128xbf16>
    %c1_29 = arith.constant 1 : index
    %c0_30 = arith.constant 0 : index
    %c0_31 = arith.constant 0 : index
    %c0_32 = arith.constant 0 : index
    %28 = vector.load %arg5[%c1_29, %c0_30, %c0_31, %c0_32] : memref<3x3x128x128xbf16, #tpu.memory_space<vmem>>, vector<1x1x128x128xbf16>
    %29 = vector.shape_cast %28 : vector<1x1x128x128xbf16> to vector<128x128xbf16>
    %cst_33 = arith.constant dense<0.000000e+00> : vector<128x128xf32>
    %30 = tpu.matmul %27, %29, %cst_33 {dimension_numbers = #tpu.dot_dimension_numbers<[1], [0], [0], [1], [0, 0, 1, 1], [], []>} : vector<128x128xbf16>, vector<128x128xbf16>, vector<128x128xf32> -> vector<128x128xf32>
    %31 = arith.addf %24, %30 : vector<128x128xf32>
    %c0_34 = arith.constant 0 : index
    %c1_35 = arith.constant 1 : index
    %c1_36 = arith.constant 1 : index
    %c0_37 = arith.constant 0 : index
    %32 = tpu.strided_load %arg11[%c0_34, %c1_35, %c1_36, %c0_37] {strides = array<i32: 1, 2, 2, 1>} : memref<2x18x18x128xf32, #tpu.memory_space<vmem>>, vector<2x8x8x128xf32>
    %33 = vector.shape_cast %32 : vector<2x8x8x128xf32> to vector<128x128xf32>
    %34 = arith.truncf %33 : vector<128x128xf32> to vector<128x128xbf16>
    %c1_38 = arith.constant 1 : index
    %c1_39 = arith.constant 1 : index
    %c0_40 = arith.constant 0 : index
    %c0_41 = arith.constant 0 : index
    %35 = vector.load %arg5[%c1_38, %c1_39, %c0_40, %c0_41] : memref<3x3x128x128xbf16, #tpu.memory_space<vmem>>, vector<1x1x128x128xbf16>
    %36 = vector.shape_cast %35 : vector<1x1x128x128xbf16> to vector<128x128xbf16>
    %cst_42 = arith.constant dense<0.000000e+00> : vector<128x128xf32>
    %37 = tpu.matmul %34, %36, %cst_42 {dimension_numbers = #tpu.dot_dimension_numbers<[1], [0], [0], [1], [0, 0, 1, 1], [], []>} : vector<128x128xbf16>, vector<128x128xbf16>, vector<128x128xf32> -> vector<128x128xf32>
    %38 = arith.addf %31, %37 : vector<128x128xf32>
    %c0_43 = arith.constant 0 : index
    %c1_44 = arith.constant 1 : index
    %c2_45 = arith.constant 2 : index
    %c0_46 = arith.constant 0 : index
    %39 = tpu.strided_load %arg11[%c0_43, %c1_44, %c2_45, %c0_46] {strides = array<i32: 1, 2, 2, 1>} : memref<2x18x18x128xf32, #tpu.memory_space<vmem>>, vector<2x8x8x128xf32>
    %40 = vector.shape_cast %39 : vector<2x8x8x128xf32> to vector<128x128xf32>
    %41 = arith.truncf %40 : vector<128x128xf32> to vector<128x128xbf16>
    %c1_47 = arith.constant 1 : index
    %c2_48 = arith.constant 2 : index
    %c0_49 = arith.constant 0 : index
    %c0_50 = arith.constant 0 : index
    %42 = vector.load %arg5[%c1_47, %c2_48, %c0_49, %c0_50] : memref<3x3x128x128xbf16, #tpu.memory_space<vmem>>, vector<1x1x128x128xbf16>
    %43 = vector.shape_cast %42 : vector<1x1x128x128xbf16> to vector<128x128xbf16>
    %cst_51 = arith.constant dense<0.000000e+00> : vector<128x128xf32>
    %44 = tpu.matmul %41, %43, %cst_51 {dimension_numbers = #tpu.dot_dimension_numbers<[1], [0], [0], [1], [0, 0, 1, 1], [], []>} : vector<128x128xbf16>, vector<128x128xbf16>, vector<128x128xf32> -> vector<128x128xf32>
    %45 = arith.addf %38, %44 : vector<128x128xf32>
    %c0_52 = arith.constant 0 : index
    %c2_53 = arith.constant 2 : index
    %c0_54 = arith.constant 0 : index
    %c0_55 = arith.constant 0 : index
    %46 = tpu.strided_load %arg11[%c0_52, %c2_53, %c0_54, %c0_55] {strides = array<i32: 1, 2, 2, 1>} : memref<2x18x18x128xf32, #tpu.memory_space<vmem>>, vector<2x8x8x128xf32>
    %47 = vector.shape_cast %46 : vector<2x8x8x128xf32> to vector<128x128xf32>
    %48 = arith.truncf %47 : vector<128x128xf32> to vector<128x128xbf16>
    %c2_56 = arith.constant 2 : index
    %c0_57 = arith.constant 0 : index
    %c0_58 = arith.constant 0 : index
    %c0_59 = arith.constant 0 : index
    %49 = vector.load %arg5[%c2_56, %c0_57, %c0_58, %c0_59] : memref<3x3x128x128xbf16, #tpu.memory_space<vmem>>, vector<1x1x128x128xbf16>
    %50 = vector.shape_cast %49 : vector<1x1x128x128xbf16> to vector<128x128xbf16>
    %cst_60 = arith.constant dense<0.000000e+00> : vector<128x128xf32>
    %51 = tpu.matmul %48, %50, %cst_60 {dimension_numbers = #tpu.dot_dimension_numbers<[1], [0], [0], [1], [0, 0, 1, 1], [], []>} : vector<128x128xbf16>, vector<128x128xbf16>, vector<128x128xf32> -> vector<128x128xf32>
    %52 = arith.addf %45, %51 : vector<128x128xf32>
    %c0_61 = arith.constant 0 : index
    %c2_62 = arith.constant 2 : index
    %c1_63 = arith.constant 1 : index
    %c0_64 = arith.constant 0 : index
    %53 = tpu.strided_load %arg11[%c0_61, %c2_62, %c1_63, %c0_64] {strides = array<i32: 1, 2, 2, 1>} : memref<2x18x18x128xf32, #tpu.memory_space<vmem>>, vector<2x8x8x128xf32>
    %54 = vector.shape_cast %53 : vector<2x8x8x128xf32> to vector<128x128xf32>
    %55 = arith.truncf %54 : vector<128x128xf32> to vector<128x128xbf16>
    %c2_65 = arith.constant 2 : index
    %c1_66 = arith.constant 1 : index
    %c0_67 = arith.constant 0 : index
    %c0_68 = arith.constant 0 : index
    %56 = vector.load %arg5[%c2_65, %c1_66, %c0_67, %c0_68] : memref<3x3x128x128xbf16, #tpu.memory_space<vmem>>, vector<1x1x128x128xbf16>
    %57 = vector.shape_cast %56 : vector<1x1x128x128xbf16> to vector<128x128xbf16>
    %cst_69 = arith.constant dense<0.000000e+00> : vector<128x128xf32>
    %58 = tpu.matmul %55, %57, %cst_69 {dimension_numbers = #tpu.dot_dimension_numbers<[1], [0], [0], [1], [0, 0, 1, 1], [], []>} : vector<128x128xbf16>, vector<128x128xbf16>, vector<128x128xf32> -> vector<128x128xf32>
    %59 = arith.addf %52, %58 : vector<128x128xf32>
    %c0_70 = arith.constant 0 : index
    %c2_71 = arith.constant 2 : index
    %c2_72 = arith.constant 2 : index
    %c0_73 = arith.constant 0 : index
    %60 = tpu.strided_load %arg11[%c0_70, %c2_71, %c2_72, %c0_73] {strides = array<i32: 1, 2, 2, 1>} : memref<2x18x18x128xf32, #tpu.memory_space<vmem>>, vector<2x8x8x128xf32>
    %61 = vector.shape_cast %60 : vector<2x8x8x128xf32> to vector<128x128xf32>
    %62 = arith.truncf %61 : vector<128x128xf32> to vector<128x128xbf16>
    %c2_74 = arith.constant 2 : index
    %c2_75 = arith.constant 2 : index
    %c0_76 = arith.constant 0 : index
    %c0_77 = arith.constant 0 : index
    %63 = vector.load %arg5[%c2_74, %c2_75, %c0_76, %c0_77] : memref<3x3x128x128xbf16, #tpu.memory_space<vmem>>, vector<1x1x128x128xbf16>
    %64 = vector.shape_cast %63 : vector<1x1x128x128xbf16> to vector<128x128xbf16>
    %cst_78 = arith.constant dense<0.000000e+00> : vector<128x128xf32>
    %65 = tpu.matmul %62, %64, %cst_78 {dimension_numbers = #tpu.dot_dimension_numbers<[1], [0], [0], [1], [0, 0, 1, 1], [], []>} : vector<128x128xbf16>, vector<128x128xbf16>, vector<128x128xf32> -> vector<128x128xf32>
    %66 = arith.addf %59, %65 : vector<128x128xf32>
    %67 = vector.shape_cast %66 : vector<128x128xf32> to vector<2x8x8x128xf32>
    %c0_79 = arith.constant 0 : index
    %c0_80 = arith.constant 0 : index
    %c0_81 = arith.constant 0 : index
    %c0_82 = arith.constant 0 : index
    %68 = vector.load %arg7[%c0_79, %c0_80, %c0_81, %c0_82] : memref<2x8x8x128xf32, #tpu.memory_space<vmem>>, vector<2x8x8x128xf32>
    tpu.vector_store %arg7[%c0_79, %c0_80, %c0_81, %c0_82], %67 {strides = array<i32>} : memref<2x8x8x128xf32, #tpu.memory_space<vmem>>, vector<2x8x8x128xf32>,
    %cst_83 = arith.constant dense<0.000000e+00> : vector<128xf32>
    %69 = vector.multi_reduction <add>, %66, %cst_83 [0] : vector<128x128xf32> to vector<128xf32>
    %70 = vector.shape_cast %69 : vector<128xf32> to vector<1x128xf32>
    %71 = vector.shape_cast %70 : vector<1x128xf32> to vector<1x1x1x128xf32>
    %c0_84 = arith.constant 0 : index
    %c0_85 = arith.constant 0 : index
    %c0_86 = arith.constant 0 : index
    %c0_87 = arith.constant 0 : index
    %72 = vector.load %arg9[%c0_84, %c0_85, %c0_86, %c0_87] : memref<1x1x1x128xf32, #tpu.memory_space<vmem>>, vector<1x1x1x128xf32>
    tpu.vector_store %arg9[%c0_84, %c0_85, %c0_86, %c0_87], %71 {strides = array<i32>} : memref<1x1x1x128xf32, #tpu.memory_space<vmem>>, vector<1x1x1x128xf32>,
    %73 = arith.mulf %66, %66 : vector<128x128xf32>
    %cst_88 = arith.constant dense<0.000000e+00> : vector<128xf32>
    %74 = vector.multi_reduction <add>, %73, %cst_88 [0] : vector<128x128xf32> to vector<128xf32>
    %75 = vector.shape_cast %74 : vector<128xf32> to vector<1x128xf32>
    %76 = vector.shape_cast %75 : vector<1x128xf32> to vector<1x1x1x128xf32>
    %c0_89 = arith.constant 0 : index
    %c0_90 = arith.constant 0 : index
    %c0_91 = arith.constant 0 : index
    %c0_92 = arith.constant 0 : index
    %77 = vector.load %arg10[%c0_89, %c0_90, %c0_91, %c0_92] : memref<1x1x1x128xf32, #tpu.memory_space<vmem>>, vector<1x1x1x128xf32>
    tpu.vector_store %arg10[%c0_89, %c0_90, %c0_91, %c0_92], %76 {strides = array<i32>} : memref<1x1x1x128xf32, #tpu.memory_space<vmem>>, vector<1x1x1x128xf32>,
    %c0_93 = arith.constant 0 : index
    %c0_94 = arith.constant 0 : index
    %78 = vector.load %arg6[%c0_93, %c0_94] : memref<128x128xbf16, #tpu.memory_space<vmem>>, vector<128x128xbf16>
    %cst_95 = arith.constant dense<0.000000e+00> : vector<128x128xf32>
    %79 = tpu.matmul %34, %78, %cst_95 {dimension_numbers = #tpu.dot_dimension_numbers<[1], [0], [0], [1], [0, 0, 1, 1], [], []>} : vector<128x128xbf16>, vector<128x128xbf16>, vector<128x128xf32> -> vector<128x128xf32>
    %80 = vector.shape_cast %79 : vector<128x128xf32> to vector<2x8x8x128xf32>
    %c0_96 = arith.constant 0 : index
    %c0_97 = arith.constant 0 : index
    %c0_98 = arith.constant 0 : index
    %c0_99 = arith.constant 0 : index
    %81 = vector.load %arg8[%c0_96, %c0_97, %c0_98, %c0_99] : memref<2x8x8x128xf32, #tpu.memory_space<vmem>>, vector<2x8x8x128xf32>
    tpu.vector_store %arg8[%c0_96, %c0_97, %c0_98, %c0_99], %80 {strides = array<i32>} : memref<2x8x8x128xf32, #tpu.memory_space<vmem>>, vector<2x8x8x128xf32>,
    return
  }
  func.func @transform_0(%arg0: i32, %arg1: i32) -> (i32, i32, i32, i32) {
    %c0_i32 = arith.constant 0 : i32
    %c0_i32_0 = arith.constant 0 : i32
    %c0_i32_1 = arith.constant 0 : i32
    %c0_i32_2 = arith.constant 0 : i32
    return %arg0, %c0_i32, %c0_i32_0, %c0_i32_1 : i32, i32, i32, i32
  }
  func.func @transform_1(%arg0: i32, %arg1: i32) -> (i32, i32) {
    %c0_i32 = arith.constant 0 : i32
    %c0_i32_0 = arith.constant 0 : i32
    %c0_i32_1 = arith.constant 0 : i32
    return %c0_i32, %c0_i32_0 : i32, i32
  }
  func.func @transform_2(%arg0: i32, %arg1: i32) -> (i32, i32) {
    %c0_i32 = arith.constant 0 : i32
    %c0_i32_0 = arith.constant 0 : i32
    %c0_i32_1 = arith.constant 0 : i32
    return %c0_i32, %c0_i32_0 : i32, i32
  }
  func.func @transform_3(%arg0: i32, %arg1: i32) -> (i32, i32, i32, i32) {
    %c0_i32 = arith.constant 0 : i32
    %c0_i32_0 = arith.constant 0 : i32
    %c0_i32_1 = arith.constant 0 : i32
    %c0_i32_2 = arith.constant 0 : i32
    return %c0_i32, %c0_i32_0, %c0_i32_1, %arg1 : i32, i32, i32, i32
  }
  func.func @transform_4(%arg0: i32, %arg1: i32) -> (i32, i32) {
    %c0_i32 = arith.constant 0 : i32
    %c0_i32_0 = arith.constant 0 : i32
    return %c0_i32, %arg1 : i32, i32
  }
  func.func @transform_5(%arg0: i32, %arg1: i32) -> (i32, i32, i32, i32) {
    %c0_i32 = arith.constant 0 : i32
    %c0_i32_0 = arith.constant 0 : i32
    %c0_i32_1 = arith.constant 0 : i32
    return %arg0, %c0_i32, %c0_i32_0, %arg1 : i32, i32, i32, i32
  }
  func.func @transform_6(%arg0: i32, %arg1: i32) -> (i32, i32, i32, i32) {
    %c0_i32 = arith.constant 0 : i32
    %c0_i32_0 = arith.constant 0 : i32
    %c0_i32_1 = arith.constant 0 : i32
    return %arg0, %c0_i32, %c0_i32_0, %arg1 : i32, i32, i32, i32
  }
  func.func @transform_7(%arg0: i32, %arg1: i32) -> (i32, i32, i32, i32) {
    %c0_i32 = arith.constant 0 : i32
    %c0_i32_0 = arith.constant 0 : i32
    %c0_i32_1 = arith.constant 0 : i32
    return %arg0, %arg1, %c0_i32, %c0_i32_0 : i32, i32, i32, i32
  }
  func.func @transform_8(%arg0: i32, %arg1: i32) -> (i32, i32, i32, i32) {
    %c0_i32 = arith.constant 0 : i32
    %c0_i32_0 = arith.constant 0 : i32
    %c0_i32_1 = arith.constant 0 : i32
    return %arg0, %arg1, %c0_i32, %c0_i32_0 : i32, i32, i32, i32
  }
}

module attributes {stable_mosaic.version = 11 : i64} {
  func.func @_fused_conv_kernel(%arg0: i32, %arg1: i32, %arg2: memref<2x8x8x128xf32, #tpu.memory_space<vmem>>, %arg3: memref<1x128xf32, #tpu.memory_space<vmem>>, %arg4: memref<1x128xf32, #tpu.memory_space<vmem>>, %arg5: memref<3x3x128x128xbf16, #tpu.memory_space<vmem>>, %arg6: memref<2x8x8x128xf32, #tpu.memory_space<vmem>>, %arg7: memref<2x8x8x128xf32, #tpu.memory_space<vmem>>, %arg8: memref<1x1x1x128xf32, #tpu.memory_space<vmem>>, %arg9: memref<1x1x1x128xf32, #tpu.memory_space<vmem>>, %arg10: memref<2x10x10x128xbf16, #tpu.memory_space<vmem>>) attributes {dimension_semantics = [#tpu.dimension_semantics<parallel>, #tpu.dimension_semantics<arbitrary>], iteration_bounds = array<i64: 1, 1>, scalar_prefetch = 0 : i64, scratch_operands = 1 : i64, tpu.core_type = #tpu.core_type<tc>, window_params = [{transform_indices = @transform_0, window_bounds = array<i64: 2, 8, 8, 128>}, {pipeline_mode = #tpu.pipeline_mode<synchronous>, transform_indices = @transform_1, window_bounds = array<i64: 1, 128>}, {pipeline_mode = #tpu.pipeline_mode<synchronous>, transform_indices = @transform_2, window_bounds = array<i64: 1, 128>}, {transform_indices = @transform_3, window_bounds = array<i64: 3, 3, 128, 128>}, {transform_indices = @transform_4, window_bounds = array<i64: 2, 8, 8, 128>}, {transform_indices = @transform_5, window_bounds = array<i64: 2, 8, 8, 128>}, {transform_indices = @transform_6, window_bounds = array<i64: 1, 1, 1, 128>}, {transform_indices = @transform_7, window_bounds = array<i64: 1, 1, 1, 128>}]} {
    %c0_i32 = arith.constant 0 : i32
    %0 = arith.cmpi eq, %arg1, %c0_i32 : i32
    %1 = arith.extui %0 : i1 to i32
    %c0_i32_0 = arith.constant 0 : i32
    %2 = arith.cmpi ne, %1, %c0_i32_0 : i32
    scf.if %2 {
      %cst_97 = arith.constant 0.000000e+00 : bf16
      %72 = vector.broadcast %cst_97 : bf16 to vector<2x1x10x128xbf16>
      %cst_98 = arith.constant 0.000000e+00 : bf16
      %73 = vector.broadcast %cst_98 : bf16 to vector<2x10x1x128xbf16>
      %c0_99 = arith.constant 0 : index
      %c0_100 = arith.constant 0 : index
      %c0_101 = arith.constant 0 : index
      %c0_102 = arith.constant 0 : index
      %74 = vector.load %arg10[%c0_99, %c0_100, %c0_101, %c0_102] : memref<2x10x10x128xbf16, #tpu.memory_space<vmem>>, vector<2x1x10x128xbf16>
      tpu.vector_store %arg10[%c0_99, %c0_100, %c0_101, %c0_102], %72 {strides = array<i32>} : memref<2x10x10x128xbf16, #tpu.memory_space<vmem>>, vector<2x1x10x128xbf16>,
      %c0_103 = arith.constant 0 : index
      %c9 = arith.constant 9 : index
      %c0_104 = arith.constant 0 : index
      %c0_105 = arith.constant 0 : index
      %75 = vector.load %arg10[%c0_103, %c9, %c0_104, %c0_105] : memref<2x10x10x128xbf16, #tpu.memory_space<vmem>>, vector<2x1x10x128xbf16>
      tpu.vector_store %arg10[%c0_103, %c9, %c0_104, %c0_105], %72 {strides = array<i32>} : memref<2x10x10x128xbf16, #tpu.memory_space<vmem>>, vector<2x1x10x128xbf16>,
      %c0_106 = arith.constant 0 : index
      %c0_107 = arith.constant 0 : index
      %c0_108 = arith.constant 0 : index
      %c0_109 = arith.constant 0 : index
      %76 = vector.load %arg10[%c0_106, %c0_107, %c0_108, %c0_109] : memref<2x10x10x128xbf16, #tpu.memory_space<vmem>>, vector<2x10x1x128xbf16>
      tpu.vector_store %arg10[%c0_106, %c0_107, %c0_108, %c0_109], %73 {strides = array<i32>} : memref<2x10x10x128xbf16, #tpu.memory_space<vmem>>, vector<2x10x1x128xbf16>,
      %c0_110 = arith.constant 0 : index
      %c0_111 = arith.constant 0 : index
      %c9_112 = arith.constant 9 : index
      %c0_113 = arith.constant 0 : index
      %77 = vector.load %arg10[%c0_110, %c0_111, %c9_112, %c0_113] : memref<2x10x10x128xbf16, #tpu.memory_space<vmem>>, vector<2x10x1x128xbf16>
      tpu.vector_store %arg10[%c0_110, %c0_111, %c9_112, %c0_113], %73 {strides = array<i32>} : memref<2x10x10x128xbf16, #tpu.memory_space<vmem>>, vector<2x10x1x128xbf16>,
      %c0_114 = arith.constant 0 : index
      %c0_115 = arith.constant 0 : index
      %c0_116 = arith.constant 0 : index
      %c0_117 = arith.constant 0 : index
      %78 = vector.load %arg2[%c0_114, %c0_115, %c0_116, %c0_117] : memref<2x8x8x128xf32, #tpu.memory_space<vmem>>, vector<2x8x8x128xf32>
      %c0_118 = arith.constant 0 : index
      %c0_119 = arith.constant 0 : index
      %79 = vector.load %arg3[%c0_118, %c0_119] : memref<1x128xf32, #tpu.memory_space<vmem>>, vector<1x128xf32>
      %80 = vector.shape_cast %79 : vector<1x128xf32> to vector<1x1x1x128xf32>
      %c0_120 = arith.constant 0 : index
      %c0_121 = arith.constant 0 : index
      %81 = vector.load %arg4[%c0_120, %c0_121] : memref<1x128xf32, #tpu.memory_space<vmem>>, vector<1x128xf32>
      %82 = vector.shape_cast %81 : vector<1x128xf32> to vector<1x1x1x128xf32>
      %83 = vector.broadcast %80 : vector<1x1x1x128xf32> to vector<2x8x8x128xf32>
      %84 = arith.mulf %78, %83 : vector<2x8x8x128xf32>
      %85 = vector.broadcast %82 : vector<1x1x1x128xf32> to vector<2x8x8x128xf32>
      %86 = arith.addf %84, %85 : vector<2x8x8x128xf32>
      %cst_122 = arith.constant 0.000000e+00 : f32
      %87 = vector.broadcast %cst_122 : f32 to vector<2x8x8x128xf32>
      %88 = arith.maximumf %86, %87 : vector<2x8x8x128xf32>
      %89 = arith.truncf %88 : vector<2x8x8x128xf32> to vector<2x8x8x128xbf16>
      %c0_123 = arith.constant 0 : index
      %c1_124 = arith.constant 1 : index
      %c1_125 = arith.constant 1 : index
      %c0_126 = arith.constant 0 : index
      %90 = vector.load %arg10[%c0_123, %c1_124, %c1_125, %c0_126] : memref<2x10x10x128xbf16, #tpu.memory_space<vmem>>, vector<2x8x8x128xbf16>
      tpu.vector_store %arg10[%c0_123, %c1_124, %c1_125, %c0_126], %89 {strides = array<i32>} : memref<2x10x10x128xbf16, #tpu.memory_space<vmem>>, vector<2x8x8x128xbf16>,
    } else {
    }
    %cst = arith.constant 0.000000e+00 : f32
    %3 = vector.broadcast %cst : f32 to vector<128x128xf32>
    %c0 = arith.constant 0 : index
    %c0_1 = arith.constant 0 : index
    %c0_2 = arith.constant 0 : index
    %c0_3 = arith.constant 0 : index
    %4 = vector.load %arg10[%c0, %c0_1, %c0_2, %c0_3] : memref<2x10x10x128xbf16, #tpu.memory_space<vmem>>, vector<2x8x8x128xbf16>
    %5 = vector.shape_cast %4 : vector<2x8x8x128xbf16> to vector<128x128xbf16>
    %c0_4 = arith.constant 0 : index
    %c0_5 = arith.constant 0 : index
    %c0_6 = arith.constant 0 : index
    %c0_7 = arith.constant 0 : index
    %6 = vector.load %arg5[%c0_4, %c0_5, %c0_6, %c0_7] : memref<3x3x128x128xbf16, #tpu.memory_space<vmem>>, vector<1x1x128x128xbf16>
    %7 = vector.shape_cast %6 : vector<1x1x128x128xbf16> to vector<128x128xbf16>
    %cst_8 = arith.constant dense<0.000000e+00> : vector<128x128xf32>
    %8 = tpu.matmul %5, %7, %cst_8 {dimension_numbers = #tpu.dot_dimension_numbers<[1], [0], [0], [1], [0, 0, 1, 1], [], []>} : vector<128x128xbf16>, vector<128x128xbf16>, vector<128x128xf32> -> vector<128x128xf32>
    %9 = arith.addf %3, %8 : vector<128x128xf32>
    %c0_9 = arith.constant 0 : index
    %c0_10 = arith.constant 0 : index
    %c1 = arith.constant 1 : index
    %c0_11 = arith.constant 0 : index
    %10 = vector.load %arg10[%c0_9, %c0_10, %c1, %c0_11] : memref<2x10x10x128xbf16, #tpu.memory_space<vmem>>, vector<2x8x8x128xbf16>
    %11 = vector.shape_cast %10 : vector<2x8x8x128xbf16> to vector<128x128xbf16>
    %c0_12 = arith.constant 0 : index
    %c1_13 = arith.constant 1 : index
    %c0_14 = arith.constant 0 : index
    %c0_15 = arith.constant 0 : index
    %12 = vector.load %arg5[%c0_12, %c1_13, %c0_14, %c0_15] : memref<3x3x128x128xbf16, #tpu.memory_space<vmem>>, vector<1x1x128x128xbf16>
    %13 = vector.shape_cast %12 : vector<1x1x128x128xbf16> to vector<128x128xbf16>
    %cst_16 = arith.constant dense<0.000000e+00> : vector<128x128xf32>
    %14 = tpu.matmul %11, %13, %cst_16 {dimension_numbers = #tpu.dot_dimension_numbers<[1], [0], [0], [1], [0, 0, 1, 1], [], []>} : vector<128x128xbf16>, vector<128x128xbf16>, vector<128x128xf32> -> vector<128x128xf32>
    %15 = arith.addf %9, %14 : vector<128x128xf32>
    %c0_17 = arith.constant 0 : index
    %c0_18 = arith.constant 0 : index
    %c2 = arith.constant 2 : index
    %c0_19 = arith.constant 0 : index
    %16 = vector.load %arg10[%c0_17, %c0_18, %c2, %c0_19] : memref<2x10x10x128xbf16, #tpu.memory_space<vmem>>, vector<2x8x8x128xbf16>
    %17 = vector.shape_cast %16 : vector<2x8x8x128xbf16> to vector<128x128xbf16>
    %c0_20 = arith.constant 0 : index
    %c2_21 = arith.constant 2 : index
    %c0_22 = arith.constant 0 : index
    %c0_23 = arith.constant 0 : index
    %18 = vector.load %arg5[%c0_20, %c2_21, %c0_22, %c0_23] : memref<3x3x128x128xbf16, #tpu.memory_space<vmem>>, vector<1x1x128x128xbf16>
    %19 = vector.shape_cast %18 : vector<1x1x128x128xbf16> to vector<128x128xbf16>
    %cst_24 = arith.constant dense<0.000000e+00> : vector<128x128xf32>
    %20 = tpu.matmul %17, %19, %cst_24 {dimension_numbers = #tpu.dot_dimension_numbers<[1], [0], [0], [1], [0, 0, 1, 1], [], []>} : vector<128x128xbf16>, vector<128x128xbf16>, vector<128x128xf32> -> vector<128x128xf32>
    %21 = arith.addf %15, %20 : vector<128x128xf32>
    %c0_25 = arith.constant 0 : index
    %c1_26 = arith.constant 1 : index
    %c0_27 = arith.constant 0 : index
    %c0_28 = arith.constant 0 : index
    %22 = vector.load %arg10[%c0_25, %c1_26, %c0_27, %c0_28] : memref<2x10x10x128xbf16, #tpu.memory_space<vmem>>, vector<2x8x8x128xbf16>
    %23 = vector.shape_cast %22 : vector<2x8x8x128xbf16> to vector<128x128xbf16>
    %c1_29 = arith.constant 1 : index
    %c0_30 = arith.constant 0 : index
    %c0_31 = arith.constant 0 : index
    %c0_32 = arith.constant 0 : index
    %24 = vector.load %arg5[%c1_29, %c0_30, %c0_31, %c0_32] : memref<3x3x128x128xbf16, #tpu.memory_space<vmem>>, vector<1x1x128x128xbf16>
    %25 = vector.shape_cast %24 : vector<1x1x128x128xbf16> to vector<128x128xbf16>
    %cst_33 = arith.constant dense<0.000000e+00> : vector<128x128xf32>
    %26 = tpu.matmul %23, %25, %cst_33 {dimension_numbers = #tpu.dot_dimension_numbers<[1], [0], [0], [1], [0, 0, 1, 1], [], []>} : vector<128x128xbf16>, vector<128x128xbf16>, vector<128x128xf32> -> vector<128x128xf32>
    %27 = arith.addf %21, %26 : vector<128x128xf32>
    %c0_34 = arith.constant 0 : index
    %c1_35 = arith.constant 1 : index
    %c1_36 = arith.constant 1 : index
    %c0_37 = arith.constant 0 : index
    %28 = vector.load %arg10[%c0_34, %c1_35, %c1_36, %c0_37] : memref<2x10x10x128xbf16, #tpu.memory_space<vmem>>, vector<2x8x8x128xbf16>
    %29 = vector.shape_cast %28 : vector<2x8x8x128xbf16> to vector<128x128xbf16>
    %c1_38 = arith.constant 1 : index
    %c1_39 = arith.constant 1 : index
    %c0_40 = arith.constant 0 : index
    %c0_41 = arith.constant 0 : index
    %30 = vector.load %arg5[%c1_38, %c1_39, %c0_40, %c0_41] : memref<3x3x128x128xbf16, #tpu.memory_space<vmem>>, vector<1x1x128x128xbf16>
    %31 = vector.shape_cast %30 : vector<1x1x128x128xbf16> to vector<128x128xbf16>
    %cst_42 = arith.constant dense<0.000000e+00> : vector<128x128xf32>
    %32 = tpu.matmul %29, %31, %cst_42 {dimension_numbers = #tpu.dot_dimension_numbers<[1], [0], [0], [1], [0, 0, 1, 1], [], []>} : vector<128x128xbf16>, vector<128x128xbf16>, vector<128x128xf32> -> vector<128x128xf32>
    %33 = arith.addf %27, %32 : vector<128x128xf32>
    %c0_43 = arith.constant 0 : index
    %c1_44 = arith.constant 1 : index
    %c2_45 = arith.constant 2 : index
    %c0_46 = arith.constant 0 : index
    %34 = vector.load %arg10[%c0_43, %c1_44, %c2_45, %c0_46] : memref<2x10x10x128xbf16, #tpu.memory_space<vmem>>, vector<2x8x8x128xbf16>
    %35 = vector.shape_cast %34 : vector<2x8x8x128xbf16> to vector<128x128xbf16>
    %c1_47 = arith.constant 1 : index
    %c2_48 = arith.constant 2 : index
    %c0_49 = arith.constant 0 : index
    %c0_50 = arith.constant 0 : index
    %36 = vector.load %arg5[%c1_47, %c2_48, %c0_49, %c0_50] : memref<3x3x128x128xbf16, #tpu.memory_space<vmem>>, vector<1x1x128x128xbf16>
    %37 = vector.shape_cast %36 : vector<1x1x128x128xbf16> to vector<128x128xbf16>
    %cst_51 = arith.constant dense<0.000000e+00> : vector<128x128xf32>
    %38 = tpu.matmul %35, %37, %cst_51 {dimension_numbers = #tpu.dot_dimension_numbers<[1], [0], [0], [1], [0, 0, 1, 1], [], []>} : vector<128x128xbf16>, vector<128x128xbf16>, vector<128x128xf32> -> vector<128x128xf32>
    %39 = arith.addf %33, %38 : vector<128x128xf32>
    %c0_52 = arith.constant 0 : index
    %c2_53 = arith.constant 2 : index
    %c0_54 = arith.constant 0 : index
    %c0_55 = arith.constant 0 : index
    %40 = vector.load %arg10[%c0_52, %c2_53, %c0_54, %c0_55] : memref<2x10x10x128xbf16, #tpu.memory_space<vmem>>, vector<2x8x8x128xbf16>
    %41 = vector.shape_cast %40 : vector<2x8x8x128xbf16> to vector<128x128xbf16>
    %c2_56 = arith.constant 2 : index
    %c0_57 = arith.constant 0 : index
    %c0_58 = arith.constant 0 : index
    %c0_59 = arith.constant 0 : index
    %42 = vector.load %arg5[%c2_56, %c0_57, %c0_58, %c0_59] : memref<3x3x128x128xbf16, #tpu.memory_space<vmem>>, vector<1x1x128x128xbf16>
    %43 = vector.shape_cast %42 : vector<1x1x128x128xbf16> to vector<128x128xbf16>
    %cst_60 = arith.constant dense<0.000000e+00> : vector<128x128xf32>
    %44 = tpu.matmul %41, %43, %cst_60 {dimension_numbers = #tpu.dot_dimension_numbers<[1], [0], [0], [1], [0, 0, 1, 1], [], []>} : vector<128x128xbf16>, vector<128x128xbf16>, vector<128x128xf32> -> vector<128x128xf32>
    %45 = arith.addf %39, %44 : vector<128x128xf32>
    %c0_61 = arith.constant 0 : index
    %c2_62 = arith.constant 2 : index
    %c1_63 = arith.constant 1 : index
    %c0_64 = arith.constant 0 : index
    %46 = vector.load %arg10[%c0_61, %c2_62, %c1_63, %c0_64] : memref<2x10x10x128xbf16, #tpu.memory_space<vmem>>, vector<2x8x8x128xbf16>
    %47 = vector.shape_cast %46 : vector<2x8x8x128xbf16> to vector<128x128xbf16>
    %c2_65 = arith.constant 2 : index
    %c1_66 = arith.constant 1 : index
    %c0_67 = arith.constant 0 : index
    %c0_68 = arith.constant 0 : index
    %48 = vector.load %arg5[%c2_65, %c1_66, %c0_67, %c0_68] : memref<3x3x128x128xbf16, #tpu.memory_space<vmem>>, vector<1x1x128x128xbf16>
    %49 = vector.shape_cast %48 : vector<1x1x128x128xbf16> to vector<128x128xbf16>
    %cst_69 = arith.constant dense<0.000000e+00> : vector<128x128xf32>
    %50 = tpu.matmul %47, %49, %cst_69 {dimension_numbers = #tpu.dot_dimension_numbers<[1], [0], [0], [1], [0, 0, 1, 1], [], []>} : vector<128x128xbf16>, vector<128x128xbf16>, vector<128x128xf32> -> vector<128x128xf32>
    %51 = arith.addf %45, %50 : vector<128x128xf32>
    %c0_70 = arith.constant 0 : index
    %c2_71 = arith.constant 2 : index
    %c2_72 = arith.constant 2 : index
    %c0_73 = arith.constant 0 : index
    %52 = vector.load %arg10[%c0_70, %c2_71, %c2_72, %c0_73] : memref<2x10x10x128xbf16, #tpu.memory_space<vmem>>, vector<2x8x8x128xbf16>
    %53 = vector.shape_cast %52 : vector<2x8x8x128xbf16> to vector<128x128xbf16>
    %c2_74 = arith.constant 2 : index
    %c2_75 = arith.constant 2 : index
    %c0_76 = arith.constant 0 : index
    %c0_77 = arith.constant 0 : index
    %54 = vector.load %arg5[%c2_74, %c2_75, %c0_76, %c0_77] : memref<3x3x128x128xbf16, #tpu.memory_space<vmem>>, vector<1x1x128x128xbf16>
    %55 = vector.shape_cast %54 : vector<1x1x128x128xbf16> to vector<128x128xbf16>
    %cst_78 = arith.constant dense<0.000000e+00> : vector<128x128xf32>
    %56 = tpu.matmul %53, %55, %cst_78 {dimension_numbers = #tpu.dot_dimension_numbers<[1], [0], [0], [1], [0, 0, 1, 1], [], []>} : vector<128x128xbf16>, vector<128x128xbf16>, vector<128x128xf32> -> vector<128x128xf32>
    %57 = arith.addf %51, %56 : vector<128x128xf32>
    %c0_79 = arith.constant 0 : index
    %c0_80 = arith.constant 0 : index
    %c0_81 = arith.constant 0 : index
    %c0_82 = arith.constant 0 : index
    %58 = vector.load %arg6[%c0_79, %c0_80, %c0_81, %c0_82] : memref<2x8x8x128xf32, #tpu.memory_space<vmem>>, vector<2x8x8x128xf32>
    %59 = vector.shape_cast %58 : vector<2x8x8x128xf32> to vector<128x128xf32>
    %60 = arith.addf %57, %59 : vector<128x128xf32>
    %61 = vector.shape_cast %60 : vector<128x128xf32> to vector<2x8x8x128xf32>
    %c0_83 = arith.constant 0 : index
    %c0_84 = arith.constant 0 : index
    %c0_85 = arith.constant 0 : index
    %c0_86 = arith.constant 0 : index
    %62 = vector.load %arg7[%c0_83, %c0_84, %c0_85, %c0_86] : memref<2x8x8x128xf32, #tpu.memory_space<vmem>>, vector<2x8x8x128xf32>
    tpu.vector_store %arg7[%c0_83, %c0_84, %c0_85, %c0_86], %61 {strides = array<i32>} : memref<2x8x8x128xf32, #tpu.memory_space<vmem>>, vector<2x8x8x128xf32>,
    %cst_87 = arith.constant dense<0.000000e+00> : vector<128xf32>
    %63 = vector.multi_reduction <add>, %60, %cst_87 [0] : vector<128x128xf32> to vector<128xf32>
    %64 = vector.shape_cast %63 : vector<128xf32> to vector<1x128xf32>
    %65 = vector.shape_cast %64 : vector<1x128xf32> to vector<1x1x1x128xf32>
    %c0_88 = arith.constant 0 : index
    %c0_89 = arith.constant 0 : index
    %c0_90 = arith.constant 0 : index
    %c0_91 = arith.constant 0 : index
    %66 = vector.load %arg8[%c0_88, %c0_89, %c0_90, %c0_91] : memref<1x1x1x128xf32, #tpu.memory_space<vmem>>, vector<1x1x1x128xf32>
    tpu.vector_store %arg8[%c0_88, %c0_89, %c0_90, %c0_91], %65 {strides = array<i32>} : memref<1x1x1x128xf32, #tpu.memory_space<vmem>>, vector<1x1x1x128xf32>,
    %67 = arith.mulf %60, %60 : vector<128x128xf32>
    %cst_92 = arith.constant dense<0.000000e+00> : vector<128xf32>
    %68 = vector.multi_reduction <add>, %67, %cst_92 [0] : vector<128x128xf32> to vector<128xf32>
    %69 = vector.shape_cast %68 : vector<128xf32> to vector<1x128xf32>
    %70 = vector.shape_cast %69 : vector<1x128xf32> to vector<1x1x1x128xf32>
    %c0_93 = arith.constant 0 : index
    %c0_94 = arith.constant 0 : index
    %c0_95 = arith.constant 0 : index
    %c0_96 = arith.constant 0 : index
    %71 = vector.load %arg9[%c0_93, %c0_94, %c0_95, %c0_96] : memref<1x1x1x128xf32, #tpu.memory_space<vmem>>, vector<1x1x1x128xf32>
    tpu.vector_store %arg9[%c0_93, %c0_94, %c0_95, %c0_96], %70 {strides = array<i32>} : memref<1x1x1x128xf32, #tpu.memory_space<vmem>>, vector<1x1x1x128xf32>,
    return
  }
  func.func @transform_0(%arg0: i32, %arg1: i32) -> (i32, i32, i32, i32) {
    %c0_i32 = arith.constant 0 : i32
    %c0_i32_0 = arith.constant 0 : i32
    %c0_i32_1 = arith.constant 0 : i32
    %c0_i32_2 = arith.constant 0 : i32
    return %arg0, %c0_i32, %c0_i32_0, %c0_i32_1 : i32, i32, i32, i32
  }
  func.func @transform_1(%arg0: i32, %arg1: i32) -> (i32, i32) {
    %c0_i32 = arith.constant 0 : i32
    %c0_i32_0 = arith.constant 0 : i32
    %c0_i32_1 = arith.constant 0 : i32
    return %c0_i32, %c0_i32_0 : i32, i32
  }
  func.func @transform_2(%arg0: i32, %arg1: i32) -> (i32, i32) {
    %c0_i32 = arith.constant 0 : i32
    %c0_i32_0 = arith.constant 0 : i32
    %c0_i32_1 = arith.constant 0 : i32
    return %c0_i32, %c0_i32_0 : i32, i32
  }
  func.func @transform_3(%arg0: i32, %arg1: i32) -> (i32, i32, i32, i32) {
    %c0_i32 = arith.constant 0 : i32
    %c0_i32_0 = arith.constant 0 : i32
    %c0_i32_1 = arith.constant 0 : i32
    %c0_i32_2 = arith.constant 0 : i32
    return %c0_i32, %c0_i32_0, %c0_i32_1, %arg1 : i32, i32, i32, i32
  }
  func.func @transform_4(%arg0: i32, %arg1: i32) -> (i32, i32, i32, i32) {
    %c0_i32 = arith.constant 0 : i32
    %c0_i32_0 = arith.constant 0 : i32
    %c0_i32_1 = arith.constant 0 : i32
    return %arg0, %c0_i32, %c0_i32_0, %arg1 : i32, i32, i32, i32
  }
  func.func @transform_5(%arg0: i32, %arg1: i32) -> (i32, i32, i32, i32) {
    %c0_i32 = arith.constant 0 : i32
    %c0_i32_0 = arith.constant 0 : i32
    %c0_i32_1 = arith.constant 0 : i32
    return %arg0, %c0_i32, %c0_i32_0, %arg1 : i32, i32, i32, i32
  }
  func.func @transform_6(%arg0: i32, %arg1: i32) -> (i32, i32, i32, i32) {
    %c0_i32 = arith.constant 0 : i32
    %c0_i32_0 = arith.constant 0 : i32
    %c0_i32_1 = arith.constant 0 : i32
    return %arg0, %arg1, %c0_i32, %c0_i32_0 : i32, i32, i32, i32
  }
  func.func @transform_7(%arg0: i32, %arg1: i32) -> (i32, i32, i32, i32) {
    %c0_i32 = arith.constant 0 : i32
    %c0_i32_0 = arith.constant 0 : i32
    %c0_i32_1 = arith.constant 0 : i32
    return %arg0, %arg1, %c0_i32, %c0_i32_0 : i32, i32, i32, i32
  }
}

module attributes {stable_mosaic.version = 11 : i64} {
  func.func @_fused_conv_kernel(%arg0: i32, %arg1: i32, %arg2: memref<2x8x8x128xf32, #tpu.memory_space<vmem>>, %arg3: memref<1x128xf32, #tpu.memory_space<vmem>>, %arg4: memref<1x128xf32, #tpu.memory_space<vmem>>, %arg5: memref<3x3x128x128xbf16, #tpu.memory_space<vmem>>, %arg6: memref<2x8x8x128xf32, #tpu.memory_space<vmem>>, %arg7: memref<1x1x1x128xf32, #tpu.memory_space<vmem>>, %arg8: memref<1x1x1x128xf32, #tpu.memory_space<vmem>>, %arg9: memref<2x10x10x128xbf16, #tpu.memory_space<vmem>>) attributes {dimension_semantics = [#tpu.dimension_semantics<parallel>, #tpu.dimension_semantics<arbitrary>], iteration_bounds = array<i64: 1, 1>, scalar_prefetch = 0 : i64, scratch_operands = 1 : i64, tpu.core_type = #tpu.core_type<tc>, window_params = [{transform_indices = @transform_0, window_bounds = array<i64: 2, 8, 8, 128>}, {pipeline_mode = #tpu.pipeline_mode<synchronous>, transform_indices = @transform_1, window_bounds = array<i64: 1, 128>}, {pipeline_mode = #tpu.pipeline_mode<synchronous>, transform_indices = @transform_2, window_bounds = array<i64: 1, 128>}, {transform_indices = @transform_3, window_bounds = array<i64: 3, 3, 128, 128>}, {transform_indices = @transform_4, window_bounds = array<i64: 2, 8, 8, 128>}, {transform_indices = @transform_5, window_bounds = array<i64: 1, 1, 1, 128>}, {transform_indices = @transform_6, window_bounds = array<i64: 1, 1, 1, 128>}]} {
    %c0_i32 = arith.constant 0 : i32
    %0 = arith.cmpi eq, %arg1, %c0_i32 : i32
    %1 = arith.extui %0 : i1 to i32
    %c0_i32_0 = arith.constant 0 : i32
    %2 = arith.cmpi ne, %1, %c0_i32_0 : i32
    scf.if %2 {
      %cst_93 = arith.constant 0.000000e+00 : bf16
      %69 = vector.broadcast %cst_93 : bf16 to vector<2x1x10x128xbf16>
      %cst_94 = arith.constant 0.000000e+00 : bf16
      %70 = vector.broadcast %cst_94 : bf16 to vector<2x10x1x128xbf16>
      %c0_95 = arith.constant 0 : index
      %c0_96 = arith.constant 0 : index
      %c0_97 = arith.constant 0 : index
      %c0_98 = arith.constant 0 : index
      %71 = vector.load %arg9[%c0_95, %c0_96, %c0_97, %c0_98] : memref<2x10x10x128xbf16, #tpu.memory_space<vmem>>, vector<2x1x10x128xbf16>
      tpu.vector_store %arg9[%c0_95, %c0_96, %c0_97, %c0_98], %69 {strides = array<i32>} : memref<2x10x10x128xbf16, #tpu.memory_space<vmem>>, vector<2x1x10x128xbf16>,
      %c0_99 = arith.constant 0 : index
      %c9 = arith.constant 9 : index
      %c0_100 = arith.constant 0 : index
      %c0_101 = arith.constant 0 : index
      %72 = vector.load %arg9[%c0_99, %c9, %c0_100, %c0_101] : memref<2x10x10x128xbf16, #tpu.memory_space<vmem>>, vector<2x1x10x128xbf16>
      tpu.vector_store %arg9[%c0_99, %c9, %c0_100, %c0_101], %69 {strides = array<i32>} : memref<2x10x10x128xbf16, #tpu.memory_space<vmem>>, vector<2x1x10x128xbf16>,
      %c0_102 = arith.constant 0 : index
      %c0_103 = arith.constant 0 : index
      %c0_104 = arith.constant 0 : index
      %c0_105 = arith.constant 0 : index
      %73 = vector.load %arg9[%c0_102, %c0_103, %c0_104, %c0_105] : memref<2x10x10x128xbf16, #tpu.memory_space<vmem>>, vector<2x10x1x128xbf16>
      tpu.vector_store %arg9[%c0_102, %c0_103, %c0_104, %c0_105], %70 {strides = array<i32>} : memref<2x10x10x128xbf16, #tpu.memory_space<vmem>>, vector<2x10x1x128xbf16>,
      %c0_106 = arith.constant 0 : index
      %c0_107 = arith.constant 0 : index
      %c9_108 = arith.constant 9 : index
      %c0_109 = arith.constant 0 : index
      %74 = vector.load %arg9[%c0_106, %c0_107, %c9_108, %c0_109] : memref<2x10x10x128xbf16, #tpu.memory_space<vmem>>, vector<2x10x1x128xbf16>
      tpu.vector_store %arg9[%c0_106, %c0_107, %c9_108, %c0_109], %70 {strides = array<i32>} : memref<2x10x10x128xbf16, #tpu.memory_space<vmem>>, vector<2x10x1x128xbf16>,
      %c0_110 = arith.constant 0 : index
      %c0_111 = arith.constant 0 : index
      %c0_112 = arith.constant 0 : index
      %c0_113 = arith.constant 0 : index
      %75 = vector.load %arg2[%c0_110, %c0_111, %c0_112, %c0_113] : memref<2x8x8x128xf32, #tpu.memory_space<vmem>>, vector<2x8x8x128xf32>
      %c0_114 = arith.constant 0 : index
      %c0_115 = arith.constant 0 : index
      %76 = vector.load %arg3[%c0_114, %c0_115] : memref<1x128xf32, #tpu.memory_space<vmem>>, vector<1x128xf32>
      %77 = vector.shape_cast %76 : vector<1x128xf32> to vector<1x1x1x128xf32>
      %c0_116 = arith.constant 0 : index
      %c0_117 = arith.constant 0 : index
      %78 = vector.load %arg4[%c0_116, %c0_117] : memref<1x128xf32, #tpu.memory_space<vmem>>, vector<1x128xf32>
      %79 = vector.shape_cast %78 : vector<1x128xf32> to vector<1x1x1x128xf32>
      %80 = vector.broadcast %77 : vector<1x1x1x128xf32> to vector<2x8x8x128xf32>
      %81 = arith.mulf %75, %80 : vector<2x8x8x128xf32>
      %82 = vector.broadcast %79 : vector<1x1x1x128xf32> to vector<2x8x8x128xf32>
      %83 = arith.addf %81, %82 : vector<2x8x8x128xf32>
      %cst_118 = arith.constant 0.000000e+00 : f32
      %84 = vector.broadcast %cst_118 : f32 to vector<2x8x8x128xf32>
      %85 = arith.maximumf %83, %84 : vector<2x8x8x128xf32>
      %86 = arith.truncf %85 : vector<2x8x8x128xf32> to vector<2x8x8x128xbf16>
      %c0_119 = arith.constant 0 : index
      %c1_120 = arith.constant 1 : index
      %c1_121 = arith.constant 1 : index
      %c0_122 = arith.constant 0 : index
      %87 = vector.load %arg9[%c0_119, %c1_120, %c1_121, %c0_122] : memref<2x10x10x128xbf16, #tpu.memory_space<vmem>>, vector<2x8x8x128xbf16>
      tpu.vector_store %arg9[%c0_119, %c1_120, %c1_121, %c0_122], %86 {strides = array<i32>} : memref<2x10x10x128xbf16, #tpu.memory_space<vmem>>, vector<2x8x8x128xbf16>,
    } else {
    }
    %cst = arith.constant 0.000000e+00 : f32
    %3 = vector.broadcast %cst : f32 to vector<128x128xf32>
    %c0 = arith.constant 0 : index
    %c0_1 = arith.constant 0 : index
    %c0_2 = arith.constant 0 : index
    %c0_3 = arith.constant 0 : index
    %4 = vector.load %arg9[%c0, %c0_1, %c0_2, %c0_3] : memref<2x10x10x128xbf16, #tpu.memory_space<vmem>>, vector<2x8x8x128xbf16>
    %5 = vector.shape_cast %4 : vector<2x8x8x128xbf16> to vector<128x128xbf16>
    %c0_4 = arith.constant 0 : index
    %c0_5 = arith.constant 0 : index
    %c0_6 = arith.constant 0 : index
    %c0_7 = arith.constant 0 : index
    %6 = vector.load %arg5[%c0_4, %c0_5, %c0_6, %c0_7] : memref<3x3x128x128xbf16, #tpu.memory_space<vmem>>, vector<1x1x128x128xbf16>
    %7 = vector.shape_cast %6 : vector<1x1x128x128xbf16> to vector<128x128xbf16>
    %cst_8 = arith.constant dense<0.000000e+00> : vector<128x128xf32>
    %8 = tpu.matmul %5, %7, %cst_8 {dimension_numbers = #tpu.dot_dimension_numbers<[1], [0], [0], [1], [0, 0, 1, 1], [], []>} : vector<128x128xbf16>, vector<128x128xbf16>, vector<128x128xf32> -> vector<128x128xf32>
    %9 = arith.addf %3, %8 : vector<128x128xf32>
    %c0_9 = arith.constant 0 : index
    %c0_10 = arith.constant 0 : index
    %c1 = arith.constant 1 : index
    %c0_11 = arith.constant 0 : index
    %10 = vector.load %arg9[%c0_9, %c0_10, %c1, %c0_11] : memref<2x10x10x128xbf16, #tpu.memory_space<vmem>>, vector<2x8x8x128xbf16>
    %11 = vector.shape_cast %10 : vector<2x8x8x128xbf16> to vector<128x128xbf16>
    %c0_12 = arith.constant 0 : index
    %c1_13 = arith.constant 1 : index
    %c0_14 = arith.constant 0 : index
    %c0_15 = arith.constant 0 : index
    %12 = vector.load %arg5[%c0_12, %c1_13, %c0_14, %c0_15] : memref<3x3x128x128xbf16, #tpu.memory_space<vmem>>, vector<1x1x128x128xbf16>
    %13 = vector.shape_cast %12 : vector<1x1x128x128xbf16> to vector<128x128xbf16>
    %cst_16 = arith.constant dense<0.000000e+00> : vector<128x128xf32>
    %14 = tpu.matmul %11, %13, %cst_16 {dimension_numbers = #tpu.dot_dimension_numbers<[1], [0], [0], [1], [0, 0, 1, 1], [], []>} : vector<128x128xbf16>, vector<128x128xbf16>, vector<128x128xf32> -> vector<128x128xf32>
    %15 = arith.addf %9, %14 : vector<128x128xf32>
    %c0_17 = arith.constant 0 : index
    %c0_18 = arith.constant 0 : index
    %c2 = arith.constant 2 : index
    %c0_19 = arith.constant 0 : index
    %16 = vector.load %arg9[%c0_17, %c0_18, %c2, %c0_19] : memref<2x10x10x128xbf16, #tpu.memory_space<vmem>>, vector<2x8x8x128xbf16>
    %17 = vector.shape_cast %16 : vector<2x8x8x128xbf16> to vector<128x128xbf16>
    %c0_20 = arith.constant 0 : index
    %c2_21 = arith.constant 2 : index
    %c0_22 = arith.constant 0 : index
    %c0_23 = arith.constant 0 : index
    %18 = vector.load %arg5[%c0_20, %c2_21, %c0_22, %c0_23] : memref<3x3x128x128xbf16, #tpu.memory_space<vmem>>, vector<1x1x128x128xbf16>
    %19 = vector.shape_cast %18 : vector<1x1x128x128xbf16> to vector<128x128xbf16>
    %cst_24 = arith.constant dense<0.000000e+00> : vector<128x128xf32>
    %20 = tpu.matmul %17, %19, %cst_24 {dimension_numbers = #tpu.dot_dimension_numbers<[1], [0], [0], [1], [0, 0, 1, 1], [], []>} : vector<128x128xbf16>, vector<128x128xbf16>, vector<128x128xf32> -> vector<128x128xf32>
    %21 = arith.addf %15, %20 : vector<128x128xf32>
    %c0_25 = arith.constant 0 : index
    %c1_26 = arith.constant 1 : index
    %c0_27 = arith.constant 0 : index
    %c0_28 = arith.constant 0 : index
    %22 = vector.load %arg9[%c0_25, %c1_26, %c0_27, %c0_28] : memref<2x10x10x128xbf16, #tpu.memory_space<vmem>>, vector<2x8x8x128xbf16>
    %23 = vector.shape_cast %22 : vector<2x8x8x128xbf16> to vector<128x128xbf16>
    %c1_29 = arith.constant 1 : index
    %c0_30 = arith.constant 0 : index
    %c0_31 = arith.constant 0 : index
    %c0_32 = arith.constant 0 : index
    %24 = vector.load %arg5[%c1_29, %c0_30, %c0_31, %c0_32] : memref<3x3x128x128xbf16, #tpu.memory_space<vmem>>, vector<1x1x128x128xbf16>
    %25 = vector.shape_cast %24 : vector<1x1x128x128xbf16> to vector<128x128xbf16>
    %cst_33 = arith.constant dense<0.000000e+00> : vector<128x128xf32>
    %26 = tpu.matmul %23, %25, %cst_33 {dimension_numbers = #tpu.dot_dimension_numbers<[1], [0], [0], [1], [0, 0, 1, 1], [], []>} : vector<128x128xbf16>, vector<128x128xbf16>, vector<128x128xf32> -> vector<128x128xf32>
    %27 = arith.addf %21, %26 : vector<128x128xf32>
    %c0_34 = arith.constant 0 : index
    %c1_35 = arith.constant 1 : index
    %c1_36 = arith.constant 1 : index
    %c0_37 = arith.constant 0 : index
    %28 = vector.load %arg9[%c0_34, %c1_35, %c1_36, %c0_37] : memref<2x10x10x128xbf16, #tpu.memory_space<vmem>>, vector<2x8x8x128xbf16>
    %29 = vector.shape_cast %28 : vector<2x8x8x128xbf16> to vector<128x128xbf16>
    %c1_38 = arith.constant 1 : index
    %c1_39 = arith.constant 1 : index
    %c0_40 = arith.constant 0 : index
    %c0_41 = arith.constant 0 : index
    %30 = vector.load %arg5[%c1_38, %c1_39, %c0_40, %c0_41] : memref<3x3x128x128xbf16, #tpu.memory_space<vmem>>, vector<1x1x128x128xbf16>
    %31 = vector.shape_cast %30 : vector<1x1x128x128xbf16> to vector<128x128xbf16>
    %cst_42 = arith.constant dense<0.000000e+00> : vector<128x128xf32>
    %32 = tpu.matmul %29, %31, %cst_42 {dimension_numbers = #tpu.dot_dimension_numbers<[1], [0], [0], [1], [0, 0, 1, 1], [], []>} : vector<128x128xbf16>, vector<128x128xbf16>, vector<128x128xf32> -> vector<128x128xf32>
    %33 = arith.addf %27, %32 : vector<128x128xf32>
    %c0_43 = arith.constant 0 : index
    %c1_44 = arith.constant 1 : index
    %c2_45 = arith.constant 2 : index
    %c0_46 = arith.constant 0 : index
    %34 = vector.load %arg9[%c0_43, %c1_44, %c2_45, %c0_46] : memref<2x10x10x128xbf16, #tpu.memory_space<vmem>>, vector<2x8x8x128xbf16>
    %35 = vector.shape_cast %34 : vector<2x8x8x128xbf16> to vector<128x128xbf16>
    %c1_47 = arith.constant 1 : index
    %c2_48 = arith.constant 2 : index
    %c0_49 = arith.constant 0 : index
    %c0_50 = arith.constant 0 : index
    %36 = vector.load %arg5[%c1_47, %c2_48, %c0_49, %c0_50] : memref<3x3x128x128xbf16, #tpu.memory_space<vmem>>, vector<1x1x128x128xbf16>
    %37 = vector.shape_cast %36 : vector<1x1x128x128xbf16> to vector<128x128xbf16>
    %cst_51 = arith.constant dense<0.000000e+00> : vector<128x128xf32>
    %38 = tpu.matmul %35, %37, %cst_51 {dimension_numbers = #tpu.dot_dimension_numbers<[1], [0], [0], [1], [0, 0, 1, 1], [], []>} : vector<128x128xbf16>, vector<128x128xbf16>, vector<128x128xf32> -> vector<128x128xf32>
    %39 = arith.addf %33, %38 : vector<128x128xf32>
    %c0_52 = arith.constant 0 : index
    %c2_53 = arith.constant 2 : index
    %c0_54 = arith.constant 0 : index
    %c0_55 = arith.constant 0 : index
    %40 = vector.load %arg9[%c0_52, %c2_53, %c0_54, %c0_55] : memref<2x10x10x128xbf16, #tpu.memory_space<vmem>>, vector<2x8x8x128xbf16>
    %41 = vector.shape_cast %40 : vector<2x8x8x128xbf16> to vector<128x128xbf16>
    %c2_56 = arith.constant 2 : index
    %c0_57 = arith.constant 0 : index
    %c0_58 = arith.constant 0 : index
    %c0_59 = arith.constant 0 : index
    %42 = vector.load %arg5[%c2_56, %c0_57, %c0_58, %c0_59] : memref<3x3x128x128xbf16, #tpu.memory_space<vmem>>, vector<1x1x128x128xbf16>
    %43 = vector.shape_cast %42 : vector<1x1x128x128xbf16> to vector<128x128xbf16>
    %cst_60 = arith.constant dense<0.000000e+00> : vector<128x128xf32>
    %44 = tpu.matmul %41, %43, %cst_60 {dimension_numbers = #tpu.dot_dimension_numbers<[1], [0], [0], [1], [0, 0, 1, 1], [], []>} : vector<128x128xbf16>, vector<128x128xbf16>, vector<128x128xf32> -> vector<128x128xf32>
    %45 = arith.addf %39, %44 : vector<128x128xf32>
    %c0_61 = arith.constant 0 : index
    %c2_62 = arith.constant 2 : index
    %c1_63 = arith.constant 1 : index
    %c0_64 = arith.constant 0 : index
    %46 = vector.load %arg9[%c0_61, %c2_62, %c1_63, %c0_64] : memref<2x10x10x128xbf16, #tpu.memory_space<vmem>>, vector<2x8x8x128xbf16>
    %47 = vector.shape_cast %46 : vector<2x8x8x128xbf16> to vector<128x128xbf16>
    %c2_65 = arith.constant 2 : index
    %c1_66 = arith.constant 1 : index
    %c0_67 = arith.constant 0 : index
    %c0_68 = arith.constant 0 : index
    %48 = vector.load %arg5[%c2_65, %c1_66, %c0_67, %c0_68] : memref<3x3x128x128xbf16, #tpu.memory_space<vmem>>, vector<1x1x128x128xbf16>
    %49 = vector.shape_cast %48 : vector<1x1x128x128xbf16> to vector<128x128xbf16>
    %cst_69 = arith.constant dense<0.000000e+00> : vector<128x128xf32>
    %50 = tpu.matmul %47, %49, %cst_69 {dimension_numbers = #tpu.dot_dimension_numbers<[1], [0], [0], [1], [0, 0, 1, 1], [], []>} : vector<128x128xbf16>, vector<128x128xbf16>, vector<128x128xf32> -> vector<128x128xf32>
    %51 = arith.addf %45, %50 : vector<128x128xf32>
    %c0_70 = arith.constant 0 : index
    %c2_71 = arith.constant 2 : index
    %c2_72 = arith.constant 2 : index
    %c0_73 = arith.constant 0 : index
    %52 = vector.load %arg9[%c0_70, %c2_71, %c2_72, %c0_73] : memref<2x10x10x128xbf16, #tpu.memory_space<vmem>>, vector<2x8x8x128xbf16>
    %53 = vector.shape_cast %52 : vector<2x8x8x128xbf16> to vector<128x128xbf16>
    %c2_74 = arith.constant 2 : index
    %c2_75 = arith.constant 2 : index
    %c0_76 = arith.constant 0 : index
    %c0_77 = arith.constant 0 : index
    %54 = vector.load %arg5[%c2_74, %c2_75, %c0_76, %c0_77] : memref<3x3x128x128xbf16, #tpu.memory_space<vmem>>, vector<1x1x128x128xbf16>
    %55 = vector.shape_cast %54 : vector<1x1x128x128xbf16> to vector<128x128xbf16>
    %cst_78 = arith.constant dense<0.000000e+00> : vector<128x128xf32>
    %56 = tpu.matmul %53, %55, %cst_78 {dimension_numbers = #tpu.dot_dimension_numbers<[1], [0], [0], [1], [0, 0, 1, 1], [], []>} : vector<128x128xbf16>, vector<128x128xbf16>, vector<128x128xf32> -> vector<128x128xf32>
    %57 = arith.addf %51, %56 : vector<128x128xf32>
    %58 = vector.shape_cast %57 : vector<128x128xf32> to vector<2x8x8x128xf32>
    %c0_79 = arith.constant 0 : index
    %c0_80 = arith.constant 0 : index
    %c0_81 = arith.constant 0 : index
    %c0_82 = arith.constant 0 : index
    %59 = vector.load %arg6[%c0_79, %c0_80, %c0_81, %c0_82] : memref<2x8x8x128xf32, #tpu.memory_space<vmem>>, vector<2x8x8x128xf32>
    tpu.vector_store %arg6[%c0_79, %c0_80, %c0_81, %c0_82], %58 {strides = array<i32>} : memref<2x8x8x128xf32, #tpu.memory_space<vmem>>, vector<2x8x8x128xf32>,
    %cst_83 = arith.constant dense<0.000000e+00> : vector<128xf32>
    %60 = vector.multi_reduction <add>, %57, %cst_83 [0] : vector<128x128xf32> to vector<128xf32>
    %61 = vector.shape_cast %60 : vector<128xf32> to vector<1x128xf32>
    %62 = vector.shape_cast %61 : vector<1x128xf32> to vector<1x1x1x128xf32>
    %c0_84 = arith.constant 0 : index
    %c0_85 = arith.constant 0 : index
    %c0_86 = arith.constant 0 : index
    %c0_87 = arith.constant 0 : index
    %63 = vector.load %arg7[%c0_84, %c0_85, %c0_86, %c0_87] : memref<1x1x1x128xf32, #tpu.memory_space<vmem>>, vector<1x1x1x128xf32>
    tpu.vector_store %arg7[%c0_84, %c0_85, %c0_86, %c0_87], %62 {strides = array<i32>} : memref<1x1x1x128xf32, #tpu.memory_space<vmem>>, vector<1x1x1x128xf32>,
    %64 = arith.mulf %57, %57 : vector<128x128xf32>
    %cst_88 = arith.constant dense<0.000000e+00> : vector<128xf32>
    %65 = vector.multi_reduction <add>, %64, %cst_88 [0] : vector<128x128xf32> to vector<128xf32>
    %66 = vector.shape_cast %65 : vector<128xf32> to vector<1x128xf32>
    %67 = vector.shape_cast %66 : vector<1x128xf32> to vector<1x1x1x128xf32>
    %c0_89 = arith.constant 0 : index
    %c0_90 = arith.constant 0 : index
    %c0_91 = arith.constant 0 : index
    %c0_92 = arith.constant 0 : index
    %68 = vector.load %arg8[%c0_89, %c0_90, %c0_91, %c0_92] : memref<1x1x1x128xf32, #tpu.memory_space<vmem>>, vector<1x1x1x128xf32>
    tpu.vector_store %arg8[%c0_89, %c0_90, %c0_91, %c0_92], %67 {strides = array<i32>} : memref<1x1x1x128xf32, #tpu.memory_space<vmem>>, vector<1x1x1x128xf32>,
    return
  }
  func.func @transform_0(%arg0: i32, %arg1: i32) -> (i32, i32, i32, i32) {
    %c0_i32 = arith.constant 0 : i32
    %c0_i32_0 = arith.constant 0 : i32
    %c0_i32_1 = arith.constant 0 : i32
    %c0_i32_2 = arith.constant 0 : i32
    return %arg0, %c0_i32, %c0_i32_0, %c0_i32_1 : i32, i32, i32, i32
  }
  func.func @transform_1(%arg0: i32, %arg1: i32) -> (i32, i32) {
    %c0_i32 = arith.constant 0 : i32
    %c0_i32_0 = arith.constant 0 : i32
    %c0_i32_1 = arith.constant 0 : i32
    return %c0_i32, %c0_i32_0 : i32, i32
  }
  func.func @transform_2(%arg0: i32, %arg1: i32) -> (i32, i32) {
    %c0_i32 = arith.constant 0 : i32
    %c0_i32_0 = arith.constant 0 : i32
    %c0_i32_1 = arith.constant 0 : i32
    return %c0_i32, %c0_i32_0 : i32, i32
  }
  func.func @transform_3(%arg0: i32, %arg1: i32) -> (i32, i32, i32, i32) {
    %c0_i32 = arith.constant 0 : i32
    %c0_i32_0 = arith.constant 0 : i32
    %c0_i32_1 = arith.constant 0 : i32
    %c0_i32_2 = arith.constant 0 : i32
    return %c0_i32, %c0_i32_0, %c0_i32_1, %arg1 : i32, i32, i32, i32
  }
  func.func @transform_4(%arg0: i32, %arg1: i32) -> (i32, i32, i32, i32) {
    %c0_i32 = arith.constant 0 : i32
    %c0_i32_0 = arith.constant 0 : i32
    %c0_i32_1 = arith.constant 0 : i32
    return %arg0, %c0_i32, %c0_i32_0, %arg1 : i32, i32, i32, i32
  }
  func.func @transform_5(%arg0: i32, %arg1: i32) -> (i32, i32, i32, i32) {
    %c0_i32 = arith.constant 0 : i32
    %c0_i32_0 = arith.constant 0 : i32
    %c0_i32_1 = arith.constant 0 : i32
    return %arg0, %arg1, %c0_i32, %c0_i32_0 : i32, i32, i32, i32
  }
  func.func @transform_6(%arg0: i32, %arg1: i32) -> (i32, i32, i32, i32) {
    %c0_i32 = arith.constant 0 : i32
    %c0_i32_0 = arith.constant 0 : i32
    %c0_i32_1 = arith.constant 0 : i32
    return %arg0, %arg1, %c0_i32, %c0_i32_0 : i32, i32, i32, i32
  }
}

module attributes {stable_mosaic.version = 11 : i64} {
  func.func @_fused_conv_kernel(%arg0: i32, %arg1: i32, %arg2: memref<2x8x8x128xf32, #tpu.memory_space<vmem>>, %arg3: memref<1x128xf32, #tpu.memory_space<vmem>>, %arg4: memref<1x128xf32, #tpu.memory_space<vmem>>, %arg5: memref<3x3x128x128xbf16, #tpu.memory_space<vmem>>, %arg6: memref<2x8x8x128xf32, #tpu.memory_space<vmem>>, %arg7: memref<2x8x8x128xf32, #tpu.memory_space<vmem>>, %arg8: memref<2x10x10x128xbf16, #tpu.memory_space<vmem>>) attributes {dimension_semantics = [#tpu.dimension_semantics<parallel>, #tpu.dimension_semantics<arbitrary>], iteration_bounds = array<i64: 1, 1>, scalar_prefetch = 0 : i64, scratch_operands = 1 : i64, tpu.core_type = #tpu.core_type<tc>, window_params = [{transform_indices = @transform_0, window_bounds = array<i64: 2, 8, 8, 128>}, {pipeline_mode = #tpu.pipeline_mode<synchronous>, transform_indices = @transform_1, window_bounds = array<i64: 1, 128>}, {pipeline_mode = #tpu.pipeline_mode<synchronous>, transform_indices = @transform_2, window_bounds = array<i64: 1, 128>}, {transform_indices = @transform_3, window_bounds = array<i64: 3, 3, 128, 128>}, {transform_indices = @transform_4, window_bounds = array<i64: 2, 8, 8, 128>}, {transform_indices = @transform_5, window_bounds = array<i64: 2, 8, 8, 128>}]} {
    %c0_i32 = arith.constant 0 : i32
    %0 = arith.cmpi eq, %arg1, %c0_i32 : i32
    %1 = arith.extui %0 : i1 to i32
    %c0_i32_0 = arith.constant 0 : i32
    %2 = arith.cmpi ne, %1, %c0_i32_0 : i32
    scf.if %2 {
      %cst_87 = arith.constant 0.000000e+00 : bf16
      %63 = vector.broadcast %cst_87 : bf16 to vector<2x1x10x128xbf16>
      %cst_88 = arith.constant 0.000000e+00 : bf16
      %64 = vector.broadcast %cst_88 : bf16 to vector<2x10x1x128xbf16>
      %c0_89 = arith.constant 0 : index
      %c0_90 = arith.constant 0 : index
      %c0_91 = arith.constant 0 : index
      %c0_92 = arith.constant 0 : index
      %65 = vector.load %arg8[%c0_89, %c0_90, %c0_91, %c0_92] : memref<2x10x10x128xbf16, #tpu.memory_space<vmem>>, vector<2x1x10x128xbf16>
      tpu.vector_store %arg8[%c0_89, %c0_90, %c0_91, %c0_92], %63 {strides = array<i32>} : memref<2x10x10x128xbf16, #tpu.memory_space<vmem>>, vector<2x1x10x128xbf16>,
      %c0_93 = arith.constant 0 : index
      %c9 = arith.constant 9 : index
      %c0_94 = arith.constant 0 : index
      %c0_95 = arith.constant 0 : index
      %66 = vector.load %arg8[%c0_93, %c9, %c0_94, %c0_95] : memref<2x10x10x128xbf16, #tpu.memory_space<vmem>>, vector<2x1x10x128xbf16>
      tpu.vector_store %arg8[%c0_93, %c9, %c0_94, %c0_95], %63 {strides = array<i32>} : memref<2x10x10x128xbf16, #tpu.memory_space<vmem>>, vector<2x1x10x128xbf16>,
      %c0_96 = arith.constant 0 : index
      %c0_97 = arith.constant 0 : index
      %c0_98 = arith.constant 0 : index
      %c0_99 = arith.constant 0 : index
      %67 = vector.load %arg8[%c0_96, %c0_97, %c0_98, %c0_99] : memref<2x10x10x128xbf16, #tpu.memory_space<vmem>>, vector<2x10x1x128xbf16>
      tpu.vector_store %arg8[%c0_96, %c0_97, %c0_98, %c0_99], %64 {strides = array<i32>} : memref<2x10x10x128xbf16, #tpu.memory_space<vmem>>, vector<2x10x1x128xbf16>,
      %c0_100 = arith.constant 0 : index
      %c0_101 = arith.constant 0 : index
      %c9_102 = arith.constant 9 : index
      %c0_103 = arith.constant 0 : index
      %68 = vector.load %arg8[%c0_100, %c0_101, %c9_102, %c0_103] : memref<2x10x10x128xbf16, #tpu.memory_space<vmem>>, vector<2x10x1x128xbf16>
      tpu.vector_store %arg8[%c0_100, %c0_101, %c9_102, %c0_103], %64 {strides = array<i32>} : memref<2x10x10x128xbf16, #tpu.memory_space<vmem>>, vector<2x10x1x128xbf16>,
      %c0_104 = arith.constant 0 : index
      %c0_105 = arith.constant 0 : index
      %c0_106 = arith.constant 0 : index
      %c0_107 = arith.constant 0 : index
      %69 = vector.load %arg2[%c0_104, %c0_105, %c0_106, %c0_107] : memref<2x8x8x128xf32, #tpu.memory_space<vmem>>, vector<2x8x8x128xf32>
      %c0_108 = arith.constant 0 : index
      %c0_109 = arith.constant 0 : index
      %70 = vector.load %arg3[%c0_108, %c0_109] : memref<1x128xf32, #tpu.memory_space<vmem>>, vector<1x128xf32>
      %71 = vector.shape_cast %70 : vector<1x128xf32> to vector<1x1x1x128xf32>
      %c0_110 = arith.constant 0 : index
      %c0_111 = arith.constant 0 : index
      %72 = vector.load %arg4[%c0_110, %c0_111] : memref<1x128xf32, #tpu.memory_space<vmem>>, vector<1x128xf32>
      %73 = vector.shape_cast %72 : vector<1x128xf32> to vector<1x1x1x128xf32>
      %74 = vector.broadcast %71 : vector<1x1x1x128xf32> to vector<2x8x8x128xf32>
      %75 = arith.mulf %69, %74 : vector<2x8x8x128xf32>
      %76 = vector.broadcast %73 : vector<1x1x1x128xf32> to vector<2x8x8x128xf32>
      %77 = arith.addf %75, %76 : vector<2x8x8x128xf32>
      %cst_112 = arith.constant 0.000000e+00 : f32
      %78 = vector.broadcast %cst_112 : f32 to vector<2x8x8x128xf32>
      %79 = arith.maximumf %77, %78 : vector<2x8x8x128xf32>
      %80 = arith.truncf %79 : vector<2x8x8x128xf32> to vector<2x8x8x128xbf16>
      %c0_113 = arith.constant 0 : index
      %c1_114 = arith.constant 1 : index
      %c1_115 = arith.constant 1 : index
      %c0_116 = arith.constant 0 : index
      %81 = vector.load %arg8[%c0_113, %c1_114, %c1_115, %c0_116] : memref<2x10x10x128xbf16, #tpu.memory_space<vmem>>, vector<2x8x8x128xbf16>
      tpu.vector_store %arg8[%c0_113, %c1_114, %c1_115, %c0_116], %80 {strides = array<i32>} : memref<2x10x10x128xbf16, #tpu.memory_space<vmem>>, vector<2x8x8x128xbf16>,
    } else {
    }
    %cst = arith.constant 0.000000e+00 : f32
    %3 = vector.broadcast %cst : f32 to vector<128x128xf32>
    %c0 = arith.constant 0 : index
    %c0_1 = arith.constant 0 : index
    %c0_2 = arith.constant 0 : index
    %c0_3 = arith.constant 0 : index
    %4 = vector.load %arg8[%c0, %c0_1, %c0_2, %c0_3] : memref<2x10x10x128xbf16, #tpu.memory_space<vmem>>, vector<2x8x8x128xbf16>
    %5 = vector.shape_cast %4 : vector<2x8x8x128xbf16> to vector<128x128xbf16>
    %c0_4 = arith.constant 0 : index
    %c0_5 = arith.constant 0 : index
    %c0_6 = arith.constant 0 : index
    %c0_7 = arith.constant 0 : index
    %6 = vector.load %arg5[%c0_4, %c0_5, %c0_6, %c0_7] : memref<3x3x128x128xbf16, #tpu.memory_space<vmem>>, vector<1x1x128x128xbf16>
    %7 = vector.shape_cast %6 : vector<1x1x128x128xbf16> to vector<128x128xbf16>
    %cst_8 = arith.constant dense<0.000000e+00> : vector<128x128xf32>
    %8 = tpu.matmul %5, %7, %cst_8 {dimension_numbers = #tpu.dot_dimension_numbers<[1], [0], [0], [1], [0, 0, 1, 1], [], []>} : vector<128x128xbf16>, vector<128x128xbf16>, vector<128x128xf32> -> vector<128x128xf32>
    %9 = arith.addf %3, %8 : vector<128x128xf32>
    %c0_9 = arith.constant 0 : index
    %c0_10 = arith.constant 0 : index
    %c1 = arith.constant 1 : index
    %c0_11 = arith.constant 0 : index
    %10 = vector.load %arg8[%c0_9, %c0_10, %c1, %c0_11] : memref<2x10x10x128xbf16, #tpu.memory_space<vmem>>, vector<2x8x8x128xbf16>
    %11 = vector.shape_cast %10 : vector<2x8x8x128xbf16> to vector<128x128xbf16>
    %c0_12 = arith.constant 0 : index
    %c1_13 = arith.constant 1 : index
    %c0_14 = arith.constant 0 : index
    %c0_15 = arith.constant 0 : index
    %12 = vector.load %arg5[%c0_12, %c1_13, %c0_14, %c0_15] : memref<3x3x128x128xbf16, #tpu.memory_space<vmem>>, vector<1x1x128x128xbf16>
    %13 = vector.shape_cast %12 : vector<1x1x128x128xbf16> to vector<128x128xbf16>
    %cst_16 = arith.constant dense<0.000000e+00> : vector<128x128xf32>
    %14 = tpu.matmul %11, %13, %cst_16 {dimension_numbers = #tpu.dot_dimension_numbers<[1], [0], [0], [1], [0, 0, 1, 1], [], []>} : vector<128x128xbf16>, vector<128x128xbf16>, vector<128x128xf32> -> vector<128x128xf32>
    %15 = arith.addf %9, %14 : vector<128x128xf32>
    %c0_17 = arith.constant 0 : index
    %c0_18 = arith.constant 0 : index
    %c2 = arith.constant 2 : index
    %c0_19 = arith.constant 0 : index
    %16 = vector.load %arg8[%c0_17, %c0_18, %c2, %c0_19] : memref<2x10x10x128xbf16, #tpu.memory_space<vmem>>, vector<2x8x8x128xbf16>
    %17 = vector.shape_cast %16 : vector<2x8x8x128xbf16> to vector<128x128xbf16>
    %c0_20 = arith.constant 0 : index
    %c2_21 = arith.constant 2 : index
    %c0_22 = arith.constant 0 : index
    %c0_23 = arith.constant 0 : index
    %18 = vector.load %arg5[%c0_20, %c2_21, %c0_22, %c0_23] : memref<3x3x128x128xbf16, #tpu.memory_space<vmem>>, vector<1x1x128x128xbf16>
    %19 = vector.shape_cast %18 : vector<1x1x128x128xbf16> to vector<128x128xbf16>
    %cst_24 = arith.constant dense<0.000000e+00> : vector<128x128xf32>
    %20 = tpu.matmul %17, %19, %cst_24 {dimension_numbers = #tpu.dot_dimension_numbers<[1], [0], [0], [1], [0, 0, 1, 1], [], []>} : vector<128x128xbf16>, vector<128x128xbf16>, vector<128x128xf32> -> vector<128x128xf32>
    %21 = arith.addf %15, %20 : vector<128x128xf32>
    %c0_25 = arith.constant 0 : index
    %c1_26 = arith.constant 1 : index
    %c0_27 = arith.constant 0 : index
    %c0_28 = arith.constant 0 : index
    %22 = vector.load %arg8[%c0_25, %c1_26, %c0_27, %c0_28] : memref<2x10x10x128xbf16, #tpu.memory_space<vmem>>, vector<2x8x8x128xbf16>
    %23 = vector.shape_cast %22 : vector<2x8x8x128xbf16> to vector<128x128xbf16>
    %c1_29 = arith.constant 1 : index
    %c0_30 = arith.constant 0 : index
    %c0_31 = arith.constant 0 : index
    %c0_32 = arith.constant 0 : index
    %24 = vector.load %arg5[%c1_29, %c0_30, %c0_31, %c0_32] : memref<3x3x128x128xbf16, #tpu.memory_space<vmem>>, vector<1x1x128x128xbf16>
    %25 = vector.shape_cast %24 : vector<1x1x128x128xbf16> to vector<128x128xbf16>
    %cst_33 = arith.constant dense<0.000000e+00> : vector<128x128xf32>
    %26 = tpu.matmul %23, %25, %cst_33 {dimension_numbers = #tpu.dot_dimension_numbers<[1], [0], [0], [1], [0, 0, 1, 1], [], []>} : vector<128x128xbf16>, vector<128x128xbf16>, vector<128x128xf32> -> vector<128x128xf32>
    %27 = arith.addf %21, %26 : vector<128x128xf32>
    %c0_34 = arith.constant 0 : index
    %c1_35 = arith.constant 1 : index
    %c1_36 = arith.constant 1 : index
    %c0_37 = arith.constant 0 : index
    %28 = vector.load %arg8[%c0_34, %c1_35, %c1_36, %c0_37] : memref<2x10x10x128xbf16, #tpu.memory_space<vmem>>, vector<2x8x8x128xbf16>
    %29 = vector.shape_cast %28 : vector<2x8x8x128xbf16> to vector<128x128xbf16>
    %c1_38 = arith.constant 1 : index
    %c1_39 = arith.constant 1 : index
    %c0_40 = arith.constant 0 : index
    %c0_41 = arith.constant 0 : index
    %30 = vector.load %arg5[%c1_38, %c1_39, %c0_40, %c0_41] : memref<3x3x128x128xbf16, #tpu.memory_space<vmem>>, vector<1x1x128x128xbf16>
    %31 = vector.shape_cast %30 : vector<1x1x128x128xbf16> to vector<128x128xbf16>
    %cst_42 = arith.constant dense<0.000000e+00> : vector<128x128xf32>
    %32 = tpu.matmul %29, %31, %cst_42 {dimension_numbers = #tpu.dot_dimension_numbers<[1], [0], [0], [1], [0, 0, 1, 1], [], []>} : vector<128x128xbf16>, vector<128x128xbf16>, vector<128x128xf32> -> vector<128x128xf32>
    %33 = arith.addf %27, %32 : vector<128x128xf32>
    %c0_43 = arith.constant 0 : index
    %c1_44 = arith.constant 1 : index
    %c2_45 = arith.constant 2 : index
    %c0_46 = arith.constant 0 : index
    %34 = vector.load %arg8[%c0_43, %c1_44, %c2_45, %c0_46] : memref<2x10x10x128xbf16, #tpu.memory_space<vmem>>, vector<2x8x8x128xbf16>
    %35 = vector.shape_cast %34 : vector<2x8x8x128xbf16> to vector<128x128xbf16>
    %c1_47 = arith.constant 1 : index
    %c2_48 = arith.constant 2 : index
    %c0_49 = arith.constant 0 : index
    %c0_50 = arith.constant 0 : index
    %36 = vector.load %arg5[%c1_47, %c2_48, %c0_49, %c0_50] : memref<3x3x128x128xbf16, #tpu.memory_space<vmem>>, vector<1x1x128x128xbf16>
    %37 = vector.shape_cast %36 : vector<1x1x128x128xbf16> to vector<128x128xbf16>
    %cst_51 = arith.constant dense<0.000000e+00> : vector<128x128xf32>
    %38 = tpu.matmul %35, %37, %cst_51 {dimension_numbers = #tpu.dot_dimension_numbers<[1], [0], [0], [1], [0, 0, 1, 1], [], []>} : vector<128x128xbf16>, vector<128x128xbf16>, vector<128x128xf32> -> vector<128x128xf32>
    %39 = arith.addf %33, %38 : vector<128x128xf32>
    %c0_52 = arith.constant 0 : index
    %c2_53 = arith.constant 2 : index
    %c0_54 = arith.constant 0 : index
    %c0_55 = arith.constant 0 : index
    %40 = vector.load %arg8[%c0_52, %c2_53, %c0_54, %c0_55] : memref<2x10x10x128xbf16, #tpu.memory_space<vmem>>, vector<2x8x8x128xbf16>
    %41 = vector.shape_cast %40 : vector<2x8x8x128xbf16> to vector<128x128xbf16>
    %c2_56 = arith.constant 2 : index
    %c0_57 = arith.constant 0 : index
    %c0_58 = arith.constant 0 : index
    %c0_59 = arith.constant 0 : index
    %42 = vector.load %arg5[%c2_56, %c0_57, %c0_58, %c0_59] : memref<3x3x128x128xbf16, #tpu.memory_space<vmem>>, vector<1x1x128x128xbf16>
    %43 = vector.shape_cast %42 : vector<1x1x128x128xbf16> to vector<128x128xbf16>
    %cst_60 = arith.constant dense<0.000000e+00> : vector<128x128xf32>
    %44 = tpu.matmul %41, %43, %cst_60 {dimension_numbers = #tpu.dot_dimension_numbers<[1], [0], [0], [1], [0, 0, 1, 1], [], []>} : vector<128x128xbf16>, vector<128x128xbf16>, vector<128x128xf32> -> vector<128x128xf32>
    %45 = arith.addf %39, %44 : vector<128x128xf32>
    %c0_61 = arith.constant 0 : index
    %c2_62 = arith.constant 2 : index
    %c1_63 = arith.constant 1 : index
    %c0_64 = arith.constant 0 : index
    %46 = vector.load %arg8[%c0_61, %c2_62, %c1_63, %c0_64] : memref<2x10x10x128xbf16, #tpu.memory_space<vmem>>, vector<2x8x8x128xbf16>
    %47 = vector.shape_cast %46 : vector<2x8x8x128xbf16> to vector<128x128xbf16>
    %c2_65 = arith.constant 2 : index
    %c1_66 = arith.constant 1 : index
    %c0_67 = arith.constant 0 : index
    %c0_68 = arith.constant 0 : index
    %48 = vector.load %arg5[%c2_65, %c1_66, %c0_67, %c0_68] : memref<3x3x128x128xbf16, #tpu.memory_space<vmem>>, vector<1x1x128x128xbf16>
    %49 = vector.shape_cast %48 : vector<1x1x128x128xbf16> to vector<128x128xbf16>
    %cst_69 = arith.constant dense<0.000000e+00> : vector<128x128xf32>
    %50 = tpu.matmul %47, %49, %cst_69 {dimension_numbers = #tpu.dot_dimension_numbers<[1], [0], [0], [1], [0, 0, 1, 1], [], []>} : vector<128x128xbf16>, vector<128x128xbf16>, vector<128x128xf32> -> vector<128x128xf32>
    %51 = arith.addf %45, %50 : vector<128x128xf32>
    %c0_70 = arith.constant 0 : index
    %c2_71 = arith.constant 2 : index
    %c2_72 = arith.constant 2 : index
    %c0_73 = arith.constant 0 : index
    %52 = vector.load %arg8[%c0_70, %c2_71, %c2_72, %c0_73] : memref<2x10x10x128xbf16, #tpu.memory_space<vmem>>, vector<2x8x8x128xbf16>
    %53 = vector.shape_cast %52 : vector<2x8x8x128xbf16> to vector<128x128xbf16>
    %c2_74 = arith.constant 2 : index
    %c2_75 = arith.constant 2 : index
    %c0_76 = arith.constant 0 : index
    %c0_77 = arith.constant 0 : index
    %54 = vector.load %arg5[%c2_74, %c2_75, %c0_76, %c0_77] : memref<3x3x128x128xbf16, #tpu.memory_space<vmem>>, vector<1x1x128x128xbf16>
    %55 = vector.shape_cast %54 : vector<1x1x128x128xbf16> to vector<128x128xbf16>
    %cst_78 = arith.constant dense<0.000000e+00> : vector<128x128xf32>
    %56 = tpu.matmul %53, %55, %cst_78 {dimension_numbers = #tpu.dot_dimension_numbers<[1], [0], [0], [1], [0, 0, 1, 1], [], []>} : vector<128x128xbf16>, vector<128x128xbf16>, vector<128x128xf32> -> vector<128x128xf32>
    %57 = arith.addf %51, %56 : vector<128x128xf32>
    %c0_79 = arith.constant 0 : index
    %c0_80 = arith.constant 0 : index
    %c0_81 = arith.constant 0 : index
    %c0_82 = arith.constant 0 : index
    %58 = vector.load %arg6[%c0_79, %c0_80, %c0_81, %c0_82] : memref<2x8x8x128xf32, #tpu.memory_space<vmem>>, vector<2x8x8x128xf32>
    %59 = vector.shape_cast %58 : vector<2x8x8x128xf32> to vector<128x128xf32>
    %60 = arith.addf %57, %59 : vector<128x128xf32>
    %61 = vector.shape_cast %60 : vector<128x128xf32> to vector<2x8x8x128xf32>
    %c0_83 = arith.constant 0 : index
    %c0_84 = arith.constant 0 : index
    %c0_85 = arith.constant 0 : index
    %c0_86 = arith.constant 0 : index
    %62 = vector.load %arg7[%c0_83, %c0_84, %c0_85, %c0_86] : memref<2x8x8x128xf32, #tpu.memory_space<vmem>>, vector<2x8x8x128xf32>
    tpu.vector_store %arg7[%c0_83, %c0_84, %c0_85, %c0_86], %61 {strides = array<i32>} : memref<2x8x8x128xf32, #tpu.memory_space<vmem>>, vector<2x8x8x128xf32>,
    return
  }
  func.func @transform_0(%arg0: i32, %arg1: i32) -> (i32, i32, i32, i32) {
    %c0_i32 = arith.constant 0 : i32
    %c0_i32_0 = arith.constant 0 : i32
    %c0_i32_1 = arith.constant 0 : i32
    %c0_i32_2 = arith.constant 0 : i32
    return %arg0, %c0_i32, %c0_i32_0, %c0_i32_1 : i32, i32, i32, i32
  }
  func.func @transform_1(%arg0: i32, %arg1: i32) -> (i32, i32) {
    %c0_i32 = arith.constant 0 : i32
    %c0_i32_0 = arith.constant 0 : i32
    %c0_i32_1 = arith.constant 0 : i32
    return %c0_i32, %c0_i32_0 : i32, i32
  }
  func.func @transform_2(%arg0: i32, %arg1: i32) -> (i32, i32) {
    %c0_i32 = arith.constant 0 : i32
    %c0_i32_0 = arith.constant 0 : i32
    %c0_i32_1 = arith.constant 0 : i32
    return %c0_i32, %c0_i32_0 : i32, i32
  }
  func.func @transform_3(%arg0: i32, %arg1: i32) -> (i32, i32, i32, i32) {
    %c0_i32 = arith.constant 0 : i32
    %c0_i32_0 = arith.constant 0 : i32
    %c0_i32_1 = arith.constant 0 : i32
    %c0_i32_2 = arith.constant 0 : i32
    return %c0_i32, %c0_i32_0, %c0_i32_1, %arg1 : i32, i32, i32, i32
  }
  func.func @transform_4(%arg0: i32, %arg1: i32) -> (i32, i32, i32, i32) {
    %c0_i32 = arith.constant 0 : i32
    %c0_i32_0 = arith.constant 0 : i32
    %c0_i32_1 = arith.constant 0 : i32
    return %arg0, %c0_i32, %c0_i32_0, %arg1 : i32, i32, i32, i32
  }
  func.func @transform_5(%arg0: i32, %arg1: i32) -> (i32, i32, i32, i32) {
    %c0_i32 = arith.constant 0 : i32
    %c0_i32_0 = arith.constant 0 : i32
    %c0_i32_1 = arith.constant 0 : i32
    return %arg0, %c0_i32, %c0_i32_0, %arg1 : i32, i32, i32, i32
  }
}

</mosaic_0001>

<bundles_post_ra>
// kernel: _lambda_.5
= control target key start
LH: loop header
LB: loop body
LE: loop exit
PB: predicated region body
PF: predicated region fallthrough
CT: control target
= control target key end

     0   :  { %s441_s15 = smov 0   ;;  %s507_s0 = inlined_call_operand.vmem [shape: f32[2,16,16,128], index: 0, kind: input, shape index: {}]   ;;  %s508_s1 = inlined_call_operand.vmem [shape: f32[1,128], index: 1, kind: input, shape index: {}]   ;;  %s509_s2 = inlined_call_operand.vmem [shape: f32[1,128], index: 2, kind: input, shape index: {}]   ;;  %s510_s3 = inlined_call_operand.vmem [shape: f32[1,128], index: 3, kind: output, shape index: {0}]   ;;  %s511_s4 = inlined_call_operand.vmem [shape: f32[1,128], index: 4, kind: output, shape index: {1}]  }
   0x1 LB: > { %s447_s16 = sadd.s32 4294967295, %s413_s15   ;;  %p388_p0 = scmp.ge.s32.totalorder %s413_s15, 1  ;;  %s413_s15 = sphi %s441_s15, %s15_s15  }
   0x2   : > { %p155_p1 = scmp.lt.s32.totalorder %s413_s15, 3 }
   0x4   : > { %p156_p2 = pnand %p388_p0, %p155_p1 }
   0x5   : > { %p176_p3 = scmp.lt.s32.totalorder (!%p156_p2), %s447_s16, 1  ;;  %p391_p4 = scmp.ne.s32.totalorder (!%p156_p2), %s447_s16, 0 }
   0x6   : > { %159 = sbr.rel (%p156_p2) target bundleno = 134 (0x86), region = 32 }
   0xd   : > { %s177_s17 = scalar_select %p176_p3, %s447_s16, 1 }
   0xe   : > { %184 = sbr.rel (%p391_p4) target bundleno = 21 (0x15), region = 36  ;;  %v415_v0 = vmov (!%p391_p4), 0.0  }
   0xf   : > { %s395_s18 = sshll.u32 %s177_s17, 8  ;;  %185 = vst [vmem:[#allocation2] sm:$0x1] (!%p391_p4), %v415_v0  ;;  %186 = vst [vmem:[#allocation3] sm:$0x1] (!%p391_p4), %v415_v0 }
  0x10   : > { %s456_s21 = scalar_lea.vmem %s507_s0, %s395_s18 }
  0x15 PF: > { %v187_v1 = vld [vmem:[%s456_s21] sm:$0xff]  ;;  %v188_v2 = vld [vmem:[%s456_s21 + $0x8] sm:$0xff]  ;;  %v189_v3 = vld [vmem:[%s456_s21 + $0x10] sm:$0xff]  ;;  %p392_p5 = scmp.ne.s32.totalorder %s447_s16, 1 }
  0x16   : > { %v190_v4 = vld [vmem:[%s456_s21 + $0x18] sm:$0xff]  ;;  %v220_v5 = vadd.f32 %v188_v2, %v187_v1  ;;  %v260_v6 = vmul.f32 %v187_v1, %v187_v1  ;;  %v261_v7 = vmul.f32 %v188_v2, %v188_v2  ;;  %v262_v8 = vmul.f32 %v189_v3, %v189_v3  ;;  %v191_v9 = vld [vmem:[%s456_s21 + $0x20] sm:$0xff]  ;;  %v192_v13 = vld [vmem:[%s456_s21 + $0x28] sm:$0xff] }
  0x17   : > { %v263_v11 = vmul.f32 %v190_v4, %v190_v4  ;;  %v264_v15 = vmul.f32 %v191_v9, %v191_v9  ;;  %v193_v17 = vld [vmem:[%s456_s21 + $0x30] sm:$0xff]  ;;  %v265_v19 = vmul.f32 %v192_v13, %v192_v13  ;;  %v194_v21 = vld [vmem:[%s456_s21 + $0x38] sm:$0xff]  ;;  %v195_v25 = vld [vmem:[%s456_s21 + $0x40] sm:$0xff] }
  0x18   : > { %v221_v10 = vadd.f32 %v220_v5, %v189_v3  ;;  %v292_v12 = vadd.f32 %v261_v7, %v260_v6  ;;  %v266_v23 = vmul.f32 %v193_v17, %v193_v17  ;;  %v267_v27 = vmul.f32 %v194_v21, %v194_v21  ;;  %v196_v29 = vld [vmem:[%s456_s21 + $0x48] sm:$0xff]  ;;  %v197_v33 = vld [vmem:[%s456_s21 + $0x50] sm:$0xff]  ;;  %v198_v37 = vld [vmem:[%s456_s21 + $0x58] sm:$0xff] }
  0x19   : > { %v268_v31 = vmul.f32 %v195_v25, %v195_v25  ;;  %v269_v35 = vmul.f32 %v196_v29, %v196_v29  ;;  %v270_v39 = vmul.f32 %v197_v33, %v197_v33  ;;  %v199_v41 = vld [vmem:[%s456_s21 + $0x60] sm:$0xff]  ;;  %v271_v43 = vmul.f32 %v198_v37, %v198_v37  ;;  %v200_v45 = vld [vmem:[%s456_s21 + $0x68] sm:$0xff]  ;;  %v201_v49 = vld [vmem:[%s456_s21 + $0x70] sm:$0xff] }
  0x1a   : > { %v222_v14 = vadd.f32 %v221_v10, %v190_v4  ;;  %v293_v16 = vadd.f32 %v292_v12, %v262_v8  ;;  %v272_v47 = vmul.f32 %v199_v41, %v199_v41  ;;  %v273_v51 = vmul.f32 %v200_v45, %v200_v45  ;;  %v202_v53 = vld [vmem:[%s456_s21 + $0x78] sm:$0xff]  ;;  %v203_v57 = vld [vmem:[%s456_s21 + $0x80] sm:$0xff]  ;;  %v204_v61 = vld [vmem:[%s456_s21 + $0x88] sm:$0xff] }
  0x1b   : > { %v274_v55 = vmul.f32 %v201_v49, %v201_v49  ;;  %v275_v59 = vmul.f32 %v202_v53, %v202_v53  ;;  %v276_v63 = vmul.f32 %v203_v57, %v203_v57  ;;  %v205_v1 = vld [vmem:[%s456_s21 + $0x90] sm:$0xff]  ;;  %v277_v3 = vmul.f32 %v204_v61, %v204_v61  ;;  %v206_v5 = vld [vmem:[%s456_s21 + $0x98] sm:$0xff] }
  0x1c   : > { %v223_v18 = vadd.f32 %v222_v14, %v191_v9  ;;  %v294_v20 = vadd.f32 %v293_v16, %v263_v11  ;;  %v278_v7 = vmul.f32 %v205_v1, %v205_v1  ;;  %v207_v9 = vld [vmem:[%s456_s21 + $0xa0] sm:$0xff]  ;;  %v279_v11 = vmul.f32 %v206_v5, %v206_v5 }
  0x1e   : > { %v224_v22 = vadd.f32 %v223_v18, %v192_v13  ;;  %v295_v24 = vadd.f32 %v294_v20, %v264_v15  ;;  %v208_v13 = vld [vmem:[%s456_s21 + $0xa8] sm:$0xff]  ;;  %v280_v15 = vmul.f32 %v207_v9, %v207_v9 }
  0x20   : > { %v225_v26 = vadd.f32 %v224_v22, %v193_v17  ;;  %v296_v28 = vadd.f32 %v295_v24, %v265_v19  ;;  %v209_v17 = vld [vmem:[%s456_s21 + $0xb0] sm:$0xff]  ;;  %v281_v19 = vmul.f32 %v208_v13, %v208_v13 }
  0x22   : > { %v226_v30 = vadd.f32 %v225_v26, %v194_v21  ;;  %v297_v32 = vadd.f32 %v296_v28, %v266_v23  ;;  %v210_v21 = vld [vmem:[%s456_s21 + $0xb8] sm:$0xff]  ;;  %v282_v23 = vmul.f32 %v209_v17, %v209_v17 }
  0x24   : > { %v227_v34 = vadd.f32 %v226_v30, %v195_v25  ;;  %v298_v36 = vadd.f32 %v297_v32, %v267_v27  ;;  %v211_v25 = vld [vmem:[%s456_s21 + $0xc0] sm:$0xff]  ;;  %v283_v27 = vmul.f32 %v210_v21, %v210_v21 }
  0x26   : > { %v228_v38 = vadd.f32 %v227_v34, %v196_v29  ;;  %v299_v40 = vadd.f32 %v298_v36, %v268_v31  ;;  %v212_v29 = vld [vmem:[%s456_s21 + $0xc8] sm:$0xff]  ;;  %v284_v31 = vmul.f32 %v211_v25, %v211_v25 }
  0x28   : > { %v229_v42 = vadd.f32 %v228_v38, %v197_v33  ;;  %v300_v44 = vadd.f32 %v299_v40, %v269_v35  ;;  %v213_v33 = vld [vmem:[%s456_s21 + $0xd0] sm:$0xff]  ;;  %v285_v35 = vmul.f32 %v212_v29, %v212_v29 }
  0x2a   : > { %v230_v46 = vadd.f32 %v229_v42, %v198_v37  ;;  %v301_v48 = vadd.f32 %v300_v44, %v270_v39  ;;  %v214_v37 = vld [vmem:[%s456_s21 + $0xd8] sm:$0xff]  ;;  %v286_v39 = vmul.f32 %v213_v33, %v213_v33 }
  0x2c   : > { %v231_v50 = vadd.f32 %v230_v46, %v199_v41  ;;  %v302_v52 = vadd.f32 %v301_v48, %v271_v43  ;;  %v215_v41 = vld [vmem:[%s456_s21 + $0xe0] sm:$0xff]  ;;  %v287_v43 = vmul.f32 %v214_v37, %v214_v37 }
  0x2e   : > { %v232_v54 = vadd.f32 %v231_v50, %v200_v45  ;;  %v303_v56 = vadd.f32 %v302_v52, %v272_v47  ;;  %v216_v45 = vld [vmem:[%s456_s21 + $0xe8] sm:$0xff]  ;;  %v288_v47 = vmul.f32 %v215_v41, %v215_v41 }
  0x30   : > { %v233_v58 = vadd.f32 %v232_v54, %v201_v49  ;;  %v304_v60 = vadd.f32 %v303_v56, %v273_v51  ;;  %v217_v49 = vld [vmem:[%s456_s21 + $0xf0] sm:$0xff]  ;;  %v289_v51 = vmul.f32 %v216_v45, %v216_v45 }
  0x32   : > { %v234_v62 = vadd.f32 %v233_v58, %v202_v53  ;;  %v305_v0 = vadd.f32 %v304_v60, %v274_v55  ;;  %v218_v53 = vld [vmem:[%s456_s21 + $0xf8] sm:$0xff]  ;;  %v290_v55 = vmul.f32 %v217_v49, %v217_v49 }
  0x33   : > { %v291_v58 = vmul.f32 %v218_v53, %v218_v53 }
  0x34   : > { %v235_v2 = vadd.f32 %v234_v62, %v203_v57  ;;  %v306_v4 = vadd.f32 %v305_v0, %v275_v59 }
  0x36   : > { %v236_v6 = vadd.f32 %v235_v2, %v204_v61  ;;  %v307_v8 = vadd.f32 %v306_v4, %v276_v63 }
  0x38   : > { %v237_v10 = vadd.f32 %v236_v6, %v205_v1  ;;  %v308_v12 = vadd.f32 %v307_v8, %v277_v3 }
  0x3a   : > { %v238_v14 = vadd.f32 %v237_v10, %v206_v5  ;;  %v309_v16 = vadd.f32 %v308_v12, %v278_v7  ;;  %v219_v7 = vld [vmem:[#allocation2] sm:$0x1]  ;;  %v259_v12 = vld [vmem:[#allocation3] sm:$0x1] }
  0x3c   : > { %v239_v18 = vadd.f32 %v238_v14, %v207_v9  ;;  %v310_v20 = vadd.f32 %v309_v16, %v279_v11 }
  0x3e   : > { %v240_v22 = vadd.f32 %v239_v18, %v208_v13  ;;  %v311_v24 = vadd.f32 %v310_v20, %v280_v15 }
  0x40   : > { %v241_v26 = vadd.f32 %v240_v22, %v209_v17  ;;  %v312_v28 = vadd.f32 %v311_v24, %v281_v19 }
  0x42   : > { %v242_v30 = vadd.f32 %v241_v26, %v210_v21  ;;  %v313_v32 = vadd.f32 %v312_v28, %v282_v23  ;;  %v344_v23 = vld [vmem:[%s508_s1] sm:$0x1] (!%p392_p5) }
  0x43   : > { %v347_v26 = vld [vmem:[%s509_s2] sm:$0x1] (!%p392_p5) }
  0x44   : > { %v243_v34 = vadd.f32 %v242_v30, %v211_v25  ;;  %v314_v36 = vadd.f32 %v313_v32, %v283_v27 }
  0x46   : > { %v244_v38 = vadd.f32 %v243_v34, %v212_v29  ;;  %v315_v40 = vadd.f32 %v314_v36, %v284_v31 }
  0x48   : > { %v245_v42 = vadd.f32 %v244_v38, %v213_v33  ;;  %v316_v44 = vadd.f32 %v315_v40, %v285_v35 }
  0x4a   : > { %v246_v46 = vadd.f32 %v245_v42, %v214_v37  ;;  %v317_v48 = vadd.f32 %v316_v44, %v286_v39 }
  0x4c   : > { %v247_v50 = vadd.f32 %v246_v46, %v215_v41  ;;  %v318_v52 = vadd.f32 %v317_v48, %v287_v43 }
  0x4e   : > { %v248_v54 = vadd.f32 %v247_v50, %v216_v45  ;;  %v319_v56 = vadd.f32 %v318_v52, %v288_v47 }
  0x50   : > { %v249_v57 = vadd.f32 %v248_v54, %v217_v49  ;;  %v320_v59 = vadd.f32 %v319_v56, %v289_v51 }
  0x52   : > { %v250_v60 = vadd.f32 %v249_v57, %v218_v53  ;;  %v321_v61 = vadd.f32 %v320_v59, %v290_v55 }
  0x54   : > { %v251_v62 = vrot.slane %v250_v60, 4  ;;  %v322_v63 = vadd.f32 %v321_v61, %v291_v58 }
  0x56   : > { %v252_v0 = vadd.f32 %v251_v62, %v250_v60  ;;  %v323_v1 = vrot.slane %v322_v63, 4 }
  0x58   : > { %v253_v2 = vrot.slane %v252_v0, 2  ;;  %v324_v3 = vadd.f32 %v323_v1, %v322_v63 }
  0x5a   : > { %v254_v4 = vadd.f32 %v253_v2, %v252_v0  ;;  %v325_v5 = vrot.slane %v324_v3, 2 }
  0x5c   : > { %v255_v6 = vrot.slane %v254_v4, 1  ;;  %v326_v8 = vadd.f32 %v325_v5, %v324_v3 }
  0x5e   : > { %v256_v9 = vadd.f32 %v255_v6, %v254_v4  ;;  %v327_v10 = vrot.slane %v326_v8, 1  ;;  %334 = sbr.rel (%p392_p5) target bundleno = 134 (0x86), region = 40 }
  0x60   : > { %v257_v11 = vadd.f32 %v256_v9, %v219_v7  ;;  %v328_v13 = vadd.f32 %v327_v10, %v326_v8 }
  0x62   : > { %258 = vst [vmem:[#allocation2] sm:$0x1] %v257_v11  ;;  %v329_v14 = vadd.f32 %v328_v13, %v259_v12 }
  0x64   : > { %330 = vst [vmem:[#allocation3] sm:$0x1] %v329_v14 }
  0x69   : > { %v335_v15 = vld [vmem:[#allocation2] sm:$0x1] }
  0x6a   : > { %v336_v17 = vmul.f32 0.001953125, %v335_v15 }
  0x6b   : > { %v337_v16 = vld [vmem:[#allocation3] sm:$0x1] }
  0x6c   : > { %v338_v18 = vmul.f32 0.001953125, %v337_v16  ;;  %v339_v19 = vmul.f32 %v336_v17, %v336_v17 }
  0x6e   : > { %v340_v20 = vsub.f32 %v338_v18, %v339_v19 }
  0x70   : > { %v341_v21 = vmax.f32 %v340_v20, 0.0 }
  0x72   : > { %v342_v22 = vadd.f32 1e-05, %v341_v21 }
  0x74   : > { %405 = vrsqrt.f32 %v342_v22 }
  0x7e   : > { %v406_v24 = vpop.eup %405 }
  0x7f   : > { %v345_v25 = vmul.f32 %v406_v24, %v344_v23 }
  0x81   : > { %346 = vst [vmem:[%s510_s3] sm:$0x1] %v345_v25  ;;  %v348_v27 = vmul.f32 %v345_v25, %v336_v17 }
  0x83   : > { %v349_v28 = vsub.f32 %v347_v26, %v348_v27 }
  0x85   : > { %350 = vst [vmem:[%s511_s4] sm:$0x1] %v349_v28 }
  0x86 PF: > { %s15_s15 = sadd.s32 1, %s413_s15  }
  0x87   : > { %p12_p6 = scmp.ge.s32.totalorder %s15_s15, 4  }
  0x89   :  { %14 = sbr.rel (!%p12_p6) target bundleno = 1 (0x1), region = 74 }

// kernel: _lambda_.6
= control target key start
LH: loop header
LB: loop body
LE: loop exit
PB: predicated region body
PF: predicated region fallthrough
CT: control target
= control target key end

     0   :  { %v3641_v1 = vmov 0.0   ;;  %s4481_s3 = inlined_call_operand.vmem [shape: bf16[3,3,128,128], index: 3, kind: input, shape index: {}]   ;;  %s4482_s0 = inlined_call_operand.vmem [shape: f32[2,16,16,128], index: 0, kind: input, shape index: {}]   ;;  %s4483_s1 = inlined_call_operand.vmem [shape: f32[1,128], index: 1, kind: input, shape index: {}]   ;;  %s4484_s2 = inlined_call_operand.vmem [shape: f32[1,128], index: 2, kind: input, shape index: {}]   ;;  %s4485_s4 = inlined_call_operand.vmem [shape: bf16[128,128], index: 4, kind: input, shape index: {}]   ;;  %s4486_s6 = inlined_call_operand.vmem [shape: f32[2,8,8,128], index: 6, kind: output, shape index: {1}]   ;;  %s4487_s5 = inlined_call_operand.vmem [shape: f32[2,8,8,128], index: 5, kind: output, shape index: {0}]   ;;  %s4488_s7 = inlined_call_operand.vmem [shape: f32[1,1,1,128], index: 7, kind: output, shape index: {2}]   ;;  %s4489_s8 = inlined_call_operand.vmem [shape: f32[1,1,1,128], index: 8, kind: output, shape index: {3}]  }
   0x1   :  { %v3559_v0 = vld [vmem:[%s4481_s3 + $0x40] sm:$0xff]   ;;  %29 = vst [vmem:[#allocation2] sm:$0xff] %v3641_v1  ;;  %30 = vst [vmem:[#allocation2 + $0x8] sm:$0xff] %v3641_v1  ;;  %v3561_v3 = vld [vmem:[%s4481_s3 + $0x48] sm:$0xff]  }
   0x2   :  { %31 = vst [vmem:[#allocation2 + $0x10] sm:$0x3] %v3641_v1  ;;  %32 = vst [vmem:[#allocation2 + $0x1b0] sm:$0xff] %v3641_v1  ;;  %v3560_v2 = vld [vmem:[%s4481_s3 + $0x100] sm:$0xff]   ;;  %3110 = vmatprep.subr.bf16.mxu1 %v3559_v0  ;;  %v3562_v4 = vld [vmem:[%s4481_s3 + $0x108] sm:$0xff]  }
   0x3   :  { %33 = vst [vmem:[#allocation2 + $0x1b8] sm:$0xff] %v3641_v1  ;;  %34 = vst [vmem:[#allocation2 + $0x1c0] sm:$0x3] %v3641_v1  ;;  %3238 = vmatprep.subr.bf16.mxu0 %v3560_v2  ;;  %3111 = vmatpush3.bf16.msra.mxu1 %v3559_v0  ;;  %v3563_v5 = vld [vmem:[%s4481_s3 + $0x50] sm:$0xff]   ;;  %v3565_v7 = vld [vmem:[%s4481_s3 + $0x58] sm:$0xff]  }
   0x4   :  { %43 = vst [vmem:[#allocation2 + $0x18] sm:$0x1] %v3641_v1  ;;  %44 = vst [vmem:[#allocation2 + $0x30] sm:$0x1] %v3641_v1  ;;  %3239 = vmatpush3.bf16.msra.mxu0 %v3560_v2  ;;  %3112 = vmatprep.subr.bf16.mxu1 %v3561_v3  ;;  %v3564_v6 = vld [vmem:[%s4481_s3 + $0x110] sm:$0xff]   ;;  %v3566_v8 = vld [vmem:[%s4481_s3 + $0x118] sm:$0xff]  }
   0x5   :  { %45 = vst [vmem:[#allocation2 + $0x48] sm:$0x1] %v3641_v1  ;;  %46 = vst [vmem:[#allocation2 + $0x60] sm:$0x1] %v3641_v1  ;;  %3240 = vmatprep.subr.bf16.mxu0 %v3562_v4  ;;  %v3567_v9 = vld [vmem:[%s4481_s3 + $0x60] sm:$0xff]   ;;  %v3569_v11 = vld [vmem:[%s4481_s3 + $0x68] sm:$0xff]  }
   0x6   :  { %47 = vst [vmem:[#allocation2 + $0x78] sm:$0x1] %v3641_v1  ;;  %48 = vst [vmem:[#allocation2 + $0x90] sm:$0x1] %v3641_v1  ;;  %v3568_v10 = vld [vmem:[%s4481_s3 + $0x120] sm:$0xff]   ;;  %v116_v12 = vld [vmem:[%s4482_s0 + $0x10] sm:$0xff] }
   0x7   :  { %49 = vst [vmem:[#allocation2 + $0xa8] sm:$0x1] %v3641_v1  ;;  %50 = vst [vmem:[#allocation2 + $0xc0] sm:$0x1] %v3641_v1  ;;  %3113 = vmatpush3.bf16.msra.mxu1 %v3561_v3  ;;  %v117_v13 = vld [vmem:[%s4482_s0 + $0x18] sm:$0xff]  ;;  %v3570_v15 = vld [vmem:[%s4481_s3 + $0x128] sm:$0xff]  }
   0x8   :  { %51 = vst [vmem:[#allocation2 + $0xd8] sm:$0x1] %v3641_v1  ;;  %52 = vst [vmem:[#allocation2 + $0xf0] sm:$0x1] %v3641_v1  ;;  %3241 = vmatpush3.bf16.msra.mxu0 %v3562_v4  ;;  %3114 = vmatprep.subr.bf16.mxu1 %v3563_v5  ;;  %v3729_v14 = vld [vmem:[%s4483_s1] ss:$0 sm:$0xff] }
   0x9   :  { %53 = vst [vmem:[#allocation2 + $0x108] sm:$0x1] %v3641_v1  ;;  %54 = vst [vmem:[#allocation2 + $0x120] sm:$0x1] %v3641_v1  ;;  %3242 = vmatprep.subr.bf16.mxu0 %v3564_v6  ;;  %v3737_v16 = vld [vmem:[%s4484_s2] ss:$0 sm:$0xff]  ;;  %v188_v17 = vmul.f32 %v3729_v14, %v116_v12  ;;  %v189_v18 = vmul.f32 %v3729_v14, %v117_v13 }
   0xa   :  { %55 = vst [vmem:[#allocation2 + $0x138] sm:$0x1] %v3641_v1  ;;  %56 = vst [vmem:[#allocation2 + $0x150] sm:$0x1] %v3641_v1  ;;  %v114_v19 = vld [vmem:[%s4482_s0] sm:$0xff]  ;;  %v3747_v20 = vld [vmem:[%s4481_s3 + $0x70] sm:$0xff]  }
   0xb   :  { %57 = vst [vmem:[#allocation2 + $0x168] sm:$0x1] %v3641_v1  ;;  %58 = vst [vmem:[#allocation2 + $0x180] sm:$0x1] %v3641_v1  ;;  %3115 = vmatpush3.bf16.msra.mxu1 %v3563_v5  ;;  %v115_v21 = vld [vmem:[%s4482_s0 + $0x8] sm:$0xff]  ;;  %v118_v22 = vld [vmem:[%s4482_s0 + $0x20] sm:$0xff]  ;;  %v186_v24 = vmul.f32 %v3729_v14, %v114_v19  ;;  %v258_v25 = vadd.f32 %v3737_v16, %v188_v17  ;;  %v259_v26 = vadd.f32 %v3737_v16, %v189_v18 }
   0xc   :  { %61 = vst [vmem:[#allocation2 + $0x1c8] sm:$0x1] %v3641_v1  ;;  %62 = vst [vmem:[#allocation2 + $0x1e0] sm:$0x1] %v3641_v1  ;;  %3243 = vmatpush3.bf16.msra.mxu0 %v3564_v6  ;;  %3116 = vmatprep.subr.bf16.mxu1 %v3565_v7  ;;  %v119_v23 = vld [vmem:[%s4482_s0 + $0x28] sm:$0xff]  ;;  %v187_v27 = vmul.f32 %v3729_v14, %v115_v21  ;;  %v190_v28 = vmul.f32 %v3729_v14, %v118_v22  ;;  %v120_v29 = vld [vmem:[%s4482_s0 + $0x30] sm:$0xff] }
   0xd   :  { %63 = vst [vmem:[#allocation2 + $0x1f8] sm:$0x1] %v3641_v1  ;;  %64 = vst [vmem:[#allocation2 + $0x210] sm:$0x1] %v3641_v1  ;;  %3244 = vmatprep.subr.bf16.mxu0 %v3566_v8  ;;  %v121_v30 = vld [vmem:[%s4482_s0 + $0x38] sm:$0xff]  ;;  %v124_v31 = vld [vmem:[%s4482_s0 + $0x50] sm:$0xff]  ;;  %v191_v32 = vmul.f32 %v3729_v14, %v119_v23  ;;  %v256_v33 = vadd.f32 %v3737_v16, %v186_v24  ;;  %v192_v35 = vmul.f32 %v3729_v14, %v120_v29 }
   0xe   :  { %65 = vst [vmem:[#allocation2 + $0x228] sm:$0x1] %v3641_v1  ;;  %66 = vst [vmem:[#allocation2 + $0x240] sm:$0x1] %v3641_v1  ;;  %v125_v34 = vld [vmem:[%s4482_s0 + $0x58] sm:$0xff]  ;;  %v3572_v36 = vld [vmem:[%s4481_s3 + $0x130] sm:$0xff]   ;;  %v257_v39 = vadd.f32 %v3737_v16, %v187_v27  ;;  %v260_v40 = vadd.f32 %v3737_v16, %v190_v28  ;;  %v193_v44 = vmul.f32 %v3729_v14, %v121_v30 }
   0xf   :  { %67 = vst [vmem:[#allocation2 + $0x258] sm:$0x1] %v3641_v1  ;;  %68 = vst [vmem:[#allocation2 + $0x270] sm:$0x1] %v3641_v1  ;;  %3117 = vmatpush3.bf16.msra.mxu1 %v3565_v7  ;;  %v322_v37 = vmax.f32 %v258_v25, 0.0  ;;  %v323_v38 = vmax.f32 %v259_v26, 0.0  ;;  %v261_v42 = vadd.f32 %v3737_v16, %v191_v32  ;;  %v196_v45 = vmul.f32 %v3729_v14, %v124_v31 }
  0x10   :  { %69 = vst [vmem:[#allocation2 + $0x288] sm:$0x1] %v3641_v1  ;;  %70 = vst [vmem:[#allocation2 + $0x2a0] sm:$0x1] %v3641_v1  ;;  %3245 = vmatpush3.bf16.msra.mxu0 %v3566_v8  ;;  %3118 = vmatprep.subr.bf16.mxu1 %v3567_v9  ;;  %v122_v41 = vld [vmem:[%s4482_s0 + $0x40] sm:$0xff]  ;;  %v320_v43 = vmax.f32 %v256_v33, 0.0  ;;  %v197_v51 = vmul.f32 %v3729_v14, %v125_v34  ;;  %v262_v52 = vadd.f32 %v3737_v16, %v192_v35 }
  0x11   :  { %71 = vst [vmem:[#allocation2 + $0x2b8] sm:$0x1] %v3641_v1  ;;  %72 = vst [vmem:[#allocation2 + $0x2d0] sm:$0x1] %v3641_v1  ;;  %3246 = vmatprep.subr.bf16.mxu0 %v3568_v10  ;;  %v123_v46 = vld [vmem:[%s4482_s0 + $0x48] sm:$0xff]  ;;  %v126_v47 = vld [vmem:[%s4482_s0 + $0x60] sm:$0xff]  ;;  %v263_v56 = vadd.f32 %v3737_v16, %v193_v44  ;;  %v266_v57 = vadd.f32 %v3737_v16, %v196_v45  ;;  %v194_v58 = vmul.f32 %v3729_v14, %v122_v41 }
  0x12   :  { %73 = vst [vmem:[#allocation2 + $0x2e8] sm:$0x1] %v3641_v1  ;;  %74 = vst [vmem:[#allocation2 + $0x300] sm:$0x1] %v3641_v1  ;;  %v3798_v48 = vld [vmem:[%s4481_s3 + $0x78] sm:$0xff]   ;;  %v321_v49 = vmax.f32 %v257_v39, 0.0  ;;  %v267_v59 = vadd.f32 %v3737_v16, %v197_v51  ;;  %v195_v61 = vmul.f32 %v3729_v14, %v123_v46  ;;  %v198_v62 = vmul.f32 %v3729_v14, %v126_v47 }
  0x13   :  { %75 = vst [vmem:[#allocation2 + $0x318] sm:$0x1] %v3641_v1  ;;  %76 = vst [vmem:[#allocation2 + $0x330] sm:$0x1] %v3641_v1  ;;  %3119 = vmatpush3.bf16.msra.mxu1 %v3567_v9  ;;  %v324_v50 = vmax.f32 %v260_v40, 0.0  ;;  %v127_v53 = vld [vmem:[%s4482_s0 + $0x68] sm:$0xff]  ;;  %v264_v3 = vadd.f32 %v3737_v16, %v194_v58 }
  0x14   :  { %42 = vst [vmem:[#allocation2] sm:$0x1] %v3641_v1  ;;  %60 = vst [vmem:[#allocation2 + $0x1b0] sm:$0x1] %v3641_v1  ;;  %3247 = vmatpush3.bf16.msra.mxu0 %v3568_v10  ;;  %3120 = vmatprep.subr.bf16.mxu1 %v3569_v11  ;;  %v3809_v54 = vld [vmem:[%s4481_s3 + $0x138] sm:$0xff]   ;;  %v325_v55 = vmax.f32 %v261_v42, 0.0  ;;  %v199_v2 = vmul.f32 %v3729_v14, %v127_v53  ;;  %v265_v9 = vadd.f32 %v3737_v16, %v195_v61 }
  0x15   :  { %3248 = vmatprep.subr.bf16.mxu0 %v3570_v15  ;;  %387 = vst [vmem:[#allocation2 + $0x31] sm:$0xff] %v322_v37  ;;  %388 = vst [vmem:[#allocation2 + $0x39] sm:$0xff] %v323_v38  ;;  %v326_v60 = vmax.f32 %v262_v52, 0.0  ;;  %v128_v63 = vld [vmem:[%s4482_s0 + $0x70] sm:$0xff]  ;;  %v327_v0 = vmax.f32 %v263_v56, 0.0  ;;  %v330_v1 = vmax.f32 %v266_v57, 0.0  ;;  %v268_v10 = vadd.f32 %v3737_v16, %v198_v62 }
  0x16   :  { %385 = vst [vmem:[#allocation2 + $0x19] sm:$0xff] %v320_v43  ;;  %386 = vst [vmem:[#allocation2 + $0x21] sm:$0xff] %v321_v49  ;;  %v129_v4 = vld [vmem:[%s4482_s0 + $0x78] sm:$0xff]  ;;  %v132_v5 = vld [vmem:[%s4482_s0 + $0x90] sm:$0xff]  ;;  %v331_v8 = vmax.f32 %v267_v59, 0.0  ;;  %v328_v17 = vmax.f32 %v264_v3, 0.0 }
  0x17   :  { %3121 = vmatpush3.bf16.msra.mxu1 %v3569_v11  ;;  %389 = vst [vmem:[#allocation2 + $0x49] sm:$0xff] %v324_v50  ;;  %390 = vst [vmem:[#allocation2 + $0x51] sm:$0xff] %v325_v55  ;;  %v133_v6 = vld [vmem:[%s4482_s0 + $0x98] sm:$0xff]  ;;  %v505_v7 = vld [vmem:[#allocation2 + $0x1] ss:$2 sm:$0xff]  ;;  %v200_v11 = vmul.f32 %v3729_v14, %v128_v63  ;;  %v201_v19 = vmul.f32 %v3729_v14, %v129_v4  ;;  %v329_v22 = vmax.f32 %v265_v9, 0.0 }
  0x18   :  { %3249 = vmatpush3.bf16.msra.mxu0 %v3570_v15  ;;  %3122 = vmatprep.subr.bf16.mxu1 %v3747_v20  ;;  %391 = vst [vmem:[#allocation2 + $0x61] sm:$0xff] %v326_v60  ;;  %v130_v12 = vld [vmem:[%s4482_s0 + $0x80] sm:$0xff]  ;;  %392 = vst [vmem:[#allocation2 + $0x69] sm:$0xff] %v327_v0  ;;  %v269_v15 = vadd.f32 %v3737_v16, %v199_v2  ;;  %v131_v21 = vld [vmem:[%s4482_s0 + $0x88] sm:$0xff]  ;;  %v332_v23 = vmax.f32 %v268_v10, 0.0  ;;  %v205_v24 = vmul.f32 %v3729_v14, %v133_v6 }
  0x19   :  { %3250 = vmatprep.subr.bf16.mxu0 %v3572_v36  ;;  %395 = vst [vmem:[#allocation2 + $0x91] sm:$0xff] %v330_v1  ;;  %v3842_v13 = vld [vmem:[%s4481_s3] sm:$0xff]   ;;  %396 = vst [vmem:[#allocation2 + $0x99] sm:$0xff] %v331_v8  ;;  %v270_v25 = vadd.f32 %v3737_v16, %v200_v11  ;;  %v135_v27 = vld [vmem:[%s4482_s0 + $0xa8] sm:$0xff]  ;;  %v271_v30 = vadd.f32 %v3737_v16, %v201_v19  ;;  %v202_v32 = vmul.f32 %v3729_v14, %v130_v12 }
  0x1a   :  { %v3848_v18 = vld [vmem:[%s4481_s3 + $0x140] sm:$0xff]   ;;  %v333_v29 = vmax.f32 %v269_v15, 0.0  ;;  %393 = vst [vmem:[#allocation2 + $0x79] sm:$0xff] %v328_v17  ;;  %v136_v33 = vld [vmem:[%s4482_s0 + $0xb0] sm:$0xff]  ;;  %394 = vst [vmem:[#allocation2 + $0x81] sm:$0xff] %v329_v22  ;;  %v275_v35 = vadd.f32 %v3737_v16, %v205_v24  ;;  %v203_v37 = vmul.f32 %v3729_v14, %v131_v21  ;;  %v207_v44 = vmul.f32 %v3729_v14, %v135_v27 }
  0x1b   :  { %3123 = vmatpush3.bf16.msra.mxu1 %v3747_v20  ;;  %v204_v20 = vmul.f32 %v3729_v14, %v132_v5  ;;  %v134_v26 = vld [vmem:[%s4482_s0 + $0xa0] sm:$0xff]  ;;  %397 = vst [vmem:[#allocation2 + $0xa9] sm:$0xff] %v332_v23  ;;  %v137_v38 = vld [vmem:[%s4482_s0 + $0xb8] sm:$0xff]  ;;  %v140_v39 = vld [vmem:[%s4482_s0 + $0xd0] sm:$0xff]  ;;  %v335_v41 = vmax.f32 %v271_v30, 0.0  ;;  %v272_v49 = vadd.f32 %v3737_v16, %v202_v32  ;;  %v208_v51 = vmul.f32 %v3729_v14, %v136_v33 }
  0x1c   :  { %3251 = vmatpush3.bf16.msra.mxu0 %v3572_v36  ;;  %3124 = vmatprep.subr.bf16.mxu1 %v3798_v48  ;;  %v507_v28 = vld [vmem:[#allocation2 + $0x31] ss:$2 sm:$0xff]  ;;  %v334_v36 = vmax.f32 %v270_v25, 0.0  ;;  %398 = vst [vmem:[#allocation2 + $0xb1] sm:$0xff] %v333_v29  ;;  %v206_v43 = vmul.f32 %v3729_v14, %v134_v26  ;;  %v138_v46 = vld [vmem:[%s4482_s0 + $0xc0] sm:$0xff]  ;;  %v273_v50 = vadd.f32 %v3737_v16, %v203_v37  ;;  %v139_v52 = vld [vmem:[%s4482_s0 + $0xc8] sm:$0xff] }
  0x1d   :  { %3252 = vmatprep.subr.bf16.mxu0 %v3809_v54  ;;  %v274_v31 = vadd.f32 %v3737_v16, %v204_v20  ;;  %v536_v34 = vpack.c.bf16 %v507_v28, %v505_v7  ;;  %v1288_v40 = vld [vmem:[#allocation2 + $0x19] ss:$2 sm:$0xff]  ;;  %400 = vst [vmem:[#allocation2 + $0xc9] sm:$0xff] %v335_v41  ;;  %v277_v56 = vadd.f32 %v3737_v16, %v207_v44  ;;  %v143_v58 = vld [vmem:[%s4482_s0 + $0xe8] sm:$0xff]  ;;  %v336_v60 = vmax.f32 %v272_v49, 0.0  ;;  %v148_v10 = vld [vmem:[%s4482_s0 + $0x110] sm:$0xff] }
  0x1e   :  { %v141_v45 = vld [vmem:[%s4482_s0 + $0xd8] sm:$0xff]  ;;  %v1290_v47 = vld [vmem:[#allocation2 + $0x49] ss:$2 sm:$0xff]  ;;  %399 = vst [vmem:[#allocation2 + $0xc1] sm:$0xff] %v334_v36  ;;  %v142_v53 = vld [vmem:[%s4482_s0 + $0xe0] sm:$0xff]  ;;  %v276_v55 = vadd.f32 %v3737_v16, %v206_v43  ;;  %v209_v57 = vmul.f32 %v3729_v14, %v137_v38  ;;  %v337_v61 = vmax.f32 %v273_v50, 0.0  ;;  %v212_v62 = vmul.f32 %v3729_v14, %v140_v39 }
  0x1f   :  { %3125 = vmatpush3.bf16.msra.mxu1 %v3798_v48  ;;  %v338_v42 = vmax.f32 %v274_v31, 0.0  ;;  %3126 = vmatprep.mubr.bf16.mxu1 %v536_v34  ;;  %v339_v48 = vmax.f32 %v275_v35, 0.0  ;;  %v509_v59 = vld [vmem:[#allocation2 + $0x61] ss:$2 sm:$0xff]  ;;  %v213_v63 = vmul.f32 %v3729_v14, %v141_v45  ;;  %v341_v2 = vmax.f32 %v277_v56, 0.0  ;;  %401 = vst [vmem:[#allocation2 + $0xd9] sm:$0xff] %v336_v60 }
  0x20   :  { %3253 = vmatpush3.bf16.msra.mxu0 %v3809_v54  ;;  %3142 = vmatprep.subr.bf16.mxu1 %v3842_v13  ;;  %v3899_v54 = vpack.c.bf16 %v1290_v47, %v1288_v40  ;;  %v511_v0 = vld [vmem:[#allocation2 + $0x91] ss:$2 sm:$0xff]  ;;  %v340_v1 = vmax.f32 %v276_v55, 0.0  ;;  %v278_v3 = vadd.f32 %v3737_v16, %v208_v51  ;;  %v279_v4 = vadd.f32 %v3737_v16, %v209_v57  ;;  %v3577_v6 = vld [vmem:[%s4481_s3 + $0x8] sm:$0xff]   ;;  %v146_v26 = vld [vmem:[%s4482_s0 + $0x100] sm:$0xff] }
  0x21   :  { %3270 = vmatprep.subr.bf16.mxu0 %v3848_v18  ;;  %403 = vst [vmem:[#allocation2 + $0xf1] sm:$0xff] %v338_v42  ;;  %404 = vst [vmem:[#allocation2 + $0xf9] sm:$0xff] %v339_v48  ;;  %v537_v5 = vpack.c.bf16 %v511_v0, %v509_v59  ;;  %v282_v7 = vadd.f32 %v3737_v16, %v212_v62  ;;  %v283_v8 = vadd.f32 %v3737_v16, %v213_v63  ;;  %v1292_v11 = vld [vmem:[#allocation2 + $0x79] ss:$2 sm:$0xff]  ;;  %v147_v27 = vld [vmem:[%s4482_s0 + $0x108] sm:$0xff] }
  0x22   :  { %3254 = vmatprep.mubr.bf16.mxu0 %v3899_v54  ;;  %402 = vst [vmem:[#allocation2 + $0xe1] sm:$0xff] %v337_v61  ;;  %v210_v9 = vmul.f32 %v3729_v14, %v138_v46  ;;  %405 = vst [vmem:[#allocation2 + $0x109] sm:$0xff] %v340_v1  ;;  %v342_v12 = vmax.f32 %v278_v3, 0.0  ;;  %v343_v15 = vmax.f32 %v279_v4, 0.0  ;;  %v211_v17 = vmul.f32 %v3729_v14, %v139_v52  ;;  %v149_v20 = vld [vmem:[%s4482_s0 + $0x118] sm:$0xff]  ;;  %v3578_v29 = vld [vmem:[%s4481_s3 + $0x148] sm:$0xff]  }
  0x23   :  { %406 = vst [vmem:[#allocation2 + $0x111] sm:$0xff] %v341_v2  ;;  %v214_v19 = vmul.f32 %v3729_v14, %v142_v53  ;;  %3127 = vmatmul.mubr.bf16.vlgmr.msra.gmra.mrb[0].mxu1 %v537_v5  ;;  %v1294_v21 = vld [vmem:[#allocation2 + $0xa9] ss:$2 sm:$0xff]  ;;  %v346_v22 = vmax.f32 %v282_v7, 0.0  ;;  %v347_v23 = vmax.f32 %v283_v8, 0.0  ;;  %v215_v24 = vmul.f32 %v3729_v14, %v143_v58  ;;  %v150_v33 = vld [vmem:[%s4482_s0 + $0x120] sm:$0xff] }
  0x24   :  { %v280_v25 = vadd.f32 %v3737_v16, %v210_v9  ;;  %v3934_v28 = vpack.c.bf16 %v1294_v21, %v1292_v11  ;;  %3143 = vmatpush3.bf16.msra.mxu1 %v3842_v13  ;;  %407 = vst [vmem:[#allocation2 + $0x121] sm:$0xff] %v342_v12  ;;  %408 = vst [vmem:[#allocation2 + $0x129] sm:$0xff] %v343_v15  ;;  %v281_v30 = vadd.f32 %v3737_v16, %v211_v17  ;;  %v3949_v13 = vld [vmem:[%s4481_s3 + $0x10] sm:$0xff]   ;;  %v151_v38 = vld [vmem:[%s4482_s0 + $0x128] sm:$0xff] }
  0x25   :  { %v284_v31 = vadd.f32 %v3737_v16, %v214_v19  ;;  %v220_v32 = vmul.f32 %v3729_v14, %v148_v10  ;;  %3144 = vmatprep.subr.bf16.mxu1 %v3577_v6  ;;  %v513_v34 = vld [vmem:[#allocation2 + $0xc1] ss:$2 sm:$0xff]  ;;  %411 = vst [vmem:[#allocation2 + $0x151] sm:$0xff] %v346_v22  ;;  %412 = vst [vmem:[#allocation2 + $0x159] sm:$0xff] %v347_v23  ;;  %v285_v35 = vadd.f32 %v3737_v16, %v215_v24  ;;  %v3961_v43 = vld [vmem:[%s4481_s3 + $0x150] sm:$0xff]  }
  0x26   :  { %v344_v36 = vmax.f32 %v280_v25, 0.0  ;;  %v221_v37 = vmul.f32 %v3729_v14, %v149_v20  ;;  %v218_v39 = vmul.f32 %v3729_v14, %v146_v26  ;;  %3255 = vmatmul.mubr.bf16.vlgmr.msra.gmra.mrb[0].mxu0 %v3934_v28  ;;  %v345_v41 = vmax.f32 %v281_v30, 0.0  ;;  %v152_v46 = vld [vmem:[%s4482_s0 + $0x130] sm:$0xff]  ;;  %v153_v47 = vld [vmem:[%s4482_s0 + $0x138] sm:$0xff]  ;;  %v154_v60 = vld [vmem:[%s4482_s0 + $0x140] sm:$0xff] }
  0x27   :  { %v348_v42 = vmax.f32 %v284_v31, 0.0  ;;  %v290_v44 = vadd.f32 %v3737_v16, %v220_v32  ;;  %v219_v45 = vmul.f32 %v3729_v14, %v147_v27  ;;  %3271 = vmatpush3.bf16.msra.mxu0 %v3848_v18  ;;  %v349_v49 = vmax.f32 %v285_v35, 0.0  ;;  %v156_v52 = vld [vmem:[%s4482_s0 + $0x150] sm:$0xff]  ;;  %v3980_v18 = vld [vmem:[%s4481_s3 + $0x18] sm:$0xff]   ;;  %v155_v2 = vld [vmem:[%s4482_s0 + $0x148] sm:$0xff] }
  0x28   :  { %v515_v40 = vld [vmem:[#allocation2 + $0xf1] ss:$2 sm:$0xff]  ;;  %409 = vst [vmem:[#allocation2 + $0x139] sm:$0xff] %v344_v36  ;;  %v291_v50 = vadd.f32 %v3737_v16, %v221_v37  ;;  %v222_v51 = vmul.f32 %v3729_v14, %v150_v33  ;;  %3272 = vmatprep.subr.bf16.mxu0 %v3578_v29  ;;  %3145 = vmatpush3.bf16.msra.mxu1 %v3577_v6  ;;  %410 = vst [vmem:[#allocation2 + $0x141] sm:$0xff] %v345_v41  ;;  %v158_v8 = vld [vmem:[%s4482_s0 + $0x160] sm:$0xff] }
  0x29   :  { %v538_v48 = vpack.c.bf16 %v515_v40, %v513_v34  ;;  %v1296_v53 = vld [vmem:[#allocation2 + $0xd9] ss:$2 sm:$0xff]  ;;  %413 = vst [vmem:[#allocation2 + $0x169] sm:$0xff] %v348_v42  ;;  %v354_v55 = vmax.f32 %v290_v44, 0.0  ;;  %v223_v56 = vmul.f32 %v3729_v14, %v151_v38  ;;  %v288_v57 = vadd.f32 %v3737_v16, %v218_v39  ;;  %3146 = vmatprep.subr.bf16.mxu1 %v3949_v13  ;;  %v159_v17 = vld [vmem:[%s4482_s0 + $0x168] sm:$0xff]  ;;  %v160_v24 = vld [vmem:[%s4482_s0 + $0x170] sm:$0xff] }
  0x2a   :  { %v289_v58 = vadd.f32 %v3737_v16, %v219_v45  ;;  %v157_v59 = vld [vmem:[%s4482_s0 + $0x158] sm:$0xff]  ;;  %v1298_v61 = vld [vmem:[#allocation2 + $0x109] ss:$2 sm:$0xff]  ;;  %414 = vst [vmem:[#allocation2 + $0x171] sm:$0xff] %v349_v49  ;;  %v355_v62 = vmax.f32 %v291_v50, 0.0  ;;  %v292_v63 = vadd.f32 %v3737_v16, %v222_v51  ;;  %v224_v0 = vmul.f32 %v3729_v14, %v152_v46  ;;  %v4033_v32 = vld [vmem:[%s4481_s3 + $0x20] sm:$0xff]  }
  0x2b   :  { %3130 = vmatprep.mubr.bf16.mxu1 %v538_v48  ;;  %v225_v1 = vmul.f32 %v3729_v14, %v153_v47  ;;  %v3998_v3 = vpack.c.bf16 %v1298_v61, %v1296_v53  ;;  %v4003_v4 = vld [vmem:[%s4481_s3 + $0x158] sm:$0xff]   ;;  %419 = vst [vmem:[#allocation2 + $0x1e1] sm:$0xff] %v354_v55  ;;  %v293_v5 = vadd.f32 %v3737_v16, %v223_v56  ;;  %v352_v6 = vmax.f32 %v288_v57, 0.0  ;;  %v517_v9 = vld [vmem:[#allocation2 + $0x121] ss:$2 sm:$0xff]  ;;  %v164_v35 = vld [vmem:[%s4482_s0 + $0x190] sm:$0xff] }
  0x2c   :  { %v353_v7 = vmax.f32 %v289_v58, 0.0  ;;  %3273 = vmatpush3.bf16.msra.mxu0 %v3578_v29  ;;  %420 = vst [vmem:[#allocation2 + $0x1e9] sm:$0xff] %v355_v62  ;;  %v356_v10 = vmax.f32 %v292_v63, 0.0  ;;  %v228_v11 = vmul.f32 %v3729_v14, %v156_v52  ;;  %v229_v12 = vmul.f32 %v3729_v14, %v157_v59  ;;  %v519_v19 = vld [vmem:[#allocation2 + $0x151] ss:$2 sm:$0xff]  ;;  %3147 = vmatpush3.bf16.msra.mxu1 %v3949_v13  ;;  %v162_v49 = vld [vmem:[%s4482_s0 + $0x180] sm:$0xff] }
  0x2d   :  { %v294_v15 = vadd.f32 %v3737_v16, %v224_v0  ;;  %3258 = vmatprep.mubr.bf16.mxu0 %v3998_v3  ;;  %3274 = vmatprep.subr.bf16.mxu0 %v3961_v43  ;;  %v357_v20 = vmax.f32 %v293_v5, 0.0  ;;  %417 = vst [vmem:[#allocation2 + $0x1c9] sm:$0xff] %v352_v6  ;;  %v295_v21 = vadd.f32 %v3737_v16, %v225_v1  ;;  %v161_v30 = vld [vmem:[%s4482_s0 + $0x178] sm:$0xff]  ;;  %v4065_v52 = vld [vmem:[%s4481_s3 + $0x28] sm:$0xff]  }
  0x2e   :  { %418 = vst [vmem:[#allocation2 + $0x1d1] sm:$0xff] %v353_v7  ;;  %v226_v22 = vmul.f32 %v3729_v14, %v154_v60  ;;  %v227_v23 = vmul.f32 %v3729_v14, %v155_v2  ;;  %v539_v25 = vpack.c.bf16 %v519_v19, %v517_v9  ;;  %421 = vst [vmem:[#allocation2 + $0x1f9] sm:$0xff] %v356_v10  ;;  %3148 = vmatprep.subr.bf16.mxu1 %v3980_v18  ;;  %v165_v36 = vld [vmem:[%s4482_s0 + $0x198] sm:$0xff]  ;;  %v163_v56 = vld [vmem:[%s4482_s0 + $0x188] sm:$0xff] }
  0x2f   :  { %v298_v26 = vadd.f32 %v3737_v16, %v228_v11  ;;  %v299_v27 = vadd.f32 %v3737_v16, %v229_v12  ;;  %v358_v29 = vmax.f32 %v294_v15, 0.0  ;;  %422 = vst [vmem:[#allocation2 + $0x201] sm:$0xff] %v357_v20  ;;  %v359_v31 = vmax.f32 %v295_v21, 0.0  ;;  %v1300_v37 = vld [vmem:[#allocation2 + $0x139] ss:$2 sm:$0xff]  ;;  %v167_v57 = vld [vmem:[%s4482_s0 + $0x1a8] sm:$0xff] }
  0x30   :  { %v230_v33 = vmul.f32 %v3729_v14, %v158_v8  ;;  %v231_v34 = vmul.f32 %v3729_v14, %v159_v17  ;;  %v296_v13 = vadd.f32 %v3737_v16, %v226_v22  ;;  %3131 = vmatmul.mubr.bf16.gmra.mrb[4].mxu1 %v539_v25  ;;  %3275 = vmatpush3.bf16.msra.mxu0 %v3961_v43  ;;  %v521_v38 = vld [vmem:[#allocation2 + $0x1b1] ss:$2 sm:$0xff]  ;;  %v4053_v43 = vld [vmem:[%s4481_s3 + $0x160] sm:$0xff]   ;;  %v4085_v1 = vld [vmem:[%s4481_s3 + $0x168] sm:$0xff]  }
  0x31   :  { %v362_v39 = vmax.f32 %v298_v26, 0.0  ;;  %v363_v40 = vmax.f32 %v299_v27, 0.0  ;;  %423 = vst [vmem:[#allocation2 + $0x211] sm:$0xff] %v358_v29  ;;  %v297_v41 = vadd.f32 %v3737_v16, %v227_v23  ;;  %v232_v42 = vmul.f32 %v3729_v14, %v160_v24  ;;  %v1302_v44 = vld [vmem:[#allocation2 + $0x169] ss:$2 sm:$0xff]  ;;  %3276 = vmatprep.subr.bf16.mxu0 %v4003_v4  ;;  %424 = vst [vmem:[#allocation2 + $0x219] sm:$0xff] %v359_v31 }
  0x32   :  { %v300_v45 = vadd.f32 %v3737_v16, %v230_v33  ;;  %v301_v46 = vadd.f32 %v3737_v16, %v231_v34  ;;  %v360_v47 = vmax.f32 %v296_v13, 0.0  ;;  %v233_v48 = vmul.f32 %v3729_v14, %v161_v30  ;;  %3149 = vmatpush3.bf16.msra.mxu1 %v3980_v18  ;;  %v166_v18 = vld [vmem:[%s4482_s0 + $0x1a0] sm:$0xff]  ;;  %v168_v7 = vld [vmem:[%s4482_s0 + $0x1b0] sm:$0xff]  ;;  %v169_v12 = vld [vmem:[%s4482_s0 + $0x1b8] sm:$0xff] }
  0x33   :  { %v4059_v50 = vpack.c.bf16 %v1302_v44, %v1300_v37  ;;  %427 = vst [vmem:[#allocation2 + $0x241] sm:$0xff] %v362_v39  ;;  %428 = vst [vmem:[#allocation2 + $0x249] sm:$0xff] %v363_v40  ;;  %v361_v51 = vmax.f32 %v297_v41, 0.0  ;;  %v236_v53 = vmul.f32 %v3729_v14, %v164_v35  ;;  %v237_v55 = vmul.f32 %v3729_v14, %v165_v36  ;;  %v523_v58 = vld [vmem:[#allocation2 + $0x1e1] ss:$2 sm:$0xff]  ;;  %v172_v15 = vld [vmem:[%s4482_s0 + $0x1d0] sm:$0xff] }
  0x34   :  { %3150 = vmatprep.subr.bf16.mxu1 %v4033_v32  ;;  %v364_v59 = vmax.f32 %v300_v45, 0.0  ;;  %v365_v60 = vmax.f32 %v301_v46, 0.0  ;;  %425 = vst [vmem:[#allocation2 + $0x229] sm:$0xff] %v360_v47  ;;  %v302_v61 = vadd.f32 %v3737_v16, %v232_v42  ;;  %v303_v62 = vadd.f32 %v3737_v16, %v233_v48  ;;  %3277 = vmatpush3.bf16.msra.mxu0 %v4003_v4  ;;  %v173_v4 = vld [vmem:[%s4482_s0 + $0x1d8] sm:$0xff]  ;;  %v4111_v23 = vld [vmem:[%s4481_s3 + $0x30] sm:$0xff]   ;;  %v170_v24 = vld [vmem:[%s4482_s0 + $0x1c0] sm:$0xff] }
  0x35   :  { %3259 = vmatmul.mubr.bf16.gmra.mrb[4].mxu0 %v4059_v50  ;;  %v540_v63 = vpack.c.bf16 %v523_v58, %v521_v38  ;;  %v1304_v0 = vld [vmem:[#allocation2 + $0x1c9] ss:$2 sm:$0xff]  ;;  %426 = vst [vmem:[#allocation2 + $0x231] sm:$0xff] %v361_v51  ;;  %v306_v2 = vadd.f32 %v3737_v16, %v236_v53  ;;  %v307_v5 = vadd.f32 %v3737_v16, %v237_v55  ;;  %v174_v31 = vld [vmem:[%s4482_s0 + $0x1e0] sm:$0xff]  ;;  %v3589_v58 = vld [vmem:[%s4481_s3 + $0x38] sm:$0xff]  }
  0x36   :  { %v234_v6 = vmul.f32 %v3729_v14, %v162_v49  ;;  %429 = vst [vmem:[#allocation2 + $0x259] sm:$0xff] %v364_v59  ;;  %430 = vst [vmem:[#allocation2 + $0x261] sm:$0xff] %v365_v60  ;;  %v366_v8 = vmax.f32 %v302_v61, 0.0  ;;  %v367_v9 = vmax.f32 %v303_v62, 0.0  ;;  %v235_v10 = vmul.f32 %v3729_v14, %v163_v56  ;;  %v1306_v17 = vld [vmem:[#allocation2 + $0x1f9] ss:$2 sm:$0xff]  ;;  %3278 = vmatprep.subr.bf16.mxu0 %v4053_v43 }
  0x37   :  { %v238_v11 = vmul.f32 %v3729_v14, %v166_v18  ;;  %3134 = vmatprep.mubr.bf16.mxu1 %v540_v63  ;;  %v370_v19 = vmax.f32 %v306_v2, 0.0  ;;  %v371_v20 = vmax.f32 %v307_v5, 0.0  ;;  %v239_v21 = vmul.f32 %v3729_v14, %v167_v57  ;;  %v171_v25 = vld [vmem:[%s4482_s0 + $0x1c8] sm:$0xff]  ;;  %3151 = vmatpush3.bf16.msra.mxu1 %v4033_v32  ;;  %v3588_v47 = vld [vmem:[%s4481_s3 + $0x170] sm:$0xff]   ;;  %v3590_v2 = vld [vmem:[%s4481_s3 + $0x178] sm:$0xff]  }
  0x38   :  { %v304_v22 = vadd.f32 %v3737_v16, %v234_v6  ;;  %v4119_v26 = vpack.c.bf16 %v1306_v17, %v1304_v0  ;;  %431 = vst [vmem:[#allocation2 + $0x271] sm:$0xff] %v366_v8  ;;  %432 = vst [vmem:[#allocation2 + $0x279] sm:$0xff] %v367_v9  ;;  %v305_v27 = vadd.f32 %v3737_v16, %v235_v10  ;;  %v525_v33 = vld [vmem:[#allocation2 + $0x211] ss:$2 sm:$0xff]  ;;  %3152 = vmatprep.subr.bf16.mxu1 %v4065_v52  ;;  %v175_v36 = vld [vmem:[%s4482_s0 + $0x1e8] sm:$0xff] }
  0x39   :  { %v308_v29 = vadd.f32 %v3737_v16, %v238_v11  ;;  %v240_v30 = vmul.f32 %v3729_v14, %v168_v7  ;;  %435 = vst [vmem:[#allocation2 + $0x2a1] sm:$0xff] %v370_v19  ;;  %436 = vst [vmem:[#allocation2 + $0x2a9] sm:$0xff] %v371_v20  ;;  %v309_v34 = vadd.f32 %v3737_v16, %v239_v21  ;;  %3279 = vmatpush3.bf16.msra.mxu0 %v4053_v43  ;;  %v449_v10 = vld [vmem:[#allocation2] ss:$2 sm:$0xff]  ;;  %v451_v11 = vld [vmem:[#allocation2 + $0x30] ss:$2 sm:$0xff] }
  0x3a   :  { %v368_v32 = vmax.f32 %v304_v22, 0.0  ;;  %v241_v13 = vmul.f32 %v3729_v14, %v169_v12  ;;  %v244_v35 = vmul.f32 %v3729_v14, %v172_v15  ;;  %3262 = vmatprep.mubr.bf16.mxu0 %v4119_v26  ;;  %v527_v37 = vld [vmem:[#allocation2 + $0x241] ss:$2 sm:$0xff]  ;;  %v369_v38 = vmax.f32 %v305_v27, 0.0  ;;  %3280 = vmatprep.subr.bf16.mxu0 %v4085_v1  ;;  %v1506_v22 = vld [vmem:[#allocation2 + $0x1a] ss:$2 sm:$0xff] }
  0x3b   :  { %v372_v39 = vmax.f32 %v308_v29, 0.0  ;;  %v245_v40 = vmul.f32 %v3729_v14, %v173_v4  ;;  %v310_v41 = vadd.f32 %v3737_v16, %v240_v30  ;;  %v541_v42 = vpack.c.bf16 %v527_v37, %v525_v33  ;;  %3153 = vmatpush3.bf16.msra.mxu1 %v4065_v52  ;;  %v3592_v15 = vld [vmem:[%s4481_s3 + $0x180] sm:$0xff]   ;;  %v455_v29 = vld [vmem:[#allocation2 + $0x90] ss:$2 sm:$0xff] }
  0x3c   :  { %v373_v44 = vmax.f32 %v309_v34, 0.0  ;;  %433 = vst [vmem:[#allocation2 + $0x289] sm:$0xff] %v368_v32  ;;  %v311_v45 = vadd.f32 %v3737_v16, %v241_v13  ;;  %v314_v46 = vadd.f32 %v3737_v16, %v244_v35  ;;  %v1308_v43 = vld [vmem:[#allocation2 + $0x229] ss:$2 sm:$0xff]  ;;  %434 = vst [vmem:[#allocation2 + $0x291] sm:$0xff] %v369_v38  ;;  %v242_v51 = vmul.f32 %v3729_v14, %v170_v24 }
  0x3d   :  { %437 = vst [vmem:[#allocation2 + $0x2b9] sm:$0xff] %v372_v39  ;;  %v315_v48 = vadd.f32 %v3737_v16, %v245_v40  ;;  %v374_v49 = vmax.f32 %v310_v41, 0.0  ;;  %v243_v53 = vmul.f32 %v3729_v14, %v171_v25  ;;  %3135 = vmatmul.mubr.bf16.gmra.mrb[8].mxu1 %v541_v42  ;;  %v1310_v55 = vld [vmem:[#allocation2 + $0x259] ss:$2 sm:$0xff]  ;;  %3154 = vmatprep.subr.bf16.mxu1 %v4111_v23  ;;  %v453_v27 = vld [vmem:[#allocation2 + $0x60] ss:$2 sm:$0xff] }
  0x3e   :  { %438 = vst [vmem:[#allocation2 + $0x2c1] sm:$0xff] %v373_v44  ;;  %v375_v56 = vmax.f32 %v311_v45, 0.0  ;;  %v378_v18 = vmax.f32 %v314_v46, 0.0  ;;  %v246_v57 = vmul.f32 %v3729_v14, %v174_v31  ;;  %v247_v52 = vmul.f32 %v3729_v14, %v175_v36  ;;  %3281 = vmatpush3.bf16.msra.mxu0 %v4085_v1  ;;  %v457_v34 = vld [vmem:[#allocation2 + $0xc0] ss:$2 sm:$0xff] }
  0x3f   :  { %v4155_v59 = vpack.c.bf16 %v1310_v55, %v1308_v43  ;;  %v379_v60 = vmax.f32 %v315_v48, 0.0  ;;  %439 = vst [vmem:[#allocation2 + $0x2d1] sm:$0xff] %v374_v49  ;;  %v312_v61 = vadd.f32 %v3737_v16, %v242_v51  ;;  %v313_v62 = vadd.f32 %v3737_v16, %v243_v53  ;;  %v529_v63 = vld [vmem:[#allocation2 + $0x271] ss:$2 sm:$0xff]  ;;  %3282 = vmatprep.subr.bf16.mxu0 %v3588_v47  ;;  %v459_v32 = vld [vmem:[#allocation2 + $0xf0] ss:$2 sm:$0xff] }
  0x40   :  { %440 = vst [vmem:[#allocation2 + $0x2d9] sm:$0xff] %v375_v56  ;;  %443 = vst [vmem:[#allocation2 + $0x301] sm:$0xff] %v378_v18  ;;  %v316_v0 = vadd.f32 %v3737_v16, %v246_v57  ;;  %v317_v14 = vadd.f32 %v3737_v16, %v247_v52  ;;  %v531_v1 = vld [vmem:[#allocation2 + $0x2a1] ss:$2 sm:$0xff]  ;;  %3155 = vmatpush3.bf16.msra.mxu1 %v4111_v23  ;;  %v480_v21 = vpack.c.bf16 %v451_v11, %v449_v10  ;;  %v1508_v23 = vld [vmem:[#allocation2 + $0x4a] ss:$2 sm:$0xff] }
  0x41   :  { %3263 = vmatmul.mubr.bf16.gmra.mrb[8].mxu0 %v4155_v59  ;;  %444 = vst [vmem:[#allocation2 + $0x309] sm:$0xff] %v379_v60  ;;  %v376_v5 = vmax.f32 %v312_v61, 0.0  ;;  %v377_v6 = vmax.f32 %v313_v62, 0.0  ;;  %v542_v7 = vpack.c.bf16 %v531_v1, %v529_v63  ;;  %3156 = vmatprep.subr.bf16.mxu1 %v3589_v58  ;;  %v3591_v16 = vld [vmem:[%s4481_s3 + $0x80] sm:$0xff]   ;;  %v1537_v31 = vpack.c.bf16 %v1508_v23, %v1506_v22  ;;  %v1512_v36 = vld [vmem:[#allocation2 + $0xaa] ss:$2 sm:$0xff] }
  0x42   :  { %v380_v8 = vmax.f32 %v316_v0, 0.0  ;;  %v381_v9 = vmax.f32 %v317_v14, 0.0  ;;  %3283 = vmatpush3.bf16.msra.mxu0 %v3588_v47  ;;  %v481_v13 = vpack.c.bf16 %v455_v29, %v453_v27  ;;  %v1510_v35 = vld [vmem:[#allocation2 + $0x7a] ss:$2 sm:$0xff]  ;;  %v482_v38 = vpack.c.bf16 %v459_v32, %v457_v34  ;;  %v1516_v39 = vld [vmem:[#allocation2 + $0x10a] ss:$2 sm:$0xff] }
  0x43   :  { %441 = vst [vmem:[#allocation2 + $0x2e9] sm:$0xff] %v376_v5  ;;  %442 = vst [vmem:[#allocation2 + $0x2f1] sm:$0xff] %v377_v6  ;;  %3138 = vmatprep.mubr.bf16.mxu1 %v542_v7  ;;  %v1312_v12 = vld [vmem:[#allocation2 + $0x289] ss:$2 sm:$0xff]  ;;  %3284 = vmatprep.subr.bf16.mxu0 %v3590_v2  ;;  %v1514_v37 = vld [vmem:[#allocation2 + $0xda] ss:$2 sm:$0xff]  ;;  %v1538_v41 = vpack.c.bf16 %v1512_v36, %v1510_v35 }
  0x44   :  { %445 = vst [vmem:[#allocation2 + $0x319] sm:$0xff] %v380_v8  ;;  %446 = vst [vmem:[#allocation2 + $0x321] sm:$0xff] %v381_v9  ;;  %3157 = vmatpush3.bf16.msra.mxu1 %v3589_v58  ;;  %v3593_v40 = vld [vmem:[%s4481_s3 + $0x88] sm:$0xff]   ;;  %v1539_v44 = vpack.c.bf16 %v1516_v39, %v1514_v37  ;;  %v463_v46 = vld [vmem:[#allocation2 + $0x150] ss:$2 sm:$0xff] }
  0x45   :  { %v1314_v4 = vld [vmem:[#allocation2 + $0x2b9] ss:$2 sm:$0xff]  ;;  %3174 = vmatprep.subr.bf16.mxu1 %v3591_v16  ;;  %v3594_v42 = vld [vmem:[%s4481_s3 + $0x188] sm:$0xff]   ;;  %v3595_v47 = vld [vmem:[%s4481_s3 + $0x90] sm:$0xff]  }
  0x46   :  { %v4173_v17 = vpack.c.bf16 %v1314_v4, %v1312_v12  ;;  %3285 = vmatpush3.bf16.msra.mxu0 %v3590_v2  ;;  %v461_v45 = vld [vmem:[#allocation2 + $0x120] ss:$2 sm:$0xff]  ;;  %v465_v49 = vld [vmem:[#allocation2 + $0x1b0] ss:$2 sm:$0xff] }
  0x47   :  { %v533_v19 = vld [vmem:[#allocation2 + $0x2d1] ss:$2 sm:$0xff]  ;;  %3302 = vmatprep.subr.bf16.mxu0 %v3592_v15  ;;  %v1518_v43 = vld [vmem:[#allocation2 + $0x13a] ss:$2 sm:$0xff]  ;;  %v1520_v48 = vld [vmem:[#allocation2 + $0x16a] ss:$2 sm:$0xff]  ;;  %v483_v53 = vpack.c.bf16 %v463_v46, %v461_v45 }
  0x48   :  { %3266 = vmatprep.mubr.bf16.mxu0 %v4173_v17  ;;  %v535_v20 = vld [vmem:[#allocation2 + $0x301] ss:$2 sm:$0xff]  ;;  %v467_v51 = vld [vmem:[#allocation2 + $0x1e0] ss:$2 sm:$0xff]  ;;  %v3596_v55 = vld [vmem:[%s4481_s3 + $0x190] sm:$0xff]   ;;  %v1540_v58 = vpack.c.bf16 %v1520_v48, %v1518_v43 }
  0x49   :  { %v543_v24 = vpack.c.bf16 %v535_v20, %v533_v19  ;;  %v1522_v56 = vld [vmem:[#allocation2 + $0x1ca] ss:$2 sm:$0xff]  ;;  %v1524_v18 = vld [vmem:[#allocation2 + $0x1fa] ss:$2 sm:$0xff]  ;;  %v484_v52 = vpack.c.bf16 %v467_v51, %v465_v49 }
  0x4a   :  { %v1316_v25 = vld [vmem:[#allocation2 + $0x2e9] ss:$2 sm:$0xff]  ;;  %v3597_v57 = vld [vmem:[%s4481_s3 + $0x98] sm:$0xff]   ;;  %v1541_v61 = vpack.c.bf16 %v1524_v18, %v1522_v56  ;;  %v471_v63 = vld [vmem:[#allocation2 + $0x240] ss:$2 sm:$0xff] }
  0x4b   :  { %3139 = vmatmul.mubr.bf16.gmra.mrb[12].mxu1 %v543_v24  ;;  %v1318_v30 = vld [vmem:[#allocation2 + $0x319] ss:$2 sm:$0xff]  ;;  %v469_v62 = vld [vmem:[#allocation2 + $0x210] ss:$2 sm:$0xff]  ;;  %v475_v6 = vld [vmem:[#allocation2 + $0x2a0] ss:$2 sm:$0xff] }
  0x4c   :  { %v4176_v33 = vpack.c.bf16 %v1318_v30, %v1316_v25  ;;  %3158 = vmatprep.mubr.bf16.mxu1 %v480_v21  ;;  %v3598_v60 = vld [vmem:[%s4481_s3 + $0x198] sm:$0xff]   ;;  %v3599_v0 = vld [vmem:[%s4481_s3 + $0xa0] sm:$0xff]   ;;  %v485_v7 = vpack.c.bf16 %v471_v63, %v469_v62  ;;  %v3602_v12 = vld [vmem:[%s4481_s3 + $0x1a8] sm:$0xff]  }
  0x4d   :  { %v1526_v14 = vld [vmem:[#allocation2 + $0x22a] ss:$2 sm:$0xff]  ;;  %v1528_v2 = vld [vmem:[#allocation2 + $0x25a] ss:$2 sm:$0xff] }
  0x4e   :  { %3267 = vmatmul.mubr.bf16.gmra.mrb[12].mxu0 %v4176_v33  ;;  %v3600_v1 = vld [vmem:[%s4481_s3 + $0x1a0] sm:$0xff]   ;;  %v473_v5 = vld [vmem:[#allocation2 + $0x270] ss:$2 sm:$0xff]  ;;  %v1542_v11 = vpack.c.bf16 %v1528_v2, %v1526_v14  ;;  %v3610_v62 = vld [vmem:[%s4481_s3 + $0x1c8] sm:$0xff]  }
  0x4f   :  { %3286 = vmatprep.mubr.bf16.mxu0 %v1537_v31  ;;  %v1530_v8 = vld [vmem:[#allocation2 + $0x28a] ss:$2 sm:$0xff]  ;;  %v1532_v9 = vld [vmem:[#allocation2 + $0x2ba] ss:$2 sm:$0xff]  ;;  %v486_v10 = vpack.c.bf16 %v475_v6, %v473_v5 }
  0x50   :  { %v477_v4 = vld [vmem:[#allocation2 + $0x2d0] ss:$2 sm:$0xff]  ;;  %v479_v19 = vld [vmem:[#allocation2 + $0x300] ss:$2 sm:$0xff] }
  0x51   :  { %v3603_v20 = vld [vmem:[%s4481_s3 + $0xb0] sm:$0xff]   ;;  %v1536_v22 = vld [vmem:[#allocation2 + $0x31a] ss:$2 sm:$0xff]  ;;  %v487_v32 = vpack.c.bf16 %v479_v19, %v477_v4 }
  0x52   :  { %v1534_v21 = vld [vmem:[#allocation2 + $0x2ea] ss:$2 sm:$0xff]  ;;  %v4224_v30 = vld [vmem:[%s4483_s1] ss:$0 sm:$0xff] }
  0x53   :  { %3159 = vmatmul.mubr.bf16.vlgmr.msra.gmra.mrb[0].mxu1 %v481_v13  ;;  %v852_v23 = vld [vmem:[#allocation2 + $0x2] ss:$2 sm:$0xff]  ;;  %v145_v25 = vld [vmem:[%s4482_s0 + $0xf8] sm:$0xff]  ;;  %v4231_v36 = vld [vmem:[%s4484_s2] ss:$0 sm:$0xff] }
  0x54   :  { %3175 = vmatpush3.bf16.msra.mxu1 %v3591_v16  ;;  %3162 = vmatprep.mubr.bf16.mxu1 %v482_v38  ;;  %v3601_v16 = vld [vmem:[%s4481_s3 + $0xa8] sm:$0xff]   ;;  %v144_v24 = vld [vmem:[%s4482_s0 + $0xf0] sm:$0xff]  ;;  %v217_v34 = vmul.f32 %v4224_v30, %v145_v25  ;;  %v3605_v39 = vld [vmem:[%s4481_s3 + $0xb8] sm:$0xff]  }
  0x55   :  { %3176 = vmatprep.subr.bf16.mxu1 %v3593_v40  ;;  %v3604_v27 = vld [vmem:[%s4481_s3 + $0x1b0] sm:$0xff]   ;;  %v216_v31 = vmul.f32 %v4224_v30, %v144_v24  ;;  %v1726_v35 = vld [vmem:[#allocation2 + $0x60] ss:$2 sm:$0xff]  ;;  %v3606_v45 = vld [vmem:[%s4481_s3 + $0x1b8] sm:$0xff]  }
  0x56   :  { %3287 = vmatmul.mubr.bf16.vlgmr.msra.gmra.mrb[0].mxu0 %v1538_v41  ;;  %v854_v29 = vld [vmem:[#allocation2 + $0x32] ss:$2 sm:$0xff]  ;;  %v287_v38 = vadd.f32 %v4231_v36, %v217_v34  ;;  %v1544_v41 = vpack.c.bf16 %v1536_v22, %v1534_v21  ;;  %v860_v51 = vld [vmem:[#allocation2 + $0xc2] ss:$2 sm:$0xff] }
  0x57   :  { %3303 = vmatpush3.bf16.msra.mxu0 %v3592_v15  ;;  %3290 = vmatprep.mubr.bf16.mxu0 %v1539_v44  ;;  %v1543_v15 = vpack.c.bf16 %v1532_v9, %v1530_v8  ;;  %v1724_v13 = vld [vmem:[#allocation2 + $0x30] ss:$2 sm:$0xff]  ;;  %v286_v37 = vadd.f32 %v4231_v36, %v216_v31  ;;  %v3607_v48 = vld [vmem:[%s4481_s3 + $0xc0] sm:$0xff]  }
  0x58   :  { %3304 = vmatprep.subr.bf16.mxu0 %v3594_v42  ;;  %3177 = vmatpush3.bf16.msra.mxu1 %v3593_v40  ;;  %v883_v40 = vpack.c.bf16 %v854_v29, %v852_v23  ;;  %v351_v44 = vmax.f32 %v287_v38, 0.0  ;;  %v1755_v46 = vpack.c.bf16 %v1726_v35, %v1724_v13  ;;  %v858_v43 = vld [vmem:[#allocation2 + $0x92] ss:$2 sm:$0xff]  ;;  %v870_v9 = vld [vmem:[#allocation2 + $0x1e2] ss:$2 sm:$0xff] }
  0x59   :  { %3178 = vmatprep.subr.bf16.mxu1 %v3595_v47  ;;  %v1728_v49 = vld [vmem:[#allocation2 + $0x90] ss:$2 sm:$0xff]  ;;  %v1730_v56 = vld [vmem:[#allocation2 + $0xc0] ss:$2 sm:$0xff] }
  0x5a   :  { %416 = vst [vmem:[#allocation2 + $0x189] sm:$0xff] %v351_v44  ;;  %v3608_v18 = vld [vmem:[%s4481_s3 + $0x1c0] sm:$0xff]   ;;  %v176_v2 = vld [vmem:[%s4482_s0 + $0x1f0] sm:$0xff]  ;;  %v177_v5 = vld [vmem:[%s4482_s0 + $0x1f8] sm:$0xff] }
  0x5b   :  { %3305 = vmatpush3.bf16.msra.mxu0 %v3594_v42  ;;  %3163 = vmatmul.mubr.bf16.gmra.mrb[4].mxu1 %v483_v53  ;;  %v350_v42 = vmax.f32 %v286_v37, 0.0  ;;  %v862_v53 = vld [vmem:[#allocation2 + $0xf2] ss:$2 sm:$0xff]  ;;  %v248_v6 = vmul.f32 %v4224_v30, %v176_v2  ;;  %v249_v8 = vmul.f32 %v4224_v30, %v177_v5  ;;  %v874_v31 = vld [vmem:[#allocation2 + $0x242] ss:$2 sm:$0xff] }
  0x5c   :  { %3306 = vmatprep.subr.bf16.mxu0 %v3596_v55  ;;  %3179 = vmatpush3.bf16.msra.mxu1 %v3595_v47  ;;  %v856_v47 = vld [vmem:[#allocation2 + $0x62] ss:$2 sm:$0xff]  ;;  %v866_v14 = vld [vmem:[#allocation2 + $0x152] ss:$2 sm:$0xff] }
  0x5d   :  { %3180 = vmatprep.subr.bf16.mxu1 %v3597_v57  ;;  %3166 = vmatprep.mubr.bf16.mxu1 %v484_v52  ;;  %415 = vst [vmem:[#allocation2 + $0x181] sm:$0xff] %v350_v42  ;;  %v1734_v52 = vld [vmem:[#allocation2 + $0x120] ss:$2 sm:$0xff]  ;;  %v3612_v4 = vld [vmem:[%s4481_s3 + $0x1d0] sm:$0xff]   ;;  %v3613_v22 = vld [vmem:[%s4481_s3 + $0xd8] sm:$0xff]  }
  0x5e   :  { %3291 = vmatmul.mubr.bf16.gmra.mrb[4].mxu0 %v1540_v58  ;;  %v3609_v58 = vld [vmem:[%s4481_s3 + $0xc8] sm:$0xff]   ;;  %v872_v30 = vld [vmem:[#allocation2 + $0x212] ss:$2 sm:$0xff] }
  0x5f   :  { %3307 = vmatpush3.bf16.msra.mxu0 %v3596_v55  ;;  %3294 = vmatprep.mubr.bf16.mxu0 %v1541_v61  ;;  %v884_v55 = vpack.c.bf16 %v858_v43, %v856_v47  ;;  %v1756_v61 = vpack.c.bf16 %v1730_v56, %v1728_v49  ;;  %v1740_v19 = vld [vmem:[#allocation2 + $0x1e0] ss:$2 sm:$0xff]  ;;  %v1746_v13 = vld [vmem:[#allocation2 + $0x270] ss:$2 sm:$0xff]  ;;  %v888_v38 = vpack.c.bf16 %v874_v31, %v872_v30 }
  0x60   :  { %3308 = vmatprep.subr.bf16.mxu0 %v3598_v60  ;;  %3181 = vmatpush3.bf16.msra.mxu1 %v3597_v57  ;;  %v1732_v57 = vld [vmem:[#allocation2 + $0xf0] ss:$2 sm:$0xff]  ;;  %v3615_v34 = vld [vmem:[%s4481_s3 + $0xe0] sm:$0xff]  }
  0x61   :  { %3182 = vmatprep.subr.bf16.mxu1 %v3599_v0  ;;  %v1757_v63 = vpack.c.bf16 %v1734_v52, %v1732_v57  ;;  %v3616_v35 = vld [vmem:[%s4481_s3 + $0x1e0] sm:$0xff]   ;;  %v1942_v57 = vld [vmem:[#allocation2 + $0x31] ss:$2 sm:$0xff] }
  0x62   :  { %v878_v37 = vld [vmem:[#allocation2 + $0x2a2] ss:$2 sm:$0xff]  ;;  %v880_v47 = vld [vmem:[#allocation2 + $0x2d2] ss:$2 sm:$0xff]  ;;  %v1944_v52 = vld [vmem:[#allocation2 + $0x61] ss:$2 sm:$0xff] }
  0x63   :  { %3309 = vmatpush3.bf16.msra.mxu0 %v3598_v60  ;;  %3167 = vmatmul.mubr.bf16.gmra.mrb[8].mxu1 %v485_v7  ;;  %v885_v60 = vpack.c.bf16 %v862_v53, %v860_v51  ;;  %v868_v7 = vld [vmem:[#allocation2 + $0x1b2] ss:$2 sm:$0xff]  ;;  %v882_v43 = vld [vmem:[#allocation2 + $0x302] ss:$2 sm:$0xff] }
  0x64   :  { %3310 = vmatprep.subr.bf16.mxu0 %v3600_v1  ;;  %3183 = vmatpush3.bf16.msra.mxu1 %v3599_v0  ;;  %v864_v0 = vld [vmem:[#allocation2 + $0x122] ss:$2 sm:$0xff]  ;;  %v887_v23 = vpack.c.bf16 %v870_v9, %v868_v7  ;;  %v890_v53 = vpack.c.bf16 %v882_v43, %v880_v47  ;;  %v1948_v7 = vld [vmem:[#allocation2 + $0xc1] ss:$2 sm:$0xff] }
  0x65   :  { %3184 = vmatprep.subr.bf16.mxu1 %v3601_v16  ;;  %3170 = vmatprep.mubr.bf16.mxu1 %v486_v10  ;;  %v886_v10 = vpack.c.bf16 %v866_v14, %v864_v0  ;;  %v1070_v49 = vld [vmem:[#allocation2 + $0x18] ss:$2 sm:$0xff]  ;;  %v1072_v51 = vld [vmem:[#allocation2 + $0x48] ss:$2 sm:$0xff]  ;;  %v1973_v0 = vpack.c.bf16 %v1944_v52, %v1942_v57 }
  0x66   :  { %3295 = vmatmul.mubr.bf16.gmra.mrb[8].mxu0 %v1542_v11  ;;  %v1736_v11 = vld [vmem:[#allocation2 + $0x150] ss:$2 sm:$0xff]  ;;  %v3629_v5 = vld [vmem:[%s4485_s4] sm:$0xff]  }
  0x67   :  { %3311 = vmatpush3.bf16.msra.mxu0 %v3600_v1  ;;  %3298 = vmatprep.mubr.bf16.mxu0 %v1543_v15  ;;  %v3611_v1 = vld [vmem:[%s4481_s3 + $0xd0] sm:$0xff]   ;;  %v319_v15 = vadd.f32 %v4231_v36, %v249_v8  ;;  %v1078_v2 = vld [vmem:[#allocation2 + $0xd8] ss:$2 sm:$0xff] }
  0x68   :  { %3312 = vmatprep.subr.bf16.mxu0 %v3602_v12  ;;  %3185 = vmatpush3.bf16.msra.mxu1 %v3601_v16  ;;  %v318_v16 = vadd.f32 %v4231_v36, %v248_v6  ;;  %v876_v36 = vld [vmem:[#allocation2 + $0x272] ss:$2 sm:$0xff]  ;;  %v1946_v6 = vld [vmem:[#allocation2 + $0x91] ss:$2 sm:$0xff] }
  0x69   :  { %3186 = vmatprep.subr.bf16.mxu1 %v3603_v20  ;;  %v383_v24 = vmax.f32 %v319_v15, 0.0  ;;  %v889_v42 = vpack.c.bf16 %v878_v37, %v876_v36  ;;  %v1076_v14 = vld [vmem:[#allocation2 + $0xa8] ss:$2 sm:$0xff]  ;;  %v3623_v8 = vld [vmem:[%s4481_s3 + $0x200] sm:$0xff]   ;;  %v3626_v37 = vld [vmem:[%s4481_s3 + $0x218] sm:$0xff]  }
  0x6a   :  { %v382_v21 = vmax.f32 %v318_v16, 0.0  ;;  %v1950_v16 = vld [vmem:[#allocation2 + $0xf1] ss:$2 sm:$0xff]  ;;  %v3631_v15 = vld [vmem:[%s4485_s4 + $0x8] sm:$0xff]   ;;  %v3627_v47 = vld [vmem:[%s4481_s3 + $0x220] sm:$0xff]  }
  0x6b   :  { %3313 = vmatpush3.bf16.msra.mxu0 %v3602_v12  ;;  %3171 = vmatmul.mubr.bf16.gmra.mrb[12].mxu1 %v487_v32  ;;  %v1738_v12 = vld [vmem:[#allocation2 + $0x180] ss:$2 sm:$0xff]  ;;  %448 = vst [vmem:[#allocation2 + $0x339] sm:$0xff] %v383_v24  ;;  %v3633_v24 = vld [vmem:[%s4485_s4 + $0x10] sm:$0xff]  }
  0x6c   :  { %3314 = vmatprep.subr.bf16.mxu0 %v3604_v27  ;;  %3187 = vmatpush3.bf16.msra.mxu1 %v3603_v20  ;;  %v1742_v20 = vld [vmem:[#allocation2 + $0x210] ss:$2 sm:$0xff]  ;;  %v1758_v25 = vpack.c.bf16 %v1738_v12, %v1736_v11  ;;  %447 = vst [vmem:[#allocation2 + $0x331] sm:$0xff] %v382_v21  ;;  %v1744_v32 = vld [vmem:[#allocation2 + $0x240] ss:$2 sm:$0xff]  ;;  %v1974_v12 = vpack.c.bf16 %v1948_v7, %v1946_v6 }
  0x6d   :  { %3188 = vmatprep.subr.bf16.mxu1 %v3605_v39  ;;  %3190 = vmatprep.mubr.bf16.mxu1 %v883_v40  ;;  %v1759_v29 = vpack.c.bf16 %v1742_v20, %v1740_v19  ;;  %v1750_v40 = vld [vmem:[#allocation2 + $0x2d0] ss:$2 sm:$0xff]  ;;  %v1760_v44 = vpack.c.bf16 %v1746_v13, %v1744_v32  ;;  %v1952_v11 = vld [vmem:[#allocation2 + $0x121] ss:$2 sm:$0xff]  ;;  %v1960_v32 = vld [vmem:[#allocation2 + $0x211] ss:$2 sm:$0xff] }
  0x6e   :  { %3299 = vmatmul.mubr.bf16.gmra.mrb[12].mxu0 %v1544_v41  ;;  %v3617_v41 = vld [vmem:[%s4481_s3 + $0xe8] sm:$0xff]   ;;  %v1082_v20 = vld [vmem:[#allocation2 + $0x138] ss:$2 sm:$0xff]  ;;  %v3625_v30 = vld [vmem:[%s4481_s3 + $0x210] sm:$0xff]  }
  0x6f   :  { %3315 = vmatpush3.bf16.msra.mxu0 %v3604_v27  ;;  %3318 = vmatprep.mubr.bf16.mxu0 %v1755_v46  ;;  %v3614_v27 = vld [vmem:[%s4481_s3 + $0x1d8] sm:$0xff]   ;;  %v3624_v19 = vld [vmem:[%s4481_s3 + $0x208] sm:$0xff]   ;;  %v3637_v52 = vld [vmem:[%s4485_s4 + $0x30] sm:$0xff]  }
  0x70   :  { %3316 = vmatprep.subr.bf16.mxu0 %v3606_v45  ;;  %3189 = vmatpush3.bf16.msra.mxu1 %v3605_v39  ;;  %v1748_v39 = vld [vmem:[#allocation2 + $0x2a0] ss:$2 sm:$0xff] }
  0x71   :  { %3206 = vmatprep.subr.bf16.mxu1 %v3607_v48  ;;  %v1761_v46 = vpack.c.bf16 %v1750_v40, %v1748_v39  ;;  %v1084_v21 = vld [vmem:[#allocation2 + $0x168] ss:$2 sm:$0xff]  ;;  %v1092_v39 = vld [vmem:[#allocation2 + $0x258] ss:$2 sm:$0xff] }
  0x72   :  { %v1094_v40 = vld [vmem:[#allocation2 + $0x288] ss:$2 sm:$0xff]  ;;  %v1100_v57 = vld [vmem:[#allocation2 + $0x318] ss:$2 sm:$0xff] }
  0x73   :  { %3317 = vmatpush3.bf16.msra.mxu0 %v3606_v45  ;;  %3191 = vmatmul.mubr.bf16.vlgmr.msra.gmra.mrb[0].mxu1 %v884_v55  ;;  %v3618_v45 = vld [vmem:[%s4481_s3 + $0x1e8] sm:$0xff]   ;;  %v1754_v56 = vld [vmem:[#allocation2 + $0x330] ss:$2 sm:$0xff] }
  0x74   :  { %3334 = vmatprep.subr.bf16.mxu0 %v3608_v18  ;;  %3207 = vmatpush3.bf16.msra.mxu1 %v3607_v48  ;;  %v3619_v48 = vld [vmem:[%s4481_s3 + $0xf0] sm:$0xff]   ;;  %v1752_v55 = vld [vmem:[#allocation2 + $0x300] ss:$2 sm:$0xff] }
  0x75   :  { %3208 = vmatprep.subr.bf16.mxu1 %v3609_v58  ;;  %3194 = vmatprep.mubr.bf16.mxu1 %v885_v60  ;;  %v1101_v60 = vpack.c.bf16 %v1072_v51, %v1070_v49  ;;  %v1968_v49 = vld [vmem:[#allocation2 + $0x2d1] ss:$2 sm:$0xff]  ;;  %v2164_v6 = vld [vmem:[#allocation2 + $0x92] ss:$2 sm:$0xff]  ;;  %v2166_v7 = vld [vmem:[#allocation2 + $0xc2] ss:$2 sm:$0xff] }
  0x76   :  { %3319 = vmatmul.mubr.bf16.vlgmr.msra.gmra.mrb[0].mxu0 %v1756_v61  ;;  %v1762_v61 = vpack.c.bf16 %v1754_v56, %v1752_v55  ;;  %v3628_v56 = vld [vmem:[%s4481_s3 + $0x228] sm:$0xff]  }
  0x77   :  { %3335 = vmatpush3.bf16.msra.mxu0 %v3608_v18  ;;  %3322 = vmatprep.mubr.bf16.mxu0 %v1757_v63  ;;  %v3620_v18 = vld [vmem:[%s4481_s3 + $0x1f0] sm:$0xff]   ;;  %v1074_v63 = vld [vmem:[#allocation2 + $0x78] ss:$2 sm:$0xff] }
  0x78   :  { %3336 = vmatprep.subr.bf16.mxu0 %v3610_v62  ;;  %3209 = vmatpush3.bf16.msra.mxu1 %v3609_v58  ;;  %v3621_v58 = vld [vmem:[%s4481_s3 + $0xf8] sm:$0xff]   ;;  %v1102_v9 = vpack.c.bf16 %v1076_v14, %v1074_v63 }
  0x79   :  { %3210 = vmatprep.subr.bf16.mxu1 %v3611_v1  ;;  %v2160_v63 = vld [vmem:[#allocation2 + $0x32] ss:$2 sm:$0xff] }
  0x7b   :  { %3337 = vmatpush3.bf16.msra.mxu0 %v3610_v62  ;;  %3195 = vmatmul.mubr.bf16.gmra.mrb[4].mxu1 %v886_v10  ;;  %v3622_v62 = vld [vmem:[%s4481_s3 + $0x1f8] sm:$0xff]  }
  0x7c   :  { %3338 = vmatprep.subr.bf16.mxu0 %v3612_v4  ;;  %3211 = vmatpush3.bf16.msra.mxu1 %v3611_v1  ;;  %v1080_v1 = vld [vmem:[#allocation2 + $0x108] ss:$2 sm:$0xff] }
  0x7d   :  { %3212 = vmatprep.subr.bf16.mxu1 %v3613_v22  ;;  %3198 = vmatprep.mubr.bf16.mxu1 %v887_v23  ;;  %v1103_v10 = vpack.c.bf16 %v1080_v1, %v1078_v2  ;;  %v1088_v23 = vld [vmem:[#allocation2 + $0x1f8] ss:$2 sm:$0xff] }
  0x7e   :  { %3323 = vmatmul.mubr.bf16.gmra.mrb[4].mxu0 %v1758_v25  ;;  %v1104_v25 = vpack.c.bf16 %v1084_v21, %v1082_v20  ;;  %v3638_v2 = vld [vmem:[%s4485_s4 + $0x38] sm:$0xff]   ;;  %v2180_v20 = vld [vmem:[#allocation2 + $0x242] ss:$2 sm:$0xff] }
  0x7f   :  { %3339 = vmatpush3.bf16.msra.mxu0 %v3612_v4  ;;  %3326 = vmatprep.mubr.bf16.mxu0 %v1759_v29  ;;  %v1975_v4 = vpack.c.bf16 %v1952_v11, %v1950_v16  ;;  %v1956_v29 = vld [vmem:[#allocation2 + $0x181] ss:$2 sm:$0xff]  ;;  %v2192_v16 = vpack.c.bf16 %v2166_v7, %v2164_v6  ;;  %v2174_v11 = vld [vmem:[#allocation2 + $0x182] ss:$2 sm:$0xff]  ;;  %v2182_v21 = vld [vmem:[#allocation2 + $0x272] ss:$2 sm:$0xff] }
  0x80   :  { %3340 = vmatprep.subr.bf16.mxu0 %v3614_v27  ;;  %3213 = vmatpush3.bf16.msra.mxu1 %v3613_v22  ;;  %v1086_v22 = vld [vmem:[#allocation2 + $0x1c8] ss:$2 sm:$0xff] }
  0x81   :  { %3214 = vmatprep.subr.bf16.mxu1 %v3615_v34  ;;  %v1105_v31 = vpack.c.bf16 %v1088_v23, %v1086_v22  ;;  %v2184_v22 = vld [vmem:[#allocation2 + $0x2a2] ss:$2 sm:$0xff]  ;;  %v2196_v23 = vpack.c.bf16 %v2182_v21, %v2180_v20 }
  0x83   :  { %3341 = vmatpush3.bf16.msra.mxu0 %v3614_v27  ;;  %3199 = vmatmul.mubr.bf16.gmra.mrb[8].mxu1 %v888_v38  ;;  %v1954_v27 = vld [vmem:[#allocation2 + $0x151] ss:$2 sm:$0xff]  ;;  %v1090_v38 = vld [vmem:[#allocation2 + $0x228] ss:$2 sm:$0xff] }
  0x84   :  { %3342 = vmatprep.subr.bf16.mxu0 %v3616_v35  ;;  %3215 = vmatpush3.bf16.msra.mxu1 %v3615_v34  ;;  %v1958_v34 = vld [vmem:[#allocation2 + $0x1e1] ss:$2 sm:$0xff]  ;;  %v1976_v13 = vpack.c.bf16 %v1956_v29, %v1954_v27 }
  0x85   :  { %3216 = vmatprep.subr.bf16.mxu1 %v3617_v41  ;;  %3202 = vmatprep.mubr.bf16.mxu1 %v889_v42  ;;  %v1977_v36 = vpack.c.bf16 %v1960_v32, %v1958_v34  ;;  %v3635_v42 = vld [vmem:[%s4485_s4 + $0x20] sm:$0xff]  }
  0x86   :  { %3327 = vmatmul.mubr.bf16.gmra.mrb[8].mxu0 %v1760_v44  ;;  %v1106_v44 = vpack.c.bf16 %v1092_v39, %v1090_v38 }
  0x87   :  { %3343 = vmatpush3.bf16.msra.mxu0 %v3616_v35  ;;  %3330 = vmatprep.mubr.bf16.mxu0 %v1761_v46  ;;  %v3634_v35 = vld [vmem:[%s4485_s4 + $0x18] sm:$0xff]  }
  0x88   :  { %3344 = vmatprep.subr.bf16.mxu0 %v3618_v45  ;;  %3217 = vmatpush3.bf16.msra.mxu1 %v3617_v41  ;;  %v1096_v41 = vld [vmem:[#allocation2 + $0x2b8] ss:$2 sm:$0xff]  ;;  %v1964_v46 = vld [vmem:[#allocation2 + $0x271] ss:$2 sm:$0xff] }
  0x89   :  { %3218 = vmatprep.subr.bf16.mxu1 %v3619_v48  ;;  %v1107_v43 = vpack.c.bf16 %v1096_v41, %v1094_v40 }
  0x8b   :  { %3345 = vmatpush3.bf16.msra.mxu0 %v3618_v45  ;;  %3203 = vmatmul.mubr.bf16.gmra.mrb[12].mxu1 %v890_v53  ;;  %v1962_v45 = vld [vmem:[#allocation2 + $0x241] ss:$2 sm:$0xff] }
  0x8c   :  { %3346 = vmatprep.subr.bf16.mxu0 %v3620_v18  ;;  %3219 = vmatpush3.bf16.msra.mxu1 %v3619_v48  ;;  %v1966_v48 = vld [vmem:[#allocation2 + $0x2a1] ss:$2 sm:$0xff]  ;;  %v1978_v51 = vpack.c.bf16 %v1964_v46, %v1962_v45 }
  0x8d   :  { %3220 = vmatprep.subr.bf16.mxu1 %v3621_v58  ;;  %3222 = vmatprep.mubr.bf16.mxu1 %v1101_v60  ;;  %v3636_v53 = vld [vmem:[%s4485_s4 + $0x28] sm:$0xff]   ;;  %v1979_v55 = vpack.c.bf16 %v1968_v49, %v1966_v48 }
  0x8e   :  { %3331 = vmatmul.mubr.bf16.gmra.mrb[12].mxu0 %v1762_v61  ;;  %v1970_v60 = vld [vmem:[#allocation2 + $0x301] ss:$2 sm:$0xff]  ;;  %v1972_v61 = vld [vmem:[#allocation2 + $0x331] ss:$2 sm:$0xff] }
  0x8f   :  { %3347 = vmatpush3.bf16.msra.mxu0 %v3620_v18  ;;  %3350 = vmatprep.mubr.bf16.mxu0 %v1973_v0  ;;  %v1098_v18 = vld [vmem:[#allocation2 + $0x2e8] ss:$2 sm:$0xff]  ;;  %v1980_v14 = vpack.c.bf16 %v1972_v61, %v1970_v60 }
  0x90   :  { %3348 = vmatprep.subr.bf16.mxu0 %v3622_v62  ;;  %3221 = vmatpush3.bf16.msra.mxu1 %v3621_v58  ;;  %v1108_v58 = vpack.c.bf16 %v1100_v57, %v1098_v18  ;;  %v2162_v0 = vld [vmem:[#allocation2 + $0x62] ss:$2 sm:$0xff] }
  0x91   :  { %3398 = vmatprep.subr.bf16.mxu1 %v3629_v5  ;;  %v2191_v1 = vpack.c.bf16 %v2162_v0, %v2160_v63 }
  0x93   :  { %3349 = vmatpush3.bf16.msra.mxu0 %v3622_v62  ;;  %3223 = vmatmul.mubr.bf16.vlgmr.msra.gmra.mrb[0].mxu1 %v1102_v9  ;;  %v3630_v62 = vld [vmem:[%s4481_s3 + $0x230] sm:$0xff]  }
  0x94   :  { %3366 = vmatprep.subr.bf16.mxu0 %v3623_v8  ;;  %3226 = vmatprep.mubr.bf16.mxu1 %v1103_v10  ;;  %v2170_v9 = vld [vmem:[#allocation2 + $0x122] ss:$2 sm:$0xff] }
  0x95   :  { %3399 = vmatpush3.bf16.msra.mxu1 %v3629_v5  ;;  %v3632_v5 = vld [vmem:[%s4481_s3 + $0x238] sm:$0xff]  }
  0x96   :  { %3351 = vmatmul.mubr.bf16.vlgmr.msra.gmra.mrb[0].mxu0 %v1974_v12  ;;  %3400 = vmatprep.subr.bf16.mxu1 %v3631_v15  ;;  %v2176_v12 = vld [vmem:[#allocation2 + $0x1e2] ss:$2 sm:$0xff] }
  0x97   :  { %3367 = vmatpush3.bf16.msra.mxu0 %v3623_v8  ;;  %3354 = vmatprep.mubr.bf16.mxu0 %v1975_v4  ;;  %v2168_v8 = vld [vmem:[#allocation2 + $0xf2] ss:$2 sm:$0xff] }
  0x98   :  { %3368 = vmatprep.subr.bf16.mxu0 %v3624_v19  ;;  %v2193_v10 = vpack.c.bf16 %v2170_v9, %v2168_v8 }
  0x99   :  { %3401 = vmatpush3.bf16.msra.mxu1 %v3631_v15  ;;  %v2178_v15 = vld [vmem:[#allocation2 + $0x212] ss:$2 sm:$0xff] }
  0x9a   :  { %3402 = vmatprep.subr.bf16.mxu1 %v3633_v24 }
  0x9b   :  { %3369 = vmatpush3.bf16.msra.mxu0 %v3624_v19  ;;  %3227 = vmatmul.mubr.bf16.gmra.mrb[4].mxu1 %v1104_v25  ;;  %v2195_v19 = vpack.c.bf16 %v2178_v15, %v2176_v12  ;;  %v2190_v25 = vld [vmem:[#allocation2 + $0x332] ss:$2 sm:$0xff] }
  0x9c   :  { %3370 = vmatprep.subr.bf16.mxu0 %v3625_v30  ;;  %3230 = vmatprep.mubr.bf16.mxu1 %v1105_v31 }
  0x9d   :  { %3403 = vmatpush3.bf16.msra.mxu1 %v3633_v24  ;;  %v2188_v24 = vld [vmem:[#allocation2 + $0x302] ss:$2 sm:$0xff] }
  0x9e   :  { %3355 = vmatmul.mubr.bf16.gmra.mrb[4].mxu0 %v1976_v13  ;;  %3404 = vmatprep.subr.bf16.mxu1 %v3634_v35  ;;  %v2198_v27 = vpack.c.bf16 %v2190_v25, %v2188_v24 }
  0x9f   :  { %3371 = vmatpush3.bf16.msra.mxu0 %v3625_v30  ;;  %3358 = vmatprep.mubr.bf16.mxu0 %v1977_v36 }
  0xa0   :  { %3372 = vmatprep.subr.bf16.mxu0 %v3626_v37 }
  0xa1   :  { %3405 = vmatpush3.bf16.msra.mxu1 %v3634_v35 }
  0xa2   :  { %3406 = vmatprep.subr.bf16.mxu1 %v3635_v42 }
  0xa3   :  { %3373 = vmatpush3.bf16.msra.mxu0 %v3626_v37  ;;  %3231 = vmatmul.mubr.bf16.gmra.mrb[8].mxu1 %v1106_v44 }
  0xa4   :  { %3374 = vmatprep.subr.bf16.mxu0 %v3627_v47  ;;  %3234 = vmatprep.mubr.bf16.mxu1 %v1107_v43 }
  0xa5   :  { %3407 = vmatpush3.bf16.msra.mxu1 %v3635_v42 }
  0xa6   :  { %3359 = vmatmul.mubr.bf16.gmra.mrb[8].mxu0 %v1978_v51  ;;  %3408 = vmatprep.subr.bf16.mxu1 %v3636_v53 }
  0xa7   :  { %3375 = vmatpush3.bf16.msra.mxu0 %v3627_v47  ;;  %3362 = vmatprep.mubr.bf16.mxu0 %v1979_v55 }
  0xa8   :  { %3376 = vmatprep.subr.bf16.mxu0 %v3628_v56 }
  0xa9   :  { %3409 = vmatpush3.bf16.msra.mxu1 %v3636_v53 }
  0xaa   :  { %3410 = vmatprep.subr.bf16.mxu1 %v3637_v52 }
  0xab   :  { %3377 = vmatpush3.bf16.msra.mxu0 %v3628_v56  ;;  %3235 = vmatmul.mubr.bf16.gmra.mrb[12].mxu1 %v1108_v58 }
  0xac   :  { %3378 = vmatprep.subr.bf16.mxu0 %v3630_v62  ;;  %3414 = vmatprep.mubr.bf16.mxu1 %v3899_v54  ;;  %v2172_v54 = vld [vmem:[#allocation2 + $0x152] ss:$2 sm:$0xff] }
  0xad   :  { %3411 = vmatpush3.bf16.msra.mxu1 %v3637_v52  ;;  %v2194_v4 = vpack.c.bf16 %v2174_v11, %v2172_v54 }
  0xae   :  { %3363 = vmatmul.mubr.bf16.gmra.mrb[12].mxu0 %v1980_v14  ;;  %3412 = vmatprep.subr.bf16.mxu1 %v3638_v2 }
  0xaf   :  { %3379 = vmatpush3.bf16.msra.mxu0 %v3630_v62  ;;  %3382 = vmatprep.mubr.bf16.mxu0 %v2191_v1 }
  0xb0   :  { %3380 = vmatprep.subr.bf16.mxu0 %v3632_v5 }
  0xb1   :  { %3413 = vmatpush3.bf16.msra.mxu1 %v3638_v2 }
  0xb3   :  { %3381 = vmatpush3.bf16.msra.mxu0 %v3632_v5 }
  0xb4   :  { %3415 = vmatmul.mubr.bf16.vlgmr.msra.gmra.mrb[16].mxu1 %v3934_v28  ;;  %v2186_v28 = vld [vmem:[#allocation2 + $0x2d2] ss:$2 sm:$0xff] }
  0xb5   :  { %3418 = vmatprep.mubr.bf16.mxu1 %v3998_v3  ;;  %v2197_v3 = vpack.c.bf16 %v2186_v28, %v2184_v22 }
  0xb6   :  { %3383 = vmatmul.mubr.bf16.vlgmr.msra.gmra.mrb[0].mxu0 %v2192_v16 }
  0xb7   :  { %3386 = vmatprep.mubr.bf16.mxu0 %v2193_v10 }
  0xbc   :  { %3419 = vmatmul.mubr.bf16.gmra.mrb[20].mxu1 %v4059_v50 }
  0xbd   :  { %3422 = vmatprep.mubr.bf16.mxu1 %v4119_v26 }
  0xbe   :  { %3387 = vmatmul.mubr.bf16.gmra.mrb[4].mxu0 %v2194_v4 }
  0xbf   :  { %3390 = vmatprep.mubr.bf16.mxu0 %v2195_v19 }
  0xc4   :  { %3423 = vmatmul.mubr.bf16.gmra.mrb[24].mxu1 %v4155_v59 }
  0xc5   :  { %3426 = vmatprep.mubr.bf16.mxu1 %v4173_v17 }
  0xc6   :  { %3391 = vmatmul.mubr.bf16.gmra.mrb[8].mxu0 %v2196_v23 }
  0xc7   :  { %3394 = vmatprep.mubr.bf16.mxu0 %v2197_v3 }
  0xcc   :  { %3427 = vmatmul.mubr.bf16.gmra.mrb[28].mxu1 %v4176_v33 }
  0xce   :  { %3395 = vmatmul.mubr.bf16.gmra.mrb[12].mxu0 %v2198_v27 }
 0x166   :  { %v3224_v50 = vpop.f32.mrb[0].mxu1 }
 0x167   :  { %v1208_v26 = vpop.f32.mrb[1].mxu1 }
 0x168   :  { %v3225_v29 = vpop.f32.mrb[2].mxu1 }
 0x169   :  { %v1211_v30 = vpop.f32.mrb[3].mxu1 }
 0x16e   :  { %v3228_v31 = vpop.f32.mrb[4].mxu1 }
 0x16f   :  { %v1224_v34 = vpop.f32.mrb[5].mxu1 }
 0x170   :  { %v3229_v32 = vpop.f32.mrb[6].mxu1 }
 0x171   :  { %v1227_v13 = vpop.f32.mrb[7].mxu1 }
 0x176   :  { %v4355_v35 = vpop.f32.mrb[8].mxu1 }
 0x177   :  { %v4357_v59 = vpop.f32.mrb[9].mxu1 }
 0x178   :  { %v4359_v17 = vpop.f32.mrb[10].mxu1 }
 0x179   :  { %v4361_v36 = vpop.f32.mrb[11].mxu1 }
 0x17e   :  { %v4363_v37 = vpop.f32.mrb[12].mxu1 }
 0x17f   :  { %v4365_v33 = vpop.f32.mrb[13].mxu1 }
 0x180   :  { %v4367_v38 = vpop.f32.mrb[14].mxu1 }
 0x181   :  { %v4369_v39 = vpop.f32.mrb[15].mxu1 }
 0x187   :  { %v3416_v40 = vpop.f32.mrb[16].mxu1 }
 0x188   :  { %2616 = vst [vmem:[%s4486_s6 + $0x10] sm:$0xff] %v3416_v40  ;;  %v2551_v41 = vpop.f32.mrb[17].mxu1 }
 0x189   :  { %v3384_v42 = vpop.f32.mrb[0].mxu0  ;;  %2614 = vst [vmem:[%s4486_s6] sm:$0xff] %v2551_v41  ;;  %v3417_v44 = vpop.f32.mrb[18].mxu1 }
 0x18a   :  { %v3430_v45 = vadd.f32 %v3384_v42, %v3224_v50  ;;  %v2298_v46 = vpop.f32.mrb[1].mxu0  ;;  %2617 = vst [vmem:[%s4486_s6 + $0x18] sm:$0xff] %v3417_v44  ;;  %v2554_v47 = vpop.f32.mrb[19].mxu1 }
 0x18b   :  { %v3431_v43 = vadd.f32 %v2298_v46, %v1208_v26  ;;  %v3385_v48 = vpop.f32.mrb[2].mxu0  ;;  %2615 = vst [vmem:[%s4486_s6 + $0x8] sm:$0xff] %v2554_v47 }
 0x18c   :  { %2379 = vst [vmem:[%s4487_s5 + $0x10] sm:$0xff] %v3430_v45  ;;  %v3432_v49 = vadd.f32 %v3385_v48, %v3225_v29  ;;  %v2301_v51 = vpop.f32.mrb[3].mxu0  ;;  %v2417_v58 = vmul.f32 %v3430_v45, %v3430_v45 }
 0x18d   :  { %2377 = vst [vmem:[%s4487_s5] sm:$0xff] %v3431_v43  ;;  %v3433_v53 = vadd.f32 %v2301_v51, %v1211_v30  ;;  %v2415_v55 = vmul.f32 %v3431_v43, %v3431_v43 }
 0x18e   :  { %2380 = vst [vmem:[%s4487_s5 + $0x18] sm:$0xff] %v3432_v49  ;;  %v2418_v1 = vmul.f32 %v3432_v49, %v3432_v49 }
 0x18f   :  { %2378 = vst [vmem:[%s4487_s5 + $0x8] sm:$0xff] %v3433_v53  ;;  %v2393_v56 = vadd.f32 %v3433_v53, %v3431_v43  ;;  %v2416_v18 = vmul.f32 %v3433_v53, %v3433_v53  ;;  %v3420_v57 = vpop.f32.mrb[20].mxu1 }
 0x190   :  { %2620 = vst [vmem:[%s4486_s6 + $0x30] sm:$0xff] %v3420_v57  ;;  %v2567_v52 = vpop.f32.mrb[21].mxu1 }
 0x191   :  { %v2394_v60 = vadd.f32 %v3430_v45, %v2393_v56  ;;  %v2431_v61 = vadd.f32 %v2416_v18, %v2415_v55  ;;  %v3388_v62 = vpop.f32.mrb[4].mxu0  ;;  %2618 = vst [vmem:[%s4486_s6 + $0x20] sm:$0xff] %v2567_v52  ;;  %v3421_v63 = vpop.f32.mrb[22].mxu1 }
 0x192   :  { %v3434_v0 = vadd.f32 %v3388_v62, %v3228_v31  ;;  %v2314_v14 = vpop.f32.mrb[5].mxu0  ;;  %2621 = vst [vmem:[%s4486_s6 + $0x38] sm:$0xff] %v3421_v63  ;;  %v2570_v2 = vpop.f32.mrb[23].mxu1 }
 0x193   :  { %v2432_v5 = vadd.f32 %v2431_v61, %v2417_v58  ;;  %v3435_v6 = vadd.f32 %v2314_v14, %v1224_v34  ;;  %v2395_v7 = vadd.f32 %v3432_v49, %v2394_v60  ;;  %v3389_v8 = vpop.f32.mrb[6].mxu0  ;;  %2619 = vst [vmem:[%s4486_s6 + $0x28] sm:$0xff] %v2570_v2 }
 0x194   :  { %2383 = vst [vmem:[%s4487_s5 + $0x30] sm:$0xff] %v3434_v0  ;;  %v3436_v9 = vadd.f32 %v3389_v8, %v3229_v32  ;;  %v2317_v16 = vpop.f32.mrb[7].mxu0  ;;  %v2421_v22 = vmul.f32 %v3434_v0, %v3434_v0 }
 0x195   :  { %2381 = vst [vmem:[%s4487_s5 + $0x20] sm:$0xff] %v3435_v6  ;;  %v2396_v10 = vadd.f32 %v3435_v6, %v2395_v7  ;;  %v2419_v54 = vmul.f32 %v3435_v6, %v3435_v6  ;;  %v2433_v11 = vadd.f32 %v2432_v5, %v2418_v1  ;;  %v3437_v12 = vadd.f32 %v2317_v16, %v1227_v13 }
 0x196   :  { %2384 = vst [vmem:[%s4487_s5 + $0x38] sm:$0xff] %v3436_v9  ;;  %v2422_v26 = vmul.f32 %v3436_v9, %v3436_v9 }
 0x197   :  { %v2434_v15 = vadd.f32 %v2433_v11, %v2419_v54  ;;  %2382 = vst [vmem:[%s4487_s5 + $0x28] sm:$0xff] %v3437_v12  ;;  %v2397_v4 = vadd.f32 %v3437_v12, %v2396_v10  ;;  %v2420_v19 = vmul.f32 %v3437_v12, %v3437_v12  ;;  %v3424_v20 = vpop.f32.mrb[24].mxu1 }
 0x198   :  { %2624 = vst [vmem:[%s4486_s6 + $0x50] sm:$0xff] %v3424_v20  ;;  %v2583_v21 = vpop.f32.mrb[25].mxu1 }
 0x199   :  { %v2398_v28 = vadd.f32 %v3434_v0, %v2397_v4  ;;  %v2435_v23 = vadd.f32 %v2434_v15, %v2420_v19  ;;  %v3392_v3 = vpop.f32.mrb[8].mxu0  ;;  %2622 = vst [vmem:[%s4486_s6 + $0x40] sm:$0xff] %v2583_v21  ;;  %v3425_v24 = vpop.f32.mrb[26].mxu1 }
 0x19a   :  { %v3438_v25 = vadd.f32 %v3392_v3, %v4355_v35  ;;  %v2330_v27 = vpop.f32.mrb[9].mxu0  ;;  %2625 = vst [vmem:[%s4486_s6 + $0x58] sm:$0xff] %v3425_v24  ;;  %v2586_v50 = vpop.f32.mrb[27].mxu1 }
 0x19b   :  { %v2436_v29 = vadd.f32 %v2435_v23, %v2421_v22  ;;  %v3439_v30 = vadd.f32 %v2330_v27, %v4357_v59  ;;  %v2399_v31 = vadd.f32 %v3436_v9, %v2398_v28  ;;  %v3393_v34 = vpop.f32.mrb[10].mxu0  ;;  %2623 = vst [vmem:[%s4486_s6 + $0x48] sm:$0xff] %v2586_v50 }
 0x19c   :  { %2387 = vst [vmem:[%s4487_s5 + $0x50] sm:$0xff] %v3438_v25  ;;  %v3440_v32 = vadd.f32 %v3393_v34, %v4359_v17  ;;  %v2333_v13 = vpop.f32.mrb[11].mxu0  ;;  %v2425_v47 = vmul.f32 %v3438_v25, %v3438_v25 }
 0x19d   :  { %2385 = vst [vmem:[%s4487_s5 + $0x40] sm:$0xff] %v3439_v30  ;;  %v2400_v35 = vadd.f32 %v3439_v30, %v2399_v31  ;;  %v2423_v40 = vmul.f32 %v3439_v30, %v3439_v30  ;;  %v2437_v59 = vadd.f32 %v2436_v29, %v2422_v26  ;;  %v3441_v41 = vadd.f32 %v2333_v13, %v4361_v36 }
 0x19e   :  { %2388 = vst [vmem:[%s4487_s5 + $0x58] sm:$0xff] %v3440_v32  ;;  %v2426_v56 = vmul.f32 %v3440_v32, %v3440_v32 }
 0x19f   :  { %v2438_v42 = vadd.f32 %v2437_v59, %v2423_v40  ;;  %2386 = vst [vmem:[%s4487_s5 + $0x48] sm:$0xff] %v3441_v41  ;;  %v2401_v17 = vadd.f32 %v3441_v41, %v2400_v35  ;;  %v2424_v44 = vmul.f32 %v3441_v41, %v3441_v41  ;;  %v3428_v45 = vpop.f32.mrb[28].mxu1 }
 0x1a0   :  { %2628 = vst [vmem:[%s4486_s6 + $0x70] sm:$0xff] %v3428_v45  ;;  %v2599_v46 = vpop.f32.mrb[29].mxu1 }
 0x1a1   :  { %v2402_v43 = vadd.f32 %v3438_v25, %v2401_v17  ;;  %v2439_v36 = vadd.f32 %v2438_v42, %v2424_v44  ;;  %v3396_v48 = vpop.f32.mrb[12].mxu0  ;;  %2626 = vst [vmem:[%s4486_s6 + $0x60] sm:$0xff] %v2599_v46  ;;  %v3429_v49 = vpop.f32.mrb[30].mxu1 }
 0x1a2   :  { %v3442_v51 = vadd.f32 %v3396_v48, %v4363_v37  ;;  %v2346_v53 = vpop.f32.mrb[13].mxu0  ;;  %2629 = vst [vmem:[%s4486_s6 + $0x78] sm:$0xff] %v3429_v49  ;;  %v2602_v55 = vpop.f32.mrb[31].mxu1 }
 0x1a3   :  { %v2440_v18 = vadd.f32 %v2439_v36, %v2425_v47  ;;  %v3443_v57 = vadd.f32 %v2346_v53, %v4365_v33  ;;  %v2403_v52 = vadd.f32 %v3440_v32, %v2402_v43  ;;  %v3397_v58 = vpop.f32.mrb[14].mxu0  ;;  %2627 = vst [vmem:[%s4486_s6 + $0x68] sm:$0xff] %v2602_v55 }
 0x1a4   :  { %2391 = vst [vmem:[%s4487_s5 + $0x70] sm:$0xff] %v3442_v51  ;;  %v3444_v37 = vadd.f32 %v3397_v58, %v4367_v38  ;;  %v2349_v60 = vpop.f32.mrb[15].mxu0  ;;  %v2429_v2 = vmul.f32 %v3442_v51, %v3442_v51 }
 0x1a5   :  { %2389 = vst [vmem:[%s4487_s5 + $0x60] sm:$0xff] %v3443_v57  ;;  %v2404_v61 = vadd.f32 %v3443_v57, %v2403_v52  ;;  %v2427_v62 = vmul.f32 %v3443_v57, %v3443_v57  ;;  %v2441_v33 = vadd.f32 %v2440_v18, %v2426_v56  ;;  %v3445_v63 = vadd.f32 %v2349_v60, %v4369_v39 }
 0x1a6   :  { %2392 = vst [vmem:[%s4487_s5 + $0x78] sm:$0xff] %v3444_v37  ;;  %v2430_v6 = vmul.f32 %v3444_v37, %v3444_v37 }
 0x1a7   :  { %v2442_v0 = vadd.f32 %v2441_v33, %v2427_v62  ;;  %2390 = vst [vmem:[%s4487_s5 + $0x68] sm:$0xff] %v3445_v63  ;;  %v2405_v38 = vadd.f32 %v3445_v63, %v2404_v61  ;;  %v2428_v14 = vmul.f32 %v3445_v63, %v3445_v63 }
 0x1a9   :  { %v2406_v1 = vadd.f32 %v3442_v51, %v2405_v38  ;;  %v2443_v5 = vadd.f32 %v2442_v0, %v2428_v14 }
 0x1ab   :  { %v2407_v7 = vadd.f32 %v3444_v37, %v2406_v1  ;;  %v2444_v8 = vadd.f32 %v2443_v5, %v2429_v2 }
 0x1ad   :  { %v2408_v9 = vrot.slane %v2407_v7, 4  ;;  %v2445_v16 = vadd.f32 %v2444_v8, %v2430_v6 }
 0x1af   :  { %v2409_v39 = vadd.f32 %v2408_v9, %v2407_v7  ;;  %v2446_v10 = vrot.slane %v2445_v16, 4 }
 0x1b1   :  { %v2410_v54 = vrot.slane %v2409_v39, 2  ;;  %v2447_v11 = vadd.f32 %v2446_v10, %v2445_v16 }
 0x1b3   :  { %v2411_v12 = vadd.f32 %v2410_v54, %v2409_v39  ;;  %v2448_v15 = vrot.slane %v2447_v11, 2 }
 0x1b5   :  { %v2412_v4 = vrot.slane %v2411_v12, 1  ;;  %v2449_v19 = vadd.f32 %v2448_v15, %v2447_v11 }
 0x1b7   :  { %v2413_v20 = vadd.f32 %v2412_v4, %v2411_v12  ;;  %v2450_v21 = vrot.slane %v2449_v19, 1 }
 0x1b9   :  { %2414 = vst [vmem:[%s4488_s7] sm:$0x1] %v2413_v20  ;;  %v2451_v22 = vadd.f32 %v2450_v21, %v2449_v19 }
 0x1bb   :  { %2452 = vst [vmem:[%s4489_s8] sm:$0x1] %v2451_v22 }

// kernel: _lambda_.8
= control target key start
LH: loop header
LB: loop body
LE: loop exit
PB: predicated region body
PF: predicated region fallthrough
CT: control target
= control target key end

     0   :  { %v4749_v1 = vmov 0   ;;  %vm35_vm0 = vsmask.f32 256  ;;  %v40_v10 = vld [vmem:[#allocation2 + $0x8] sm:$0x1]  ;;  %vm34_vm1 = vcmask 1040384   ;;  %s6042_s3 = inlined_call_operand.vmem [shape: bf16[3,3,128,128], index: 3, kind: input, shape index: {}]   ;;  %s6043_s0 = inlined_call_operand.vmem [shape: f32[2,8,8,128], index: 0, kind: input, shape index: {}]   ;;  %s6044_s1 = inlined_call_operand.vmem [shape: f32[1,128], index: 1, kind: input, shape index: {}]   ;;  %s6045_s2 = inlined_call_operand.vmem [shape: f32[1,128], index: 2, kind: input, shape index: {}]   ;;  %s6046_s4 = inlined_call_operand.vmem [shape: f32[2,8,8,128], index: 4, kind: output, shape index: {0}]   ;;  %s6047_s5 = inlined_call_operand.vmem [shape: f32[1,1,1,128], index: 5, kind: output, shape index: {1}]   ;;  %s6048_s6 = inlined_call_operand.vmem [shape: f32[1,1,1,128], index: 6, kind: output, shape index: {2}]  }
   0x1   :  { %v4628_v0 = vld [vmem:[%s6042_s3 + $0x100] sm:$0xff]   ;;  %25 = vst [vmem:[#allocation2] sm:$0xf] %v4749_v1  ;;  %26 = vst [vmem:[#allocation2 + $0x4] sm:$0x1] %v4749_v1  ;;  %v4630_v3 = vld [vmem:[%s6042_s3 + $0x108] sm:$0xff]  }
   0x2   :  { %27 = vst [vmem:[#allocation2 + $0x50] sm:$0xf] %v4749_v1  ;;  %28 = vst [vmem:[#allocation2 + $0x54] sm:$0x1] %v4749_v1  ;;  %v4629_v2 = vld [vmem:[%s6042_s3 + $0x40] sm:$0xff]   ;;  %4323 = vmatprep.subr.bf16.mxu0 %v4628_v0  ;;  %v4631_v4 = vld [vmem:[%s6042_s3 + $0x48] sm:$0xff]  }
   0x3   :  { %30 = vst [vmem:[#allocation2 + $0x48] sm:$0xf] %v4749_v1  ;;  %31 = vst [vmem:[#allocation2 + $0x4c] sm:$0x1] %v4749_v1  ;;  %4195 = vmatprep.subr.bf16.mxu1 %v4629_v2  ;;  %4324 = vmatpush3.bf16.msra.mxu0 %v4628_v0  ;;  %v4632_v5 = vld [vmem:[%s6042_s3 + $0x110] sm:$0xff]   ;;  %v4634_v7 = vld [vmem:[%s6042_s3 + $0x118] sm:$0xff]  }
   0x4   :  { %32 = vst [vmem:[#allocation2 + $0x98] sm:$0xf] %v4749_v1  ;;  %33 = vst [vmem:[#allocation2 + $0x9c] sm:$0x1] %v4749_v1  ;;  %4196 = vmatpush3.bf16.msra.mxu1 %v4629_v2  ;;  %4325 = vmatprep.subr.bf16.mxu0 %v4630_v3  ;;  %v4633_v6 = vld [vmem:[%s6042_s3 + $0x50] sm:$0xff]   ;;  %v4635_v8 = vld [vmem:[%s6042_s3 + $0x58] sm:$0xff]  }
   0x5   :  { %4197 = vmatprep.subr.bf16.mxu1 %v4631_v4  ;;  %v4636_v9 = vld [vmem:[%s6042_s3 + $0x120] sm:$0xff]   ;;  %v4638_v12 = vld [vmem:[%s6042_s3 + $0x128] sm:$0xff]   ;;  %vm4823_vm2 = vmand %vm34_vm1, %vm35_vm0  ;;  %vm97_vm3 = vsmask.f32 7938  ;;  %vm462_vm5 = vcmask 1043456   ;;  %vm1270_vm10 = vcmask 1042432  }
   0x6   :  { %v4637_v11 = vld [vmem:[%s6042_s3 + $0x60] sm:$0xff]   ;;  %v4639_v13 = vld [vmem:[%s6042_s3 + $0x68] sm:$0xff]   ;;  %v41_v18 = vsel %vm4823_vm2, 0, %v40_v10  ;;  %vm4833_vm4 = vmand %vm34_vm1, %vm97_vm3  ;;  %vm608_vm6 = vsmask.f32 3328  ;;  %vm1271_vm11 = vcmask 1046532  }
   0x7   :  { %4326 = vmatpush3.bf16.msra.mxu0 %v4630_v3  ;;  %v102_v20 = vld [vmem:[#allocation2 + $0xc] sm:$0x1]  ;;  %v159_v21 = vld [vmem:[%s6043_s0] sm:$0xff]  ;;  %42 = vst [vmem:[#allocation2 + $0x8] sm:$0x1] %v41_v18  ;;  %v4640_v28 = vld [vmem:[%s6042_s3 + $0x130] sm:$0xff]  }
   0x8   :  { %4198 = vmatpush3.bf16.msra.mxu1 %v4631_v4  ;;  %4327 = vmatprep.subr.bf16.mxu0 %v4632_v5  ;;  %v37_v15 = vld [vmem:[#allocation2] sm:$0x1]  ;;  %v99_v16 = vld [vmem:[#allocation2 + $0x4] sm:$0x1]  ;;  %v103_v23 = vsel %vm4833_vm4, 0, %v102_v20  ;;  %v160_v31 = vld [vmem:[%s6043_s0 + $0x8] sm:$0xff] }
   0x9   :  { %4199 = vmatprep.subr.bf16.mxu1 %v4633_v6  ;;  %v38_v17 = vsel %vm4823_vm2, 0, %v37_v15  ;;  %v100_v22 = vsel %vm4833_vm4, 0, %v99_v16  ;;  %v4847_v24 = vld [vmem:[%s6044_s1] ss:$0 sm:$0xff]  ;;  %104 = vst [vmem:[#allocation2 + $0xc] sm:$0x1] %v103_v23  ;;  %vm4911_vm8 = vmand %vm462_vm5, %vm97_vm3 }
   0xa   :  { %39 = vst [vmem:[#allocation2] sm:$0x1] %v38_v17  ;;  %v4852_v25 = vld [vmem:[%s6045_s2] ss:$0 sm:$0xff]  ;;  %101 = vst [vmem:[#allocation2 + $0x4] sm:$0x1] %v100_v22  ;;  %v183_v26 = vmul.f32 %v4847_v24, %v159_v21  ;;  %v184_v35 = vmul.f32 %v4847_v24, %v160_v31 }
   0xb   :  { %4328 = vmatpush3.bf16.msra.mxu0 %v4632_v5  ;;  %v43_v27 = vld [vmem:[#allocation2 + $0x10] sm:$0x1]  ;;  %v105_v30 = vld [vmem:[#allocation2 + $0x14] sm:$0x1]  ;;  %v46_v36 = vld [vmem:[#allocation2 + $0x18] sm:$0x1] }
   0xc   :  { %4200 = vmatpush3.bf16.msra.mxu1 %v4633_v6  ;;  %4329 = vmatprep.subr.bf16.mxu0 %v4634_v7  ;;  %v44_v29 = vsel %vm4823_vm2, 0, %v43_v27  ;;  %v4641_v32 = vld [vmem:[%s6042_s3 + $0x70] sm:$0xff]   ;;  %v205_v33 = vadd.f32 %v4852_v25, %v183_v26  ;;  %v106_v34 = vsel %vm4833_vm4, 0, %v105_v30  ;;  %v108_v37 = vld [vmem:[#allocation2 + $0x1c] sm:$0x1]  ;;  %v206_v40 = vadd.f32 %v4852_v25, %v184_v35  ;;  %v4891_v59 = vld [vmem:[%s6042_s3 + $0x140] sm:$0xff]  }
   0xd   :  { %4201 = vmatprep.subr.bf16.mxu1 %v4635_v8  ;;  %45 = vst [vmem:[#allocation2 + $0x10] sm:$0x1] %v44_v29  ;;  %107 = vst [vmem:[#allocation2 + $0x14] sm:$0x1] %v106_v34  ;;  %v161_v38 = vld [vmem:[%s6043_s0 + $0x10] sm:$0xff]  ;;  %v47_v41 = vsel %vm4823_vm2, 0, %v46_v36 }
   0xe   :  { %v221_v39 = vmax.f32 %v205_v33, 0.0  ;;  %v109_v42 = vsel %vm4833_vm4, 0, %v108_v37  ;;  %v4642_v43 = vld [vmem:[%s6042_s3 + $0x138] sm:$0xff]   ;;  %48 = vst [vmem:[#allocation2 + $0x18] sm:$0x1] %v47_v41  ;;  %v185_v44 = vmul.f32 %v4847_v24, %v161_v38  ;;  %v222_v49 = vmax.f32 %v206_v40, 0.0  ;;  %vm5376_vm12 = vmor %vm1270_vm10, %vm1271_vm11 }
   0xf   :  { %4330 = vmatpush3.bf16.msra.mxu0 %v4634_v7  ;;  %110 = vst [vmem:[#allocation2 + $0x1c] sm:$0x1] %v109_v42  ;;  %v49_v45 = vld [vmem:[#allocation2 + $0x20] sm:$0x1]  ;;  %v4643_v46 = vld [vmem:[%s6042_s3 + $0x78] sm:$0xff]   ;;  %v4679_v14 = vld [vmem:[%s6042_s3 + $0x1b0] sm:$0xff]  }
  0x10   :  { %4202 = vmatpush3.bf16.msra.mxu1 %v4635_v8  ;;  %4331 = vmatprep.subr.bf16.mxu0 %v4636_v9  ;;  %v4035_v47 = vpack.c.bf16 %v221_v39, %v221_v39  ;;  %v50_v50 = vsel %vm4823_vm2, 0, %v49_v45  ;;  %v207_v54 = vadd.f32 %v4852_v25, %v185_v44  ;;  %v111_v55 = vld [vmem:[#allocation2 + $0x24] sm:$0x1]  ;;  %vm609_vm7 = vsmask.f32 7440  ;;  %v162_v60 = vld [vmem:[%s6043_s0 + $0x18] sm:$0xff] }
  0x11   :  { %4203 = vmatprep.subr.bf16.mxu1 %v4637_v11  ;;  %v560_v48 = vld [vmem:[#allocation2] sm:$0xf]  ;;  %v592_v51 = vld [vmem:[#allocation2 + $0x4] sm:$0x1]  ;;  %51 = vst [vmem:[#allocation2 + $0x20] sm:$0x1] %v50_v50  ;;  %v4036_v0 = vpack.c.bf16 %v222_v49, %v222_v49  ;;  %v186_v7 = vmul.f32 %v4847_v24, %v162_v60  ;;  %vm4943_vm9 = vmor %vm608_vm6, %vm609_vm7 }
  0x12   :  { %v612_v52 = vshrl.u32 %v560_v48, 16  ;;  %v615_v53 = vshll.u32 %v560_v48, 16  ;;  %v302_v56 = vshrl.u32 %v4035_v47, 16  ;;  %v305_v57 = vshll.u32 %v4035_v47, 16  ;;  %v464_v61 = vld [vmem:[#allocation2 + $0x8] sm:$0xf] }
  0x13   :  { %4332 = vmatpush3.bf16.msra.mxu0 %v4636_v9  ;;  %v621_v58 = vshll.u32 %v592_v51, 16  ;;  %v223_v1 = vmax.f32 %v207_v54, 0.0  ;;  %v4899_v2 = vld [vmem:[%s6042_s3] sm:$0xff]   ;;  %v467_v4 = vld [vmem:[#allocation2 + $0xc] sm:$0x1]  ;;  %v112_v6 = vsel %vm4833_vm4, 0, %v111_v55  ;;  %v208_v18 = vadd.f32 %v4852_v25, %v186_v7 }
  0x14   :  { %4204 = vmatpush3.bf16.msra.mxu1 %v4637_v11  ;;  %4333 = vmatprep.subr.bf16.mxu0 %v4638_v12  ;;  %v614_v62 = vrot.slane %v612_v52, 4  ;;  %v617_v63 = vrot.slane %v615_v53, 5  ;;  %v304_v3 = vrot.slane %v302_v56, 7  ;;  %v163_v8 = vld [vmem:[%s6043_s0 + $0x20] sm:$0xff]  ;;  %v310_v10 = vshrl.u32 %v4036_v0, 16 }
  0x15   :  { %4205 = vmatprep.subr.bf16.mxu1 %v4639_v13  ;;  %v4901_v5 = vrot.slane %v621_v58, 5  ;;  %v313_v11 = vshll.u32 %v4036_v0, 16  ;;  %113 = vst [vmem:[#allocation2 + $0x24] sm:$0x1] %v112_v6  ;;  %v470_v16 = vld [vmem:[#allocation2 + $0x10] sm:$0xf]  ;;  %v187_v20 = vmul.f32 %v4847_v24, %v163_v8 }
  0x16   :  { %v308_v15 = vrot.slane %v304_v3, 4  ;;  %v473_v17 = vld [vmem:[#allocation2 + $0x14] sm:$0x1]  ;;  %v618_v21 = vor.u32 %v617_v63, %v614_v62  ;;  %v312_v22 = vrot.slane %v310_v10, 7  ;;  %v476_v29 = vld [vmem:[#allocation2 + $0x18] sm:$0xf] }
  0x17   :  { %4334 = vmatpush3.bf16.msra.mxu0 %v4638_v12  ;;  %v4037_v12 = vpack.c.bf16 %v223_v1, %v223_v1  ;;  %v479_v30 = vld [vmem:[#allocation2 + $0x1c] sm:$0x1]  ;;  %v224_v31 = vmax.f32 %v208_v18, 0.0  ;;  %v52_v36 = vld [vmem:[#allocation2 + $0x28] sm:$0x1]  ;;  %v165_v1 = vld [vmem:[%s6043_s0 + $0x30] sm:$0xff] }
  0x18   :  { %4206 = vmatpush3.bf16.msra.mxu1 %v4639_v13  ;;  %4335 = vmatprep.subr.bf16.mxu0 %v4640_v28  ;;  %v307_v13 = vor.u32 %v305_v57, %v304_v3  ;;  %v315_v33 = vor.u32 %v313_v11, %v312_v22  ;;  %v316_v34 = vrot.slane %v312_v22, 4  ;;  %v114_v37 = vld [vmem:[#allocation2 + $0x2c] sm:$0x1]  ;;  %v53_v39 = vsel %vm4823_vm2, 0, %v52_v36  ;;  %v55_v42 = vld [vmem:[#allocation2 + $0x30] sm:$0x1] }
  0x19   :  { %4207 = vmatprep.subr.bf16.mxu1 %v4641_v32  ;;  %v318_v23 = vshrl.u32 %v4037_v12, 16  ;;  %v321_v26 = vshll.u32 %v4037_v12, 16  ;;  %v4038_v38 = vpack.c.bf16 %v224_v31, %v224_v31  ;;  %v115_v40 = vsel %vm4833_vm4, 0, %v114_v37  ;;  %54 = vst [vmem:[#allocation2 + $0x28] sm:$0x1] %v53_v39 }
  0x1a   :  { %v465_v27 = vsel %vm4911_vm8, %v307_v13, %v464_v61  ;;  %v471_v44 = vsel %vm4911_vm8, %v315_v33, %v470_v16  ;;  %v474_v45 = vsel %vm4823_vm2, %v316_v34, %v473_v17  ;;  %116 = vst [vmem:[#allocation2 + $0x2c] sm:$0x1] %v115_v40  ;;  %v117_v48 = vld [vmem:[#allocation2 + $0x34] sm:$0x1]  ;;  %v4935_v49 = vrot.slane %v618_v21, 4 }
  0x1b   :  { %4336 = vmatpush3.bf16.msra.mxu0 %v4640_v28  ;;  %v468_v28 = vsel %vm4823_vm2, %v308_v15, %v467_v4  ;;  %466 = vst [vmem:[#allocation2 + $0x8] sm:$0xf] %v465_v27  ;;  %v320_v35 = vrot.slane %v318_v23, 7  ;;  %472 = vst [vmem:[#allocation2 + $0x10] sm:$0xf] %v471_v44  ;;  %v326_v50 = vshrl.u32 %v4038_v38, 16 }
  0x1c   :  { %4208 = vmatpush3.bf16.msra.mxu1 %v4641_v32  ;;  %4337 = vmatprep.subr.bf16.mxu0 %v4642_v43  ;;  %v209_v32 = vadd.f32 %v4852_v25, %v187_v20  ;;  %469 = vst [vmem:[#allocation2 + $0xc] sm:$0x1] %v468_v28  ;;  %475 = vst [vmem:[#allocation2 + $0x14] sm:$0x1] %v474_v45  ;;  %v56_v52 = vsel %vm4823_vm2, 0, %v55_v42  ;;  %v118_v56 = vsel %vm4833_vm4, 0, %v117_v48 }
  0x1d   :  { %4209 = vmatprep.subr.bf16.mxu1 %v4643_v46  ;;  %v324_v47 = vrot.slane %v320_v35, 4  ;;  %57 = vst [vmem:[#allocation2 + $0x30] sm:$0x1] %v56_v52  ;;  %v58_v58 = vld [vmem:[#allocation2 + $0x38] sm:$0x1]  ;;  %v4954_v60 = vrot.slane %v326_v50, 7  ;;  %v624_v8 = vsel %vm4943_vm9, %v4935_v49, %v4901_v5  ;;  %v4977_v28 = vmul.f32 %v4847_v24, %v165_v1 }
  0x1e   :  { %v225_v41 = vmax.f32 %v209_v32, 0.0  ;;  %v329_v61 = vshll.u32 %v4038_v38, 16  ;;  %119 = vst [vmem:[#allocation2 + $0x34] sm:$0x1] %v118_v56  ;;  %v59_v63 = vsel %vm4823_vm2, 0, %v58_v58 }
  0x1f   :  { %4338 = vmatpush3.bf16.msra.mxu0 %v4642_v43  ;;  %v164_v43 = vld [vmem:[%s6043_s0 + $0x28] sm:$0xff]  ;;  %v480_v55 = vsel %vm4823_vm2, %v324_v47, %v479_v30  ;;  %v120_v0 = vld [vmem:[#allocation2 + $0x3c] sm:$0x1]  ;;  %60 = vst [vmem:[#allocation2 + $0x38] sm:$0x1] %v59_v63  ;;  %v332_v33 = vrot.slane %v4954_v60, 4 }
  0x20   :  { %4210 = vmatpush3.bf16.msra.mxu1 %v4643_v46  ;;  %4355 = vmatprep.subr.bf16.mxu0 %v4891_v59  ;;  %v323_v46 = vor.u32 %v321_v26, %v320_v35  ;;  %v4937_v51 = vpack.c.bf16 %v225_v41, %v225_v41  ;;  %v188_v57 = vmul.f32 %v4847_v24, %v164_v43  ;;  %v121_v4 = vsel %vm4833_vm4, 0, %v120_v0  ;;  %v482_v22 = vld [vmem:[#allocation2 + $0x20] sm:$0xf]  ;;  %v485_v49 = vld [vmem:[#allocation2 + $0x24] sm:$0x1]  ;;  %v166_v0 = vld [vmem:[%s6043_s0 + $0x38] sm:$0xff] }
  0x21   :  { %4227 = vmatprep.subr.bf16.mxu1 %v4899_v2  ;;  %481 = vst [vmem:[#allocation2 + $0x1c] sm:$0x1] %v480_v55  ;;  %122 = vst [vmem:[#allocation2 + $0x3c] sm:$0x1] %v121_v4  ;;  %v331_v21 = vor.u32 %v329_v61, %v4954_v60 }
  0x22   :  { %v477_v54 = vsel %vm4911_vm8, %v323_v46, %v476_v29  ;;  %v334_v62 = vshrl.u32 %v4937_v51, 16  ;;  %v337_v3 = vshll.u32 %v4937_v51, 16  ;;  %v561_v6 = vld [vmem:[#allocation2 + $0x8] sm:$0xf]  ;;  %v4972_v16 = vadd.f32 %v4852_v25, %v188_v57  ;;  %v1792_v27 = vld [vmem:[#allocation2 + $0x10] sm:$0xf] }
  0x23   :  { %478 = vst [vmem:[#allocation2 + $0x18] sm:$0xf] %v477_v54  ;;  %v593_v7 = vld [vmem:[#allocation2 + $0xc] sm:$0x1]  ;;  %v1790_v10 = vld [vmem:[#allocation2 + $0x8] sm:$0xf]  ;;  %v483_v44 = vsel %vm4911_vm8, %v331_v21, %v482_v22  ;;  %v211_v51 = vadd.f32 %v4852_v25, %v4977_v28 }
  0x24   :  { %v626_v11 = vshrl.u32 %v561_v6, 16  ;;  %v629_v12 = vshll.u32 %v561_v6, 16  ;;  %v635_v13 = vshll.u32 %v593_v7, 16  ;;  %v4969_v15 = vld [vmem:[#allocation2 + $0xc] sm:$0x1]  ;;  %v1823_v17 = vshrl.u32 %v1790_v10, 16 }
  0x25   :  { %v1826_v18 = vshll.u32 %v1790_v10, 16  ;;  %v1832_v20 = vshll.u32 %v4969_v15, 16  ;;  %v4979_v29 = vld [vmem:[#allocation2 + $0x14] sm:$0x1]  ;;  %v1837_v32 = vshrl.u32 %v1792_v27, 16  ;;  %v1840_v36 = vshll.u32 %v1792_v27, 16 }
  0x26   :  { %v628_v23 = vrot.slane %v626_v11, 4  ;;  %v631_v26 = vrot.slane %v629_v12, 5  ;;  %v637_v5 = vrot.slane %v635_v13, 5  ;;  %v1825_v30 = vrot.slane %v1823_v17, 4  ;;  %v562_v38 = vld [vmem:[#allocation2 + $0x10] sm:$0xf] }
  0x27   :  { %v1828_v31 = vrot.slane %v1826_v18, 5  ;;  %v1834_v35 = vrot.slane %v1832_v20, 5  ;;  %v1846_v37 = vshll.u32 %v4979_v29, 16  ;;  %v1839_v40 = vrot.slane %v1837_v32, 4  ;;  %v594_v42 = vld [vmem:[#allocation2 + $0x14] sm:$0x1] }
  0x28   :  { %v632_v34 = vor.u32 %v631_v26, %v628_v23  ;;  %v640_v43 = vshrl.u32 %v562_v38, 16  ;;  %v1842_v46 = vrot.slane %v1840_v36, 5  ;;  %v643_v48 = vshll.u32 %v562_v38, 16  ;;  %484 = vst [vmem:[#allocation2 + $0x20] sm:$0xf] %v483_v44  ;;  %v4649_v28 = vld [vmem:[%s6042_s3 + $0x10] sm:$0xff]  }
  0x29   :  { %v1829_v39 = vor.u32 %v1828_v31, %v1825_v30  ;;  %v1848_v47 = vrot.slane %v1846_v37, 5  ;;  %v595_v52 = vld [vmem:[#allocation2 + $0x1c] sm:$0x1]  ;;  %v649_v55 = vshll.u32 %v594_v42, 16  ;;  %v2306_v18 = vrot.slane %v4969_v15, 5 }
  0x2a   :  { %v563_v41 = vld [vmem:[#allocation2 + $0x18] sm:$0xf]  ;;  %v633_v45 = vrot.slane %v632_v34, 4  ;;  %v642_v54 = vrot.slane %v640_v43, 4  ;;  %v1843_v58 = vor.u32 %v1842_v46, %v1839_v40  ;;  %v645_v60 = vrot.slane %v643_v48, 5 }
  0x2b   :  { %v1830_v50 = vrot.slane %v1829_v39, 4  ;;  %v654_v56 = vshrl.u32 %v563_v41, 16  ;;  %v657_v61 = vshll.u32 %v563_v41, 16  ;;  %v1794_v63 = vld [vmem:[#allocation2 + $0x18] sm:$0xf]  ;;  %v651_v6 = vrot.slane %v649_v55, 5 }
  0x2c   :  { %v638_v57 = vsel %vm4943_vm9, %v633_v45, %v637_v5  ;;  %v1844_v10 = vrot.slane %v1843_v58, 4  ;;  %v646_v11 = vor.u32 %v645_v60, %v642_v54  ;;  %v663_v13 = vshll.u32 %v595_v52, 16  ;;  %v4992_v17 = vld [vmem:[#allocation2 + $0x1c] sm:$0x1]  ;;  %v488_v38 = vld [vmem:[#allocation2 + $0x28] sm:$0xf] }
  0x2d   :  { %v3731_v1 = vcombine.low %v624_v8, %v638_v57  ;;  %v1835_v4 = vsel %vm4943_vm9, %v1830_v50, %v1834_v35  ;;  %v656_v7 = vrot.slane %v654_v56, 4  ;;  %v659_v12 = vrot.slane %v657_v61, 5  ;;  %v491_v39 = vld [vmem:[#allocation2 + $0x2c] sm:$0x1]  ;;  %v61_v56 = vld [vmem:[#allocation2 + $0x40] sm:$0x1] }
  0x2e   :  { %v486_v20 = vsel %vm4823_vm2, %v332_v33, %v485_v49  ;;  %v1851_v21 = vshrl.u32 %v1794_v63, 16  ;;  %v4998_v8 = vmul.f32 %v4847_v24, %v166_v0  ;;  %v1849_v22 = vsel %vm4943_vm9, %v1844_v10, %v1848_v47  ;;  %v4647_v52 = vld [vmem:[%s6042_s3 + $0x8] sm:$0xff]   ;;  %v123_v61 = vld [vmem:[#allocation2 + $0x44] sm:$0x1] }
  0x2f   :  { %4211 = vmatprep.mubr.bf16.mxu1 %v3731_v1  ;;  %v647_v23 = vrot.slane %v646_v11, 4  ;;  %v660_v26 = vor.u32 %v659_v12, %v656_v7  ;;  %v665_v5 = vrot.slane %v663_v13, 5  ;;  %487 = vst [vmem:[#allocation2 + $0x24] sm:$0x1] %v486_v20  ;;  %v3859_v27 = vcombine.low %v1835_v4, %v1849_v22  ;;  %v1796_v30 = vld [vmem:[#allocation2 + $0x20] sm:$0xf] }
  0x30   :  { %v1853_v31 = vrot.slane %v1851_v21, 4  ;;  %v1854_v32 = vshll.u32 %v1794_v63, 16  ;;  %v1860_v34 = vshll.u32 %v4992_v17, 16  ;;  %v1865_v36 = vshrl.u32 %v1796_v30, 16  ;;  %v564_v40 = vld [vmem:[#allocation2 + $0x20] sm:$0xf] }
  0x31   :  { %v652_v33 = vsel %vm4943_vm9, %v647_v23, %v651_v6  ;;  %v661_v35 = vrot.slane %v660_v26, 4  ;;  %v1868_v37 = vshll.u32 %v1796_v30, 16  ;;  %4339 = vmatprep.mubr.bf16.mxu0 %v3859_v27  ;;  %v2310_v41 = vrot.slane %v4979_v29, 5  ;;  %v67_v21 = vld [vmem:[#allocation2 + $0x50] sm:$0x1]  ;;  %v5036_v27 = vld [vmem:[%s6042_s3 + $0x148] sm:$0xff]  }
  0x32   :  { %v1856_v42 = vrot.slane %v1854_v32, 5  ;;  %v1862_v43 = vrot.slane %v1860_v34, 5  ;;  %v336_v44 = vrot.slane %v334_v62, 7  ;;  %v1867_v46 = vrot.slane %v1865_v36, 4 }
  0x33   :  { %v666_v45 = vsel %vm4943_vm9, %v661_v35, %v665_v5  ;;  %v1870_v47 = vrot.slane %v1868_v37, 5  ;;  %v668_v48 = vshrl.u32 %v564_v40, 16  ;;  %v671_v62 = vshll.u32 %v564_v40, 16  ;;  %v70_v5 = vld [vmem:[#allocation2 + $0x58] sm:$0x1]  ;;  %v167_v35 = vld [vmem:[%s6043_s0 + $0x40] sm:$0xff] }
  0x34   :  { %v3732_v49 = vcombine.low %v652_v33, %v666_v45  ;;  %v1857_v50 = vor.u32 %v1856_v42, %v1853_v31  ;;  %v339_v54 = vor.u32 %v337_v3, %v336_v44  ;;  %v340_v55 = vrot.slane %v336_v44, 4  ;;  %v129_v33 = vld [vmem:[#allocation2 + $0x54] sm:$0x1] }
  0x35   :  { %v1871_v57 = vor.u32 %v1870_v47, %v1867_v46  ;;  %v670_v58 = vrot.slane %v668_v48, 4  ;;  %v226_v60 = vmax.f32 %v4972_v16, 0.0  ;;  %v2314_v10 = vrot.slane %v4992_v17, 5  ;;  %v4651_v46 = vld [vmem:[%s6042_s3 + $0x18] sm:$0xff]  }
  0x36   :  { %4212 = vmatmul.mubr.bf16.vlgmr.msra.gmra.mrb[0].mxu1 %v3732_v49  ;;  %v1797_v63 = vld [vmem:[#allocation2 + $0x24] sm:$0x1]  ;;  %v1858_v0 = vrot.slane %v1857_v50, 4  ;;  %v489_v1 = vsel %vm4911_vm8, %v339_v54, %v488_v38  ;;  %v492_v4 = vsel %vm4823_vm2, %v340_v55, %v491_v39  ;;  %v673_v16 = vrot.slane %v671_v62, 5 }
  0x37   :  { %v596_v6 = vld [vmem:[#allocation2 + $0x24] sm:$0x1]  ;;  %v1872_v3 = vrot.slane %v1871_v57, 4  ;;  %v1874_v7 = vshll.u32 %v1797_v63, 16  ;;  %4228 = vmatpush3.bf16.msra.mxu1 %v4899_v2  ;;  %490 = vst [vmem:[#allocation2 + $0x28] sm:$0xf] %v489_v1  ;;  %v4040_v13 = vpack.c.bf16 %v226_v60, %v226_v60  ;;  %v212_v38 = vadd.f32 %v4852_v25, %v4998_v8 }
  0x38   :  { %493 = vst [vmem:[#allocation2 + $0x2c] sm:$0x1] %v492_v4  ;;  %v1863_v11 = vsel %vm4943_vm9, %v1858_v0, %v1862_v43  ;;  %4229 = vmatprep.subr.bf16.mxu1 %v4647_v52  ;;  %v677_v12 = vshll.u32 %v596_v6, 16  ;;  %v227_v20 = vmax.f32 %v211_v51, 0.0  ;;  %v674_v23 = vor.u32 %v673_v16, %v670_v58  ;;  %v494_v43 = vld [vmem:[#allocation2 + $0x30] sm:$0xf] }
  0x39   :  { %v1876_v22 = vrot.slane %v1874_v7, 5  ;;  %v62_v2 = vsel %vm4823_vm2, 0, %v61_v56  ;;  %v124_v26 = vsel %vm4833_vm4, 0, %v123_v61  ;;  %v342_v31 = vshrl.u32 %v4040_v13, 16  ;;  %v497_v8 = vld [vmem:[#allocation2 + $0x34] sm:$0x1] }
  0x3a   :  { %v5038_v30 = vrot.slane %v677_v12, 5  ;;  %v345_v32 = vshll.u32 %v4040_v13, 16  ;;  %v4041_v34 = vpack.c.bf16 %v227_v20, %v227_v20  ;;  %63 = vst [vmem:[#allocation2 + $0x40] sm:$0x1] %v62_v2  ;;  %125 = vst [vmem:[#allocation2 + $0x44] sm:$0x1] %v124_v26  ;;  %v191_v62 = vmul.f32 %v4847_v24, %v167_v35 }
  0x3b   :  { %v1877_v36 = vsel %vm4943_vm9, %v1872_v3, %v1876_v22  ;;  %4230 = vmatpush3.bf16.msra.mxu1 %v4647_v52  ;;  %v5045_v37 = vrot.slane %v674_v23, 4  ;;  %v68_v39 = vsel %vm4823_vm2, 0, %v67_v21  ;;  %v344_v42 = vrot.slane %v342_v31, 7  ;;  %v5065_v57 = vld [vmem:[%s6042_s3 + $0x150] sm:$0xff]   ;;  %v500_v1 = vld [vmem:[#allocation2 + $0x38] sm:$0xf] }
  0x3c   :  { %v3860_v40 = vcombine.low %v1863_v11, %v1877_v36  ;;  %v350_v44 = vshrl.u32 %v4041_v34, 16  ;;  %v353_v45 = vshll.u32 %v4041_v34, 16  ;;  %4231 = vmatprep.subr.bf16.mxu1 %v4649_v28  ;;  %69 = vst [vmem:[#allocation2 + $0x50] sm:$0x1] %v68_v39  ;;  %v228_v48 = vmax.f32 %v212_v38, 0.0  ;;  %v4653_v51 = vld [vmem:[%s6042_s3 + $0x20] sm:$0xff]  }
  0x3d   :  { %v680_v47 = vsel %vm4943_vm9, %v5045_v37, %v5038_v30  ;;  %v71_v49 = vsel %vm4823_vm2, 0, %v70_v5  ;;  %v130_v50 = vsel %vm4833_vm4, 0, %v129_v33  ;;  %v347_v55 = vor.u32 %v345_v32, %v344_v42  ;;  %v503_v4 = vld [vmem:[#allocation2 + $0x3c] sm:$0x1]  ;;  %v168_v5 = vld [vmem:[%s6043_s0 + $0x48] sm:$0xff] }
  0x3e   :  { %4340 = vmatmul.mubr.bf16.vlgmr.msra.gmra.mrb[0].mxu0 %v3860_v40  ;;  %v565_v52 = vld [vmem:[#allocation2 + $0x28] sm:$0xf]  ;;  %v348_v56 = vrot.slane %v344_v42, 4  ;;  %v352_v58 = vrot.slane %v350_v44, 7  ;;  %72 = vst [vmem:[#allocation2 + $0x58] sm:$0x1] %v71_v49  ;;  %v4042_v6 = vpack.c.bf16 %v228_v48, %v228_v48  ;;  %v192_v49 = vmul.f32 %v4847_v24, %v168_v5 }
  0x3f   :  { %v597_v54 = vld [vmem:[#allocation2 + $0x2c] sm:$0x1]  ;;  %131 = vst [vmem:[#allocation2 + $0x54] sm:$0x1] %v130_v50  ;;  %4356 = vmatpush3.bf16.msra.mxu0 %v4891_v59  ;;  %v682_v60 = vshrl.u32 %v565_v52, 16  ;;  %v685_v61 = vshll.u32 %v565_v52, 16  ;;  %4232 = vmatpush3.bf16.msra.mxu1 %v4649_v28  ;;  %v495_v3 = vsel %vm4911_vm8, %v347_v55, %v494_v43 }
  0x40   :  { %v691_v63 = vshll.u32 %v597_v54, 16  ;;  %v1798_v0 = vld [vmem:[#allocation2 + $0x28] sm:$0xf]  ;;  %4357 = vmatprep.subr.bf16.mxu0 %v5036_v27  ;;  %v498_v59 = vsel %vm4823_vm2, %v348_v56, %v497_v8  ;;  %v1799_v7 = vld [vmem:[#allocation2 + $0x2c] sm:$0x1]  ;;  %4233 = vmatprep.subr.bf16.mxu1 %v4651_v46  ;;  %v355_v2 = vor.u32 %v353_v45, %v352_v58  ;;  %v356_v26 = vrot.slane %v352_v58, 4 }
  0x41   :  { %v1879_v16 = vshrl.u32 %v1798_v0, 16  ;;  %v1882_v11 = vshll.u32 %v1798_v0, 16  ;;  %v684_v12 = vrot.slane %v682_v60, 4  ;;  %v687_v13 = vrot.slane %v685_v61, 5  ;;  %496 = vst [vmem:[#allocation2 + $0x30] sm:$0xf] %v495_v3 }
  0x42   :  { %v693_v20 = vrot.slane %v691_v63, 5  ;;  %499 = vst [vmem:[#allocation2 + $0x34] sm:$0x1] %v498_v59  ;;  %v1888_v28 = vshll.u32 %v1799_v7, 16  ;;  %v132_v21 = vld [vmem:[#allocation2 + $0x5c] sm:$0x1]  ;;  %v501_v39 = vsel %vm4911_vm8, %v355_v2, %v500_v1  ;;  %v213_v8 = vadd.f32 %v4852_v25, %v191_v62 }
  0x43   :  { %v1881_v22 = vrot.slane %v1879_v16, 4  ;;  %v1884_v23 = vrot.slane %v1882_v11, 5  ;;  %4358 = vmatpush3.bf16.msra.mxu0 %v5036_v27  ;;  %v688_v31 = vor.u32 %v687_v13, %v684_v12  ;;  %v358_v34 = vshrl.u32 %v4042_v6, 16  ;;  %v4650_v35 = vld [vmem:[%s6042_s3 + $0x158] sm:$0xff]   ;;  %4234 = vmatpush3.bf16.msra.mxu1 %v4651_v46  ;;  %v5086_v36 = vld [vmem:[#allocation2 + $0x50] sm:$0xf] }
  0x44   :  { %v5081_v32 = vrot.slane %v1888_v28, 5  ;;  %v361_v33 = vshll.u32 %v4042_v6, 16  ;;  %4359 = vmatprep.subr.bf16.mxu0 %v5065_v57  ;;  %v504_v27 = vsel %vm4823_vm2, %v356_v26, %v503_v4  ;;  %v133_v40 = vsel %vm4833_vm4, 0, %v132_v21  ;;  %v169_v42 = vld [vmem:[%s6043_s0 + $0x50] sm:$0xff]  ;;  %4235 = vmatprep.subr.bf16.mxu1 %v4653_v51  ;;  %v4655_v43 = vld [vmem:[%s6042_s3 + $0x28] sm:$0xff]   ;;  %v4652_v58 = vld [vmem:[%s6042_s3 + $0x160] sm:$0xff]  }
  0x45   :  { %v1885_v38 = vor.u32 %v1884_v23, %v1881_v22  ;;  %v689_v44 = vrot.slane %v688_v31, 4  ;;  %502 = vst [vmem:[#allocation2 + $0x38] sm:$0xf] %v501_v39  ;;  %505 = vst [vmem:[#allocation2 + $0x3c] sm:$0x1] %v504_v27  ;;  %v360_v45 = vrot.slane %v358_v34, 7  ;;  %v5129_v7 = vadd.f32 %v4852_v25, %v192_v49 }
  0x46   :  { %v506_v46 = vld [vmem:[#allocation2 + $0x40] sm:$0xf]  ;;  %134 = vst [vmem:[#allocation2 + $0x5c] sm:$0x1] %v133_v40  ;;  %v5102_v48 = vld [vmem:[#allocation2 + $0x54] sm:$0x1] }
  0x47   :  { %v5105_v50 = vrot.slane %v1885_v38, 4  ;;  %v509_v52 = vld [vmem:[#allocation2 + $0x44] sm:$0x1]  ;;  %v724_v54 = vshrl.u32 %v5086_v36, 16  ;;  %v727_v55 = vshll.u32 %v5086_v36, 16  ;;  %v733_v56 = vshll.u32 %v5102_v48, 16  ;;  %4360 = vmatpush3.bf16.msra.mxu0 %v5065_v57  ;;  %4236 = vmatpush3.bf16.msra.mxu1 %v4653_v51 }
  0x48   :  { %v4657_v62 = vld [vmem:[%s6042_s3 + $0x30] sm:$0xff]   ;;  %v694_v60 = vsel %vm4943_vm9, %v689_v44, %v693_v20  ;;  %v363_v61 = vor.u32 %v361_v33, %v360_v45  ;;  %v364_v63 = vrot.slane %v360_v45, 4  ;;  %v229_v0 = vmax.f32 %v213_v8, 0.0  ;;  %4361 = vmatprep.subr.bf16.mxu0 %v4650_v35  ;;  %4237 = vmatprep.subr.bf16.mxu1 %v4655_v43  ;;  %v4659_v2 = vld [vmem:[%s6042_s3 + $0x38] sm:$0xff]  }
  0x49   :  { %v3733_v1 = vcombine.low %v680_v47, %v694_v60  ;;  %v1800_v4 = vld [vmem:[#allocation2 + $0x30] sm:$0xf]  ;;  %v1801_v6 = vld [vmem:[#allocation2 + $0x34] sm:$0x1]  ;;  %v1891_v3 = vsel %vm4943_vm9, %v5105_v50, %v5081_v32  ;;  %v193_v57 = vmul.f32 %v4847_v24, %v169_v42  ;;  %v4654_v24 = vld [vmem:[%s6042_s3 + $0x168] sm:$0xff]  }
  0x4a   :  { %v566_v59 = vld [vmem:[#allocation2 + $0x30] sm:$0xf]  ;;  %v1893_v51 = vshrl.u32 %v1800_v4, 16  ;;  %v1896_v16 = vshll.u32 %v1800_v4, 16  ;;  %v1902_v11 = vshll.u32 %v1801_v6, 16  ;;  %v507_v13 = vsel %vm4911_vm8, %v363_v61, %v506_v46 }
  0x4b   :  { %v598_v12 = vld [vmem:[#allocation2 + $0x34] sm:$0x1]  ;;  %v696_v30 = vshrl.u32 %v566_v59, 16  ;;  %4215 = vmatprep.mubr.bf16.mxu1 %v3733_v1  ;;  %v699_v37 = vshll.u32 %v566_v59, 16  ;;  %v510_v20 = vsel %vm4823_vm2, %v364_v63, %v509_v52  ;;  %508 = vst [vmem:[#allocation2 + $0x40] sm:$0xf] %v507_v13  ;;  %4362 = vmatpush3.bf16.msra.mxu0 %v4650_v35  ;;  %v4043_v33 = vpack.c.bf16 %v229_v0, %v229_v0 }
  0x4c   :  { %v705_v47 = vshll.u32 %v598_v12, 16  ;;  %v1895_v28 = vrot.slane %v1893_v51, 4  ;;  %v1898_v21 = vrot.slane %v1896_v16, 5  ;;  %v1904_v22 = vrot.slane %v1902_v11, 5  ;;  %511 = vst [vmem:[#allocation2 + $0x44] sm:$0x1] %v510_v20  ;;  %4238 = vmatpush3.bf16.msra.mxu1 %v4655_v43  ;;  %4363 = vmatprep.subr.bf16.mxu0 %v4652_v58 }
  0x4d   :  { %v698_v23 = vrot.slane %v696_v30, 4  ;;  %v567_v26 = vld [vmem:[#allocation2 + $0x38] sm:$0xf]  ;;  %v599_v5 = vld [vmem:[#allocation2 + $0x3c] sm:$0x1]  ;;  %v701_v31 = vrot.slane %v699_v37, 5  ;;  %v5145_v38 = vadd.f32 %v4852_v25, %v193_v57  ;;  %4239 = vmatprep.subr.bf16.mxu1 %v4657_v62 }
  0x4e   :  { %v5142_v34 = vrot.slane %v705_v47, 5  ;;  %v1899_v35 = vor.u32 %v1898_v21, %v1895_v28  ;;  %v710_v39 = vshrl.u32 %v567_v26, 16  ;;  %v713_v27 = vshll.u32 %v567_v26, 16  ;;  %v1802_v42 = vld [vmem:[#allocation2 + $0x38] sm:$0xf]  ;;  %v4656_v4 = vld [vmem:[%s6042_s3 + $0x170] sm:$0xff]  }
  0x4f   :  { %v719_v40 = vshll.u32 %v599_v5, 16  ;;  %v702_v43 = vor.u32 %v701_v31, %v698_v23  ;;  %v1803_v44 = vld [vmem:[#allocation2 + $0x3c] sm:$0x1]  ;;  %v1907_v45 = vshrl.u32 %v1802_v42, 16  ;;  %v1910_v46 = vshll.u32 %v1802_v42, 16  ;;  %4364 = vmatpush3.bf16.msra.mxu0 %v4652_v58  ;;  %v5155_v58 = vld [vmem:[%s6042_s3 + $0x80] sm:$0xff]  }
  0x50   :  { %v366_v8 = vshrl.u32 %v4043_v33, 16  ;;  %v1900_v49 = vrot.slane %v1899_v35, 4  ;;  %v712_v52 = vrot.slane %v710_v39, 4  ;;  %v715_v60 = vrot.slane %v713_v27, 5  ;;  %4240 = vmatpush3.bf16.msra.mxu1 %v4657_v62  ;;  %4365 = vmatprep.subr.bf16.mxu0 %v4654_v24  ;;  %v512_v16 = vld [vmem:[#allocation2 + $0x58] sm:$0xf] }
  0x51   :  { %v721_v61 = vrot.slane %v719_v40, 5  ;;  %v703_v63 = vrot.slane %v702_v43, 4  ;;  %v1909_v25 = vrot.slane %v1907_v45, 4  ;;  %v1912_v0 = vrot.slane %v1910_v46, 5  ;;  %4241 = vmatprep.subr.bf16.mxu1 %v4659_v2  ;;  %v515_v11 = vld [vmem:[#allocation2 + $0x5c] sm:$0x1] }
  0x52   :  { %v1916_v1 = vshll.u32 %v1803_v44, 16  ;;  %v1905_v6 = vsel %vm4943_vm9, %v1900_v49, %v1904_v22  ;;  %v716_v59 = vor.u32 %v715_v60, %v712_v52  ;;  %v368_v57 = vrot.slane %v366_v8, 7  ;;  %v1804_v30 = vld [vmem:[#allocation2 + $0x40] sm:$0xf]  ;;  %v135_v26 = vld [vmem:[#allocation2 + $0x64] sm:$0x1] }
  0x53   :  { %v369_v51 = vshll.u32 %v4043_v33, 16  ;;  %v3861_v62 = vcombine.low %v1891_v3, %v1905_v6  ;;  %v708_v12 = vsel %vm4943_vm9, %v703_v63, %v5142_v34  ;;  %v5165_v37 = vld [vmem:[#allocation2 + $0x44] sm:$0x1]  ;;  %v1913_v47 = vor.u32 %v1912_v0, %v1909_v25  ;;  %v73_v20 = vld [vmem:[#allocation2 + $0x60] sm:$0x1]  ;;  %4366 = vmatpush3.bf16.msra.mxu0 %v4654_v24  ;;  %v4658_v33 = vld [vmem:[%s6042_s3 + $0x178] sm:$0xff]  }
  0x54   :  { %v5167_v13 = vrot.slane %v1916_v1, 5  ;;  %v717_v28 = vrot.slane %v716_v59, 4  ;;  %v1921_v21 = vshrl.u32 %v1804_v30, 16  ;;  %v1924_v22 = vshll.u32 %v1804_v30, 16  ;;  %v76_v5 = vld [vmem:[#allocation2 + $0x68] sm:$0x1]  ;;  %4242 = vmatpush3.bf16.msra.mxu1 %v4659_v2  ;;  %4367 = vmatprep.subr.bf16.mxu0 %v4656_v4 }
  0x55   :  { %v1930_v23 = vshll.u32 %v5165_v37, 16  ;;  %v138_v32 = vld [vmem:[#allocation2 + $0x6c] sm:$0x1]  ;;  %4343 = vmatprep.mubr.bf16.mxu0 %v3861_v62  ;;  %v1914_v50 = vrot.slane %v1913_v47, 4  ;;  %v371_v3 = vor.u32 %v369_v51, %v368_v57  ;;  %v372_v31 = vrot.slane %v368_v57, 4  ;;  %v170_v2 = vld [vmem:[%s6043_s0 + $0x58] sm:$0xff]  ;;  %4259 = vmatprep.subr.bf16.mxu1 %v5155_v58 }
  0x56   :  { %v726_v34 = vrot.slane %v724_v54, 4  ;;  %v722_v35 = vsel %vm4943_vm9, %v717_v28, %v721_v61  ;;  %v1923_v39 = vrot.slane %v1921_v21, 4  ;;  %v1926_v27 = vrot.slane %v1924_v22, 5  ;;  %v79_v24 = vld [vmem:[#allocation2 + $0x70] sm:$0x1]  ;;  %v5199_v61 = vld [vmem:[%s6042_s3 + $0x180] sm:$0xff]  }
  0x57   :  { %v1932_v40 = vrot.slane %v1930_v23, 5  ;;  %v3734_v42 = vcombine.low %v708_v12, %v722_v35  ;;  %v1919_v54 = vsel %vm4943_vm9, %v1914_v50, %v5167_v13  ;;  %v513_v43 = vsel %vm4911_vm8, %v371_v3, %v512_v16  ;;  %v141_v45 = vld [vmem:[#allocation2 + $0x74] sm:$0x1]  ;;  %v82_v60 = vld [vmem:[#allocation2 + $0x78] sm:$0x1]  ;;  %4368 = vmatpush3.bf16.msra.mxu0 %v4656_v4  ;;  %v172_v30 = vld [vmem:[%s6043_s0 + $0x68] sm:$0xff] }
  0x58   :  { %v516_v44 = vsel %vm4823_vm2, %v372_v31, %v515_v11  ;;  %v1927_v46 = vor.u32 %v1926_v27, %v1923_v39  ;;  %514 = vst [vmem:[#allocation2 + $0x58] sm:$0xf] %v513_v43  ;;  %v729_v8 = vrot.slane %v727_v55, 5  ;;  %v5192_v49 = vrot.slane %v733_v56, 5  ;;  %v144_v63 = vld [vmem:[#allocation2 + $0x7c] sm:$0x1]  ;;  %4369 = vmatprep.subr.bf16.mxu0 %v4658_v33 }
  0x59   :  { %517 = vst [vmem:[#allocation2 + $0x5c] sm:$0x1] %v516_v44  ;;  %v74_v52 = vsel %vm4823_vm2, 0, %v73_v20  ;;  %4216 = vmatmul.mubr.bf16.gmra.mrb[4].mxu1 %v3734_v42  ;;  %v136_v36 = vsel %vm4833_vm4, 0, %v135_v26  ;;  %v230_v55 = vmax.f32 %v5129_v7, 0.0  ;;  %v77_v48 = vsel %vm4823_vm2, 0, %v76_v5 }
  0x5a   :  { %75 = vst [vmem:[#allocation2 + $0x60] sm:$0x1] %v74_v52  ;;  %v139_v56 = vsel %vm4833_vm4, 0, %v138_v32  ;;  %v1928_v25 = vrot.slane %v1927_v46, 4  ;;  %v730_v0 = vor.u32 %v729_v8, %v726_v34  ;;  %137 = vst [vmem:[#allocation2 + $0x64] sm:$0x1] %v136_v36 }
  0x5b   :  { %78 = vst [vmem:[#allocation2 + $0x68] sm:$0x1] %v77_v48  ;;  %140 = vst [vmem:[#allocation2 + $0x6c] sm:$0x1] %v139_v56  ;;  %v231_v1 = vmax.f32 %v5145_v38, 0.0  ;;  %v80_v4 = vsel %vm4823_vm2, 0, %v79_v24  ;;  %v4044_v6 = vpack.c.bf16 %v230_v55, %v230_v55  ;;  %4370 = vmatpush3.bf16.msra.mxu0 %v4658_v33 }
  0x5c   :  { %v171_v7 = vld [vmem:[%s6043_s0 + $0x60] sm:$0xff]  ;;  %81 = vst [vmem:[#allocation2 + $0x70] sm:$0x1] %v80_v4  ;;  %v142_v59 = vsel %vm4833_vm4, 0, %v141_v45  ;;  %v83_v38 = vsel %vm4823_vm2, 0, %v82_v60  ;;  %v1933_v16 = vsel %vm4943_vm9, %v1928_v25, %v1932_v40  ;;  %v5226_v11 = vrot.slane %v730_v0, 4  ;;  %4387 = vmatprep.subr.bf16.mxu0 %v5199_v61 }
  0x5d   :  { %v5219_v57 = vld [vmem:[%s6044_s1] ss:$0 sm:$0xff]  ;;  %v4045_v62 = vpack.c.bf16 %v231_v1, %v231_v1  ;;  %143 = vst [vmem:[#allocation2 + $0x74] sm:$0x1] %v142_v59  ;;  %84 = vst [vmem:[#allocation2 + $0x78] sm:$0x1] %v83_v38  ;;  %v3862_v13 = vcombine.low %v1919_v54, %v1933_v16 }
  0x5e   :  { %v194_v51 = vmul.f32 %v5219_v57, %v170_v2  ;;  %v145_v12 = vsel %vm4833_vm4, 0, %v144_v63  ;;  %v173_v47 = vld [vmem:[%s6043_s0 + $0x70] sm:$0xff]  ;;  %v374_v20 = vshrl.u32 %v4044_v6, 16  ;;  %v377_v28 = vshll.u32 %v4044_v6, 16  ;;  %v5239_v21 = vld [vmem:[%s6045_s2] ss:$0 sm:$0xff] }
  0x5f   :  { %146 = vst [vmem:[#allocation2 + $0x7c] sm:$0x1] %v145_v12  ;;  %v736_v23 = vsel %vm4943_vm9, %v5226_v11, %v5192_v49  ;;  %v382_v26 = vshrl.u32 %v4045_v62, 16  ;;  %v385_v5 = vshll.u32 %v4045_v62, 16  ;;  %v195_v32 = vmul.f32 %v5219_v57, %v171_v7  ;;  %4344 = vmatmul.mubr.bf16.gmra.mrb[4].mxu0 %v3862_v13  ;;  %v5248_v50 = vld [vmem:[#allocation2 + $0x58] sm:$0xf] }
  0x60   :  { %v216_v22 = vadd.f32 %v5239_v21, %v194_v51  ;;  %v601_v3 = vld [vmem:[#allocation2 + $0x5c] sm:$0x1]  ;;  %v376_v31 = vrot.slane %v374_v20, 7  ;;  %v196_v33 = vmul.f32 %v5219_v57, %v172_v30  ;;  %v5252_v35 = vmul.f32 %v5219_v57, %v173_v47  ;;  %v1806_v44 = vld [vmem:[#allocation2 + $0x58] sm:$0xf] }
  0x61   :  { %v738_v39 = vshrl.u32 %v5248_v50, 16  ;;  %v741_v27 = vshll.u32 %v5248_v50, 16  ;;  %v747_v40 = vshll.u32 %v601_v3, 16  ;;  %v518_v24 = vld [vmem:[#allocation2 + $0x60] sm:$0xf]  ;;  %v384_v2 = vrot.slane %v382_v26, 7 }
  0x62   :  { %v232_v34 = vmax.f32 %v216_v22, 0.0  ;;  %v379_v42 = vor.u32 %v377_v28, %v376_v31  ;;  %v380_v54 = vrot.slane %v376_v31, 4  ;;  %v521_v43 = vld [vmem:[#allocation2 + $0x64] sm:$0x1]  ;;  %v217_v46 = vadd.f32 %v5239_v21, %v195_v32  ;;  %v5257_v36 = vld [vmem:[#allocation2 + $0x5c] sm:$0x1] }
  0x63   :  { %v740_v8 = vrot.slane %v738_v39, 4  ;;  %v743_v52 = vrot.slane %v741_v27, 5  ;;  %v749_v60 = vrot.slane %v747_v40, 5  ;;  %v1935_v55 = vshrl.u32 %v1806_v44, 16  ;;  %v524_v0 = vld [vmem:[#allocation2 + $0x68] sm:$0xf] }
  0x64   :  { %v4046_v45 = vpack.c.bf16 %v232_v34, %v232_v34  ;;  %v519_v48 = vsel %vm4911_vm8, %v379_v42, %v518_v24  ;;  %v522_v56 = vsel %vm4823_vm2, %v380_v54, %v521_v43  ;;  %v1938_v63 = vshll.u32 %v1806_v44, 16  ;;  %v527_v1 = vld [vmem:[#allocation2 + $0x6c] sm:$0x1]  ;;  %v85_v51 = vld [vmem:[#allocation2 + $0x80] sm:$0x1] }
  0x65   :  { %v1944_v25 = vshll.u32 %v5257_v36, 16  ;;  %v744_v4 = vor.u32 %v743_v52, %v740_v8  ;;  %520 = vst [vmem:[#allocation2 + $0x60] sm:$0xf] %v519_v48  ;;  %523 = vst [vmem:[#allocation2 + $0x64] sm:$0x1] %v522_v56  ;;  %v1937_v7 = vrot.slane %v1935_v55, 4  ;;  %v387_v6 = vor.u32 %v385_v5, %v384_v2 }
  0x66   :  { %v388_v59 = vrot.slane %v384_v2, 4  ;;  %v147_v38 = vld [vmem:[#allocation2 + $0x84] sm:$0x1]  ;;  %v1940_v16 = vrot.slane %v1938_v63, 5  ;;  %v390_v12 = vshrl.u32 %v4046_v45, 16  ;;  %v393_v30 = vshll.u32 %v4046_v45, 16 }
  0x67   :  { %v5264_v62 = vrot.slane %v1944_v25, 5  ;;  %v88_v47 = vld [vmem:[#allocation2 + $0x88] sm:$0x1]  ;;  %v745_v13 = vrot.slane %v744_v4, 4  ;;  %v525_v20 = vsel %vm4911_vm8, %v387_v6, %v524_v0  ;;  %v233_v22 = vmax.f32 %v217_v46, 0.0 }
  0x68   :  { %v528_v28 = vsel %vm4823_vm2, %v388_v59, %v527_v1  ;;  %v150_v26 = vld [vmem:[#allocation2 + $0x8c] sm:$0x1]  ;;  %v1941_v32 = vor.u32 %v1940_v16, %v1937_v7  ;;  %526 = vst [vmem:[#allocation2 + $0x68] sm:$0xf] %v525_v20  ;;  %v392_v5 = vrot.slane %v390_v12, 7  ;;  %v86_v31 = vsel %vm4823_vm2, 0, %v85_v51 }
  0x69   :  { %529 = vst [vmem:[#allocation2 + $0x6c] sm:$0x1] %v528_v28  ;;  %v530_v3 = vld [vmem:[#allocation2 + $0x70] sm:$0xf]  ;;  %v148_v34 = vsel %vm4833_vm4, 0, %v147_v38  ;;  %v750_v39 = vsel %vm4943_vm9, %v745_v13, %v749_v60  ;;  %v4047_v40 = vpack.c.bf16 %v233_v22, %v233_v22  ;;  %v218_v24 = vadd.f32 %v5239_v21, %v196_v33 }
  0x6a   :  { %v533_v27 = vld [vmem:[#allocation2 + $0x74] sm:$0x1]  ;;  %87 = vst [vmem:[#allocation2 + $0x80] sm:$0x1] %v86_v31  ;;  %149 = vst [vmem:[#allocation2 + $0x84] sm:$0x1] %v148_v34  ;;  %v3735_v42 = vcombine.low %v736_v23, %v750_v39  ;;  %v395_v43 = vor.u32 %v393_v30, %v392_v5  ;;  %v5302_v48 = vadd.f32 %v5239_v21, %v5252_v35 }
  0x6b   :  { %v89_v2 = vsel %vm4823_vm2, 0, %v88_v47  ;;  %v5284_v54 = vrot.slane %v1941_v32, 4  ;;  %v396_v44 = vrot.slane %v392_v5, 4  ;;  %v398_v45 = vshrl.u32 %v4047_v40, 16  ;;  %v536_v12 = vld [vmem:[#allocation2 + $0x78] sm:$0xf] }
  0x6c   :  { %90 = vst [vmem:[#allocation2 + $0x88] sm:$0x1] %v89_v2  ;;  %v401_v46 = vshll.u32 %v4047_v40, 16  ;;  %v234_v8 = vmax.f32 %v218_v24, 0.0  ;;  %v151_v33 = vsel %vm4833_vm4, 0, %v150_v26  ;;  %4219 = vmatprep.mubr.bf16.mxu1 %v3735_v42  ;;  %v531_v23 = vsel %vm4911_vm8, %v395_v43, %v530_v3 }
  0x6d   :  { %v1808_v52 = vld [vmem:[#allocation2 + $0x60] sm:$0xf]  ;;  %v5288_v60 = vld [vmem:[#allocation2 + $0x64] sm:$0x1]  ;;  %v1947_v49 = vsel %vm4943_vm9, %v5284_v54, %v5264_v62  ;;  %v534_v55 = vsel %vm4823_vm2, %v396_v44, %v533_v27  ;;  %152 = vst [vmem:[#allocation2 + $0x8c] sm:$0x1] %v151_v33 }
  0x6e   :  { %v5294_v11 = vld [vmem:[#allocation2 + $0x60] sm:$0xf]  ;;  %v1949_v56 = vshrl.u32 %v1808_v52, 16  ;;  %v1952_v63 = vshll.u32 %v1808_v52, 16  ;;  %v1958_v25 = vshll.u32 %v5288_v60, 16  ;;  %v400_v6 = vrot.slane %v398_v45, 7 }
  0x6f   :  { %v5305_v0 = vld [vmem:[#allocation2 + $0x64] sm:$0x1]  ;;  %v752_v1 = vshrl.u32 %v5294_v11, 16  ;;  %532 = vst [vmem:[#allocation2 + $0x70] sm:$0xf] %v531_v23  ;;  %v755_v4 = vshll.u32 %v5294_v11, 16  ;;  %v5310_v59 = vpack.c.bf16 %v234_v8, %v234_v8 }
  0x70   :  { %535 = vst [vmem:[#allocation2 + $0x74] sm:$0x1] %v534_v55  ;;  %v761_v7 = vshll.u32 %v5305_v0, 16  ;;  %v1951_v51 = vrot.slane %v1949_v56, 4  ;;  %v1954_v35 = vrot.slane %v1952_v63, 5  ;;  %v1960_v38 = vrot.slane %v1958_v25, 5 }
  0x71   :  { %v5312_v16 = vld [vmem:[#allocation2 + $0x68] sm:$0xf]  ;;  %v754_v62 = vrot.slane %v752_v1, 4  ;;  %v5314_v30 = vld [vmem:[#allocation2 + $0x6c] sm:$0x1]  ;;  %v757_v47 = vrot.slane %v755_v4, 5  ;;  %v403_v3 = vor.u32 %v401_v46, %v400_v6 }
  0x72   :  { %v763_v13 = vrot.slane %v761_v7, 5  ;;  %v766_v20 = vshrl.u32 %v5312_v16, 16  ;;  %v769_v28 = vshll.u32 %v5312_v16, 16  ;;  %v1955_v22 = vor.u32 %v1954_v35, %v1951_v51  ;;  %v1810_v32 = vld [vmem:[#allocation2 + $0x68] sm:$0xf] }
  0x73   :  { %v775_v26 = vshll.u32 %v5314_v30, 16  ;;  %v5319_v5 = vld [vmem:[#allocation2 + $0x6c] sm:$0x1]  ;;  %v404_v31 = vrot.slane %v400_v6, 4  ;;  %v758_v34 = vor.u32 %v757_v47, %v754_v62  ;;  %v1963_v40 = vshrl.u32 %v1810_v32, 16 }
  0x74   :  { %v768_v39 = vrot.slane %v766_v20, 4  ;;  %v771_v27 = vrot.slane %v769_v28, 5  ;;  %v1956_v24 = vrot.slane %v1955_v22, 4  ;;  %v1966_v42 = vshll.u32 %v1810_v32, 16  ;;  %v539_v43 = vld [vmem:[#allocation2 + $0x7c] sm:$0x1] }
  0x75   :  { %v777_v2 = vrot.slane %v775_v26, 5  ;;  %v1972_v54 = vshll.u32 %v5319_v5, 16  ;;  %v759_v44 = vrot.slane %v758_v34, 4  ;;  %v1965_v52 = vrot.slane %v1963_v40, 4 }
  0x76   :  { %v772_v45 = vor.u32 %v771_v27, %v768_v39  ;;  %v1812_v8 = vld [vmem:[#allocation2 + $0x70] sm:$0xf]  ;;  %v537_v46 = vsel %vm4911_vm8, %v403_v3, %v536_v12  ;;  %v1961_v23 = vsel %vm4943_vm9, %v1956_v24, %v1960_v38  ;;  %v1968_v55 = vrot.slane %v1966_v42, 5  ;;  %v542_v24 = vld [vmem:[#allocation2 + $0x80] sm:$0xf]  ;;  %v174_v42 = vld [vmem:[%s6043_s0 + $0x78] sm:$0xff] }
  0x77   :  { %v5322_v33 = vld [vmem:[#allocation2 + $0x74] sm:$0x1]  ;;  %v1974_v56 = vrot.slane %v1972_v54, 5  ;;  %v1977_v63 = vshrl.u32 %v1812_v8, 16  ;;  %538 = vst [vmem:[#allocation2 + $0x78] sm:$0xf] %v537_v46  ;;  %v3863_v1 = vcombine.low %v1947_v49, %v1961_v23  ;;  %v764_v4 = vsel %vm4943_vm9, %v759_v44, %v763_v13 }
  0x78   :  { %v5328_v25 = vld [vmem:[#allocation2 + $0x70] sm:$0xf]  ;;  %v773_v7 = vrot.slane %v772_v45, 4  ;;  %v1980_v6 = vshll.u32 %v1812_v8, 16  ;;  %v5332_v51 = vld [vmem:[#allocation2 + $0x74] sm:$0x1]  ;;  %v1969_v35 = vor.u32 %v1968_v55, %v1965_v52  ;;  %v540_v38 = vsel %vm4823_vm2, %v404_v31, %v539_v43 }
  0x79   :  { %v1979_v62 = vrot.slane %v1977_v63, 4  ;;  %v1986_v12 = vshll.u32 %v5322_v33, 16  ;;  %4347 = vmatprep.mubr.bf16.mxu0 %v3863_v1  ;;  %541 = vst [vmem:[#allocation2 + $0x7c] sm:$0x1] %v540_v38  ;;  %v780_v49 = vshrl.u32 %v5328_v25, 16  ;;  %v783_v13 = vshll.u32 %v5328_v25, 16 }
  0x7a   :  { %v778_v47 = vsel %vm4943_vm9, %v773_v7, %v777_v2  ;;  %v1982_v20 = vrot.slane %v1980_v6, 5  ;;  %v1970_v22 = vrot.slane %v1969_v35, 4  ;;  %v789_v32 = vshll.u32 %v5332_v51, 16  ;;  %v545_v23 = vld [vmem:[#allocation2 + $0x84] sm:$0x1] }
  0x7b   :  { %v3736_v28 = vcombine.low %v764_v4, %v778_v47  ;;  %v1988_v26 = vrot.slane %v1986_v12, 5  ;;  %v782_v34 = vrot.slane %v780_v49, 4  ;;  %v785_v39 = vrot.slane %v783_v13, 5  ;;  %v91_v63 = vld [vmem:[#allocation2 + $0x90] sm:$0x1] }
  0x7c   :  { %v1983_v3 = vor.u32 %v1982_v20, %v1979_v62  ;;  %v406_v31 = vshrl.u32 %v5310_v59, 16  ;;  %v791_v27 = vrot.slane %v789_v32, 5  ;;  %v409_v40 = vshll.u32 %v5310_v59, 16  ;;  %v153_v6 = vld [vmem:[#allocation2 + $0x94] sm:$0x1] }
  0x7d   :  { %4220 = vmatmul.mubr.bf16.gmra.mrb[8].mxu1 %v3736_v28  ;;  %v235_v2 = vmax.f32 %v5302_v48, 0.0  ;;  %v1975_v54 = vsel %vm4943_vm9, %v1970_v22, %v1974_v56  ;;  %v786_v45 = vor.u32 %v785_v39, %v782_v34  ;;  %v198_v22 = vmul.f32 %v5219_v57, %v174_v42  ;;  %v2256_v39 = vld [vmem:[#allocation2 + $0x8] sm:$0xe] }
  0x7e   :  { %v1984_v43 = vrot.slane %v1983_v3, 4  ;;  %v5350_v44 = vld [vmem:[#allocation2 + $0x78] sm:$0xf]  ;;  %v408_v8 = vrot.slane %v406_v31, 7  ;;  %v548_v42 = vld [vmem:[#allocation2 + $0x88] sm:$0xf] }
  0x7f   :  { %v1814_v52 = vld [vmem:[#allocation2 + $0x78] sm:$0xf]  ;;  %v794_v46 = vshrl.u32 %v5350_v44, 16  ;;  %v797_v59 = vshll.u32 %v5350_v44, 16  ;;  %v787_v4 = vrot.slane %v786_v45, 4  ;;  %v4049_v20 = vpack.c.bf16 %v235_v2, %v235_v2 }
  0x80   :  { %v1991_v55 = vshrl.u32 %v1814_v52, 16  ;;  %v1994_v48 = vshll.u32 %v1814_v52, 16  ;;  %v1989_v1 = vsel %vm4943_vm9, %v1984_v43, %v1988_v26  ;;  %v411_v7 = vor.u32 %v409_v40, %v408_v8  ;;  %v5356_v62 = vld [vmem:[#allocation2 + $0x7c] sm:$0x1] }
  0x81   :  { %v412_v56 = vrot.slane %v408_v8, 4  ;;  %v3864_v35 = vcombine.low %v1975_v54, %v1989_v1  ;;  %v796_v12 = vrot.slane %v794_v46, 4  ;;  %v799_v38 = vrot.slane %v797_v59, 5  ;;  %v5358_v47 = vld [vmem:[#allocation2 + $0x7c] sm:$0x1] }
  0x82   :  { %v803_v49 = vshll.u32 %v5356_v62, 16  ;;  %v543_v13 = vsel %vm4911_vm8, %v411_v7, %v542_v24  ;;  %v792_v26 = vsel %vm4943_vm9, %v787_v4, %v791_v27  ;;  %v1993_v3 = vrot.slane %v1991_v55, 4  ;;  %v2257_v54 = vld [vmem:[#allocation2 + $0x10] sm:$0xe]  ;;  %v551_v59 = vld [vmem:[#allocation2 + $0x8c] sm:$0x1] }
  0x83   :  { %v546_v28 = vsel %vm4823_vm2, %v412_v56, %v545_v23  ;;  %4348 = vmatmul.mubr.bf16.gmra.mrb[8].mxu0 %v3864_v35  ;;  %v800_v32 = vor.u32 %v799_v38, %v796_v12  ;;  %544 = vst [vmem:[#allocation2 + $0x80] sm:$0xf] %v543_v13  ;;  %v1996_v34 = vrot.slane %v1994_v48, 5  ;;  %v414_v40 = vshrl.u32 %v4049_v20, 16  ;;  %v4726_v4 = vld [vmem:[#allocation2 + $0x24] sm:$0x1] }
  0x84   :  { %547 = vst [vmem:[#allocation2 + $0x84] sm:$0x1] %v546_v28  ;;  %v805_v31 = vrot.slane %v803_v49, 5  ;;  %v417_v2 = vshll.u32 %v4049_v20, 16  ;;  %v92_v24 = vsel %vm4823_vm2, 0, %v91_v63  ;;  %v2000_v57 = vshll.u32 %v5358_v47, 16 }
  0x85   :  { %v801_v43 = vrot.slane %v800_v32, 4  ;;  %v1997_v45 = vor.u32 %v1996_v34, %v1993_v3  ;;  %93 = vst [vmem:[#allocation2 + $0x90] sm:$0x1] %v92_v24  ;;  %v154_v27 = vsel %vm4833_vm4, 0, %v153_v6  ;;  %v416_v8 = vrot.slane %v414_v40, 7 }
  0x86   :  { %155 = vst [vmem:[#allocation2 + $0x94] sm:$0x1] %v154_v27  ;;  %v220_v52 = vadd.f32 %v5239_v21, %v198_v22  ;;  %v3875_v23 = vrot.slane %v2256_v39, 9  ;;  %v2318_v7 = vrot.slane %v4726_v4, 5  ;;  %v2002_v35 = vrot.slane %v2000_v57, 5 }
  0x87   :  { %v806_v46 = vsel %vm4943_vm9, %v801_v43, %v805_v31  ;;  %v419_v48 = vor.u32 %v417_v2, %v416_v8  ;;  %v420_v63 = vrot.slane %v416_v8, 4  ;;  %v1998_v56 = vrot.slane %v1997_v45, 4  ;;  %v2258_v22 = vld [vmem:[#allocation2 + $0x18] sm:$0xe]  ;;  %v2259_v39 = vld [vmem:[#allocation2 + $0x20] sm:$0xe] }
  0x88   :  { %v3737_v55 = vcombine.low %v792_v26, %v806_v46  ;;  %v236_v1 = vmax.f32 %v220_v52, 0.0  ;;  %v3876_v21 = vrot.slane %v2257_v54, 9  ;;  %v5397_v54 = vsel %vm5376_vm12, %v3875_v23, %v2306_v18 }
  0x89   :  { %v549_v20 = vsel %vm4911_vm8, %v419_v48, %v548_v42  ;;  %v552_v49 = vsel %vm4823_vm2, %v420_v63, %v551_v59  ;;  %v3877_v18 = vrot.slane %v2258_v22, 9  ;;  %v3878_v23 = vrot.slane %v2259_v39, 9 }
  0x8a   :  { %4223 = vmatprep.mubr.bf16.mxu1 %v3737_v55  ;;  %v1816_v12 = vld [vmem:[#allocation2 + $0x80] sm:$0xf]  ;;  %v4050_v28 = vpack.c.bf16 %v236_v1, %v236_v1  ;;  %550 = vst [vmem:[#allocation2 + $0x88] sm:$0xf] %v549_v20  ;;  %553 = vst [vmem:[#allocation2 + $0x8c] sm:$0x1] %v552_v49  ;;  %v5403_v59 = vsel %vm5376_vm12, %v3876_v21, %v2310_v41  ;;  %v2003_v48 = vsel %vm4943_vm9, %v1998_v56, %v2002_v35 }
  0x8b   :  { %v5380_v38 = vld [vmem:[#allocation2 + $0x84] sm:$0x1]  ;;  %v5386_v13 = vld [vmem:[#allocation2 + $0x80] sm:$0xf]  ;;  %v2005_v26 = vshrl.u32 %v1816_v12, 16  ;;  %v2008_v32 = vshll.u32 %v1816_v12, 16  ;;  %v3907_v15 = vcombine.low %v5397_v54, %v5403_v59  ;;  %v5414_v29 = vsel %vm5376_vm12, %v3877_v18, %v2314_v10 }
  0x8c   :  { %v2014_v3 = vshll.u32 %v5380_v38, 16  ;;  %v808_v34 = vshrl.u32 %v5386_v13, 16  ;;  %v5390_v31 = vld [vmem:[#allocation2 + $0x84] sm:$0x1]  ;;  %v811_v40 = vshll.u32 %v5386_v13, 16  ;;  %v422_v2 = vshrl.u32 %v4050_v28, 16 }
  0x8d   :  { %v425_v24 = vshll.u32 %v4050_v28, 16  ;;  %v2007_v43 = vrot.slane %v2005_v26, 4  ;;  %v2010_v45 = vrot.slane %v2008_v32, 5  ;;  %v554_v27 = vld [vmem:[#allocation2 + $0x90] sm:$0xf]  ;;  %v817_v63 = vshll.u32 %v5390_v31, 16 }
  0x8e   :  { %v2016_v57 = vrot.slane %v2014_v3, 5  ;;  %v810_v42 = vrot.slane %v808_v34, 4  ;;  %v813_v8 = vrot.slane %v811_v40, 5  ;;  %v424_v52 = vrot.slane %v422_v2, 7  ;;  %v557_v46 = vld [vmem:[#allocation2 + $0x94] sm:$0x1] }
  0x8f   :  { %v2011_v55 = vor.u32 %v2010_v45, %v2007_v43  ;;  %v5418_v41 = vsel %vm5376_vm12, %v3878_v23, %v2318_v7  ;;  %v819_v39 = vrot.slane %v817_v63, 5  ;;  %v4727_v23 = vld [vmem:[#allocation2] sm:$0xf] }
  0x90   :  { %v427_v1 = vor.u32 %v425_v24, %v424_v52  ;;  %v428_v4 = vrot.slane %v424_v52, 4  ;;  %v814_v20 = vor.u32 %v813_v8, %v810_v42  ;;  %v2265_v59 = vld [vmem:[#allocation2 + $0x60] sm:$0xe] }
  0x91   :  { %v2012_v12 = vrot.slane %v2011_v55, 4  ;;  %v5420_v21 = vld [vmem:[#allocation2 + $0x88] sm:$0xf]  ;;  %v5422_v49 = vld [vmem:[#allocation2 + $0x8c] sm:$0x1] }
  0x92   :  { %v555_v56 = vsel %vm4911_vm8, %v427_v1, %v554_v27  ;;  %v558_v35 = vsel %vm4823_vm2, %v428_v4, %v557_v46  ;;  %v822_v28 = vshrl.u32 %v5420_v21, 16  ;;  %v825_v7 = vshll.u32 %v5420_v21, 16  ;;  %v1818_v26 = vld [vmem:[#allocation2 + $0x88] sm:$0xf]  ;;  %v5435_v24 = vld [vmem:[#allocation2 + $0x8c] sm:$0x1] }
  0x93   :  { %v2017_v10 = vsel %vm4943_vm9, %v2012_v12, %v2016_v57  ;;  %v831_v22 = vshll.u32 %v5422_v49, 16  ;;  %556 = vst [vmem:[#allocation2 + $0x90] sm:$0xf] %v555_v56  ;;  %559 = vst [vmem:[#allocation2 + $0x94] sm:$0x1] %v558_v35  ;;  %v2019_v32 = vshrl.u32 %v1818_v26, 16 }
  0x94   :  { %v3865_v9 = vcombine.low %v2003_v48, %v2017_v10  ;;  %v2022_v3 = vshll.u32 %v1818_v26, 16  ;;  %v815_v34 = vrot.slane %v814_v20, 4  ;;  %v824_v40 = vrot.slane %v822_v28, 4  ;;  %v4728_v48 = vld [vmem:[#allocation2 + $0x8] sm:$0xf] }
  0x95   :  { %v827_v2 = vrot.slane %v825_v7, 5  ;;  %v2021_v43 = vrot.slane %v2019_v32, 4  ;;  %v833_v42 = vrot.slane %v831_v22, 5  ;;  %v2028_v46 = vshll.u32 %v5435_v24, 16  ;;  %v2260_v35 = vld [vmem:[#allocation2 + $0x28] sm:$0xe] }
  0x96   :  { %4351 = vmatprep.mubr.bf16.mxu0 %v3865_v9  ;;  %v2024_v45 = vrot.slane %v2022_v3, 5  ;;  %v820_v27 = vsel %vm4943_vm9, %v815_v34, %v819_v39  ;;  %v3747_v63 = vcombine.low %v4727_v23, %v4728_v48  ;;  %v4729_v9 = vld [vmem:[#allocation2 + $0x4] sm:$0x1]  ;;  %v4730_v3 = vld [vmem:[#allocation2 + $0xc] sm:$0x1] }
  0x97   :  { %v828_v57 = vor.u32 %v827_v2, %v824_v40  ;;  %v2030_v28 = vrot.slane %v2028_v46, 5  ;;  %v1275_v32 = vrot.slane %v4729_v9, 5  ;;  %v1279_v34 = vrot.slane %v4730_v3, 5  ;;  %v4731_v2 = vld [vmem:[#allocation2 + $0x14] sm:$0x1] }
  0x98   :  { %v2025_v52 = vor.u32 %v2024_v45, %v2021_v43  ;;  %v1283_v43 = vrot.slane %v4731_v2, 5  ;;  %v2261_v45 = vld [vmem:[#allocation2 + $0x30] sm:$0xe]  ;;  %v4734_v23 = vld [vmem:[#allocation2 + $0x18] sm:$0xf] }
  0x99   :  { %v829_v8 = vrot.slane %v828_v57, 4  ;;  %v3879_v57 = vrot.slane %v2260_v35, 9  ;;  %v4735_v35 = vld [vmem:[#allocation2 + $0x20] sm:$0xf]  ;;  %v4738_v3 = vld [vmem:[#allocation2 + $0x1c] sm:$0x1] }
  0x9a   :  { %v1820_v55 = vld [vmem:[#allocation2 + $0x90] sm:$0xf]  ;;  %v5440_v18 = vld [vmem:[#allocation2 + $0x94] sm:$0x1]  ;;  %v2026_v10 = vrot.slane %v2025_v52, 4 }
  0x9b   :  { %v834_v1 = vsel %vm4943_vm9, %v829_v8, %v833_v42  ;;  %v2033_v4 = vshrl.u32 %v1820_v55, 16  ;;  %v2036_v12 = vshll.u32 %v1820_v55, 16  ;;  %v2042_v20 = vshll.u32 %v5440_v18, 16  ;;  %v1222_v42 = vld [vmem:[#allocation2] sm:$0xe] }
  0x9c   :  { %v3738_v56 = vcombine.low %v820_v27, %v834_v1  ;;  %v2031_v27 = vsel %vm4943_vm9, %v2026_v10, %v2030_v28  ;;  %v4732_v52 = vld [vmem:[#allocation2 + $0x2c] sm:$0x1]  ;;  %v4733_v55 = vld [vmem:[#allocation2 + $0x10] sm:$0xf]  ;;  %v3880_v28 = vrot.slane %v2261_v45, 9  ;;  %v3763_v2 = vrot.slane %v1222_v42, 9 }
  0x9d   :  { %v2035_v7 = vrot.slane %v2033_v4, 4  ;;  %v2038_v22 = vrot.slane %v2036_v12, 5  ;;  %v2044_v40 = vrot.slane %v2042_v20, 5  ;;  %v2322_v46 = vrot.slane %v4732_v52, 5  ;;  %v4665_v1 = vld [vmem:[%s6042_s3 + $0x88] sm:$0xff]  }
  0x9e   :  { %4224 = vmatmul.mubr.bf16.gmra.mrb[12].mxu1 %v3738_v56  ;;  %v3748_v48 = vcombine.low %v4733_v55, %v4734_v23  ;;  %v1223_v4 = vld [vmem:[#allocation2 + $0x8] sm:$0xe]  ;;  %v1224_v12 = vld [vmem:[#allocation2 + $0x10] sm:$0xe]  ;;  %v1225_v20 = vld [vmem:[#allocation2 + $0x18] sm:$0xe]  ;;  %v5462_v42 = vsel %vm5376_vm12, %v3763_v2, %v1275_v32 }
  0x9f   :  { %v2039_v39 = vor.u32 %v2038_v22, %v2035_v7  ;;  %4243 = vmatprep.mubr.bf16.mxu1 %v3747_v63  ;;  %v4736_v7 = vld [vmem:[#allocation2 + $0x28] sm:$0xf]  ;;  %v4737_v22 = vld [vmem:[#allocation2 + $0x34] sm:$0x1]  ;;  %v3764_v52 = vrot.slane %v1223_v4, 9  ;;  %v3765_v26 = vrot.slane %v1224_v12, 9 }
  0xa0   :  { %v3749_v10 = vcombine.low %v4735_v35, %v4736_v7  ;;  %v2326_v9 = vrot.slane %v4737_v22, 5  ;;  %v2262_v55 = vld [vmem:[#allocation2 + $0x38] sm:$0xe]  ;;  %v2263_v23 = vld [vmem:[#allocation2 + $0x40] sm:$0xe]  ;;  %v3766_v17 = vrot.slane %v1225_v20, 9 }
  0xa1   :  { %v2040_v8 = vrot.slane %v2039_v39, 4  ;;  %v1287_v39 = vrot.slane %v4738_v3, 5  ;;  %v2264_v45 = vld [vmem:[#allocation2 + $0x58] sm:$0xe]  ;;  %v5477_v32 = vsel %vm5376_vm12, %v3765_v26, %v1283_v43  ;;  %v4664_v20 = vld [vmem:[%s6042_s3 + $0x188] sm:$0xff]   ;;  %v2334_v26 = vrot.slane %v5165_v37, 5 }
  0xa2   :  { %v2327_v54 = vsel %vm5376_vm12, %v3880_v28, %v2326_v9  ;;  %v3883_v43 = vrot.slane %v2264_v45, 9  ;;  %v5489_v35 = vld [vmem:[#allocation2 + $0x70] sm:$0xe]  ;;  %v2338_v28 = vrot.slane %v5257_v36, 5  ;;  %v3884_v22 = vrot.slane %v2265_v59, 9 }
  0xa3   :  { %v2045_v63 = vsel %vm4943_vm9, %v2040_v8, %v2044_v40  ;;  %v2323_v40 = vsel %vm5376_vm12, %v3879_v57, %v2322_v46  ;;  %v4739_v57 = vld [vmem:[#allocation2 + $0x30] sm:$0xf]  ;;  %v3881_v46 = vrot.slane %v2262_v55, 9  ;;  %v5483_v12 = vsel %vm5376_vm12, %v3766_v17, %v1287_v39  ;;  %v4671_v17 = vld [vmem:[%s6042_s3 + $0x98] sm:$0xff]   ;;  %v64_v3 = vld [vmem:[#allocation2 + $0x48] sm:$0x1] }
  0xa4   :  { %v3866_v56 = vcombine.low %v2031_v27, %v2045_v63  ;;  %v5466_v27 = vsel %vm5376_vm12, %v3764_v52, %v1279_v34  ;;  %v4740_v34 = vld [vmem:[#allocation2 + $0x38] sm:$0xf]  ;;  %v5479_v63 = vld [vmem:[#allocation2 + $0x68] sm:$0xe]  ;;  %v3796_v7 = vcombine.low %v5477_v32, %v5483_v12  ;;  %v2342_v37 = vrot.slane %v5288_v60, 5  ;;  %v4667_v36 = vld [vmem:[%s6042_s3 + $0x190] sm:$0xff]  }
  0xa5   :  { %v3750_v8 = vcombine.low %v4739_v57, %v4740_v34  ;;  %v5497_v9 = vld [vmem:[#allocation2 + $0x78] sm:$0xe]  ;;  %v65_v39 = vsel %vm4823_vm2, 0, %v64_v3  ;;  %v4742_v2 = vld [vmem:[#allocation2 + $0x50] sm:$0xf]  ;;  %v6059_v52 = vcombine.low %v5414_v29, %v5418_v41  ;;  %v3885_v55 = vrot.slane %v5479_v63, 9 }
  0xa6   :  { %4352 = vmatmul.mubr.bf16.gmra.mrb[12].mxu0 %v3866_v56  ;;  %4244 = vmatmul.mubr.bf16.vlgmr.msra.gmra.mrb[0].mxu1 %v3748_v48  ;;  %v4741_v48 = vld [vmem:[#allocation2 + $0x3c] sm:$0x1]  ;;  %v3882_v56 = vrot.slane %v2263_v23, 9  ;;  %66 = vst [vmem:[#allocation2 + $0x48] sm:$0x1] %v65_v39  ;;  %v2346_v60 = vrot.slane %v5319_v5, 5  ;;  %v2343_v5 = vsel %vm5376_vm12, %v3884_v22, %v2342_v37  ;;  %v6060_v22 = vcombine.low %v5294_v11, %v5312_v16 }
  0xa7   :  { %4371 = vmatprep.mubr.bf16.mxu0 %v3907_v15  ;;  %4260 = vmatpush3.bf16.msra.mxu1 %v5155_v58  ;;  %v4669_v58 = vld [vmem:[%s6042_s3 + $0x90] sm:$0xff]   ;;  %v3795_v15 = vcombine.low %v5462_v42, %v5466_v27  ;;  %v2330_v4 = vrot.slane %v4741_v48, 5  ;;  %v2269_v23 = vld [vmem:[#allocation2 + $0x80] sm:$0xe]  ;;  %v2350_v45 = vrot.slane %v5322_v33, 5  ;;  %v3887_v59 = vrot.slane %v5497_v9, 9 }
  0xa8   :  { %4261 = vmatprep.subr.bf16.mxu1 %v4665_v1  ;;  %4247 = vmatprep.mubr.bf16.mxu1 %v3749_v10  ;;  %v3909_v10 = vcombine.low %v2323_v40, %v2327_v54  ;;  %v2335_v29 = vsel %vm5376_vm12, %v3882_v56, %v2334_v26  ;;  %v4675_v41 = vld [vmem:[%s6042_s3 + $0xa0] sm:$0xff]   ;;  %v3886_v40 = vrot.slane %v5489_v35, 9  ;;  %v5521_v54 = vld [vmem:[#allocation2 + $0x88] sm:$0xe]  ;;  %v1315_v57 = vrot.slane %v5305_v0, 5  ;;  %v4681_v11 = vld [vmem:[%s6042_s3 + $0xb0] sm:$0xff]  }
  0xa9   :  { %v2354_v34 = vrot.slane %v5358_v47, 5  ;;  %v1233_v33 = vld [vmem:[#allocation2 + $0x68] sm:$0xe]  ;;  %v3888_v26 = vrot.slane %v2269_v23, 9  ;;  %v2358_v47 = vrot.slane %v5380_v38, 5  ;;  %v3753_v38 = vcombine.low %v5328_v25, %v5350_v44  ;;  %v4692_v32 = vld [vmem:[%s6042_s3 + $0xd0] sm:$0xff]  }
  0xaa   :  { %v3774_v63 = vrot.slane %v1233_v33, 9  ;;  %v4677_v0 = vld [vmem:[%s6042_s3 + $0xa8] sm:$0xff]   ;;  %v2347_v9 = vsel %vm5376_vm12, %v3885_v55, %v2346_v60  ;;  %v1234_v3 = vld [vmem:[#allocation2 + $0x70] sm:$0xe]  ;;  %v1235_v37 = vld [vmem:[#allocation2 + $0x78] sm:$0xe]  ;;  %v2351_v44 = vsel %vm5376_vm12, %v3886_v40, %v2350_v45  ;;  %v3754_v39 = vcombine.low %v5386_v13, %v5420_v21 }
  0xab   :  { %4262 = vmatpush3.bf16.msra.mxu1 %v4665_v1  ;;  %v3751_v1 = vcombine.low %v4742_v2, %v5248_v50  ;;  %v2331_v50 = vsel %vm5376_vm12, %v3881_v46, %v2330_v4  ;;  %v1319_v46 = vrot.slane %v5314_v30, 5  ;;  %v3889_v30 = vrot.slane %v5521_v54, 9  ;;  %v1226_v21 = vld [vmem:[#allocation2 + $0x20] sm:$0xe]  ;;  %v4745_v27 = vld [vmem:[#allocation2 + $0x34] sm:$0x1] }
  0xac   :  { %4263 = vmatprep.subr.bf16.mxu1 %v4669_v58  ;;  %v3910_v48 = vcombine.low %v2331_v50, %v2335_v29  ;;  %v1327_v25 = vrot.slane %v5356_v62, 5  ;;  %v3775_v16 = vrot.slane %v1234_v3, 9  ;;  %v3776_v2 = vrot.slane %v1235_v37, 9  ;;  %v1236_v23 = vld [vmem:[#allocation2 + $0x80] sm:$0xe]  ;;  %v4689_v3 = vld [vmem:[%s6042_s3 + $0xc8] sm:$0xff]  }
  0xad   :  { %v2359_v62 = vsel %vm5376_vm12, %v3888_v26, %v2358_v47  ;;  %v2366_v13 = vrot.slane %v5440_v18, 5  ;;  %v1237_v50 = vld [vmem:[#allocation2 + $0x88] sm:$0xe]  ;;  %v1335_v29 = vrot.slane %v5422_v49, 5  ;;  %v3777_v40 = vrot.slane %v1236_v23, 9  ;;  %v4686_v26 = vld [vmem:[%s6042_s3 + $0xc0] sm:$0xff]  }
  0xae   :  { %4372 = vmatmul.mubr.bf16.vlgmr.msra.gmra.mrb[0].mxu0 %v6059_v52  ;;  %4248 = vmatmul.mubr.bf16.gmra.mrb[4].mxu1 %v3750_v8  ;;  %v1232_v8 = vld [vmem:[#allocation2 + $0x60] sm:$0xe]  ;;  %v1331_v52 = vrot.slane %v5390_v31, 5  ;;  %v5584_v60 = vsel %vm5376_vm12, %v3776_v2, %v1327_v25  ;;  %v4676_v31 = vld [vmem:[%s6042_s3 + $0x1a8] sm:$0xff]   ;;  %v3778_v45 = vrot.slane %v1237_v50, 9  ;;  %v3767_v33 = vrot.slane %v1226_v21, 9 }
  0xaf   :  { %4388 = vmatpush3.bf16.msra.mxu0 %v5199_v61  ;;  %4375 = vmatprep.mubr.bf16.mxu0 %v3909_v10  ;;  %v2339_v61 = vsel %vm5376_vm12, %v3883_v43, %v2338_v28  ;;  %v3773_v4 = vrot.slane %v1232_v8, 9  ;;  %v5538_v43 = vld [vmem:[#allocation2 + $0x90] sm:$0xe]  ;;  %v1323_v10 = vrot.slane %v5332_v51, 5  ;;  %v2362_v51 = vrot.slane %v5435_v24, 5 }
  0xb0   :  { %4389 = vmatprep.subr.bf16.mxu0 %v4664_v20  ;;  %4264 = vmatpush3.bf16.msra.mxu1 %v4669_v58  ;;  %v4670_v58 = vld [vmem:[%s6042_s3 + $0x198] sm:$0xff]   ;;  %v3911_v56 = vcombine.low %v2339_v61, %v2343_v5  ;;  %v2355_v24 = vsel %vm5376_vm12, %v3887_v59, %v2354_v34  ;;  %v5597_v49 = vsel %vm5376_vm12, %v3777_v40, %v1331_v52  ;;  %v1228_v47 = vld [vmem:[#allocation2 + $0x30] sm:$0xe] }
  0xb1   :  { %4265 = vmatprep.subr.bf16.mxu1 %v4671_v17  ;;  %4251 = vmatprep.mubr.bf16.mxu1 %v3751_v1  ;;  %v5543_v35 = vsel %vm5376_vm12, %v3773_v4, %v1315_v57  ;;  %v3890_v1 = vrot.slane %v5538_v43, 9  ;;  %v5580_v55 = vsel %vm5376_vm12, %v3775_v16, %v1323_v10  ;;  %v3913_v61 = vcombine.low %v2355_v24, %v2359_v62  ;;  %v94_v5 = vld [vmem:[#allocation2 + $0x98] sm:$0x1]  ;;  %v4744_v4 = vld [vmem:[#allocation2 + $0x2c] sm:$0x1] }
  0xb2   :  { %v3801_v18 = vcombine.low %v5580_v55, %v5584_v60  ;;  %v4683_v59 = vld [vmem:[%s6042_s3 + $0xb8] sm:$0xff]   ;;  %v5601_v57 = vsel %vm5376_vm12, %v3778_v45, %v1335_v29  ;;  %v95_v34 = vsel %vm4823_vm2, 0, %v94_v5  ;;  %v3769_v42 = vrot.slane %v1228_v47, 9  ;;  %v4687_v29 = vld [vmem:[#allocation2 + $0x20] ss:$8 sps:$4 sm:$0xff]  }
  0xb3   :  { %4390 = vmatpush3.bf16.msra.mxu0 %v4664_v20  ;;  %v5547_v20 = vsel %vm5376_vm12, %v3774_v63, %v1319_v46  ;;  %v3802_v8 = vcombine.low %v5597_v49, %v5601_v57  ;;  %96 = vst [vmem:[#allocation2 + $0x98] sm:$0x1] %v95_v34  ;;  %v4743_v46 = vld [vmem:[#allocation2 + $0x24] sm:$0x1]  ;;  %v1295_v63 = vrot.slane %v4744_v4, 5 }
  0xb4   :  { %4391 = vmatprep.subr.bf16.mxu0 %v4667_v36  ;;  %4266 = vmatpush3.bf16.msra.mxu1 %v4671_v17  ;;  %v3800_v28 = vcombine.low %v5543_v35, %v5547_v20  ;;  %v4673_v17 = vld [vmem:[%s6042_s3 + $0x1a0] sm:$0xff]   ;;  %v1229_v43 = vld [vmem:[#allocation2 + $0x38] sm:$0xe]  ;;  %v4746_v25 = vld [vmem:[#allocation2 + $0x3c] sm:$0x1] }
  0xb5   :  { %4267 = vmatprep.subr.bf16.mxu1 %v4675_v41  ;;  %v4748_v16 = vld [vmem:[#allocation2 + $0x5c] sm:$0x1]  ;;  %v2823_v52 = vld [vmem:[#allocation2 + $0x18] sm:$0xf]  ;;  %v2827_v4 = vld [vmem:[#allocation2 + $0x28] sm:$0xf] }
  0xb6   :  { %4376 = vmatmul.mubr.bf16.gmra.mrb[4].mxu0 %v3910_v48  ;;  %4252 = vmatmul.mubr.bf16.gmra.mrb[8].mxu1 %v6060_v22  ;;  %v1291_v48 = vrot.slane %v4743_v46, 5  ;;  %v1231_v22 = vld [vmem:[#allocation2 + $0x58] sm:$0xe]  ;;  %v1311_v2 = vrot.slane %v4748_v16, 5  ;;  %v2871_v40 = vshll.u32 %v2823_v52, 16 }
  0xb7   :  { %4392 = vmatpush3.bf16.msra.mxu0 %v4667_v36  ;;  %4379 = vmatprep.mubr.bf16.mxu0 %v3911_v56  ;;  %v1227_v36 = vld [vmem:[#allocation2 + $0x28] sm:$0xe]  ;;  %v2363_v56 = vsel %vm5376_vm12, %v3889_v30, %v2362_v51  ;;  %v3770_v51 = vrot.slane %v1229_v43, 9  ;;  %v3772_v62 = vrot.slane %v1231_v22, 9  ;;  %v4690_v45 = vld [vmem:[#allocation2 + $0x30] ss:$8 sps:$4 sm:$0xff]  }
  0xb8   :  { %4393 = vmatprep.subr.bf16.mxu0 %v4670_v58  ;;  %4268 = vmatpush3.bf16.msra.mxu1 %v4675_v41  ;;  %v3912_v41 = vcombine.low %v2347_v9, %v2351_v44  ;;  %v1292_v30 = vsel %vm5376_vm12, %v3767_v33, %v1291_v48  ;;  %v4682_v9 = vld [vmem:[%s6042_s3 + $0x1b8] sm:$0xff]   ;;  %v1303_v44 = vrot.slane %v4746_v25, 5  ;;  %v2825_v33 = vld [vmem:[#allocation2 + $0x20] sm:$0xf]  ;;  %v2829_v25 = vld [vmem:[#allocation2 + $0x30] sm:$0xf] }
  0xb9   :  { %4269 = vmatprep.subr.bf16.mxu1 %v4677_v0  ;;  %4255 = vmatprep.mubr.bf16.mxu1 %v3753_v38  ;;  %v4684_v38 = vld [vmem:[#allocation2 + $0x10] ss:$8 sps:$4 sm:$0xff]   ;;  %v5657_v34 = vld [vmem:[#allocation2 + $0x1c] sm:$0x1]  ;;  %v2882_v47 = vshrl.u32 %v2825_v33, 16  ;;  %v2885_v43 = vshll.u32 %v2825_v33, 16 }
  0xba   :  { %v4704_v33 = vld [vmem:[%s6042_s3 + $0xf0] sm:$0xff]   ;;  %v2837_v60 = vld [vmem:[#allocation2 + $0x60] sm:$0xf] }
  0xbb   :  { %4394 = vmatpush3.bf16.msra.mxu0 %v4670_v58  ;;  %v3768_v58 = vrot.slane %v1227_v36, 9  ;;  %v1304_v36 = vsel %vm5376_vm12, %v3770_v51, %v1303_v44  ;;  %v4694_v51 = vld [vmem:[%s6042_s3 + $0x1d8] sm:$0xff]   ;;  %v2887_v16 = vrot.slane %v2885_v43, 5 }
  0xbc   :  { %4395 = vmatprep.subr.bf16.mxu0 %v4673_v17  ;;  %4270 = vmatpush3.bf16.msra.mxu1 %v4677_v0  ;;  %v2367_v0 = vsel %vm5376_vm12, %v3890_v1, %v2366_v13  ;;  %v2821_v1 = vld [vmem:[#allocation2 + $0x10] sm:$0xf]  ;;  %v4685_v13 = vld [vmem:[%s6042_s3 + $0x1c0] sm:$0xff]   ;;  %v2831_v44 = vld [vmem:[#allocation2 + $0x38] sm:$0xf] }
  0xbd   :  { %4271 = vmatprep.subr.bf16.mxu1 %v4681_v11  ;;  %v3914_v54 = vcombine.low %v2363_v56, %v2367_v0  ;;  %v1296_v10 = vsel %vm5376_vm12, %v3768_v58, %v1295_v63  ;;  %v2854_v23 = vshrl.u32 %v2821_v1, 16  ;;  %v2857_v50 = vshll.u32 %v2821_v1, 16  ;;  %v5659_v56 = vld [vmem:[#allocation2 + $0x24] sm:$0x1]  ;;  %v4691_v0 = vld [vmem:[%s6042_s3 + $0x1d0] sm:$0xff]  }
  0xbe   :  { %4380 = vmatmul.mubr.bf16.gmra.mrb[8].mxu0 %v3912_v41  ;;  %4256 = vmatmul.mubr.bf16.gmra.mrb[12].mxu1 %v3754_v39  ;;  %v3797_v37 = vcombine.low %v1292_v30, %v1296_v10  ;;  %v4747_v39 = vld [vmem:[#allocation2 + $0x54] sm:$0x1]  ;;  %v4688_v41 = vld [vmem:[%s6042_s3 + $0x1c8] sm:$0xff]   ;;  %v4698_v30 = vld [vmem:[%s6042_s3 + $0xe0] sm:$0xff]  }
  0xbf   :  { %4396 = vmatpush3.bf16.msra.mxu0 %v4673_v17  ;;  %4383 = vmatprep.mubr.bf16.mxu0 %v3913_v61  ;;  %v1230_v17 = vld [vmem:[#allocation2 + $0x50] sm:$0xe]  ;;  %v5652_v61 = vld [vmem:[#allocation2 + $0x14] sm:$0x1]  ;;  %v2856_v48 = vrot.slane %v2854_v23, 4  ;;  %v2859_v58 = vrot.slane %v2857_v50, 5 }
  0xc0   :  { %4397 = vmatprep.subr.bf16.mxu0 %v4676_v31  ;;  %4272 = vmatpush3.bf16.msra.mxu1 %v4681_v11  ;;  %v1307_v11 = vrot.slane %v4747_v39, 5  ;;  %v3771_v24 = vrot.slane %v1230_v17, 9  ;;  %v5668_v10 = vld [vmem:[#allocation2 + $0x2c] sm:$0x1]  ;;  %v2899_v17 = vshll.u32 %v2827_v4, 16 }
  0xc1   :  { %4273 = vmatprep.subr.bf16.mxu1 %v4683_v59  ;;  %4275 = vmatprep.mubr.bf16.mxu1 %v3795_v15  ;;  %v1299_v15 = vrot.slane %v4745_v27, 5  ;;  %v2877_v27 = vshll.u32 %v5657_v34, 16  ;;  %v2833_v1 = vld [vmem:[#allocation2 + $0x40] sm:$0xf]  ;;  %v2835_v23 = vld [vmem:[#allocation2 + $0x48] sm:$0xf] }
  0xc2   :  { %v1308_v12 = vsel %vm5376_vm12, %v3771_v24, %v1307_v11  ;;  %v2884_v11 = vrot.slane %v2882_v47, 4  ;;  %v4701_v50 = vld [vmem:[%s6042_s3 + $0xe8] sm:$0xff]  }
  0xc3   :  { %4398 = vmatpush3.bf16.msra.mxu0 %v4676_v31  ;;  %v1300_v21 = vsel %vm5376_vm12, %v3769_v42, %v1299_v15  ;;  %v2868_v31 = vshrl.u32 %v2823_v52, 16  ;;  %v4696_v42 = vld [vmem:[#allocation2 + $0x60] ss:$8 sps:$4 sm:$0xff]   ;;  %v2891_v15 = vshll.u32 %v5659_v56, 16  ;;  %v2910_v52 = vshrl.u32 %v2829_v25, 16 }
  0xc4   :  { %4399 = vmatprep.subr.bf16.mxu0 %v4679_v14  ;;  %4274 = vmatpush3.bf16.msra.mxu1 %v4683_v59  ;;  %v3798_v5 = vcombine.low %v1300_v21, %v1304_v36  ;;  %v4695_v59 = vld [vmem:[%s6042_s3 + $0xd8] sm:$0xff]   ;;  %v2924_v21 = vshrl.u32 %v2831_v44, 16  ;;  %v2927_v36 = vshll.u32 %v2831_v44, 16  ;;  %v2969_v44 = vshll.u32 %v2837_v60, 16 }
  0xc5   :  { %4291 = vmatprep.subr.bf16.mxu1 %v4686_v26  ;;  %v2870_v63 = vrot.slane %v2868_v31, 4  ;;  %v2888_v31 = vor.u32 %v2887_v16, %v2884_v11  ;;  %v2912_v35 = vrot.slane %v2910_v52, 4  ;;  %v4703_v16 = vld [vmem:[%s6042_s3 + $0x1f0] sm:$0xff]  }
  0xc6   :  { %4384 = vmatmul.mubr.bf16.gmra.mrb[12].mxu0 %v3914_v54  ;;  %v126_v54 = vld [vmem:[#allocation2 + $0x4c] sm:$0x1] }
  0xc7   :  { %4400 = vmatpush3.bf16.msra.mxu0 %v4679_v14  ;;  %4403 = vmatprep.mubr.bf16.mxu0 %v4684_v38  ;;  %v2873_v14 = vrot.slane %v2871_v40, 5  ;;  %v2896_v38 = vshrl.u32 %v2827_v4, 16  ;;  %v127_v22 = vsel %vm4833_vm4, 0, %v126_v54  ;;  %v2952_v4 = vshrl.u32 %v2835_v23, 16 }
  0xc8   :  { %4401 = vmatprep.subr.bf16.mxu0 %v4682_v9  ;;  %4276 = vmatmul.mubr.bf16.vlgmr.msra.gmra.mrb[0].mxu1 %v3796_v7  ;;  %v1312_v7 = vsel %vm5376_vm12, %v3772_v62, %v1311_v2  ;;  %128 = vst [vmem:[#allocation2 + $0x4c] sm:$0x1] %v127_v22  ;;  %v2905_v2 = vshll.u32 %v5668_v10, 16  ;;  %v2901_v62 = vrot.slane %v2899_v17, 5 }
  0xc9   :  { %4292 = vmatpush3.bf16.msra.mxu1 %v4686_v26  ;;  %4279 = vmatprep.mubr.bf16.mxu1 %v3797_v37  ;;  %v3799_v46 = vcombine.low %v1308_v12, %v1312_v7  ;;  %v2863_v26 = vshll.u32 %v5652_v61, 16  ;;  %v2874_v37 = vor.u32 %v2873_v14, %v2870_v63  ;;  %v2898_v24 = vrot.slane %v2896_v38, 4  ;;  %v4697_v7 = vld [vmem:[%s6042_s3 + $0x1e0] sm:$0xff]   ;;  %v2839_v38 = vld [vmem:[#allocation2 + $0x68] sm:$0xf] }
  0xca   :  { %4293 = vmatprep.subr.bf16.mxu1 %v4689_v3  ;;  %v5689_v12 = vrot.slane %v2891_v15, 5  ;;  %v5694_v40 = vrot.slane %v2905_v2, 5  ;;  %v2955_v63 = vshll.u32 %v2835_v23, 16  ;;  %v4702_v14 = vld [vmem:[#allocation2 + $0x80] ss:$8 sps:$4 sm:$0xff]   ;;  %v4707_v15 = vld [vmem:[%s6042_s3 + $0xf8] sm:$0xff]  }
  0xcb   :  { %4402 = vmatpush3.bf16.msra.mxu0 %v4682_v9  ;;  %v4693_v9 = vld [vmem:[#allocation2 + $0x40] ss:$8 sps:$4 sm:$0xff]   ;;  %v5677_v39 = vrot.slane %v2863_v26, 5  ;;  %v2983_v11 = vshll.u32 %v2839_v38, 16  ;;  %v5744_v23 = vld [vmem:[#allocation2 + $0x6c] sm:$0x1] }
  0xcc   :  { %4419 = vmatprep.subr.bf16.mxu0 %v4685_v13  ;;  %v4700_v26 = vld [vmem:[%s6042_s3 + $0x1e8] sm:$0xff]  }
  0xcd   :  { %4294 = vmatpush3.bf16.msra.mxu1 %v4689_v3  ;;  %v2860_v3 = vor.u32 %v2859_v58, %v2856_v48  ;;  %v5702_v48 = vld [vmem:[#allocation2 + $0x34] sm:$0x1]  ;;  %v5704_v58 = vld [vmem:[#allocation2 + $0x3c] sm:$0x1] }
  0xce   :  { %4404 = vmatmul.mubr.bf16.vlgmr.msra.gmra.mrb[0].mxu0 %v4687_v29  ;;  %4295 = vmatprep.subr.bf16.mxu1 %v4692_v32  ;;  %v2919_v43 = vshll.u32 %v5702_v48, 16  ;;  %v2933_v22 = vshll.u32 %v5704_v58, 16 }
  0xcf   :  { %4420 = vmatpush3.bf16.msra.mxu0 %v4685_v13  ;;  %4407 = vmatprep.mubr.bf16.mxu0 %v4690_v45  ;;  %v2913_v13 = vshll.u32 %v2829_v25, 16  ;;  %v5683_v29 = vrot.slane %v2860_v3, 4  ;;  %v2938_v45 = vshrl.u32 %v2833_v1, 16  ;;  %v2966_v25 = vshrl.u32 %v2837_v60, 16  ;;  %v5778_v60 = vld [vmem:[%s6042_s3 + $0x208] sm:$0xff]  }
  0xd0   :  { %4421 = vmatprep.subr.bf16.mxu0 %v4688_v41  ;;  %4280 = vmatmul.mubr.bf16.gmra.mrb[4].mxu1 %v3798_v5  ;;  %v2941_v5 = vshll.u32 %v2833_v1, 16  ;;  %v5732_v2 = vrot.slane %v2919_v43, 5  ;;  %v4705_v1 = vld [vmem:[#allocation2 + $0x90] ss:$8 sps:$4 sm:$0xff]  }
  0xd1   :  { %4296 = vmatpush3.bf16.msra.mxu1 %v4692_v32  ;;  %4283 = vmatprep.mubr.bf16.mxu1 %v3799_v46  ;;  %v5687_v32 = vrot.slane %v2877_v27, 5  ;;  %v2902_v46 = vor.u32 %v2901_v62, %v2898_v24  ;;  %v2915_v20 = vrot.slane %v2913_v13, 5  ;;  %v2866_v47 = vsel %vm4943_vm9, %v5683_v29, %v5677_v39 }
  0xd2   :  { %4297 = vmatprep.subr.bf16.mxu1 %v4695_v59  ;;  %v2940_v54 = vrot.slane %v2938_v45, 4  ;;  %v2957_v27 = vrot.slane %v2955_v63, 5  ;;  %v2980_v39 = vshrl.u32 %v2839_v38, 16  ;;  %v5758_v29 = vrot.slane %v2933_v22, 5 }
  0xd3   :  { %4422 = vmatpush3.bf16.msra.mxu0 %v4688_v41  ;;  %v5685_v41 = vrot.slane %v2874_v37, 4  ;;  %v2903_v17 = vrot.slane %v2902_v46, 4  ;;  %v2916_v3 = vor.u32 %v2915_v20, %v2912_v35  ;;  %v2989_v63 = vshll.u32 %v5744_v23, 16 }
  0xd4   :  { %4423 = vmatprep.subr.bf16.mxu0 %v4691_v0  ;;  %v2982_v45 = vrot.slane %v2980_v39, 4 }
  0xd5   :  { %4298 = vmatpush3.bf16.msra.mxu1 %v4695_v59  ;;  %v4699_v59 = vld [vmem:[#allocation2 + $0x70] ss:$8 sps:$4 sm:$0xff]   ;;  %v2880_v55 = vsel %vm4943_vm9, %v5685_v41, %v5687_v32  ;;  %v2908_v49 = vsel %vm4943_vm9, %v2903_v17, %v5694_v40  ;;  %v5754_v57 = vrot.slane %v2916_v3, 4  ;;  %v5760_v41 = vld [vmem:[#allocation2 + $0x4c] sm:$0x1]  ;;  %v5798_v39 = vrot.slane %v2989_v63, 5 }
  0xd6   :  { %4408 = vmatmul.mubr.bf16.gmra.mrb[4].mxu0 %v4693_v9  ;;  %4299 = vmatprep.subr.bf16.mxu1 %v4698_v30  ;;  %v5724_v9 = vld [vmem:[#allocation2 + $0x44] sm:$0x1]  ;;  %v3971_v52 = vcombine.low %v2866_v47, %v2880_v55  ;;  %v4706_v32 = vld [vmem:[%s6042_s3 + $0x1f8] sm:$0xff]   ;;  %v4712_v40 = vld [vmem:[#allocation2 + $0x28] ss:$8 sps:$4 sm:$0xff]   ;;  %v2961_v20 = vshll.u32 %v5760_v41, 16 }
  0xd7   :  { %4424 = vmatpush3.bf16.msra.mxu0 %v4691_v0  ;;  %4411 = vmatprep.mubr.bf16.mxu0 %v4696_v42  ;;  %v2929_v0 = vrot.slane %v2927_v36, 5  ;;  %v2954_v42 = vrot.slane %v2952_v4, 4  ;;  %v2947_v62 = vshll.u32 %v5724_v9, 16  ;;  %v5742_v36 = vld [vmem:[#allocation2 + $0x64] sm:$0x1]  ;;  %v2922_v38 = vsel %vm4943_vm9, %v5754_v57, %v5732_v2  ;;  %v5823_v63 = vld [vmem:[%s6042_s3 + $0x218] sm:$0xff]  }
  0xd8   :  { %4425 = vmatprep.subr.bf16.mxu0 %v4694_v51  ;;  %4284 = vmatmul.mubr.bf16.gmra.mrb[8].mxu1 %v3800_v28  ;;  %v2926_v28 = vrot.slane %v2924_v21, 4  ;;  %v2975_v4 = vshll.u32 %v5742_v36, 16  ;;  %v2847_v55 = vld [vmem:[#allocation2 + $0x88] sm:$0xf]  ;;  %v2849_v57 = vld [vmem:[#allocation2 + $0x90] sm:$0xf] }
  0xd9   :  { %4300 = vmatpush3.bf16.msra.mxu1 %v4698_v30  ;;  %4287 = vmatprep.mubr.bf16.mxu1 %v3801_v18  ;;  %v5720_v18 = vrot.slane %v2888_v31, 4  ;;  %v2943_v30 = vrot.slane %v2941_v5, 5  ;;  %v2958_v21 = vor.u32 %v2957_v27, %v2954_v42  ;;  %v2971_v31 = vrot.slane %v2969_v44, 5  ;;  %v156_v27 = vld [vmem:[#allocation2 + $0x9c] sm:$0x1] }
  0xda   :  { %4301 = vmatprep.subr.bf16.mxu1 %v4701_v50  ;;  %v2930_v37 = vor.u32 %v2929_v0, %v2926_v28  ;;  %v2985_v5 = vrot.slane %v2983_v11, 5  ;;  %v5767_v46 = vrot.slane %v2947_v62, 5  ;;  %v2845_v28 = vld [vmem:[#allocation2 + $0x80] sm:$0xf]  ;;  %v5788_v22 = vrot.slane %v2975_v4, 5 }
  0xdb   :  { %4426 = vmatpush3.bf16.msra.mxu0 %v4694_v51  ;;  %v4708_v51 = vld [vmem:[#allocation2 + $0x8] ss:$8 sps:$4 sm:$0xff]   ;;  %v2944_v24 = vor.u32 %v2943_v30, %v2940_v54  ;;  %v2894_v13 = vsel %vm4943_vm9, %v5720_v18, %v5689_v12  ;;  %v4710_v12 = vld [vmem:[#allocation2 + $0x18] ss:$8 sps:$4 sm:$0xff]   ;;  %v5771_v35 = vrot.slane %v2958_v21, 4  ;;  %v3022_v42 = vshrl.u32 %v2845_v28, 16 }
  0xdc   :  { %4427 = vmatprep.subr.bf16.mxu0 %v4697_v7  ;;  %v3972_v0 = vcombine.low %v2894_v13, %v2908_v49  ;;  %v2986_v43 = vor.u32 %v2985_v5, %v2982_v45  ;;  %v3036_v3 = vshrl.u32 %v2847_v55, 16  ;;  %v2963_v44 = vrot.slane %v2961_v20, 5  ;;  %v5800_v11 = vld [vmem:[#allocation2 + $0x74] sm:$0x1]  ;;  %v4716_v21 = vld [vmem:[#allocation2 + $0x58] ss:$8 sps:$4 sm:$0xff]  }
  0xdd   :  { %4302 = vmatpush3.bf16.msra.mxu1 %v4701_v50  ;;  %v5749_v50 = vld [vmem:[%s6042_s3 + $0x200] sm:$0xff]   ;;  %v5803_v49 = vld [vmem:[#allocation2 + $0x7c] sm:$0x1]  ;;  %v5817_v4 = vld [vmem:[#allocation2 + $0x8c] sm:$0x1] }
  0xde   :  { %4412 = vmatmul.mubr.bf16.gmra.mrb[8].mxu0 %v4699_v59  ;;  %4303 = vmatprep.subr.bf16.mxu1 %v4704_v33  ;;  %v2841_v59 = vld [vmem:[#allocation2 + $0x70] sm:$0xf] }
  0xdf   :  { %4428 = vmatpush3.bf16.msra.mxu0 %v4697_v7  ;;  %4415 = vmatprep.mubr.bf16.mxu0 %v4702_v14  ;;  %v2968_v7 = vrot.slane %v2966_v25, 4  ;;  %v2843_v14 = vld [vmem:[#allocation2 + $0x78] sm:$0xf]  ;;  %v2994_v47 = vshrl.u32 %v2841_v59, 16  ;;  %v157_v25 = vsel %vm4833_vm4, 0, %v156_v27 }
  0xe0   :  { %4429 = vmatprep.subr.bf16.mxu0 %v4700_v26  ;;  %4288 = vmatmul.mubr.bf16.gmra.mrb[12].mxu1 %v3802_v8  ;;  %v5756_v8 = vrot.slane %v2930_v37, 4  ;;  %v3008_v54 = vshrl.u32 %v2843_v14, 16  ;;  %v3011_v30 = vshll.u32 %v2843_v14, 16  ;;  %v3039_v37 = vshll.u32 %v2847_v55, 16  ;;  %158 = vst [vmem:[#allocation2 + $0x9c] sm:$0x1] %v157_v25 }
  0xe1   :  { %4304 = vmatpush3.bf16.msra.mxu1 %v4704_v33  ;;  %4307 = vmatprep.mubr.bf16.mxu1 %v4708_v51  ;;  %v5765_v33 = vrot.slane %v2944_v24, 4  ;;  %v2972_v18 = vor.u32 %v2971_v31, %v2968_v7  ;;  %v3025_v51 = vshll.u32 %v2845_v28, 16  ;;  %v4714_v24 = vld [vmem:[#allocation2 + $0x38] ss:$8 sps:$4 sm:$0xff]   ;;  %v3050_v14 = vshrl.u32 %v2849_v57, 16 }
  0xe2   :  { %4305 = vmatprep.subr.bf16.mxu1 %v4707_v15  ;;  %v2936_v17 = vsel %vm4943_vm9, %v5756_v8, %v5758_v29  ;;  %v3013_v13 = vrot.slane %v3011_v30, 5  ;;  %v3024_v8 = vrot.slane %v3022_v42, 4  ;;  %v3041_v7 = vrot.slane %v3039_v37, 5  ;;  %v2851_v31 = vld [vmem:[#allocation2 + $0x98] sm:$0xf] }
  0xe3   :  { %4430 = vmatpush3.bf16.msra.mxu0 %v4700_v26  ;;  %v2997_v26 = vshll.u32 %v2841_v59, 16  ;;  %v2973_v62 = vrot.slane %v2972_v18, 4  ;;  %v3973_v19 = vcombine.low %v2922_v38, %v2936_v17  ;;  %v3027_v29 = vrot.slane %v3025_v51, 5  ;;  %v4718_v17 = vld [vmem:[#allocation2 + $0x68] ss:$8 sps:$4 sm:$0xff]  }
  0xe4   :  { %4431 = vmatprep.subr.bf16.mxu0 %v4703_v16  ;;  %v2950_v45 = vsel %vm4943_vm9, %v5765_v33, %v5767_v46  ;;  %v3003_v59 = vshll.u32 %v5800_v11, 16  ;;  %v3017_v46 = vshll.u32 %v5803_v49, 16  ;;  %v5843_v27 = vld [vmem:[#allocation2 + $0x94] sm:$0x1]  ;;  %v3052_v51 = vrot.slane %v3050_v14, 4 }
  0xe5   :  { %4306 = vmatpush3.bf16.msra.mxu1 %v4707_v15  ;;  %v5793_v15 = vld [vmem:[%s6042_s3 + $0x210] sm:$0xff]   ;;  %v2999_v2 = vrot.slane %v2997_v26, 5  ;;  %v2978_v20 = vsel %vm4943_vm9, %v2973_v62, %v5788_v22  ;;  %v3028_v26 = vor.u32 %v3027_v29, %v3024_v8  ;;  %v5861_v29 = vld [vmem:[%s6042_s3 + $0x228] sm:$0xff]  }
  0xe6   :  { %4416 = vmatmul.mubr.bf16.gmra.mrb[12].mxu0 %v4705_v1  ;;  %4483 = vmatprep.subr.bf16.mxu1 %v5749_v50  ;;  %v2987_v1 = vrot.slane %v2986_v43, 4  ;;  %v3005_v38 = vrot.slane %v3003_v59, 5  ;;  %v3019_v42 = vrot.slane %v3017_v46, 5 }
  0xe7   :  { %4432 = vmatpush3.bf16.msra.mxu0 %v4703_v16  ;;  %4435 = vmatprep.mubr.bf16.mxu0 %v3971_v52  ;;  %v2996_v16 = vrot.slane %v2994_v47, 4  ;;  %v3010_v52 = vrot.slane %v3008_v54, 4  ;;  %v3067_v47 = vshll.u32 %v2851_v31, 16  ;;  %v5840_v54 = vld [vmem:[%s6042_s3 + $0x220] sm:$0xff]  }
  0xe8   :  { %4433 = vmatprep.subr.bf16.mxu0 %v4706_v32  ;;  %4308 = vmatmul.mubr.bf16.vlgmr.msra.gmra.mrb[0].mxu1 %v4710_v12  ;;  %v3038_v12 = vrot.slane %v3036_v3, 4  ;;  %v2992_v28 = vsel %vm4943_vm9, %v2987_v1, %v5798_v39  ;;  %v3295_v39 = vld [vmem:[#allocation2 + $0x60] sm:$0xe] }
  0xe9   :  { %4491 = vmatpush3.bf16.msra.mxu1 %v5749_v50  ;;  %4311 = vmatprep.mubr.bf16.mxu1 %v4712_v40  ;;  %v3000_v5 = vor.u32 %v2999_v2, %v2996_v16  ;;  %v5815_v40 = vld [vmem:[#allocation2 + $0x84] sm:$0x1]  ;;  %v3014_v33 = vor.u32 %v3013_v13, %v3010_v52  ;;  %v3975_v37 = vcombine.low %v2978_v20, %v2992_v28  ;;  %v3296_v16 = vld [vmem:[#allocation2 + $0x68] sm:$0xe]  ;;  %v3029_v2 = vrot.slane %v3028_v26, 4 }
  0xea   :  { %4484 = vmatprep.subr.bf16.mxu1 %v5778_v60  ;;  %v3031_v55 = vshll.u32 %v5815_v40, 16  ;;  %v3042_v18 = vor.u32 %v3041_v7, %v3038_v12  ;;  %v5847_v52 = vld [vmem:[#allocation2 + $0x9c] sm:$0x1]  ;;  %v3287_v7 = vld [vmem:[#allocation2 + $0x10] sm:$0xe]  ;;  %v3341_v20 = vrot.slane %v5657_v34, 5 }
  0xeb   :  { %4434 = vmatpush3.bf16.msra.mxu0 %v4706_v32  ;;  %v2964_v32 = vsel %vm4943_vm9, %v5771_v35, %v2963_v44  ;;  %v3053_v35 = vshll.u32 %v2849_v57, 16  ;;  %v3001_v30 = vrot.slane %v3000_v5, 4  ;;  %v3015_v22 = vrot.slane %v3014_v33, 4  ;;  %v3297_v26 = vld [vmem:[#allocation2 + $0x70] sm:$0xe] }
  0xec   :  { %4451 = vmatprep.subr.bf16.mxu0 %v5749_v50  ;;  %v3974_v43 = vcombine.low %v2950_v45, %v2964_v32  ;;  %v3069_v44 = vrot.slane %v3067_v47, 5  ;;  %v3043_v62 = vrot.slane %v3042_v18, 4  ;;  %v3373_v57 = vrot.slane %v5744_v23, 5  ;;  %v3288_v32 = vld [vmem:[#allocation2 + $0x18] sm:$0xe] }
  0xed   :  { %4492 = vmatpush3.bf16.msra.mxu1 %v5778_v60  ;;  %v3055_v3 = vrot.slane %v3053_v35, 5  ;;  %v3006_v13 = vsel %vm4943_vm9, %v3001_v30, %v3005_v38  ;;  %v3020_v8 = vsel %vm4943_vm9, %v3015_v22, %v3019_v42  ;;  %v3996_v45 = vrot.slane %v3296_v16, 9  ;;  %v3299_v30 = vld [vmem:[#allocation2 + $0x80] sm:$0xe]  ;;  %v3300_v38 = vld [vmem:[#allocation2 + $0x88] sm:$0xe] }
  0xee   :  { %4436 = vmatmul.mubr.bf16.vlgmr.msra.gmra.mrb[0].mxu0 %v3972_v0  ;;  %4485 = vmatprep.subr.bf16.mxu1 %v5793_v15  ;;  %v3064_v0 = vshrl.u32 %v2851_v31, 16  ;;  %v3995_v31 = vrot.slane %v3295_v39, 9  ;;  %v3073_v23 = vshll.u32 %v5847_v52, 16  ;;  %v3337_v33 = vrot.slane %v5652_v61, 5  ;;  %v4722_v22 = vld [vmem:[#allocation2 + $0x88] ss:$8 sps:$4 sm:$0xff]  }
  0xef   :  { %4452 = vmatpush3.bf16.msra.mxu0 %v5749_v50  ;;  %4439 = vmatprep.mubr.bf16.mxu0 %v3973_v19  ;;  %v3045_v50 = vshll.u32 %v5817_v4, 16  ;;  %v4720_v19 = vld [vmem:[#allocation2 + $0x78] ss:$8 sps:$4 sm:$0xff]   ;;  %v3056_v12 = vor.u32 %v3055_v3, %v3052_v51  ;;  %v3976_v46 = vcombine.low %v3006_v13, %v3020_v8  ;;  %v3987_v35 = vrot.slane %v3287_v7, 9 }
  0xf0   :  { %4453 = vmatprep.subr.bf16.mxu0 %v5778_v60  ;;  %4312 = vmatmul.mubr.bf16.gmra.mrb[4].mxu1 %v4714_v24  ;;  %v3066_v25 = vrot.slane %v3064_v0, 4  ;;  %v3033_v24 = vrot.slane %v3031_v55, 5  ;;  %v3988_v0 = vrot.slane %v3288_v32, 9  ;;  %v3374_v47 = vsel %vm5376_vm12, %v3996_v45, %v3373_v57  ;;  %v3298_v55 = vld [vmem:[#allocation2 + $0x78] sm:$0xe] }
  0xf1   :  { %4493 = vmatpush3.bf16.msra.mxu1 %v5793_v15  ;;  %4315 = vmatprep.mubr.bf16.mxu1 %v4716_v21  ;;  %v3047_v1 = vrot.slane %v3045_v50, 5  ;;  %v3369_v21 = vrot.slane %v5742_v36, 5  ;;  %v3057_v28 = vrot.slane %v3056_v12, 4  ;;  %v3377_v34 = vrot.slane %v5800_v11, 5  ;;  %v3289_v11 = vld [vmem:[#allocation2 + $0x20] sm:$0xe] }
  0xf2   :  { %4486 = vmatprep.subr.bf16.mxu1 %v5823_v63  ;;  %v3070_v36 = vor.u32 %v3069_v44, %v3066_v25  ;;  %v3034_v5 = vsel %vm4943_vm9, %v3029_v2, %v3033_v24  ;;  %v3345_v42 = vrot.slane %v5659_v56, 5  ;;  %v3338_v51 = vsel %vm5376_vm12, %v3987_v35, %v3337_v33  ;;  %v3302_v12 = vld [vmem:[#allocation2 + $0x98] sm:$0xe] }
  0xf3   :  { %4454 = vmatpush3.bf16.msra.mxu0 %v5778_v60  ;;  %v3059_v60 = vshll.u32 %v5843_v27, 16  ;;  %v3048_v59 = vsel %vm4943_vm9, %v3043_v62, %v3047_v1  ;;  %v3370_v61 = vsel %vm5376_vm12, %v3995_v31, %v3369_v21  ;;  %v3998_v25 = vrot.slane %v3298_v55, 9  ;;  %v3291_v1 = vld [vmem:[#allocation2 + $0x30] sm:$0xe] }
  0xf4   :  { %4455 = vmatprep.subr.bf16.mxu0 %v5793_v15  ;;  %v3977_v18 = vcombine.low %v3034_v5, %v3048_v59  ;;  %v3071_v50 = vrot.slane %v3070_v36, 4  ;;  %v4023_v3 = vcombine.low %v3370_v61, %v3374_v47  ;;  %v3385_v56 = vrot.slane %v5815_v40, 5  ;;  %v3290_v40 = vld [vmem:[#allocation2 + $0x28] sm:$0xe] }
  0xf5   :  { %4494 = vmatpush3.bf16.msra.mxu1 %v5823_v63  ;;  %v3061_v14 = vrot.slane %v3059_v60, 5  ;;  %v4000_v44 = vrot.slane %v3300_v38, 9  ;;  %v3389_v39 = vrot.slane %v5817_v4, 5  ;;  %v3342_v24 = vsel %vm5376_vm12, %v3988_v0, %v3341_v20  ;;  %v3292_v4 = vld [vmem:[#allocation2 + $0x38] sm:$0xe] }
  0xf6   :  { %4440 = vmatmul.mubr.bf16.gmra.mrb[4].mxu0 %v3974_v43  ;;  %4487 = vmatprep.subr.bf16.mxu1 %v5840_v54  ;;  %v3075_v43 = vrot.slane %v3073_v23, 5  ;;  %v3349_v62 = vrot.slane %v5668_v10, 5  ;;  %v3301_v60 = vld [vmem:[#allocation2 + $0x90] sm:$0xe]  ;;  %v4019_v21 = vcombine.low %v3338_v51, %v3342_v24  ;;  %v3990_v7 = vrot.slane %v3290_v40, 9 }
  0xf7   :  { %4456 = vmatpush3.bf16.msra.mxu0 %v5793_v15  ;;  %4443 = vmatprep.mubr.bf16.mxu0 %v3975_v37  ;;  %v5875_v15 = vld [vmem:[%s6042_s3 + $0x230] sm:$0xff]   ;;  %v3997_v37 = vrot.slane %v3297_v26, 9  ;;  %v3062_v16 = vsel %vm4943_vm9, %v3057_v28, %v3061_v14  ;;  %v3390_v8 = vsel %vm5376_vm12, %v4000_v44, %v3389_v39  ;;  %v3991_v31 = vrot.slane %v3291_v1, 9 }
  0xf8   :  { %4457 = vmatprep.subr.bf16.mxu0 %v5823_v63  ;;  %4316 = vmatmul.mubr.bf16.gmra.mrb[8].mxu1 %v4718_v17  ;;  %v3381_v17 = vrot.slane %v5803_v49, 5  ;;  %v3999_v49 = vrot.slane %v3299_v30, 9  ;;  %v3076_v2 = vsel %vm4943_vm9, %v3071_v50, %v3075_v43  ;;  %v3992_v45 = vrot.slane %v3292_v4, 9 }
  0xf9   :  { %4495 = vmatpush3.bf16.msra.mxu1 %v5840_v54  ;;  %4319 = vmatprep.mubr.bf16.mxu1 %v4720_v19  ;;  %v3378_v13 = vsel %vm5376_vm12, %v3997_v37, %v3377_v34  ;;  %v3353_v19 = vrot.slane %v5702_v48, 5  ;;  %v3978_v10 = vcombine.low %v3062_v16, %v3076_v2  ;;  %v3357_v36 = vrot.slane %v5704_v58, 5 }
  0xfa   :  { %4488 = vmatprep.subr.bf16.mxu1 %v5861_v29  ;;  %v3382_v53 = vsel %vm5376_vm12, %v3998_v25, %v3381_v17  ;;  %v3386_v57 = vsel %vm5376_vm12, %v3999_v49, %v3385_v56  ;;  %v4001_v23 = vrot.slane %v3301_v60, 9  ;;  %v3393_v5 = vrot.slane %v5843_v27, 5  ;;  %v3293_v27 = vld [vmem:[#allocation2 + $0x40] sm:$0xe] }
  0xfb   :  { %4458 = vmatpush3.bf16.msra.mxu0 %v5823_v63  ;;  %v5892_v63 = vld [vmem:[%s6042_s3 + $0x238] sm:$0xff]   ;;  %v4024_v48 = vcombine.low %v3378_v13, %v3382_v53  ;;  %v4025_v32 = vcombine.low %v3386_v57, %v3390_v8  ;;  %v4002_v59 = vrot.slane %v3302_v12, 9  ;;  %v3397_v33 = vrot.slane %v5847_v52, 5  ;;  %v3294_v52 = vld [vmem:[#allocation2 + $0x48] sm:$0xe] }
  0xfc   :  { %4459 = vmatprep.subr.bf16.mxu0 %v5840_v54  ;;  %v3350_v58 = vsel %vm5376_vm12, %v3990_v7, %v3349_v62  ;;  %v3358_v14 = vsel %vm5376_vm12, %v3992_v45, %v3357_v36  ;;  %v3394_v35 = vsel %vm5376_vm12, %v4001_v23, %v3393_v5  ;;  %v3993_v0 = vrot.slane %v3293_v27, 9 }
  0xfd   :  { %4496 = vmatpush3.bf16.msra.mxu1 %v5861_v29  ;;  %v3361_v61 = vrot.slane %v5724_v9, 5  ;;  %v3994_v47 = vrot.slane %v3294_v52, 9  ;;  %v3365_v26 = vrot.slane %v5760_v41, 5 }
  0xfe   :  { %4444 = vmatmul.mubr.bf16.gmra.mrb[8].mxu0 %v3976_v46  ;;  %4489 = vmatprep.subr.bf16.mxu1 %v5875_v15  ;;  %v3354_v46 = vsel %vm5376_vm12, %v3991_v31, %v3353_v19 }
  0xff   :  { %4460 = vmatpush3.bf16.msra.mxu0 %v5840_v54  ;;  %4447 = vmatprep.mubr.bf16.mxu0 %v3977_v18  ;;  %v3989_v54 = vrot.slane %v3289_v11, 9  ;;  %v4021_v28 = vcombine.low %v3354_v46, %v3358_v14  ;;  %v3362_v18 = vsel %vm5376_vm12, %v3993_v0, %v3361_v61  ;;  %v3366_v50 = vsel %vm5376_vm12, %v3994_v47, %v3365_v26 }
 0x100   :  { %4461 = vmatprep.subr.bf16.mxu0 %v5861_v29  ;;  %4320 = vmatmul.mubr.bf16.gmra.mrb[12].mxu1 %v4722_v22  ;;  %v4022_v43 = vcombine.low %v3362_v18, %v3366_v50 }
 0x101   :  { %4497 = vmatpush3.bf16.msra.mxu1 %v5875_v15  ;;  %4475 = vmatprep.mubr.bf16.mxu1 %v4023_v3 }
 0x102   :  { %4490 = vmatprep.subr.bf16.mxu1 %v5892_v63 }
 0x103   :  { %4462 = vmatpush3.bf16.msra.mxu0 %v5861_v29  ;;  %v3346_v29 = vsel %vm5376_vm12, %v3989_v54, %v3345_v42 }
 0x104   :  { %4463 = vmatprep.subr.bf16.mxu0 %v5875_v15  ;;  %v4020_v20 = vcombine.low %v3346_v29, %v3350_v58 }
 0x105   :  { %4498 = vmatpush3.bf16.msra.mxu1 %v5892_v63 }
 0x106   :  { %4448 = vmatmul.mubr.bf16.gmra.mrb[12].mxu0 %v3978_v10 }
 0x107   :  { %4464 = vmatpush3.bf16.msra.mxu0 %v5875_v15  ;;  %4467 = vmatprep.mubr.bf16.mxu0 %v4019_v21  ;;  %v3398_v15 = vsel %vm5376_vm12, %v4002_v59, %v3397_v33 }
 0x108   :  { %4465 = vmatprep.subr.bf16.mxu0 %v5892_v63  ;;  %4476 = vmatmul.mubr.bf16.vlgmr.msra.gmra.mrb[16].mxu1 %v4024_v48  ;;  %v4026_v55 = vcombine.low %v3394_v35, %v3398_v15 }
 0x109   :  { %4479 = vmatprep.mubr.bf16.mxu1 %v4025_v32 }
 0x10b   :  { %4466 = vmatpush3.bf16.msra.mxu0 %v5892_v63 }
 0x10e   :  { %4468 = vmatmul.mubr.bf16.vlgmr.msra.gmra.mrb[0].mxu0 %v4020_v20 }
 0x10f   :  { %4471 = vmatprep.mubr.bf16.mxu0 %v4021_v28 }
 0x110   :  { %4480 = vmatmul.mubr.bf16.gmra.mrb[20].mxu1 %v4026_v55 }
 0x116   :  { %4472 = vmatmul.mubr.bf16.gmra.mrb[4].mxu0 %v4022_v43 }
 0x1bb   :  { %v4309_v30 = vpop.f32.mrb[0].mxu1 }
 0x1bc   :  { %v1711_v38 = vpop.f32.mrb[1].mxu1 }
 0x1bd   :  { %v4310_v34 = vpop.f32.mrb[2].mxu1 }
 0x1be   :  { %v1714_v17 = vpop.f32.mrb[3].mxu1 }
 0x1c3   :  { %v5946_v9 = vpop.f32.mrb[4].mxu1 }
 0x1c4   :  { %v5948_v22 = vpop.f32.mrb[5].mxu1 }
 0x1c5   :  { %v5950_v41 = vpop.f32.mrb[6].mxu1 }
 0x1c6   :  { %v5952_v42 = vpop.f32.mrb[7].mxu1 }
 0x1cb   :  { %v4317_v63 = vpop.f32.mrb[8].mxu1 }
 0x1cc   :  { %v1743_v51 = vpop.f32.mrb[9].mxu1 }
 0x1cd   :  { %v4318_v3 = vpop.f32.mrb[10].mxu1 }
 0x1ce   :  { %v1746_v6 = vpop.f32.mrb[11].mxu1 }
 0x1d1   :  { %v4445_v37 = vpop.f32.mrb[8].mxu0 }
 0x1d2   :  { %v4507_v25 = vadd.f32 %v4445_v37, %v4317_v63  ;;  %v3240_v11 = vpop.f32.mrb[9].mxu0 }
 0x1d3   :  { %v4509_v49 = vadd.f32 %v3240_v11, %v1743_v51  ;;  %v4446_v56 = vpop.f32.mrb[10].mxu0  ;;  %v4321_v44 = vpop.f32.mrb[12].mxu1 }
 0x1d4   :  { %v4511_v39 = vadd.f32 %v4446_v56, %v4318_v3  ;;  %v3243_v16 = vpop.f32.mrb[11].mxu0  ;;  %v1759_v2 = vpop.f32.mrb[13].mxu1 }
 0x1d5   :  { %v4513_v24 = vadd.f32 %v3243_v16, %v1746_v6  ;;  %v4322_v62 = vpop.f32.mrb[14].mxu1 }
 0x1d6   :  { %v1762_v40 = vpop.f32.mrb[15].mxu1 }
 0x1d9   :  { %v4449_v1 = vpop.f32.mrb[12].mxu0 }
 0x1da   :  { %v4515_v4 = vadd.f32 %v4449_v1, %v4321_v44  ;;  %v3256_v54 = vpop.f32.mrb[13].mxu0 }
 0x1db   :  { %v4517_v13 = vadd.f32 %v3256_v54, %v1759_v2  ;;  %v4450_v53 = vpop.f32.mrb[14].mxu0  ;;  %v4477_v19 = vpop.f32.mrb[16].mxu1 }
 0x1dc   :  { %v4519_v60 = vadd.f32 %v4450_v53, %v4322_v62  ;;  %v3259_v10 = vpop.f32.mrb[15].mxu0  ;;  %v5954_v21 = vadd.f32 %v4507_v25, %v4477_v19  ;;  %v3562_v57 = vpop.f32.mrb[17].mxu1 }
 0x1dd   :  { %v4521_v8 = vadd.f32 %v3259_v10, %v1762_v40  ;;  %v5956_v12 = vadd.f32 %v4509_v49, %v3562_v57  ;;  %v4478_v7 = vpop.f32.mrb[18].mxu1 }
 0x1de   :  { %3619 = vst [vmem:[%s6046_s4 + $0x50] sm:$0xff] %v5954_v21  ;;  %v5962_v31 = vadd.f32 %v4511_v39, %v4478_v7  ;;  %v3565_v45 = vpop.f32.mrb[19].mxu1 }
 0x1df   :  { %3617 = vst [vmem:[%s6046_s4 + $0x40] sm:$0xff] %v5956_v12  ;;  %v5968_v36 = vadd.f32 %v4513_v24, %v3565_v45 }
 0x1e0   :  { %3620 = vst [vmem:[%s6046_s4 + $0x58] sm:$0xff] %v5962_v31 }
 0x1e1   :  { %v4469_v48 = vpop.f32.mrb[0].mxu0  ;;  %3618 = vst [vmem:[%s6046_s4 + $0x48] sm:$0xff] %v5968_v36  ;;  %v3656_v1 = vmul.f32 %v5968_v36, %v5968_v36 }
 0x1e2   :  { %v4499_v23 = vadd.f32 %v4469_v48, %v4309_v30  ;;  %v3530_v32 = vpop.f32.mrb[1].mxu0 }
 0x1e3   :  { %v4500_v5 = vadd.f32 %v3530_v32, %v1711_v38  ;;  %v4470_v59 = vpop.f32.mrb[2].mxu0  ;;  %v4481_v33 = vpop.f32.mrb[20].mxu1 }
 0x1e4   :  { %3611 = vst [vmem:[%s6046_s4 + $0x10] sm:$0xff] %v4499_v23  ;;  %v4501_v29 = vadd.f32 %v4470_v59, %v4310_v34  ;;  %v3533_v58 = vpop.f32.mrb[3].mxu0  ;;  %v5981_v46 = vadd.f32 %v4515_v4, %v4481_v33  ;;  %v3578_v14 = vpop.f32.mrb[21].mxu1  ;;  %v3649_v26 = vmul.f32 %v4499_v23, %v4499_v23 }
 0x1e5   :  { %3609 = vst [vmem:[%s6046_s4] sm:$0xff] %v4500_v5  ;;  %v4502_v27 = vadd.f32 %v3533_v58, %v1714_v17  ;;  %v4518_v52 = vadd.f32 %v4517_v13, %v3578_v14  ;;  %v4482_v35 = vpop.f32.mrb[22].mxu1  ;;  %v3647_v28 = vmul.f32 %v4500_v5, %v4500_v5  ;;  %v3657_v13 = vmul.f32 %v5954_v21, %v5954_v21 }
 0x1e6   :  { %3612 = vst [vmem:[%s6046_s4 + $0x18] sm:$0xff] %v4501_v29  ;;  %3623 = vst [vmem:[%s6046_s4 + $0x70] sm:$0xff] %v5981_v46  ;;  %v4520_v15 = vadd.f32 %v4519_v60, %v4482_v35  ;;  %v3581_v20 = vpop.f32.mrb[23].mxu1  ;;  %v3650_v38 = vmul.f32 %v4501_v29, %v4501_v29  ;;  %v3658_v60 = vmul.f32 %v5962_v31, %v5962_v31 }
 0x1e7   :  { %3610 = vst [vmem:[%s6046_s4 + $0x8] sm:$0xff] %v4502_v27  ;;  %v3625_v0 = vadd.f32 %v4502_v27, %v4500_v5  ;;  %v3648_v61 = vmul.f32 %v4502_v27, %v4502_v27  ;;  %3621 = vst [vmem:[%s6046_s4 + $0x60] sm:$0xff] %v4518_v52  ;;  %v4522_v47 = vadd.f32 %v4521_v8, %v3581_v20 }
 0x1e8   :  { %3624 = vst [vmem:[%s6046_s4 + $0x78] sm:$0xff] %v4520_v15  ;;  %v3659_v8 = vmul.f32 %v4518_v52, %v4518_v52 }
 0x1e9   :  { %v3626_v55 = vadd.f32 %v4499_v23, %v3625_v0  ;;  %v3663_v18 = vadd.f32 %v3648_v61, %v3647_v28  ;;  %v4473_v50 = vpop.f32.mrb[4].mxu0  ;;  %3622 = vst [vmem:[%s6046_s4 + $0x68] sm:$0xff] %v4522_v47  ;;  %v3660_v48 = vmul.f32 %v4522_v47, %v4522_v47 }
 0x1ea   :  { %v4503_v43 = vadd.f32 %v4473_v50, %v5946_v9  ;;  %v3546_v30 = vpop.f32.mrb[5].mxu0 }
 0x1eb   :  { %v3664_v34 = vadd.f32 %v3663_v18, %v3649_v26  ;;  %v4504_v17 = vadd.f32 %v3546_v30, %v5948_v22  ;;  %v3627_v63 = vadd.f32 %v4501_v29, %v3626_v55  ;;  %v4474_v51 = vpop.f32.mrb[6].mxu0 }
 0x1ec   :  { %3615 = vst [vmem:[%s6046_s4 + $0x30] sm:$0xff] %v4503_v43  ;;  %v4505_v3 = vadd.f32 %v4474_v51, %v5950_v41  ;;  %v3549_v6 = vpop.f32.mrb[7].mxu0  ;;  %v3653_v56 = vmul.f32 %v4503_v43, %v4503_v43 }
 0x1ed   :  { %3613 = vst [vmem:[%s6046_s4 + $0x20] sm:$0xff] %v4504_v17  ;;  %v3628_v37 = vadd.f32 %v4504_v17, %v3627_v63  ;;  %v3651_v9 = vmul.f32 %v4504_v17, %v4504_v17  ;;  %v3665_v25 = vadd.f32 %v3664_v34, %v3650_v38  ;;  %v4506_v11 = vadd.f32 %v3549_v6, %v5952_v42 }
 0x1ee   :  { %3616 = vst [vmem:[%s6046_s4 + $0x38] sm:$0xff] %v4505_v3  ;;  %v3654_v16 = vmul.f32 %v4505_v3, %v4505_v3  ;;  %v3655_v42 = vmul.f32 %v5956_v12, %v5956_v12 }
 0x1ef   :  { %v3666_v22 = vadd.f32 %v3665_v25, %v3651_v9  ;;  %3614 = vst [vmem:[%s6046_s4 + $0x28] sm:$0xff] %v4506_v11  ;;  %v3629_v41 = vadd.f32 %v4506_v11, %v3628_v37  ;;  %v3652_v49 = vmul.f32 %v4506_v11, %v4506_v11 }
 0x1f1   :  { %v3630_v44 = vadd.f32 %v4503_v43, %v3629_v41  ;;  %v3667_v39 = vadd.f32 %v3666_v22, %v3652_v49 }
 0x1f3   :  { %v3631_v2 = vadd.f32 %v4505_v3, %v3630_v44  ;;  %v3668_v24 = vadd.f32 %v3667_v39, %v3653_v56 }
 0x1f5   :  { %v3632_v62 = vadd.f32 %v5956_v12, %v3631_v2  ;;  %v3669_v40 = vadd.f32 %v3668_v24, %v3654_v16 }
 0x1f7   :  { %v3670_v4 = vadd.f32 %v3669_v40, %v3655_v42  ;;  %v3633_v54 = vadd.f32 %v5968_v36, %v3632_v62  ;;  %v3661_v36 = vmul.f32 %v5981_v46, %v5981_v46 }
 0x1f9   :  { %v3634_v53 = vadd.f32 %v5954_v21, %v3633_v54  ;;  %v3671_v19 = vadd.f32 %v3670_v4, %v3656_v1  ;;  %v3662_v21 = vmul.f32 %v4520_v15, %v4520_v15 }
 0x1fb   :  { %v3635_v10 = vadd.f32 %v5962_v31, %v3634_v53  ;;  %v3672_v57 = vadd.f32 %v3671_v19, %v3657_v13 }
 0x1fd   :  { %v3636_v12 = vadd.f32 %v4518_v52, %v3635_v10  ;;  %v3673_v7 = vadd.f32 %v3672_v57, %v3658_v60 }
 0x1ff   :  { %v3637_v45 = vadd.f32 %v4522_v47, %v3636_v12  ;;  %v3674_v23 = vadd.f32 %v3673_v7, %v3659_v8 }
 0x201   :  { %v3638_v32 = vadd.f32 %v5981_v46, %v3637_v45  ;;  %v3675_v5 = vadd.f32 %v3674_v23, %v3660_v48 }
 0x203   :  { %v3639_v59 = vadd.f32 %v4520_v15, %v3638_v32  ;;  %v3676_v33 = vadd.f32 %v3675_v5, %v3661_v36 }
 0x205   :  { %v3640_v29 = vrot.slane %v3639_v59, 4  ;;  %v3677_v58 = vadd.f32 %v3676_v33, %v3662_v21 }
 0x207   :  { %v3641_v14 = vadd.f32 %v3640_v29, %v3639_v59  ;;  %v3678_v31 = vrot.slane %v3677_v58, 4 }
 0x209   :  { %v3642_v27 = vrot.slane %v3641_v14, 2  ;;  %v3679_v35 = vadd.f32 %v3678_v31, %v3677_v58 }
 0x20b   :  { %v3643_v52 = vadd.f32 %v3642_v27, %v3641_v14  ;;  %v3680_v20 = vrot.slane %v3679_v35, 2 }
 0x20d   :  { %v3644_v28 = vrot.slane %v3643_v52, 1  ;;  %v3681_v0 = vadd.f32 %v3680_v20, %v3679_v35 }
 0x20f   :  { %v3645_v61 = vadd.f32 %v3644_v28, %v3643_v52  ;;  %v3682_v47 = vrot.slane %v3681_v0, 1 }
 0x211   :  { %3646 = vst [vmem:[%s6047_s5] sm:$0x1] %v3645_v61  ;;  %v3683_v46 = vadd.f32 %v3682_v47, %v3681_v0 }
 0x213   :  { %3684 = vst [vmem:[%s6048_s6] sm:$0x1] %v3683_v46 }

// kernel: _lambda_.9
= control target key start
LH: loop header
LB: loop body
LE: loop exit
PB: predicated region body
PF: predicated region fallthrough
CT: control target
= control target key end

     0   :  { %v4706_v1 = vmov 0   ;;  %vm35_vm0 = vsmask.f32 256  ;;  %v40_v10 = vld [vmem:[#allocation2 + $0x8] sm:$0x1]  ;;  %vm34_vm1 = vcmask 1040384   ;;  %s6123_s3 = inlined_call_operand.vmem [shape: bf16[3,3,128,128], index: 3, kind: input, shape index: {}]   ;;  %s6124_s0 = inlined_call_operand.vmem [shape: f32[2,8,8,128], index: 0, kind: input, shape index: {}]   ;;  %s6125_s1 = inlined_call_operand.vmem [shape: f32[1,128], index: 1, kind: input, shape index: {}]   ;;  %s6126_s2 = inlined_call_operand.vmem [shape: f32[1,128], index: 2, kind: input, shape index: {}]   ;;  %s6127_s4 = inlined_call_operand.vmem [shape: f32[2,8,8,128], index: 4, kind: input, shape index: {}]   ;;  %s6128_s5 = inlined_call_operand.vmem [shape: f32[2,8,8,128], index: 5, kind: output, shape index: {}]  }
   0x1   :  { %v4592_v0 = vld [vmem:[%s6123_s3 + $0x40] sm:$0xff]   ;;  %25 = vst [vmem:[#allocation2] sm:$0xf] %v4706_v1  ;;  %26 = vst [vmem:[#allocation2 + $0x4] sm:$0x1] %v4706_v1  ;;  %v4594_v3 = vld [vmem:[%s6123_s3 + $0x48] sm:$0xff]  }
   0x2   :  { %27 = vst [vmem:[#allocation2 + $0x50] sm:$0xf] %v4706_v1  ;;  %28 = vst [vmem:[#allocation2 + $0x54] sm:$0x1] %v4706_v1  ;;  %v4593_v2 = vld [vmem:[%s6123_s3 + $0x100] sm:$0xff]   ;;  %4159 = vmatprep.subr.bf16.mxu1 %v4592_v0  ;;  %v4595_v4 = vld [vmem:[%s6123_s3 + $0x108] sm:$0xff]  }
   0x3   :  { %30 = vst [vmem:[#allocation2 + $0x48] sm:$0xf] %v4706_v1  ;;  %31 = vst [vmem:[#allocation2 + $0x4c] sm:$0x1] %v4706_v1  ;;  %4287 = vmatprep.subr.bf16.mxu0 %v4593_v2  ;;  %4160 = vmatpush3.bf16.msra.mxu1 %v4592_v0  ;;  %v4596_v5 = vld [vmem:[%s6123_s3 + $0x50] sm:$0xff]   ;;  %v4598_v7 = vld [vmem:[%s6123_s3 + $0x58] sm:$0xff]  }
   0x4   :  { %32 = vst [vmem:[#allocation2 + $0x98] sm:$0xf] %v4706_v1  ;;  %33 = vst [vmem:[#allocation2 + $0x9c] sm:$0x1] %v4706_v1  ;;  %4288 = vmatpush3.bf16.msra.mxu0 %v4593_v2  ;;  %4161 = vmatprep.subr.bf16.mxu1 %v4594_v3  ;;  %v4597_v6 = vld [vmem:[%s6123_s3 + $0x110] sm:$0xff]   ;;  %v4599_v8 = vld [vmem:[%s6123_s3 + $0x118] sm:$0xff]  }
   0x5   :  { %4289 = vmatprep.subr.bf16.mxu0 %v4595_v4  ;;  %v4600_v9 = vld [vmem:[%s6123_s3 + $0x60] sm:$0xff]   ;;  %v4602_v12 = vld [vmem:[%s6123_s3 + $0x68] sm:$0xff]   ;;  %vm4775_vm2 = vmand %vm34_vm1, %vm35_vm0  ;;  %vm97_vm3 = vsmask.f32 7938  ;;  %v6134_v19 = vmov 0  ;;  %vm462_vm5 = vcmask 1043456  }
   0x6   :  { %v4601_v11 = vld [vmem:[%s6123_s3 + $0x120] sm:$0xff]   ;;  %v4603_v13 = vld [vmem:[%s6123_s3 + $0x128] sm:$0xff]   ;;  %v41_v18 = vsel %vm4775_vm2, 0, %v40_v10  ;;  %vm4785_vm4 = vmand %vm34_vm1, %vm97_vm3  ;;  %vm608_vm6 = vsmask.f32 3328  ;;  %vm1270_vm10 = vcmask 1042432  }
   0x7   :  { %4162 = vmatpush3.bf16.msra.mxu1 %v4594_v3  ;;  %v6135_v19 = vsel %vm4785_vm4, 4294967295, %v6134_v19  ;;  %v102_v20 = vld [vmem:[#allocation2 + $0xc] sm:$0x1]  ;;  %v159_v21 = vld [vmem:[%s6124_s0] sm:$0xff]  ;;  %42 = vst [vmem:[#allocation2 + $0x8] sm:$0x1] %v41_v18  ;;  %vm4866_vm8 = vmand %vm462_vm5, %vm97_vm3 }
   0x8   :  { %4290 = vmatpush3.bf16.msra.mxu0 %v4595_v4  ;;  %4163 = vmatprep.subr.bf16.mxu1 %v4596_v5  ;;  %v37_v15 = vld [vmem:[#allocation2] sm:$0x1]  ;;  %v99_v16 = vld [vmem:[#allocation2 + $0x4] sm:$0x1]  ;;  %6136 = vst [vmem:[#allocation3_spill] sm:$0xff] %v6135_v19  ;;  %v103_v23 = vsel %vm4785_vm4, 0, %v102_v20 }
   0x9   :  { %4291 = vmatprep.subr.bf16.mxu0 %v4597_v6  ;;  %v38_v17 = vsel %vm4775_vm2, 0, %v37_v15  ;;  %v100_v22 = vsel %vm4785_vm4, 0, %v99_v16  ;;  %v4799_v24 = vld [vmem:[%s6125_s1] ss:$0 sm:$0xff]  ;;  %104 = vst [vmem:[#allocation2 + $0xc] sm:$0x1] %v103_v23 }
   0xa   :  { %39 = vst [vmem:[#allocation2] sm:$0x1] %v38_v17  ;;  %v4804_v25 = vld [vmem:[%s6126_s2] ss:$0 sm:$0xff]  ;;  %101 = vst [vmem:[#allocation2 + $0x4] sm:$0x1] %v100_v22  ;;  %v183_v26 = vmul.f32 %v4799_v24, %v159_v21 }
   0xb   :  { %4164 = vmatpush3.bf16.msra.mxu1 %v4596_v5  ;;  %v4604_v27 = vld [vmem:[%s6123_s3 + $0x70] sm:$0xff]   ;;  %v160_v32 = vld [vmem:[%s6124_s0 + $0x8] sm:$0xff]  ;;  %v4606_v36 = vld [vmem:[%s6123_s3 + $0x78] sm:$0xff]   ;;  %vm609_vm7 = vsmask.f32 7440  ;;  %vm1271_vm11 = vcmask 1046532  }
   0xc   :  { %4292 = vmatpush3.bf16.msra.mxu0 %v4597_v6  ;;  %4165 = vmatprep.subr.bf16.mxu1 %v4598_v7  ;;  %v4605_v28 = vld [vmem:[%s6123_s3 + $0x130] sm:$0xff]   ;;  %v205_v29 = vadd.f32 %v4804_v25, %v183_v26  ;;  %v184_v35 = vmul.f32 %v4799_v24, %v160_v32  ;;  %v46_v38 = vld [vmem:[#allocation2 + $0x18] sm:$0x1]  ;;  %v108_v39 = vld [vmem:[#allocation2 + $0x1c] sm:$0x1] }
   0xd   :  { %4293 = vmatprep.subr.bf16.mxu0 %v4599_v8  ;;  %v43_v30 = vld [vmem:[#allocation2 + $0x10] sm:$0x1]  ;;  %v105_v31 = vld [vmem:[#allocation2 + $0x14] sm:$0x1]  ;;  %v47_v41 = vsel %vm4775_vm2, 0, %v46_v38  ;;  %v109_v42 = vsel %vm4785_vm4, 0, %v108_v39  ;;  %vm4900_vm9 = vmor %vm608_vm6, %vm609_vm7 }
   0xe   :  { %v44_v33 = vsel %vm4775_vm2, 0, %v43_v30  ;;  %v106_v34 = vsel %vm4785_vm4, 0, %v105_v31  ;;  %v221_v37 = vmax.f32 %v205_v29, 0.0  ;;  %v206_v40 = vadd.f32 %v4804_v25, %v184_v35  ;;  %v161_v43 = vld [vmem:[%s6124_s0 + $0x10] sm:$0xff]  ;;  %v49_v44 = vld [vmem:[#allocation2 + $0x20] sm:$0x1]  ;;  %vm5393_vm12 = vmor %vm1270_vm10, %vm1271_vm11 }
   0xf   :  { %4166 = vmatpush3.bf16.msra.mxu1 %v4598_v7  ;;  %45 = vst [vmem:[#allocation2 + $0x10] sm:$0x1] %v44_v33  ;;  %107 = vst [vmem:[#allocation2 + $0x14] sm:$0x1] %v106_v34  ;;  %v162_v45 = vld [vmem:[%s6124_s0 + $0x18] sm:$0xff]  ;;  %v185_v49 = vmul.f32 %v4799_v24, %v161_v43  ;;  %v50_v50 = vsel %vm4775_vm2, 0, %v49_v44 }
  0x10   :  { %4294 = vmatpush3.bf16.msra.mxu0 %v4599_v8  ;;  %4167 = vmatprep.subr.bf16.mxu1 %v4600_v9  ;;  %v4607_v46 = vld [vmem:[%s6123_s3 + $0x138] sm:$0xff]   ;;  %v3999_v47 = vpack.c.bf16 %v221_v37, %v221_v37  ;;  %48 = vst [vmem:[#allocation2 + $0x18] sm:$0x1] %v47_v41  ;;  %110 = vst [vmem:[#allocation2 + $0x1c] sm:$0x1] %v109_v42  ;;  %v186_v51 = vmul.f32 %v4799_v24, %v162_v45  ;;  %v4850_v57 = vld [vmem:[%s6123_s3] sm:$0xff]  }
  0x11   :  { %4295 = vmatprep.subr.bf16.mxu0 %v4601_v11  ;;  %v4839_v48 = vld [vmem:[#allocation2] sm:$0xf]  ;;  %v592_v52 = vld [vmem:[#allocation2 + $0x4] sm:$0x1]  ;;  %51 = vst [vmem:[#allocation2 + $0x20] sm:$0x1] %v50_v50  ;;  %v207_v63 = vadd.f32 %v4804_v25, %v185_v49 }
  0x12   :  { %v612_v53 = vshrl.u32 %v4839_v48, 16  ;;  %v615_v54 = vshll.u32 %v4839_v48, 16  ;;  %v302_v55 = vshrl.u32 %v3999_v47, 16  ;;  %v305_v56 = vshll.u32 %v3999_v47, 16  ;;  %v111_v58 = vld [vmem:[#allocation2 + $0x24] sm:$0x1] }
  0x13   :  { %4168 = vmatpush3.bf16.msra.mxu1 %v4600_v9  ;;  %v621_v60 = vshll.u32 %v592_v52, 16  ;;  %v222_v61 = vmax.f32 %v206_v40, 0.0  ;;  %v4855_v62 = vld [vmem:[%s6123_s3 + $0x140] sm:$0xff]   ;;  %v112_v2 = vsel %vm4785_vm4, 0, %v111_v58  ;;  %v208_v3 = vadd.f32 %v4804_v25, %v186_v51  ;;  %v464_v6 = vld [vmem:[#allocation2 + $0x8] sm:$0xf] }
  0x14   :  { %4296 = vmatpush3.bf16.msra.mxu0 %v4601_v11  ;;  %4169 = vmatprep.subr.bf16.mxu1 %v4602_v12  ;;  %v614_v59 = vrot.slane %v612_v53, 4  ;;  %v304_v0 = vrot.slane %v302_v55, 7  ;;  %v617_v1 = vrot.slane %v615_v54, 5  ;;  %v163_v4 = vld [vmem:[%s6124_s0 + $0x20] sm:$0xff]  ;;  %v467_v7 = vld [vmem:[#allocation2 + $0xc] sm:$0x1] }
  0x15   :  { %4297 = vmatprep.subr.bf16.mxu0 %v4603_v13  ;;  %v4000_v8 = vpack.c.bf16 %v222_v61, %v222_v61  ;;  %v223_v9 = vmax.f32 %v207_v63, 0.0  ;;  %113 = vst [vmem:[#allocation2 + $0x24] sm:$0x1] %v112_v2  ;;  %v187_v10 = vmul.f32 %v4799_v24, %v163_v4  ;;  %v4871_v15 = vrot.slane %v621_v60, 5  ;;  %v114_v32 = vld [vmem:[#allocation2 + $0x2c] sm:$0x1] }
  0x16   :  { %v307_v11 = vor.u32 %v305_v56, %v304_v0  ;;  %v618_v22 = vor.u32 %v617_v1, %v614_v59  ;;  %v470_v23 = vld [vmem:[#allocation2 + $0x10] sm:$0xf]  ;;  %v473_v26 = vld [vmem:[#allocation2 + $0x14] sm:$0x1]  ;;  %v115_v39 = vsel %vm4785_vm4, 0, %v114_v32  ;;  %v164_v54 = vld [vmem:[%s6124_s0 + $0x28] sm:$0xff] }
  0x17   :  { %4170 = vmatpush3.bf16.msra.mxu1 %v4602_v12  ;;  %v308_v12 = vrot.slane %v304_v0, 4  ;;  %v310_v16 = vshrl.u32 %v4000_v8, 16  ;;  %v313_v17 = vshll.u32 %v4000_v8, 16  ;;  %v4001_v18 = vpack.c.bf16 %v223_v9, %v223_v9  ;;  %v476_v34 = vld [vmem:[#allocation2 + $0x18] sm:$0xf]  ;;  %v165_v60 = vld [vmem:[%s6124_s0 + $0x30] sm:$0xff] }
  0x18   :  { %4298 = vmatpush3.bf16.msra.mxu0 %v4603_v13  ;;  %4171 = vmatprep.subr.bf16.mxu1 %v4604_v27  ;;  %v224_v13 = vmax.f32 %v208_v3, 0.0  ;;  %v465_v20 = vsel %vm4866_vm8, %v307_v11, %v464_v6  ;;  %v209_v33 = vadd.f32 %v4804_v25, %v187_v10  ;;  %v479_v35 = vld [vmem:[#allocation2 + $0x1c] sm:$0x1]  ;;  %v482_v43 = vld [vmem:[#allocation2 + $0x20] sm:$0xf]  ;;  %v4884_v44 = vrot.slane %v618_v22, 4 }
  0x19   :  { %4299 = vmatprep.subr.bf16.mxu0 %v4605_v28  ;;  %v468_v21 = vsel %vm4775_vm2, %v308_v12, %v467_v7  ;;  %466 = vst [vmem:[#allocation2 + $0x8] sm:$0xf] %v465_v20  ;;  %v312_v29 = vrot.slane %v310_v16, 7  ;;  %v318_v30 = vshrl.u32 %v4001_v18, 16  ;;  %v321_v31 = vshll.u32 %v4001_v18, 16  ;;  %v166_v2 = vld [vmem:[%s6124_s0 + $0x38] sm:$0xff] }
  0x1a   :  { %469 = vst [vmem:[#allocation2 + $0xc] sm:$0x1] %v468_v21  ;;  %116 = vst [vmem:[#allocation2 + $0x2c] sm:$0x1] %v115_v39  ;;  %v55_v47 = vld [vmem:[#allocation2 + $0x30] sm:$0x1]  ;;  %v188_v9 = vmul.f32 %v4799_v24, %v164_v54  ;;  %v189_v16 = vmul.f32 %v4799_v24, %v165_v60 }
  0x1b   :  { %4172 = vmatpush3.bf16.msra.mxu1 %v4604_v27  ;;  %v4002_v27 = vpack.c.bf16 %v224_v13, %v224_v13  ;;  %v315_v40 = vor.u32 %v313_v17, %v312_v29  ;;  %v316_v41 = vrot.slane %v312_v29, 4  ;;  %v320_v42 = vrot.slane %v318_v30, 7  ;;  %v117_v53 = vld [vmem:[#allocation2 + $0x34] sm:$0x1]  ;;  %v4641_v14 = vld [vmem:[%s6123_s3 + $0x1a8] sm:$0xff]  }
  0x1c   :  { %4300 = vmatpush3.bf16.msra.mxu0 %v4605_v28  ;;  %4173 = vmatprep.subr.bf16.mxu1 %v4606_v36  ;;  %v52_v28 = vld [vmem:[#allocation2 + $0x28] sm:$0x1]  ;;  %v225_v58 = vmax.f32 %v209_v33, 0.0  ;;  %v56_v59 = vsel %vm4775_vm2, 0, %v55_v47  ;;  %v118_v1 = vsel %vm4785_vm4, 0, %v117_v53  ;;  %v624_v17 = vsel %vm4900_vm9, %v4884_v44, %v4871_v15 }
  0x1d   :  { %4301 = vmatprep.subr.bf16.mxu0 %v4607_v46  ;;  %v329_v37 = vshll.u32 %v4002_v27, 16  ;;  %v53_v38 = vsel %vm4775_vm2, 0, %v52_v28  ;;  %v471_v49 = vsel %vm4866_vm8, %v315_v40, %v470_v23  ;;  %v474_v50 = vsel %vm4775_vm2, %v316_v41, %v473_v26  ;;  %57 = vst [vmem:[#allocation2 + $0x30] sm:$0x1] %v56_v59  ;;  %119 = vst [vmem:[#allocation2 + $0x34] sm:$0x1] %v118_v1 }
  0x1e   :  { %54 = vst [vmem:[#allocation2 + $0x28] sm:$0x1] %v53_v38  ;;  %v323_v51 = vor.u32 %v321_v31, %v320_v42  ;;  %v324_v52 = vrot.slane %v320_v42, 4  ;;  %472 = vst [vmem:[#allocation2 + $0x10] sm:$0xf] %v471_v49  ;;  %v4929_v21 = vpack.c.bf16 %v225_v58, %v225_v58 }
  0x1f   :  { %4174 = vmatpush3.bf16.msra.mxu1 %v4606_v36  ;;  %v326_v36 = vshrl.u32 %v4002_v27, 16  ;;  %475 = vst [vmem:[#allocation2 + $0x14] sm:$0x1] %v474_v50  ;;  %v190_v27 = vmul.f32 %v4799_v24, %v166_v2 }
  0x20   :  { %4302 = vmatpush3.bf16.msra.mxu0 %v4607_v46  ;;  %4191 = vmatprep.subr.bf16.mxu1 %v4850_v57  ;;  %v485_v46 = vld [vmem:[#allocation2 + $0x24] sm:$0x1]  ;;  %v477_v63 = vsel %vm4866_vm8, %v323_v51, %v476_v34  ;;  %v480_v0 = vsel %vm4775_vm2, %v324_v52, %v479_v35  ;;  %v4913_v3 = vld [vmem:[#allocation2 + $0x8] sm:$0xf]  ;;  %v4937_v35 = vadd.f32 %v4804_v25, %v188_v9  ;;  %v337_v47 = vshll.u32 %v4929_v21, 16 }
  0x21   :  { %4319 = vmatprep.subr.bf16.mxu0 %v4855_v62  ;;  %v328_v45 = vrot.slane %v326_v36, 7  ;;  %v593_v4 = vld [vmem:[#allocation2 + $0xc] sm:$0x1]  ;;  %v1790_v6 = vld [vmem:[#allocation2 + $0x8] sm:$0xf]  ;;  %v626_v10 = vshrl.u32 %v4913_v3, 16  ;;  %v4940_v36 = vadd.f32 %v4804_v25, %v189_v16  ;;  %v4948_v52 = vadd.f32 %v4804_v25, %v190_v27 }
  0x22   :  { %478 = vst [vmem:[#allocation2 + $0x18] sm:$0xf] %v477_v63  ;;  %481 = vst [vmem:[#allocation2 + $0x1c] sm:$0x1] %v480_v0  ;;  %v629_v11 = vshll.u32 %v4913_v3, 16  ;;  %v635_v12 = vshll.u32 %v593_v4, 16 }
  0x23   :  { %v331_v55 = vor.u32 %v329_v37, %v328_v45  ;;  %v332_v56 = vrot.slane %v328_v45, 4  ;;  %v4922_v13 = vld [vmem:[#allocation2 + $0xc] sm:$0x1]  ;;  %v1823_v18 = vshrl.u32 %v1790_v6, 16  ;;  %v1826_v20 = vshll.u32 %v1790_v6, 16 }
  0x24   :  { %v628_v22 = vrot.slane %v626_v10, 4  ;;  %v631_v23 = vrot.slane %v629_v11, 5  ;;  %v1832_v26 = vshll.u32 %v4922_v13, 16  ;;  %v637_v28 = vrot.slane %v635_v12, 5 }
  0x25   :  { %v483_v7 = vsel %vm4866_vm8, %v331_v55, %v482_v43  ;;  %v486_v8 = vsel %vm4775_vm2, %v332_v56, %v485_v46  ;;  %v1825_v29 = vrot.slane %v1823_v18, 4  ;;  %v1828_v30 = vrot.slane %v1826_v20, 5  ;;  %v1792_v33 = vld [vmem:[#allocation2 + $0x10] sm:$0xf] }
  0x26   :  { %484 = vst [vmem:[#allocation2 + $0x20] sm:$0xf] %v483_v7  ;;  %487 = vst [vmem:[#allocation2 + $0x24] sm:$0x1] %v486_v8  ;;  %v2306_v31 = vrot.slane %v4922_v13, 5  ;;  %v632_v32 = vor.u32 %v631_v23, %v628_v22  ;;  %v1837_v39 = vshrl.u32 %v1792_v33, 16 }
  0x27   :  { %v4934_v34 = vld [vmem:[#allocation2 + $0x14] sm:$0x1]  ;;  %v562_v15 = vld [vmem:[#allocation2 + $0x10] sm:$0xf]  ;;  %v1829_v38 = vor.u32 %v1828_v30, %v1825_v29  ;;  %v1840_v40 = vshll.u32 %v1792_v33, 16  ;;  %v1834_v44 = vrot.slane %v1832_v26, 5 }
  0x28   :  { %v1846_v41 = vshll.u32 %v4934_v34, 16  ;;  %v594_v42 = vld [vmem:[#allocation2 + $0x14] sm:$0x1]  ;;  %v633_v43 = vrot.slane %v632_v32, 4  ;;  %v334_v46 = vshrl.u32 %v4929_v21, 16  ;;  %v1839_v50 = vrot.slane %v1837_v39, 4 }
  0x29   :  { %v563_v45 = vld [vmem:[#allocation2 + $0x18] sm:$0xf]  ;;  %v1830_v49 = vrot.slane %v1829_v38, 4  ;;  %v1842_v51 = vrot.slane %v1840_v40, 5  ;;  %v595_v54 = vld [vmem:[#allocation2 + $0x1c] sm:$0x1] }
  0x2a   :  { %v638_v53 = vsel %vm4900_vm9, %v633_v43, %v637_v28  ;;  %v640_v55 = vshrl.u32 %v562_v15, 16  ;;  %v643_v56 = vshll.u32 %v562_v15, 16  ;;  %v649_v58 = vshll.u32 %v594_v42, 16  ;;  %v1794_v1 = vld [vmem:[#allocation2 + $0x18] sm:$0xf]  ;;  %v167_v26 = vld [vmem:[%s6124_s0 + $0x40] sm:$0xff] }
  0x2b   :  { %v3695_v59 = vcombine.low %v624_v17, %v638_v53  ;;  %v1843_v60 = vor.u32 %v1842_v51, %v1839_v50  ;;  %v1848_v63 = vrot.slane %v1846_v41, 5  ;;  %v654_v0 = vshrl.u32 %v563_v45, 16  ;;  %v4953_v8 = vld [vmem:[#allocation2 + $0x1c] sm:$0x1]  ;;  %v1225_v13 = vld [vmem:[#allocation2 + $0x18] sm:$0xe] }
  0x2c   :  { %v2310_v2 = vrot.slane %v4934_v34, 5  ;;  %v642_v4 = vrot.slane %v640_v55, 4  ;;  %v645_v6 = vrot.slane %v643_v56, 5  ;;  %v657_v7 = vshll.u32 %v563_v45, 16 }
  0x2d   :  { %4175 = vmatprep.mubr.bf16.mxu1 %v3695_v59  ;;  %v1835_v9 = vsel %vm4900_vm9, %v1830_v49, %v1834_v44  ;;  %v1844_v10 = vrot.slane %v1843_v60, 4  ;;  %v656_v11 = vrot.slane %v654_v0, 4  ;;  %v663_v12 = vshll.u32 %v595_v54, 16  ;;  %v1796_v16 = vld [vmem:[#allocation2 + $0x20] sm:$0xf] }
  0x2e   :  { %v646_v17 = vor.u32 %v645_v6, %v642_v4  ;;  %v651_v18 = vrot.slane %v649_v58, 5  ;;  %v659_v20 = vrot.slane %v657_v7, 5  ;;  %v1797_v22 = vld [vmem:[#allocation2 + $0x24] sm:$0x1]  ;;  %v1851_v23 = vshrl.u32 %v1794_v1, 16 }
  0x2f   :  { %v1849_v27 = vsel %vm4900_vm9, %v1844_v10, %v1848_v63  ;;  %v665_v28 = vrot.slane %v663_v12, 5  ;;  %v1854_v29 = vshll.u32 %v1794_v1, 16  ;;  %v1860_v30 = vshll.u32 %v4953_v8, 16  ;;  %v4963_v32 = vld [vmem:[#allocation2 + $0x20] sm:$0xf]  ;;  %v4610_v63 = vld [vmem:[%s6123_s3 + $0x8] sm:$0xff]  }
  0x30   :  { %v3823_v33 = vcombine.low %v1835_v9, %v1849_v27  ;;  %v647_v15 = vrot.slane %v646_v17, 4  ;;  %v660_v38 = vor.u32 %v659_v20, %v656_v11  ;;  %v1853_v39 = vrot.slane %v1851_v23, 4  ;;  %v596_v56 = vld [vmem:[#allocation2 + $0x24] sm:$0x1]  ;;  %v58_v58 = vld [vmem:[#allocation2 + $0x38] sm:$0x1] }
  0x31   :  { %v1856_v40 = vrot.slane %v1854_v29, 5  ;;  %v1865_v41 = vshrl.u32 %v1796_v16, 16  ;;  %v1868_v42 = vshll.u32 %v1796_v16, 16  ;;  %v4966_v43 = vmul.f32 %v4799_v24, %v167_v26  ;;  %v488_v1 = vld [vmem:[#allocation2 + $0x28] sm:$0xf] }
  0x32   :  { %4303 = vmatprep.mubr.bf16.mxu0 %v3823_v33  ;;  %v652_v44 = vsel %vm4900_vm9, %v647_v15, %v651_v18  ;;  %v661_v45 = vrot.slane %v660_v38, 4  ;;  %v1862_v49 = vrot.slane %v1860_v30, 5  ;;  %v1874_v50 = vshll.u32 %v1797_v22, 16  ;;  %v120_v6 = vld [vmem:[#allocation2 + $0x3c] sm:$0x1] }
  0x33   :  { %v1857_v51 = vor.u32 %v1856_v40, %v1853_v39  ;;  %v1867_v53 = vrot.slane %v1865_v41, 4  ;;  %v1870_v54 = vrot.slane %v1868_v42, 5  ;;  %v2314_v55 = vrot.slane %v4953_v8, 5  ;;  %v491_v11 = vld [vmem:[#allocation2 + $0x2c] sm:$0x1] }
  0x34   :  { %v666_v59 = vsel %vm4900_vm9, %v661_v45, %v665_v28  ;;  %v1876_v60 = vrot.slane %v1874_v50, 5  ;;  %v336_v0 = vrot.slane %v334_v46, 7  ;;  %v668_v4 = vshrl.u32 %v4963_v32, 16  ;;  %v61_v16 = vld [vmem:[#allocation2 + $0x40] sm:$0x1] }
  0x35   :  { %v3696_v7 = vcombine.low %v652_v44, %v666_v59  ;;  %v1858_v9 = vrot.slane %v1857_v51, 4  ;;  %v1871_v10 = vor.u32 %v1870_v54, %v1867_v53  ;;  %v671_v12 = vshll.u32 %v4963_v32, 16  ;;  %v123_v17 = vld [vmem:[#allocation2 + $0x44] sm:$0x1]  ;;  %v67_v29 = vld [vmem:[#allocation2 + $0x50] sm:$0x1] }
  0x36   :  { %v339_v18 = vor.u32 %v337_v47, %v336_v0  ;;  %v340_v20 = vrot.slane %v336_v0, 4  ;;  %v670_v22 = vrot.slane %v668_v4, 4  ;;  %v677_v23 = vshll.u32 %v596_v56, 16  ;;  %v70_v15 = vld [vmem:[#allocation2 + $0x58] sm:$0x1]  ;;  %v4611_v44 = vld [vmem:[%s6123_s3 + $0x148] sm:$0xff]  }
  0x37   :  { %4176 = vmatmul.mubr.bf16.vlgmr.msra.gmra.mrb[0].mxu1 %v3696_v7  ;;  %v1863_v46 = vsel %vm4900_vm9, %v1858_v9, %v1862_v49  ;;  %v1872_v26 = vrot.slane %v1871_v10, 4  ;;  %v673_v27 = vrot.slane %v671_v12, 5  ;;  %v226_v28 = vmax.f32 %v4937_v35, 0.0  ;;  %v129_v38 = vld [vmem:[#allocation2 + $0x54] sm:$0x1]  ;;  %v5013_v59 = vld [vmem:[%s6123_s3 + $0x18] sm:$0xff]  }
  0x38   :  { %4192 = vmatpush3.bf16.msra.mxu1 %v4850_v57  ;;  %v489_v30 = vsel %vm4866_vm8, %v339_v18, %v488_v1  ;;  %v492_v21 = vsel %vm4775_vm2, %v340_v20, %v491_v11  ;;  %v4988_v47 = vrot.slane %v677_v23, 5  ;;  %v59_v33 = vsel %vm4775_vm2, 0, %v58_v58  ;;  %v4612_v35 = vld [vmem:[%s6123_s3 + $0x10] sm:$0xff]   ;;  %v132_v51 = vld [vmem:[#allocation2 + $0x5c] sm:$0x1] }
  0x39   :  { %v1877_v39 = vsel %vm4900_vm9, %v1872_v26, %v1876_v60  ;;  %4193 = vmatprep.subr.bf16.mxu1 %v4610_v63  ;;  %490 = vst [vmem:[#allocation2 + $0x28] sm:$0xf] %v489_v30  ;;  %493 = vst [vmem:[#allocation2 + $0x2c] sm:$0x1] %v492_v21  ;;  %v674_v57 = vor.u32 %v673_v27, %v670_v22  ;;  %v4004_v40 = vpack.c.bf16 %v226_v28, %v226_v28  ;;  %v168_v60 = vld [vmem:[%s6124_s0 + $0x48] sm:$0xff]  ;;  %v169_v7 = vld [vmem:[%s6124_s0 + $0x50] sm:$0xff] }
  0x3a   :  { %60 = vst [vmem:[#allocation2 + $0x38] sm:$0x1] %v59_v33  ;;  %v121_v41 = vsel %vm4785_vm4, 0, %v120_v6  ;;  %v3824_v42 = vcombine.low %v1863_v46, %v1877_v39  ;;  %v227_v45 = vmax.f32 %v4940_v36, 0.0  ;;  %v62_v49 = vsel %vm4775_vm2, 0, %v61_v16  ;;  %v171_v16 = vld [vmem:[%s6124_s0 + $0x60] sm:$0xff] }
  0x3b   :  { %122 = vst [vmem:[#allocation2 + $0x3c] sm:$0x1] %v121_v41  ;;  %v124_v50 = vsel %vm4785_vm4, 0, %v123_v17  ;;  %v5007_v53 = vrot.slane %v674_v57, 4  ;;  %v342_v54 = vshrl.u32 %v4004_v40, 16  ;;  %v345_v56 = vshll.u32 %v4004_v40, 16 }
  0x3c   :  { %63 = vst [vmem:[#allocation2 + $0x40] sm:$0x1] %v62_v49  ;;  %125 = vst [vmem:[#allocation2 + $0x44] sm:$0x1] %v124_v50  ;;  %v228_v58 = vmax.f32 %v4948_v52, 0.0  ;;  %4304 = vmatmul.mubr.bf16.vlgmr.msra.gmra.mrb[0].mxu0 %v3824_v42  ;;  %4194 = vmatpush3.bf16.msra.mxu1 %v4610_v63  ;;  %v5018_v1 = vpack.c.bf16 %v227_v45, %v227_v45  ;;  %v68_v4 = vsel %vm4775_vm2, 0, %v67_v29 }
  0x3d   :  { %v73_v36 = vld [vmem:[#allocation2 + $0x60] sm:$0x1]  ;;  %v494_v0 = vld [vmem:[#allocation2 + $0x30] sm:$0xf]  ;;  %v71_v52 = vsel %vm4775_vm2, 0, %v70_v15  ;;  %v130_v6 = vsel %vm4785_vm4, 0, %v129_v38  ;;  %4320 = vmatpush3.bf16.msra.mxu0 %v4855_v62  ;;  %v680_v63 = vsel %vm4900_vm9, %v5007_v53, %v4988_v47  ;;  %4195 = vmatprep.subr.bf16.mxu1 %v4612_v35  ;;  %v5051_v22 = vadd.f32 %v4804_v25, %v4966_v43 }
  0x3e   :  { %v344_v9 = vrot.slane %v342_v54, 7  ;;  %v497_v10 = vld [vmem:[#allocation2 + $0x34] sm:$0x1]  ;;  %v5034_v11 = vpack.c.bf16 %v228_v58, %v228_v58  ;;  %69 = vst [vmem:[#allocation2 + $0x50] sm:$0x1] %v68_v4  ;;  %v133_v12 = vsel %vm4785_vm4, 0, %v132_v51  ;;  %4321 = vmatprep.subr.bf16.mxu0 %v4611_v44  ;;  %v5060_v33 = vmul.f32 %v4799_v24, %v168_v60 }
  0x3f   :  { %72 = vst [vmem:[#allocation2 + $0x58] sm:$0x1] %v71_v52  ;;  %131 = vst [vmem:[#allocation2 + $0x54] sm:$0x1] %v130_v6  ;;  %v170_v62 = vld [vmem:[%s6124_s0 + $0x58] sm:$0xff]  ;;  %v4613_v17 = vld [vmem:[%s6123_s3 + $0x150] sm:$0xff]   ;;  %v5063_v43 = vmul.f32 %v4799_v24, %v169_v7  ;;  %v5069_v38 = vmul.f32 %v4799_v24, %v171_v16 }
  0x40   :  { %v350_v18 = vshrl.u32 %v5018_v1, 16  ;;  %v353_v20 = vshll.u32 %v5018_v1, 16  ;;  %134 = vst [vmem:[#allocation2 + $0x5c] sm:$0x1] %v133_v12  ;;  %v74_v23 = vsel %vm4775_vm2, 0, %v73_v36  ;;  %v347_v46 = vor.u32 %v345_v56, %v344_v9  ;;  %4196 = vmatpush3.bf16.msra.mxu1 %v4612_v35  ;;  %v4616_v42 = vld [vmem:[%s6123_s3 + $0x20] sm:$0xff]  }
  0x41   :  { %v348_v26 = vrot.slane %v344_v9, 4  ;;  %v358_v27 = vshrl.u32 %v5034_v11, 16  ;;  %v361_v28 = vshll.u32 %v5034_v11, 16  ;;  %75 = vst [vmem:[#allocation2 + $0x60] sm:$0x1] %v74_v23  ;;  %v5066_v15 = vmul.f32 %v4799_v24, %v170_v62  ;;  %4322 = vmatpush3.bf16.msra.mxu0 %v4611_v44  ;;  %4197 = vmatprep.subr.bf16.mxu1 %v5013_v59  ;;  %v4615_v50 = vld [vmem:[%s6123_s3 + $0x158] sm:$0xff]  }
  0x42   :  { %v5057_v29 = vld [vmem:[#allocation2 + $0x28] sm:$0xf]  ;;  %v597_v30 = vld [vmem:[#allocation2 + $0x2c] sm:$0x1]  ;;  %v495_v35 = vsel %vm4866_vm8, %v347_v46, %v494_v0  ;;  %4323 = vmatprep.subr.bf16.mxu0 %v4613_v17  ;;  %v135_v51 = vld [vmem:[#allocation2 + $0x64] sm:$0x1] }
  0x43   :  { %v1798_v21 = vld [vmem:[#allocation2 + $0x28] sm:$0xf]  ;;  %v682_v39 = vshrl.u32 %v5057_v29, 16  ;;  %v685_v57 = vshll.u32 %v5057_v29, 16  ;;  %v691_v40 = vshll.u32 %v597_v30, 16  ;;  %v498_v24 = vsel %vm4775_vm2, %v348_v26, %v497_v10  ;;  %v4622_v47 = vld [vmem:[%s6123_s3 + $0x38] sm:$0xff]  }
  0x44   :  { %v1799_v41 = vld [vmem:[#allocation2 + $0x2c] sm:$0x1]  ;;  %496 = vst [vmem:[#allocation2 + $0x30] sm:$0xf] %v495_v35  ;;  %v1879_v44 = vshrl.u32 %v1798_v21, 16  ;;  %v1882_v45 = vshll.u32 %v1798_v21, 16  ;;  %4198 = vmatpush3.bf16.msra.mxu1 %v5013_v59 }
  0x45   :  { %v1888_v49 = vshll.u32 %v1799_v41, 16  ;;  %v684_v54 = vrot.slane %v682_v39, 4  ;;  %v687_v56 = vrot.slane %v685_v57, 5  ;;  %v693_v58 = vrot.slane %v691_v40, 5  ;;  %499 = vst [vmem:[#allocation2 + $0x34] sm:$0x1] %v498_v24  ;;  %4324 = vmatpush3.bf16.msra.mxu0 %v4613_v17  ;;  %4199 = vmatprep.subr.bf16.mxu1 %v4616_v42 }
  0x46   :  { %v352_v36 = vrot.slane %v350_v18, 7  ;;  %v500_v60 = vld [vmem:[#allocation2 + $0x38] sm:$0xf]  ;;  %v4618_v0 = vld [vmem:[%s6123_s3 + $0x28] sm:$0xff]   ;;  %v1881_v1 = vrot.slane %v1879_v44, 4  ;;  %v1884_v4 = vrot.slane %v1882_v45, 5  ;;  %4325 = vmatprep.subr.bf16.mxu0 %v4615_v50 }
  0x47   :  { %v5087_v52 = vrot.slane %v1888_v49, 5  ;;  %v503_v6 = vld [vmem:[#allocation2 + $0x3c] sm:$0x1]  ;;  %v360_v7 = vrot.slane %v358_v27, 7  ;;  %v688_v9 = vor.u32 %v687_v56, %v684_v54  ;;  %v506_v12 = vld [vmem:[#allocation2 + $0x40] sm:$0xf]  ;;  %v5123_v49 = vadd.f32 %v4804_v25, %v5060_v33 }
  0x48   :  { %v355_v10 = vor.u32 %v353_v20, %v352_v36  ;;  %v356_v11 = vrot.slane %v352_v36, 4  ;;  %v509_v62 = vld [vmem:[#allocation2 + $0x44] sm:$0x1]  ;;  %v229_v16 = vmax.f32 %v5051_v22, 0.0  ;;  %v1885_v18 = vor.u32 %v1884_v4, %v1881_v1  ;;  %v5091_v26 = vld [vmem:[#allocation2 + $0x50] sm:$0xf]  ;;  %4200 = vmatpush3.bf16.msra.mxu1 %v4616_v42 }
  0x49   :  { %v363_v23 = vor.u32 %v361_v28, %v360_v7  ;;  %v364_v46 = vrot.slane %v360_v7, 4  ;;  %v136_v27 = vsel %vm4785_vm4, 0, %v135_v51  ;;  %v4617_v59 = vld [vmem:[%s6123_s3 + $0x160] sm:$0xff]   ;;  %v689_v20 = vrot.slane %v688_v9, 4  ;;  %v5112_v40 = vld [vmem:[%s6123_s3 + $0x168] sm:$0xff]   ;;  %v4620_v35 = vld [vmem:[%s6123_s3 + $0x30] sm:$0xff]   ;;  %4326 = vmatpush3.bf16.msra.mxu0 %v4615_v50  ;;  %4201 = vmatprep.subr.bf16.mxu1 %v4618_v0 }
  0x4a   :  { %v501_v17 = vsel %vm4866_vm8, %v355_v10, %v500_v60  ;;  %v504_v22 = vsel %vm4775_vm2, %v356_v11, %v503_v6  ;;  %v4007_v30 = vpack.c.bf16 %v229_v16, %v229_v16  ;;  %137 = vst [vmem:[#allocation2 + $0x64] sm:$0x1] %v136_v27  ;;  %v5102_v28 = vrot.slane %v1885_v18, 4  ;;  %4327 = vmatprep.subr.bf16.mxu0 %v4617_v59 }
  0x4b   :  { %502 = vst [vmem:[#allocation2 + $0x38] sm:$0xf] %v501_v17  ;;  %505 = vst [vmem:[#allocation2 + $0x3c] sm:$0x1] %v504_v22  ;;  %v507_v21 = vsel %vm4866_vm8, %v363_v23, %v506_v12  ;;  %v510_v39 = vsel %vm4775_vm2, %v364_v46, %v509_v62  ;;  %v724_v57 = vshrl.u32 %v5091_v26, 16  ;;  %v694_v41 = vsel %vm4900_vm9, %v689_v20, %v693_v58 }
  0x4c   :  { %v1800_v24 = vld [vmem:[#allocation2 + $0x30] sm:$0xf]  ;;  %508 = vst [vmem:[#allocation2 + $0x40] sm:$0xf] %v507_v21  ;;  %511 = vst [vmem:[#allocation2 + $0x44] sm:$0x1] %v510_v39  ;;  %v3697_v51 = vcombine.low %v680_v63, %v694_v41  ;;  %v1891_v56 = vsel %vm4900_vm9, %v5102_v28, %v5087_v52  ;;  %4202 = vmatpush3.bf16.msra.mxu1 %v4618_v0  ;;  %v5160_v28 = vadd.f32 %v4804_v25, %v5069_v38 }
  0x4d   :  { %v5119_v44 = vld [vmem:[#allocation2 + $0x30] sm:$0xf]  ;;  %v366_v45 = vshrl.u32 %v4007_v30, 16  ;;  %v369_v42 = vshll.u32 %v4007_v30, 16  ;;  %v1801_v54 = vld [vmem:[#allocation2 + $0x34] sm:$0x1]  ;;  %4328 = vmatpush3.bf16.msra.mxu0 %v4617_v59  ;;  %4203 = vmatprep.subr.bf16.mxu1 %v4620_v35  ;;  %v5152_v30 = vadd.f32 %v4804_v25, %v5063_v43  ;;  %v5156_v59 = vadd.f32 %v4804_v25, %v5066_v15 }
  0x4e   :  { %v1893_v50 = vshrl.u32 %v1800_v24, 16  ;;  %v1896_v58 = vshll.u32 %v1800_v24, 16  ;;  %v598_v36 = vld [vmem:[#allocation2 + $0x34] sm:$0x1]  ;;  %v1902_v60 = vshll.u32 %v1801_v54, 16  ;;  %v696_v33 = vshrl.u32 %v5119_v44, 16  ;;  %4179 = vmatprep.mubr.bf16.mxu1 %v3697_v51  ;;  %4329 = vmatprep.subr.bf16.mxu0 %v5112_v40 }
  0x4f   :  { %v699_v1 = vshll.u32 %v5119_v44, 16  ;;  %v705_v4 = vshll.u32 %v598_v36, 16  ;;  %v368_v6 = vrot.slane %v366_v45, 7  ;;  %v5139_v7 = vrot.slane %v724_v57, 4  ;;  %v4621_v52 = vld [vmem:[%s6123_s3 + $0x170] sm:$0xff]   ;;  %v4623_v43 = vld [vmem:[%s6123_s3 + $0x178] sm:$0xff]  }
  0x50   :  { %v1895_v53 = vrot.slane %v1893_v50, 4  ;;  %v1898_v63 = vrot.slane %v1896_v58, 5  ;;  %v1904_v9 = vrot.slane %v1902_v60, 5  ;;  %v698_v10 = vrot.slane %v696_v33, 4  ;;  %v512_v23 = vld [vmem:[#allocation2 + $0x58] sm:$0xf]  ;;  %4204 = vmatpush3.bf16.msra.mxu1 %v4620_v35 }
  0x51   :  { %v701_v11 = vrot.slane %v699_v1, 5  ;;  %v5144_v12 = vrot.slane %v705_v4, 5  ;;  %v371_v16 = vor.u32 %v369_v42, %v368_v6  ;;  %v372_v18 = vrot.slane %v368_v6, 4  ;;  %v515_v46 = vld [vmem:[#allocation2 + $0x5c] sm:$0x1]  ;;  %4330 = vmatpush3.bf16.msra.mxu0 %v5112_v40  ;;  %4205 = vmatprep.subr.bf16.mxu1 %v4622_v47  ;;  %v5181_v36 = vld [vmem:[%s6123_s3 + $0x80] sm:$0xff]  }
  0x52   :  { %v1899_v62 = vor.u32 %v1898_v63, %v1895_v53  ;;  %v727_v27 = vshll.u32 %v5091_v26, 16  ;;  %v5148_v0 = vld [vmem:[#allocation2 + $0x38] sm:$0xf]  ;;  %v599_v20 = vld [vmem:[#allocation2 + $0x3c] sm:$0x1]  ;;  %4331 = vmatprep.subr.bf16.mxu0 %v4621_v52 }
  0x53   :  { %v702_v17 = vor.u32 %v701_v11, %v698_v10  ;;  %v1802_v22 = vld [vmem:[#allocation2 + $0x38] sm:$0xf]  ;;  %v710_v21 = vshrl.u32 %v5148_v0, 16  ;;  %v713_v39 = vshll.u32 %v5148_v0, 16  ;;  %v719_v57 = vshll.u32 %v599_v20, 16 }
  0x54   :  { %v1900_v26 = vrot.slane %v1899_v62, 4  ;;  %v600_v41 = vld [vmem:[#allocation2 + $0x54] sm:$0x1]  ;;  %v5167_v45 = vld [vmem:[#allocation2 + $0x3c] sm:$0x1]  ;;  %v1907_v42 = vshrl.u32 %v1802_v22, 16  ;;  %v513_v25 = vsel %vm4866_vm8, %v371_v16, %v512_v23  ;;  %v516_v38 = vsel %vm4775_vm2, %v372_v18, %v515_v46  ;;  %4206 = vmatpush3.bf16.msra.mxu1 %v4622_v47 }
  0x55   :  { %v703_v24 = vrot.slane %v702_v17, 4  ;;  %v1804_v15 = vld [vmem:[#allocation2 + $0x40] sm:$0xf]  ;;  %v712_v51 = vrot.slane %v710_v21, 4  ;;  %v715_v54 = vrot.slane %v713_v39, 5  ;;  %v721_v50 = vrot.slane %v719_v57, 5  ;;  %4332 = vmatpush3.bf16.msra.mxu0 %v4621_v52  ;;  %4223 = vmatprep.subr.bf16.mxu1 %v5181_v36 }
  0x56   :  { %v1905_v35 = vsel %vm4900_vm9, %v1900_v26, %v1904_v9  ;;  %v5176_v58 = vld [vmem:[#allocation2 + $0x44] sm:$0x1]  ;;  %514 = vst [vmem:[#allocation2 + $0x58] sm:$0xf] %v513_v25  ;;  %517 = vst [vmem:[#allocation2 + $0x5c] sm:$0x1] %v516_v38  ;;  %4333 = vmatprep.subr.bf16.mxu0 %v4623_v43 }
  0x57   :  { %v3825_v60 = vcombine.low %v1891_v56, %v1905_v35  ;;  %v708_v40 = vsel %vm4900_vm9, %v703_v24, %v5144_v12  ;;  %v1909_v33 = vrot.slane %v1907_v42, 4  ;;  %v1910_v1 = vshll.u32 %v1802_v22, 16  ;;  %v76_v16 = vld [vmem:[#allocation2 + $0x68] sm:$0x1]  ;;  %v5195_v47 = vld [vmem:[%s6123_s3 + $0x180] sm:$0xff]  }
  0x58   :  { %v716_v4 = vor.u32 %v715_v54, %v712_v51  ;;  %v1916_v53 = vshll.u32 %v5167_v45, 16  ;;  %v1921_v63 = vshrl.u32 %v1804_v15, 16  ;;  %v1924_v6 = vshll.u32 %v1804_v15, 16  ;;  %v172_v46 = vld [vmem:[%s6124_s0 + $0x68] sm:$0xff] }
  0x59   :  { %4307 = vmatprep.mubr.bf16.mxu0 %v3825_v60  ;;  %v1912_v9 = vrot.slane %v1910_v1, 5  ;;  %v1930_v10 = vshll.u32 %v5176_v58, 16  ;;  %v729_v11 = vrot.slane %v727_v27, 5  ;;  %v733_v62 = vshll.u32 %v600_v41, 16  ;;  %v138_v25 = vld [vmem:[#allocation2 + $0x6c] sm:$0x1]  ;;  %4334 = vmatpush3.bf16.msra.mxu0 %v4623_v43 }
  0x5a   :  { %v717_v56 = vrot.slane %v716_v4, 4  ;;  %v1918_v18 = vrot.slane %v1916_v53, 5  ;;  %v1923_v23 = vrot.slane %v1921_v63, 4  ;;  %v1926_v12 = vrot.slane %v1924_v6, 5  ;;  %v79_v60 = vld [vmem:[#allocation2 + $0x70] sm:$0x1]  ;;  %4351 = vmatprep.subr.bf16.mxu0 %v5195_v47 }
  0x5b   :  { %v1913_v27 = vor.u32 %v1912_v9, %v1909_v33  ;;  %v1932_v20 = vrot.slane %v1930_v10, 5  ;;  %v730_v52 = vor.u32 %v729_v11, %v5139_v7  ;;  %v5198_v17 = vrot.slane %v733_v62, 5  ;;  %v5210_v7 = vld [vmem:[%s6125_s1] ss:$0 sm:$0xff]  ;;  %v82_v11 = vld [vmem:[#allocation2 + $0x78] sm:$0x1] }
  0x5c   :  { %v722_v22 = vsel %vm4900_vm9, %v717_v56, %v721_v50  ;;  %v1927_v26 = vor.u32 %v1926_v12, %v1923_v23  ;;  %v230_v21 = vmax.f32 %v5123_v49, 0.0  ;;  %v77_v39 = vsel %vm4775_vm2, 0, %v76_v16  ;;  %v518_v12 = vld [vmem:[#allocation2 + $0x60] sm:$0xf] }
  0x5d   :  { %v3698_v57 = vcombine.low %v708_v40, %v722_v22  ;;  %v1914_v41 = vrot.slane %v1913_v27, 4  ;;  %v5205_v24 = vld [vmem:[#allocation2 + $0x58] sm:$0xf]  ;;  %v601_v15 = vld [vmem:[#allocation2 + $0x5c] sm:$0x1]  ;;  %v731_v42 = vrot.slane %v730_v52, 4  ;;  %v5213_v38 = vmul.f32 %v5210_v7, %v172_v46 }
  0x5e   :  { %78 = vst [vmem:[#allocation2 + $0x68] sm:$0x1] %v77_v39  ;;  %v1928_v49 = vrot.slane %v1927_v26, 4  ;;  %v738_v35 = vshrl.u32 %v5205_v24, 16  ;;  %v741_v51 = vshll.u32 %v5205_v24, 16  ;;  %v747_v54 = vshll.u32 %v601_v15, 16 }
  0x5f   :  { %v1806_v50 = vld [vmem:[#allocation2 + $0x58] sm:$0xf]  ;;  %v141_v40 = vld [vmem:[#allocation2 + $0x74] sm:$0x1]  ;;  %4180 = vmatmul.mubr.bf16.gmra.mrb[4].mxu1 %v3698_v57  ;;  %v1919_v33 = vsel %vm4900_vm9, %v1914_v41, %v1918_v18  ;;  %v736_v1 = vsel %vm4900_vm9, %v731_v42, %v5198_v17  ;;  %v4008_v43 = vpack.c.bf16 %v230_v21, %v230_v21  ;;  %v5223_v4 = vld [vmem:[#allocation2 + $0x5c] sm:$0x1] }
  0x60   :  { %v1935_v53 = vshrl.u32 %v1806_v50, 16  ;;  %v1933_v63 = vsel %vm4900_vm9, %v1928_v49, %v1932_v20  ;;  %v740_v6 = vrot.slane %v738_v35, 4  ;;  %v743_v9 = vrot.slane %v741_v51, 5  ;;  %v144_v17 = vld [vmem:[#allocation2 + $0x7c] sm:$0x1] }
  0x61   :  { %v749_v10 = vrot.slane %v747_v54, 5  ;;  %v3826_v62 = vcombine.low %v1919_v33, %v1933_v63  ;;  %v374_v16 = vshrl.u32 %v4008_v43, 16  ;;  %v377_v56 = vshll.u32 %v4008_v43, 16  ;;  %v521_v20 = vld [vmem:[#allocation2 + $0x64] sm:$0x1] }
  0x62   :  { %v1937_v23 = vrot.slane %v1935_v53, 4  ;;  %v744_v18 = vor.u32 %v743_v9, %v740_v6  ;;  %v1938_v46 = vshll.u32 %v1806_v50, 16  ;;  %v1944_v27 = vshll.u32 %v5223_v4, 16  ;;  %v147_v49 = vld [vmem:[#allocation2 + $0x84] sm:$0x1] }
  0x63   :  { %v139_v52 = vsel %vm4785_vm4, 0, %v138_v25  ;;  %4308 = vmatmul.mubr.bf16.gmra.mrb[4].mxu0 %v3826_v62  ;;  %v376_v22 = vrot.slane %v374_v16, 7  ;;  %v231_v26 = vmax.f32 %v5152_v30, 0.0  ;;  %v80_v21 = vsel %vm4775_vm2, 0, %v79_v60  ;;  %v85_v25 = vld [vmem:[#allocation2 + $0x80] sm:$0x1] }
  0x64   :  { %140 = vst [vmem:[#allocation2 + $0x6c] sm:$0x1] %v139_v52  ;;  %v142_v39 = vsel %vm4785_vm4, 0, %v141_v40  ;;  %v745_v57 = vrot.slane %v744_v18, 4  ;;  %v1940_v41 = vrot.slane %v1938_v46, 5  ;;  %v5235_v15 = vrot.slane %v1944_v27, 5 }
  0x65   :  { %81 = vst [vmem:[#allocation2 + $0x70] sm:$0x1] %v80_v21  ;;  %143 = vst [vmem:[#allocation2 + $0x74] sm:$0x1] %v142_v39  ;;  %v232_v42 = vmax.f32 %v5156_v59, 0.0  ;;  %v379_v35 = vor.u32 %v377_v56, %v376_v22  ;;  %v380_v51 = vrot.slane %v376_v22, 4  ;;  %v4009_v54 = vpack.c.bf16 %v231_v26, %v231_v26 }
  0x66   :  { %v83_v30 = vsel %vm4775_vm2, 0, %v82_v11  ;;  %v750_v50 = vsel %vm4900_vm9, %v745_v57, %v749_v10  ;;  %v1941_v60 = vor.u32 %v1940_v41, %v1937_v23  ;;  %v145_v33 = vsel %vm4785_vm4, 0, %v144_v17  ;;  %v88_v43 = vld [vmem:[#allocation2 + $0x88] sm:$0x1]  ;;  %v150_v53 = vld [vmem:[#allocation2 + $0x8c] sm:$0x1] }
  0x67   :  { %v4010_v40 = vpack.c.bf16 %v232_v42, %v232_v42  ;;  %84 = vst [vmem:[#allocation2 + $0x78] sm:$0x1] %v83_v30  ;;  %v3699_v59 = vcombine.low %v736_v1, %v750_v50  ;;  %v519_v63 = vsel %vm4866_vm8, %v379_v35, %v518_v12  ;;  %v522_v6 = vsel %vm4775_vm2, %v380_v51, %v521_v20  ;;  %v173_v10 = vld [vmem:[%s6124_s0 + $0x70] sm:$0xff]  ;;  %v524_v16 = vld [vmem:[#allocation2 + $0x68] sm:$0xf] }
  0x68   :  { %v382_v9 = vshrl.u32 %v4009_v54, 16  ;;  %146 = vst [vmem:[#allocation2 + $0x7c] sm:$0x1] %v145_v33  ;;  %520 = vst [vmem:[#allocation2 + $0x60] sm:$0xf] %v519_v63  ;;  %v5251_v11 = vrot.slane %v1941_v60, 4  ;;  %v197_v35 = vmul.f32 %v5210_v7, %v173_v10 }
  0x69   :  { %523 = vst [vmem:[#allocation2 + $0x64] sm:$0x1] %v522_v6  ;;  %v385_v62 = vshll.u32 %v4009_v54, 16  ;;  %v390_v56 = vshrl.u32 %v4010_v40, 16  ;;  %v393_v1 = vshll.u32 %v4010_v40, 16  ;;  %4183 = vmatprep.mubr.bf16.mxu1 %v3699_v59  ;;  %v233_v18 = vmax.f32 %v5160_v28, 0.0 }
  0x6a   :  { %v384_v23 = vrot.slane %v382_v9, 7  ;;  %v86_v12 = vsel %vm4775_vm2, 0, %v85_v25  ;;  %v148_v46 = vsel %vm4785_vm4, 0, %v147_v49  ;;  %v5261_v17 = vld [vmem:[%s6126_s2] ss:$0 sm:$0xff]  ;;  %v89_v28 = vsel %vm4775_vm2, 0, %v88_v43 }
  0x6b   :  { %v527_v27 = vld [vmem:[#allocation2 + $0x6c] sm:$0x1]  ;;  %v392_v52 = vrot.slane %v390_v56, 7  ;;  %87 = vst [vmem:[#allocation2 + $0x80] sm:$0x1] %v86_v12  ;;  %v218_v22 = vadd.f32 %v5261_v17, %v5213_v38  ;;  %v4011_v57 = vpack.c.bf16 %v233_v18, %v233_v18  ;;  %v151_v41 = vsel %vm4785_vm4, 0, %v150_v53 }
  0x6c   :  { %149 = vst [vmem:[#allocation2 + $0x84] sm:$0x1] %v148_v46  ;;  %v387_v20 = vor.u32 %v385_v62, %v384_v23  ;;  %v388_v26 = vrot.slane %v384_v23, 4  ;;  %v530_v21 = vld [vmem:[#allocation2 + $0x70] sm:$0xf]  ;;  %v174_v38 = vld [vmem:[%s6124_s0 + $0x78] sm:$0xff]  ;;  %v1947_v51 = vsel %vm4900_vm9, %v5251_v11, %v5235_v15  ;;  %v219_v6 = vadd.f32 %v5261_v17, %v197_v35 }
  0x6d   :  { %v533_v39 = vld [vmem:[#allocation2 + $0x74] sm:$0x1]  ;;  %90 = vst [vmem:[#allocation2 + $0x88] sm:$0x1] %v89_v28  ;;  %v395_v42 = vor.u32 %v393_v1, %v392_v52  ;;  %v396_v25 = vrot.slane %v392_v52, 4  ;;  %v234_v49 = vmax.f32 %v218_v22, 0.0  ;;  %v198_v9 = vmul.f32 %v5210_v7, %v174_v38 }
  0x6e   :  { %152 = vst [vmem:[#allocation2 + $0x8c] sm:$0x1] %v151_v41  ;;  %v525_v54 = vsel %vm4866_vm8, %v387_v20, %v524_v16  ;;  %v528_v30 = vsel %vm4775_vm2, %v388_v26, %v527_v27  ;;  %v398_v50 = vshrl.u32 %v4011_v57, 16  ;;  %v401_v33 = vshll.u32 %v4011_v57, 16  ;;  %v536_v7 = vld [vmem:[#allocation2 + $0x78] sm:$0xf] }
  0x6f   :  { %526 = vst [vmem:[#allocation2 + $0x68] sm:$0xf] %v525_v54  ;;  %529 = vst [vmem:[#allocation2 + $0x6c] sm:$0x1] %v528_v30  ;;  %v531_v60 = vsel %vm4866_vm8, %v395_v42, %v530_v21  ;;  %v534_v40 = vsel %vm4775_vm2, %v396_v25, %v533_v39  ;;  %v4012_v43 = vpack.c.bf16 %v234_v49, %v234_v49  ;;  %v1808_v53 = vld [vmem:[#allocation2 + $0x60] sm:$0xf] }
  0x70   :  { %v5285_v59 = vld [vmem:[#allocation2 + $0x64] sm:$0x1]  ;;  %v5287_v63 = vld [vmem:[#allocation2 + $0x60] sm:$0xf]  ;;  %532 = vst [vmem:[#allocation2 + $0x70] sm:$0xf] %v531_v60 }
  0x71   :  { %535 = vst [vmem:[#allocation2 + $0x74] sm:$0x1] %v534_v40  ;;  %v1949_v16 = vshrl.u32 %v1808_v53, 16  ;;  %v1952_v56 = vshll.u32 %v1808_v53, 16  ;;  %v1958_v1 = vshll.u32 %v5285_v59, 16  ;;  %v752_v18 = vshrl.u32 %v5287_v63, 16 }
  0x72   :  { %v5296_v23 = vld [vmem:[#allocation2 + $0x64] sm:$0x1]  ;;  %v755_v12 = vshll.u32 %v5287_v63, 16  ;;  %v400_v27 = vrot.slane %v398_v50, 7  ;;  %v406_v52 = vshrl.u32 %v4012_v43, 16  ;;  %v409_v35 = vshll.u32 %v4012_v43, 16 }
  0x73   :  { %v761_v46 = vshll.u32 %v5296_v23, 16  ;;  %v1951_v22 = vrot.slane %v1949_v16, 4  ;;  %v1954_v28 = vrot.slane %v1952_v56, 5  ;;  %v1960_v20 = vrot.slane %v1958_v1, 5  ;;  %v539_v21 = vld [vmem:[#allocation2 + $0x7c] sm:$0x1] }
  0x74   :  { %v754_v26 = vrot.slane %v752_v18, 4  ;;  %v757_v39 = vrot.slane %v755_v12, 5  ;;  %v403_v41 = vor.u32 %v401_v33, %v400_v27  ;;  %v404_v42 = vrot.slane %v400_v27, 4 }
  0x75   :  { %v5301_v57 = vrot.slane %v761_v46, 5  ;;  %v1955_v25 = vor.u32 %v1954_v28, %v1951_v22  ;;  %v5303_v49 = vrot.slane %v406_v52, 7  ;;  %v235_v38 = vmax.f32 %v219_v6, 0.0 }
  0x76   :  { %v5305_v54 = vld [vmem:[#allocation2 + $0x68] sm:$0xf]  ;;  %v5307_v30 = vld [vmem:[#allocation2 + $0x6c] sm:$0x1]  ;;  %v758_v50 = vor.u32 %v757_v39, %v754_v26  ;;  %v537_v40 = vsel %vm4866_vm8, %v403_v41, %v536_v7  ;;  %v540_v53 = vsel %vm4775_vm2, %v404_v42, %v539_v21  ;;  %v5314_v33 = vadd.f32 %v5261_v17, %v198_v9 }
  0x77   :  { %v1810_v60 = vld [vmem:[#allocation2 + $0x68] sm:$0xf]  ;;  %v1956_v16 = vrot.slane %v1955_v25, 4  ;;  %v766_v56 = vshrl.u32 %v5305_v54, 16  ;;  %v769_v43 = vshll.u32 %v5305_v54, 16  ;;  %v775_v6 = vshll.u32 %v5307_v30, 16 }
  0x78   :  { %v5319_v1 = vld [vmem:[#allocation2 + $0x6c] sm:$0x1]  ;;  %538 = vst [vmem:[#allocation2 + $0x78] sm:$0xf] %v537_v40  ;;  %541 = vst [vmem:[#allocation2 + $0x7c] sm:$0x1] %v540_v53  ;;  %v411_v7 = vor.u32 %v409_v35, %v5303_v49  ;;  %v5324_v17 = vpack.c.bf16 %v235_v38, %v235_v38 }
  0x79   :  { %v759_v18 = vrot.slane %v758_v50, 4  ;;  %v1812_v12 = vld [vmem:[#allocation2 + $0x70] sm:$0xf]  ;;  %v5321_v46 = vld [vmem:[#allocation2 + $0x74] sm:$0x1]  ;;  %v1963_v27 = vshrl.u32 %v1810_v60, 16  ;;  %v1961_v9 = vsel %vm4900_vm9, %v1956_v16, %v1960_v20 }
  0x7a   :  { %v768_v52 = vrot.slane %v766_v56, 4  ;;  %v771_v22 = vrot.slane %v769_v43, 5  ;;  %v777_v28 = vrot.slane %v775_v6, 5  ;;  %v5328_v26 = vld [vmem:[#allocation2 + $0x70] sm:$0xf]  ;;  %v3827_v21 = vcombine.low %v1947_v51, %v1961_v9 }
  0x7b   :  { %v764_v39 = vsel %vm4900_vm9, %v759_v18, %v5301_v57  ;;  %v1965_v41 = vrot.slane %v1963_v27, 4  ;;  %v1966_v42 = vshll.u32 %v1810_v60, 16  ;;  %v542_v25 = vld [vmem:[#allocation2 + $0x80] sm:$0xf]  ;;  %v1972_v20 = vshll.u32 %v5319_v1, 16 }
  0x7c   :  { %v772_v35 = vor.u32 %v771_v22, %v768_v52  ;;  %v1977_v38 = vshrl.u32 %v1812_v12, 16  ;;  %v1980_v50 = vshll.u32 %v1812_v12, 16  ;;  %v5339_v40 = vld [vmem:[#allocation2 + $0x74] sm:$0x1]  ;;  %4311 = vmatprep.mubr.bf16.mxu0 %v3827_v21  ;;  %v1986_v16 = vshll.u32 %v5321_v46, 16 }
  0x7d   :  { %v1968_v53 = vrot.slane %v1966_v42, 5  ;;  %v780_v15 = vshrl.u32 %v5328_v26, 16  ;;  %v783_v11 = vshll.u32 %v5328_v26, 16  ;;  %v1974_v57 = vrot.slane %v1972_v20, 5 }
  0x7e   :  { %v773_v51 = vrot.slane %v772_v35, 4  ;;  %v1979_v56 = vrot.slane %v1977_v38, 4  ;;  %v1982_v60 = vrot.slane %v1980_v50, 5  ;;  %v1988_v6 = vrot.slane %v1986_v16, 5  ;;  %v545_v35 = vld [vmem:[#allocation2 + $0x84] sm:$0x1] }
  0x7f   :  { %v1969_v43 = vor.u32 %v1968_v53, %v1965_v41  ;;  %v5344_v18 = vld [vmem:[#allocation2 + $0x78] sm:$0xf]  ;;  %v5346_v27 = vld [vmem:[#allocation2 + $0x7c] sm:$0x1]  ;;  %v782_v12 = vrot.slane %v780_v15, 4  ;;  %v543_v9 = vsel %vm4866_vm8, %v411_v7, %v542_v25  ;;  %v785_v21 = vrot.slane %v783_v11, 5 }
  0x80   :  { %v778_v52 = vsel %vm4900_vm9, %v773_v51, %v777_v28  ;;  %v1983_v22 = vor.u32 %v1982_v60, %v1979_v56  ;;  %v789_v42 = vshll.u32 %v5339_v40, 16  ;;  %544 = vst [vmem:[#allocation2 + $0x80] sm:$0xf] %v543_v9  ;;  %v1814_v20 = vld [vmem:[#allocation2 + $0x78] sm:$0xf]  ;;  %v794_v50 = vshrl.u32 %v5344_v18, 16 }
  0x81   :  { %v3700_v41 = vcombine.low %v764_v39, %v778_v52  ;;  %v1970_v38 = vrot.slane %v1969_v43, 4  ;;  %v797_v53 = vshll.u32 %v5344_v18, 16  ;;  %v5355_v16 = vld [vmem:[#allocation2 + $0x7c] sm:$0x1]  ;;  %v786_v7 = vor.u32 %v785_v21, %v782_v12  ;;  %v91_v51 = vld [vmem:[#allocation2 + $0x90] sm:$0x1] }
  0x82   :  { %v1984_v15 = vrot.slane %v1983_v22, 4  ;;  %v791_v25 = vrot.slane %v789_v42, 5  ;;  %v803_v28 = vshll.u32 %v5346_v27, 16  ;;  %v796_v56 = vrot.slane %v794_v50, 4 }
  0x83   :  { %4184 = vmatmul.mubr.bf16.gmra.mrb[8].mxu1 %v3700_v41  ;;  %v1975_v11 = vsel %vm4900_vm9, %v1970_v38, %v1974_v57  ;;  %v799_v60 = vrot.slane %v797_v53, 5  ;;  %v412_v39 = vrot.slane %v5303_v49, 4  ;;  %v787_v9 = vrot.slane %v786_v7, 4 }
  0x84   :  { %v1989_v43 = vsel %vm4900_vm9, %v1984_v15, %v1988_v6  ;;  %v805_v52 = vrot.slane %v803_v28, 5  ;;  %v1991_v62 = vshrl.u32 %v1814_v20, 16  ;;  %v1994_v42 = vshll.u32 %v1814_v20, 16 }
  0x85   :  { %v3828_v22 = vcombine.low %v1975_v11, %v1989_v43  ;;  %v800_v12 = vor.u32 %v799_v60, %v796_v56  ;;  %v546_v21 = vsel %vm4775_vm2, %v412_v39, %v545_v35  ;;  %v792_v41 = vsel %vm4900_vm9, %v787_v9, %v791_v25  ;;  %v153_v35 = vld [vmem:[#allocation2 + $0x94] sm:$0x1]  ;;  %v548_v39 = vld [vmem:[#allocation2 + $0x88] sm:$0xf] }
  0x86   :  { %547 = vst [vmem:[#allocation2 + $0x84] sm:$0x1] %v546_v21  ;;  %v1993_v57 = vrot.slane %v1991_v62, 4  ;;  %v2000_v38 = vshll.u32 %v5355_v16, 16  ;;  %v414_v49 = vshrl.u32 %v5324_v17, 16  ;;  %v1996_v53 = vrot.slane %v1994_v42, 5 }
  0x87   :  { %4312 = vmatmul.mubr.bf16.gmra.mrb[8].mxu0 %v3828_v22  ;;  %v801_v6 = vrot.slane %v800_v12, 4  ;;  %v1816_v50 = vld [vmem:[#allocation2 + $0x80] sm:$0xf]  ;;  %v417_v15 = vshll.u32 %v5324_v17, 16  ;;  %v92_v7 = vsel %vm4775_vm2, 0, %v91_v51 }
  0x88   :  { %v2002_v20 = vrot.slane %v2000_v38, 5  ;;  %v2005_v28 = vshrl.u32 %v1816_v50, 16  ;;  %v2008_v11 = vshll.u32 %v1816_v50, 16  ;;  %v416_v25 = vrot.slane %v414_v49, 7  ;;  %v5372_v56 = vld [vmem:[#allocation2 + $0x80] sm:$0xf] }
  0x89   :  { %93 = vst [vmem:[#allocation2 + $0x90] sm:$0x1] %v92_v7  ;;  %v806_v62 = vsel %vm4900_vm9, %v801_v6, %v805_v52  ;;  %v1997_v60 = vor.u32 %v1996_v53, %v1993_v57  ;;  %v808_v43 = vshrl.u32 %v5372_v56, 16  ;;  %v811_v17 = vshll.u32 %v5372_v56, 16  ;;  %v551_v21 = vld [vmem:[#allocation2 + $0x8c] sm:$0x1] }
  0x8a   :  { %v3701_v9 = vcombine.low %v792_v41, %v806_v62  ;;  %v2007_v22 = vrot.slane %v2005_v28, 4  ;;  %v2010_v51 = vrot.slane %v2008_v11, 5  ;;  %v419_v12 = vor.u32 %v417_v15, %v416_v25  ;;  %v2256_v42 = vld [vmem:[#allocation2 + $0x8] sm:$0xe]  ;;  %v2257_v38 = vld [vmem:[#allocation2 + $0x10] sm:$0xe] }
  0x8b   :  { %v1998_v49 = vrot.slane %v1997_v60, 4  ;;  %v420_v50 = vrot.slane %v416_v25, 4  ;;  %v810_v10 = vrot.slane %v808_v43, 4  ;;  %v813_v7 = vrot.slane %v811_v17, 5  ;;  %v4690_v6 = vld [vmem:[#allocation2 + $0x24] sm:$0x1] }
  0x8c   :  { %4187 = vmatprep.mubr.bf16.mxu1 %v3701_v9  ;;  %v2011_v37 = vor.u32 %v2010_v51, %v2007_v22  ;;  %v549_v52 = vsel %vm4866_vm8, %v419_v12, %v548_v39  ;;  %v154_v57 = vsel %vm4785_vm4, 0, %v153_v35  ;;  %v236_v41 = vmax.f32 %v5314_v33, 0.0  ;;  %v2258_v11 = vld [vmem:[#allocation2 + $0x18] sm:$0xe]  ;;  %v2259_v39 = vld [vmem:[#allocation2 + $0x20] sm:$0xe] }
  0x8d   :  { %v2318_v53 = vrot.slane %v4690_v6, 5  ;;  %v5383_v15 = vld [vmem:[#allocation2 + $0x84] sm:$0x1]  ;;  %550 = vst [vmem:[#allocation2 + $0x88] sm:$0xf] %v549_v52  ;;  %v552_v28 = vsel %vm4775_vm2, %v420_v50, %v551_v21  ;;  %v2003_v33 = vsel %vm4900_vm9, %v1998_v49, %v2002_v20  ;;  %v3839_v43 = vrot.slane %v2256_v42, 9 }
  0x8e   :  { %155 = vst [vmem:[#allocation2 + $0x94] sm:$0x1] %v154_v57  ;;  %v2012_v25 = vrot.slane %v2011_v37, 4  ;;  %v2014_v62 = vshll.u32 %v5383_v15, 16  ;;  %553 = vst [vmem:[#allocation2 + $0x8c] sm:$0x1] %v552_v28  ;;  %v4014_v60 = vpack.c.bf16 %v236_v41, %v236_v41  ;;  %v814_v22 = vor.u32 %v813_v7, %v810_v10 }
  0x8f   :  { %v5390_v35 = vld [vmem:[#allocation2 + $0x84] sm:$0x1]  ;;  %v3840_v17 = vrot.slane %v2257_v38, 9  ;;  %v5401_v21 = vsel %vm5393_vm12, %v3839_v43, %v2306_v31  ;;  %v3841_v10 = vrot.slane %v2258_v11, 9  ;;  %v3842_v42 = vrot.slane %v2259_v39, 9 }
  0x90   :  { %v2016_v9 = vrot.slane %v2014_v62, 5  ;;  %v422_v51 = vshrl.u32 %v4014_v60, 16  ;;  %v425_v12 = vshll.u32 %v4014_v60, 16  ;;  %v817_v49 = vshll.u32 %v5390_v35, 16  ;;  %v554_v31 = vld [vmem:[#allocation2 + $0x90] sm:$0xf] }
  0x91   :  { %v5407_v20 = vsel %vm5393_vm12, %v3840_v17, %v2310_v2  ;;  %v5418_v34 = vsel %vm5393_vm12, %v3841_v10, %v2314_v55  ;;  %v5422_v2 = vsel %vm5393_vm12, %v3842_v42, %v2318_v53  ;;  %v815_v57 = vrot.slane %v814_v22, 4  ;;  %v2262_v43 = vld [vmem:[#allocation2 + $0x38] sm:$0xe]  ;;  %v2263_v17 = vld [vmem:[#allocation2 + $0x40] sm:$0xe] }
  0x92   :  { %v2017_v38 = vsel %vm4900_vm9, %v2012_v25, %v2016_v9  ;;  %v424_v50 = vrot.slane %v422_v51, 7  ;;  %v819_v9 = vrot.slane %v817_v49, 5  ;;  %v2264_v10 = vld [vmem:[#allocation2 + $0x58] sm:$0xe]  ;;  %v2265_v11 = vld [vmem:[#allocation2 + $0x60] sm:$0xe] }
  0x93   :  { %v3829_v7 = vcombine.low %v2003_v33, %v2017_v38 }
  0x94   :  { %v5424_v52 = vld [vmem:[#allocation2 + $0x88] sm:$0xf]  ;;  %v427_v41 = vor.u32 %v425_v12, %v424_v50  ;;  %v428_v6 = vrot.slane %v424_v50, 4  ;;  %v820_v49 = vsel %vm4900_vm9, %v815_v57, %v819_v9 }
  0x95   :  { %v557_v28 = vld [vmem:[#allocation2 + $0x94] sm:$0x1]  ;;  %4315 = vmatprep.mubr.bf16.mxu0 %v3829_v7  ;;  %v5428_v25 = vld [vmem:[#allocation2 + $0x8c] sm:$0x1]  ;;  %v822_v8 = vshrl.u32 %v5424_v52, 16  ;;  %v825_v55 = vshll.u32 %v5424_v52, 16 }
  0x96   :  { %6143 = vst [vmem:[#allocation4_spill] sm:$0xff] %v5428_v25  ;;  %v1818_v62 = vld [vmem:[#allocation2 + $0x88] sm:$0xf]  ;;  %v831_v53 = vshll.u32 %v5428_v25, 16  ;;  %v555_v60 = vsel %vm4866_vm8, %v427_v41, %v554_v31  ;;  %v558_v39 = vsel %vm4775_vm2, %v428_v6, %v557_v28  ;;  %v5437_v50 = vld [vmem:[#allocation2 + $0x8c] sm:$0x1] }
  0x97   :  { %v2019_v33 = vshrl.u32 %v1818_v62, 16  ;;  %v824_v22 = vrot.slane %v822_v8, 4  ;;  %v827_v51 = vrot.slane %v825_v55, 5  ;;  %556 = vst [vmem:[#allocation2 + $0x90] sm:$0xf] %v555_v60  ;;  %v2022_v12 = vshll.u32 %v1818_v62, 16 }
  0x98   :  { %559 = vst [vmem:[#allocation2 + $0x94] sm:$0x1] %v558_v39  ;;  %v833_v38 = vrot.slane %v831_v53, 5  ;;  %v3845_v31 = vrot.slane %v2262_v43, 9  ;;  %v2330_v41 = vrot.slane %v5167_v45, 5  ;;  %v3846_v6 = vrot.slane %v2263_v17, 9 }
  0x99   :  { %v828_v42 = vor.u32 %v827_v51, %v824_v22  ;;  %v2021_v7 = vrot.slane %v2019_v33, 4  ;;  %v2024_v5 = vrot.slane %v2022_v12, 5  ;;  %v2334_v28 = vrot.slane %v5176_v58, 5  ;;  %v4691_v12 = vld [vmem:[#allocation2 + $0x4] sm:$0x1] }
  0x9a   :  { %v3847_v55 = vrot.slane %v2264_v10, 9  ;;  %v2028_v62 = vshll.u32 %v5437_v50, 16  ;;  %v5446_v53 = vsel %vm5393_vm12, %v3845_v31, %v2330_v41  ;;  %v2338_v45 = vrot.slane %v5223_v4, 5  ;;  %v4693_v31 = vld [vmem:[#allocation2 + $0x14] sm:$0x1] }
  0x9b   :  { %v829_v8 = vrot.slane %v828_v42, 4  ;;  %v5450_v60 = vsel %vm5393_vm12, %v3846_v6, %v2334_v28  ;;  %v2025_v39 = vor.u32 %v2024_v5, %v2021_v7  ;;  %v3848_v33 = vrot.slane %v2265_v11, 9  ;;  %v4692_v7 = vld [vmem:[#allocation2 + $0xc] sm:$0x1] }
  0x9c   :  { %v5461_v22 = vsel %vm5393_vm12, %v3847_v55, %v2338_v45  ;;  %v2342_v51 = vrot.slane %v5285_v59, 5  ;;  %v1275_v4 = vrot.slane %v4691_v12, 5  ;;  %v1279_v5 = vrot.slane %v4692_v7, 5  ;;  %v2260_v55 = vld [vmem:[#allocation2 + $0x28] sm:$0xe] }
  0x9d   :  { %v834_v58 = vsel %vm4900_vm9, %v829_v8, %v833_v38  ;;  %v1283_v11 = vrot.slane %v4693_v31, 5  ;;  %v2030_v41 = vrot.slane %v2028_v62, 5  ;;  %v2026_v28 = vrot.slane %v2025_v39, 4  ;;  %v4694_v12 = vld [vmem:[#allocation2 + $0x1c] sm:$0x1] }
  0x9e   :  { %v3702_v43 = vcombine.low %v820_v49, %v834_v58  ;;  %v1820_v17 = vld [vmem:[#allocation2 + $0x90] sm:$0xf]  ;;  %v5467_v6 = vsel %vm5393_vm12, %v3848_v33, %v2342_v51  ;;  %v6144_v59 = vcombine.low %v4839_v48, %v4913_v3  ;;  %v1223_v31 = vld [vmem:[#allocation2 + $0x8] sm:$0xe]  ;;  %v4696_v51 = vld [vmem:[#allocation2 + $0x18] sm:$0xf] }
  0x9f   :  { %v5457_v9 = vld [vmem:[#allocation2 + $0x94] sm:$0x1]  ;;  %v2033_v10 = vshrl.u32 %v1820_v17, 16  ;;  %v2036_v42 = vshll.u32 %v1820_v17, 16  ;;  %v2261_v58 = vld [vmem:[#allocation2 + $0x30] sm:$0xe] }
  0xa0   :  { %v2042_v38 = vshll.u32 %v5457_v9, 16  ;;  %4188 = vmatmul.mubr.bf16.gmra.mrb[12].mxu1 %v3702_v43  ;;  %v1222_v17 = vld [vmem:[#allocation2] sm:$0xe]  ;;  %v1287_v43 = vrot.slane %v4694_v12, 5  ;;  %v4695_v33 = vld [vmem:[#allocation2 + $0x10] sm:$0xf] }
  0xa1   :  { %v2035_v49 = vrot.slane %v2033_v10, 4  ;;  %v2038_v8 = vrot.slane %v2036_v42, 5  ;;  %4207 = vmatprep.mubr.bf16.mxu1 %v6144_v59  ;;  %v3712_v39 = vcombine.low %v4695_v33, %v4696_v51  ;;  %v4628_v10 = vld [vmem:[%s6123_s3 + $0x88] sm:$0xff]   ;;  %v3843_v48 = vrot.slane %v2260_v55, 9  ;;  %v1224_v3 = vld [vmem:[#allocation2 + $0x10] sm:$0xe] }
  0xa2   :  { %v2044_v7 = vrot.slane %v2042_v38, 5  ;;  %v2031_v42 = vsel %vm4900_vm9, %v2026_v28, %v2030_v41  ;;  %v4697_v45 = vld [vmem:[#allocation2 + $0x2c] sm:$0x1]  ;;  %v3727_v12 = vrot.slane %v1222_v17, 9  ;;  %v4698_v33 = vld [vmem:[#allocation2 + $0x34] sm:$0x1]  ;;  %v6145_v28 = vcombine.low %v4963_v32, %v5057_v29 }
  0xa3   :  { %v2039_v62 = vor.u32 %v2038_v8, %v2035_v49  ;;  %v2322_v57 = vrot.slane %v4697_v45, 5  ;;  %v3728_v49 = vrot.slane %v1223_v31, 9  ;;  %v3844_v8 = vrot.slane %v2261_v58, 9 }
  0xa4   :  { %v2326_v51 = vrot.slane %v4698_v33, 5  ;;  %v3729_v19 = vrot.slane %v1224_v3, 9  ;;  %v5483_v55 = vsel %vm5393_vm12, %v3727_v12, %v1275_v4  ;;  %v3730_v17 = vrot.slane %v1225_v13, 9  ;;  %v4631_v4 = vld [vmem:[%s6123_s3 + $0x90] sm:$0xff]   ;;  %v5513_v13 = vld [vmem:[#allocation2 + $0x78] sm:$0xe] }
  0xa5   :  { %v2040_v59 = vrot.slane %v2039_v62, 4  ;;  %v5487_v41 = vsel %vm5393_vm12, %v3728_v49, %v1279_v5  ;;  %v5502_v5 = vld [vmem:[#allocation2 + $0x68] sm:$0xe]  ;;  %v6146_v32 = vcombine.low %v5401_v21, %v5407_v20  ;;  %v2323_v29 = vsel %vm5393_vm12, %v3843_v48, %v2322_v57  ;;  %v5522_v21 = vld [vmem:[#allocation2 + $0x80] sm:$0xe] }
  0xa6   :  { %v3759_v45 = vcombine.low %v5483_v55, %v5487_v41  ;;  %v5497_v58 = vsel %vm5393_vm12, %v3729_v19, %v1283_v11  ;;  %v2327_v19 = vsel %vm5393_vm12, %v3844_v8, %v2326_v51  ;;  %v4634_v11 = vld [vmem:[%s6123_s3 + $0x98] sm:$0xff]   ;;  %v64_v57 = vld [vmem:[#allocation2 + $0x48] sm:$0x1]  ;;  %v4699_v62 = vld [vmem:[#allocation2 + $0x50] sm:$0xf]  ;;  %v3849_v31 = vrot.slane %v5502_v5, 9 }
  0xa7   :  { %v2045_v38 = vsel %vm4900_vm9, %v2040_v59, %v2044_v7  ;;  %v3715_v7 = vcombine.low %v4699_v62, %v5205_v24  ;;  %v4629_v48 = vld [vmem:[%s6123_s3 + $0x188] sm:$0xff]   ;;  %v3873_v3 = vcombine.low %v2323_v29, %v2327_v19  ;;  %v2350_v24 = vrot.slane %v5321_v46, 5  ;;  %v5539_v12 = vld [vmem:[#allocation2 + $0x90] sm:$0xe] }
  0xa8   :  { %v3830_v25 = vcombine.low %v2031_v42, %v2045_v38  ;;  %4208 = vmatmul.mubr.bf16.vlgmr.msra.gmra.mrb[0].mxu1 %v3712_v39  ;;  %v5528_v39 = vld [vmem:[#allocation2 + $0x88] sm:$0xe]  ;;  %v2346_v42 = vrot.slane %v5319_v1, 5  ;;  %v3851_v59 = vrot.slane %v5513_v13, 9  ;;  %v6147_v49 = vcombine.low %v5119_v44, %v5148_v0  ;;  %v4637_v38 = vld [vmem:[%s6123_s3 + $0xa0] sm:$0xff]   ;;  %v4632_v44 = vld [vmem:[%s6123_s3 + $0x190] sm:$0xff]  }
  0xa9   :  { %4224 = vmatpush3.bf16.msra.mxu1 %v5181_v36  ;;  %4211 = vmatprep.mubr.bf16.mxu1 %v6145_v28  ;;  %v5511_v36 = vld [vmem:[#allocation2 + $0x70] sm:$0xe]  ;;  %v2354_v8 = vrot.slane %v5355_v16, 5  ;;  %v3852_v1 = vrot.slane %v5522_v21, 9  ;;  %v2358_v46 = vrot.slane %v5383_v15, 5  ;;  %v3853_v33 = vrot.slane %v5528_v39, 9 }
  0xaa   :  { %4316 = vmatmul.mubr.bf16.gmra.mrb[12].mxu0 %v3830_v25  ;;  %4225 = vmatprep.subr.bf16.mxu1 %v4628_v10  ;;  %v5517_v25 = vsel %vm5393_vm12, %v3730_v17, %v1287_v43  ;;  %v65_v43 = vsel %vm4775_vm2, 0, %v64_v57  ;;  %v6148_v51 = vcombine.low %v5418_v34, %v5422_v2  ;;  %v1232_v0 = vld [vmem:[#allocation2 + $0x60] sm:$0xe]  ;;  %v2362_v28 = vrot.slane %v5437_v50, 5  ;;  %v1233_v17 = vld [vmem:[#allocation2 + $0x68] sm:$0xe] }
  0xab   :  { %4335 = vmatprep.mubr.bf16.mxu0 %v6146_v32  ;;  %v3760_v20 = vcombine.low %v5497_v58, %v5517_v25  ;;  %66 = vst [vmem:[#allocation2 + $0x48] sm:$0x1] %v65_v43  ;;  %v1315_v15 = vrot.slane %v5296_v23, 5  ;;  %v1319_v5 = vrot.slane %v5307_v30, 5  ;;  %v3716_v34 = vcombine.low %v5287_v63, %v5305_v54  ;;  %v4640_v2 = vld [vmem:[%s6123_s3 + $0xa8] sm:$0xff]   ;;  %v4635_v54 = vld [vmem:[%s6123_s3 + $0x198] sm:$0xff]  }
  0xac   :  { %v3854_v32 = vrot.slane %v5539_v12, 9  ;;  %v3717_v29 = vcombine.low %v5328_v26, %v5344_v18  ;;  %v2366_v19 = vrot.slane %v5457_v9, 5  ;;  %v5570_v23 = vld [vmem:[#allocation2 + $0x20] sm:$0xe]  ;;  %v1323_v63 = vrot.slane %v5339_v40, 5  ;;  %v4643_v40 = vld [vmem:[%s6123_s3 + $0xb0] sm:$0xff]  }
  0xad   :  { %4226 = vmatpush3.bf16.msra.mxu1 %v4628_v10  ;;  %v3850_v10 = vrot.slane %v5511_v36, 9  ;;  %v5580_v36 = vld [vmem:[#allocation2 + $0x28] sm:$0xe]  ;;  %v1235_v57 = vld [vmem:[#allocation2 + $0x78] sm:$0xe]  ;;  %v3731_v62 = vrot.slane %v5570_v23, 9 }
  0xae   :  { %4227 = vmatprep.subr.bf16.mxu1 %v4631_v4  ;;  %v3740_v43 = vrot.slane %v1235_v57, 9  ;;  %v4648_v50 = vld [vmem:[%s6123_s3 + $0xc0] sm:$0xff]   ;;  %v1228_v23 = vld [vmem:[#allocation2 + $0x30] sm:$0xe]  ;;  %v1229_v12 = vld [vmem:[#allocation2 + $0x38] sm:$0xe] }
  0xaf   :  { %v4644_v55 = vld [vmem:[%s6123_s3 + $0x1b0] sm:$0xff]   ;;  %v4652_v57 = vld [vmem:[%s6123_s3 + $0xc8] sm:$0xff]   ;;  %v2823_v25 = vld [vmem:[#allocation2 + $0x18] sm:$0xf] }
  0xb0   :  { %4212 = vmatmul.mubr.bf16.gmra.mrb[4].mxu1 %v6147_v49  ;;  %v2351_v49 = vsel %vm5393_vm12, %v3850_v10, %v2350_v24  ;;  %v3732_v10 = vrot.slane %v5580_v36, 9  ;;  %v4703_v36 = vld [vmem:[#allocation2 + $0x3c] sm:$0x1] }
  0xb1   :  { %4228 = vmatpush3.bf16.msra.mxu1 %v4631_v4  ;;  %4215 = vmatprep.mubr.bf16.mxu1 %v3715_v7  ;;  %v3737_v4 = vrot.slane %v1232_v0, 9  ;;  %v4638_v0 = vld [vmem:[%s6123_s3 + $0x1a0] sm:$0xff]  }
  0xb2   :  { %4336 = vmatmul.mubr.bf16.vlgmr.msra.gmra.mrb[0].mxu0 %v6148_v51  ;;  %4229 = vmatprep.subr.bf16.mxu1 %v4634_v11  ;;  %v6149_v51 = vcombine.low %v5446_v53, %v5450_v60  ;;  %v6150_v53 = vcombine.low %v5461_v22, %v5467_v6  ;;  %v3718_v60 = vcombine.low %v5372_v56, %v5424_v52  ;;  %v4646_v52 = vld [vmem:[%s6123_s3 + $0xb8] sm:$0xff]  }
  0xb3   :  { %4352 = vmatpush3.bf16.msra.mxu0 %v5195_v47  ;;  %4339 = vmatprep.mubr.bf16.mxu0 %v3873_v3  ;;  %v3738_v47 = vrot.slane %v1233_v17, 9  ;;  %v5574_v30 = vsel %vm5393_vm12, %v3737_v4, %v1315_v15  ;;  %v1327_v3 = vrot.slane %v5346_v27, 5  ;;  %v4700_v17 = vld [vmem:[#allocation2 + $0x24] sm:$0x1]  ;;  %v1237_v15 = vld [vmem:[#allocation2 + $0x88] sm:$0xe]  ;;  %v2359_v56 = vsel %vm5393_vm12, %v3852_v1, %v2358_v46 }
  0xb4   :  { %4353 = vmatprep.subr.bf16.mxu0 %v4629_v48  ;;  %v1291_v4 = vrot.slane %v4700_v17, 5  ;;  %v3742_v6 = vrot.slane %v1237_v15, 9  ;;  %v2363_v46 = vsel %vm5393_vm12, %v3853_v33, %v2362_v28  ;;  %v1230_v33 = vld [vmem:[#allocation2 + $0x50] sm:$0xe]  ;;  %v1231_v28 = vld [vmem:[#allocation2 + $0x58] sm:$0xe] }
  0xb5   :  { %4230 = vmatpush3.bf16.msra.mxu1 %v4634_v11  ;;  %v5584_v26 = vsel %vm5393_vm12, %v3738_v47, %v1319_v5  ;;  %v1234_v11 = vld [vmem:[#allocation2 + $0x70] sm:$0xe]  ;;  %v6151_v5 = vld [vmem:[#allocation4_spill] sm:$0xff]  ;;  %v4658_v15 = vld [vmem:[%s6123_s3 + $0xd8] sm:$0xff]  }
  0xb6   :  { %4231 = vmatprep.subr.bf16.mxu1 %v4637_v38  ;;  %v3764_v18 = vcombine.low %v5574_v30, %v5584_v26  ;;  %v3739_v7 = vrot.slane %v1234_v11, 9  ;;  %v4701_v47 = vld [vmem:[#allocation2 + $0x2c] sm:$0x1]  ;;  %v1292_v39 = vsel %vm5393_vm12, %v3731_v62, %v1291_v4  ;;  %v1303_v11 = vrot.slane %v4703_v36, 5  ;;  %v4704_v62 = vld [vmem:[#allocation2 + $0x54] sm:$0x1] }
  0xb7   :  { %4354 = vmatpush3.bf16.msra.mxu0 %v4629_v48  ;;  %v2347_v48 = vsel %vm5393_vm12, %v3849_v31, %v2346_v42  ;;  %v5609_v31 = vsel %vm5393_vm12, %v3740_v43, %v1327_v3  ;;  %v1331_v42 = vrot.slane %v5390_v35, 5  ;;  %v2355_v35 = vsel %vm5393_vm12, %v3851_v59, %v2354_v8  ;;  %v4705_v3 = vld [vmem:[#allocation2 + $0x5c] sm:$0x1]  ;;  %v4657_v36 = vld [vmem:[#allocation2 + $0x40] ss:$8 sps:$4 sm:$0xff]  }
  0xb8   :  { %4355 = vmatprep.subr.bf16.mxu0 %v4632_v44  ;;  %4216 = vmatmul.mubr.bf16.gmra.mrb[8].mxu1 %v3716_v34  ;;  %v5605_v27 = vsel %vm5393_vm12, %v3739_v7, %v1323_v63  ;;  %v1335_v34 = vrot.slane %v6151_v5, 5  ;;  %v1295_v16 = vrot.slane %v4701_v47, 5  ;;  %v3877_v8 = vcombine.low %v2355_v35, %v2359_v56  ;;  %v4651_v5 = vld [vmem:[#allocation2 + $0x20] ss:$8 sps:$4 sm:$0xff]   ;;  %v5700_v56 = vld [vmem:[#allocation2 + $0x14] sm:$0x1] }
  0xb9   :  { %4232 = vmatpush3.bf16.msra.mxu1 %v4637_v38  ;;  %4219 = vmatprep.mubr.bf16.mxu1 %v3717_v29  ;;  %v3765_v24 = vcombine.low %v5605_v27, %v5609_v31  ;;  %v1236_v38 = vld [vmem:[#allocation2 + $0x80] sm:$0xe]  ;;  %v3876_v29 = vcombine.low %v2347_v48, %v2351_v49  ;;  %v3733_v63 = vrot.slane %v1228_v23, 9  ;;  %v1307_v7 = vrot.slane %v4704_v62, 5  ;;  %v4649_v49 = vld [vmem:[#allocation2 + $0x10] ss:$8 sps:$4 sm:$0xff]  }
  0xba   :  { %4340 = vmatmul.mubr.bf16.gmra.mrb[4].mxu0 %v6149_v51  ;;  %4233 = vmatprep.subr.bf16.mxu1 %v4640_v2  ;;  %v3741_v22 = vrot.slane %v1236_v38, 9  ;;  %v5642_v59 = vsel %vm5393_vm12, %v3742_v6, %v1335_v34  ;;  %v1296_v9 = vsel %vm5393_vm12, %v3732_v10, %v1295_v16  ;;  %v3736_v43 = vrot.slane %v1231_v28, 9  ;;  %v4647_v51 = vld [vmem:[%s6123_s3 + $0x1b8] sm:$0xff]   ;;  %v4650_v10 = vld [vmem:[%s6123_s3 + $0x1c0] sm:$0xff]   ;;  %v4653_v16 = vld [vmem:[%s6123_s3 + $0x1c8] sm:$0xff]  }
  0xbb   :  { %4356 = vmatpush3.bf16.msra.mxu0 %v4632_v44  ;;  %4343 = vmatprep.mubr.bf16.mxu0 %v6150_v53  ;;  %v94_v44 = vld [vmem:[#allocation2 + $0x98] sm:$0x1]  ;;  %v1311_v48 = vrot.slane %v4705_v3, 5  ;;  %v5702_v6 = vld [vmem:[#allocation2 + $0x1c] sm:$0x1]  ;;  %v2863_v23 = vshll.u32 %v5700_v56, 16 }
  0xbc   :  { %4357 = vmatprep.subr.bf16.mxu0 %v4635_v54  ;;  %v95_v13 = vsel %vm4775_vm2, 0, %v94_v44  ;;  %v5638_v21 = vsel %vm5393_vm12, %v3741_v22, %v1331_v42  ;;  %v4654_v42 = vld [vmem:[%s6123_s3 + $0xd0] sm:$0xff]   ;;  %v2871_v22 = vshll.u32 %v2823_v25, 16  ;;  %v5717_v28 = vld [vmem:[#allocation2 + $0x24] sm:$0x1] }
  0xbd   :  { %4234 = vmatpush3.bf16.msra.mxu1 %v4640_v2  ;;  %96 = vst [vmem:[#allocation2 + $0x98] sm:$0x1] %v95_v13  ;;  %v3766_v1 = vcombine.low %v5638_v21, %v5642_v59  ;;  %v2367_v2 = vsel %vm5393_vm12, %v3854_v32, %v2366_v19  ;;  %v3761_v19 = vcombine.low %v1292_v39, %v1296_v9  ;;  %v4655_v34 = vld [vmem:[#allocation2 + $0x30] ss:$8 sps:$4 sm:$0xff]   ;;  %v126_v13 = vld [vmem:[#allocation2 + $0x4c] sm:$0x1] }
  0xbe   :  { %4235 = vmatprep.subr.bf16.mxu1 %v4643_v40  ;;  %v3878_v41 = vcombine.low %v2363_v46, %v2367_v2  ;;  %v1312_v58 = vsel %vm5393_vm12, %v3736_v43, %v1311_v48  ;;  %v127_v46 = vsel %vm4785_vm4, 0, %v126_v13  ;;  %v4656_v2 = vld [vmem:[%s6123_s3 + $0x1d0] sm:$0xff]   ;;  %v2873_v9 = vrot.slane %v2871_v22, 5  ;;  %v5731_v48 = vld [vmem:[#allocation2 + $0x2c] sm:$0x1]  ;;  %v4662_v26 = vld [vmem:[%s6123_s3 + $0x1e0] sm:$0xff]  }
  0xbf   :  { %4358 = vmatpush3.bf16.msra.mxu0 %v4635_v54  ;;  %v3734_v54 = vrot.slane %v1229_v12, 9  ;;  %v2877_v12 = vshll.u32 %v5702_v6, 16  ;;  %128 = vst [vmem:[#allocation2 + $0x4c] sm:$0x1] %v127_v46  ;;  %v2833_v30 = vld [vmem:[#allocation2 + $0x40] sm:$0xf] }
  0xc0   :  { %4359 = vmatprep.subr.bf16.mxu0 %v4638_v0  ;;  %4220 = vmatmul.mubr.bf16.gmra.mrb[12].mxu1 %v3718_v60  ;;  %v4663_v27 = vld [vmem:[#allocation2 + $0x70] ss:$8 sps:$4 sm:$0xff]   ;;  %v2837_v13 = vld [vmem:[#allocation2 + $0x60] sm:$0xf] }
  0xc1   :  { %4236 = vmatpush3.bf16.msra.mxu1 %v4643_v40  ;;  %4239 = vmatprep.mubr.bf16.mxu1 %v3759_v45  ;;  %v4702_v45 = vld [vmem:[#allocation2 + $0x34] sm:$0x1]  ;;  %v3735_v40 = vrot.slane %v1230_v33, 9  ;;  %v1304_v4 = vsel %vm5393_vm12, %v3734_v54, %v1303_v11  ;;  %v4661_v54 = vld [vmem:[#allocation2 + $0x60] ss:$8 sps:$4 sm:$0xff]   ;;  %v4659_v11 = vld [vmem:[%s6123_s3 + $0x1d8] sm:$0xff]  }
  0xc2   :  { %4344 = vmatmul.mubr.bf16.gmra.mrb[8].mxu0 %v3876_v29  ;;  %4237 = vmatprep.subr.bf16.mxu1 %v4646_v52  ;;  %v1299_v32 = vrot.slane %v4702_v45, 5  ;;  %v2825_v29 = vld [vmem:[#allocation2 + $0x20] sm:$0xf]  ;;  %v4672_v31 = vld [vmem:[#allocation2 + $0x8] ss:$8 sps:$4 sm:$0xff]  }
  0xc3   :  { %4360 = vmatpush3.bf16.msra.mxu0 %v4638_v0  ;;  %4347 = vmatprep.mubr.bf16.mxu0 %v3877_v8  ;;  %v2821_v0 = vld [vmem:[#allocation2 + $0x10] sm:$0xf]  ;;  %v1308_v53 = vsel %vm5393_vm12, %v3735_v40, %v1307_v7  ;;  %v2827_v8 = vld [vmem:[#allocation2 + $0x28] sm:$0xf]  ;;  %v2882_v45 = vshrl.u32 %v2825_v29, 16  ;;  %v5727_v40 = vrot.slane %v2877_v12, 5 }
  0xc4   :  { %4361 = vmatprep.subr.bf16.mxu0 %v4641_v14  ;;  %v1300_v17 = vsel %vm5393_vm12, %v3733_v63, %v1299_v32  ;;  %v2857_v60 = vshll.u32 %v2821_v0, 16  ;;  %v3763_v35 = vcombine.low %v1308_v53, %v1312_v58  ;;  %v2885_v32 = vshll.u32 %v2825_v29, 16  ;;  %v5747_v58 = vld [vmem:[#allocation2 + $0x34] sm:$0x1]  ;;  %v4665_v29 = vld [vmem:[%s6123_s3 + $0x1e8] sm:$0xff]   ;;  %v5790_v21 = vld [vmem:[%s6123_s3 + $0x200] sm:$0xff]  }
  0xc5   :  { %4238 = vmatpush3.bf16.msra.mxu1 %v4646_v52  ;;  %v3762_v38 = vcombine.low %v1300_v17, %v1304_v4  ;;  %v2868_v52 = vshrl.u32 %v2823_v25, 16  ;;  %v2899_v63 = vshll.u32 %v2827_v8, 16  ;;  %v2884_v17 = vrot.slane %v2882_v45, 4  ;;  %v5749_v25 = vld [vmem:[#allocation2 + $0x3c] sm:$0x1] }
  0xc6   :  { %4255 = vmatprep.subr.bf16.mxu1 %v4648_v50  ;;  %v2859_v47 = vrot.slane %v2857_v60, 5  ;;  %v2887_v4 = vrot.slane %v2885_v32, 5  ;;  %v2966_v45 = vshrl.u32 %v2837_v13, 16  ;;  %v2969_v32 = vshll.u32 %v2837_v13, 16  ;;  %v4674_v59 = vld [vmem:[#allocation2 + $0x18] ss:$8 sps:$4 sm:$0xff]  }
  0xc7   :  { %4362 = vmatpush3.bf16.msra.mxu0 %v4641_v14  ;;  %v2870_v39 = vrot.slane %v2868_v52, 4  ;;  %v5742_v53 = vrot.slane %v2899_v63, 5  ;;  %v4670_v52 = vld [vmem:[%s6123_s3 + $0xf8] sm:$0xff]   ;;  %v5837_v13 = vld [vmem:[%s6123_s3 + $0x210] sm:$0xff]  }
  0xc8   :  { %4363 = vmatprep.subr.bf16.mxu0 %v4644_v55  ;;  %4240 = vmatmul.mubr.bf16.vlgmr.msra.gmra.mrb[0].mxu1 %v3760_v20  ;;  %v2854_v20 = vshrl.u32 %v2821_v0, 16  ;;  %v4666_v0 = vld [vmem:[%s6123_s3 + $0xf0] sm:$0xff]   ;;  %v2888_v22 = vor.u32 %v2887_v4, %v2884_v17  ;;  %v5801_v17 = vld [vmem:[#allocation2 + $0x64] sm:$0x1] }
  0xc9   :  { %4256 = vmatpush3.bf16.msra.mxu1 %v4648_v50  ;;  %4243 = vmatprep.mubr.bf16.mxu1 %v3761_v19  ;;  %v4660_v50 = vld [vmem:[%s6123_s3 + $0xe0] sm:$0xff]   ;;  %v2896_v19 = vshrl.u32 %v2827_v8, 16  ;;  %v2874_v3 = vor.u32 %v2873_v9, %v2870_v39  ;;  %v4669_v4 = vld [vmem:[#allocation2 + $0x90] ss:$8 sps:$4 sm:$0xff]  }
  0xca   :  { %4348 = vmatmul.mubr.bf16.gmra.mrb[12].mxu0 %v3878_v41  ;;  %4257 = vmatprep.subr.bf16.mxu1 %v4652_v57  ;;  %v2856_v44 = vrot.slane %v2854_v20, 4  ;;  %v4664_v41 = vld [vmem:[%s6123_s3 + $0xe8] sm:$0xff]  }
  0xcb   :  { %4364 = vmatpush3.bf16.msra.mxu0 %v4644_v55  ;;  %4367 = vmatprep.mubr.bf16.mxu0 %v4649_v49  ;;  %v2829_v55 = vld [vmem:[#allocation2 + $0x30] sm:$0xf]  ;;  %v2891_v49 = vshll.u32 %v5717_v28, 16 }
  0xcc   :  { %4365 = vmatprep.subr.bf16.mxu0 %v4647_v51  ;;  %v2860_v33 = vor.u32 %v2859_v47, %v2856_v44  ;;  %v2910_v62 = vshrl.u32 %v2829_v55, 16  ;;  %v2913_v7 = vshll.u32 %v2829_v55, 16  ;;  %v2919_v47 = vshll.u32 %v5747_v58, 16 }
  0xcd   :  { %4258 = vmatpush3.bf16.msra.mxu1 %v4652_v57  ;;  %v5725_v57 = vrot.slane %v2863_v23, 5  ;;  %v5760_v44 = vrot.slane %v2891_v49, 5  ;;  %v2839_v23 = vld [vmem:[#allocation2 + $0x68] sm:$0xf] }
  0xce   :  { %4259 = vmatprep.subr.bf16.mxu1 %v4654_v42  ;;  %v5729_v43 = vrot.slane %v2860_v33, 4  ;;  %v2915_v20 = vrot.slane %v2913_v7, 5  ;;  %v5773_v33 = vld [vmem:[#allocation2 + $0x44] sm:$0x1] }
  0xcf   :  { %4366 = vmatpush3.bf16.msra.mxu0 %v4647_v51  ;;  %v2831_v51 = vld [vmem:[#allocation2 + $0x38] sm:$0xf] }
  0xd0   :  { %4383 = vmatprep.subr.bf16.mxu0 %v4650_v10  ;;  %4244 = vmatmul.mubr.bf16.gmra.mrb[4].mxu1 %v3762_v38  ;;  %v2924_v60 = vshrl.u32 %v2831_v51, 16  ;;  %v2835_v38 = vld [vmem:[#allocation2 + $0x48] sm:$0xf]  ;;  %v2866_v39 = vsel %vm4900_vm9, %v5729_v43, %v5725_v57  ;;  %v2947_v57 = vshll.u32 %v5773_v33, 16 }
  0xd1   :  { %4260 = vmatpush3.bf16.msra.mxu1 %v4654_v42  ;;  %4247 = vmatprep.mubr.bf16.mxu1 %v3763_v35  ;;  %v5740_v42 = vrot.slane %v2896_v19, 4  ;;  %v4667_v35 = vld [vmem:[#allocation2 + $0x80] ss:$8 sps:$4 sm:$0xff]   ;;  %v5778_v19 = vrot.slane %v2888_v22, 4  ;;  %v2843_v22 = vld [vmem:[#allocation2 + $0x78] sm:$0xf] }
  0xd2   :  { %4368 = vmatmul.mubr.bf16.vlgmr.msra.gmra.mrb[0].mxu0 %v4651_v5  ;;  %4261 = vmatprep.subr.bf16.mxu1 %v4658_v15  ;;  %v2938_v5 = vshrl.u32 %v2833_v30, 16  ;;  %v2926_v8 = vrot.slane %v2924_v60, 4 }
  0xd3   :  { %4384 = vmatpush3.bf16.msra.mxu0 %v4650_v10  ;;  %4371 = vmatprep.mubr.bf16.mxu0 %v4655_v34  ;;  %v2927_v10 = vshll.u32 %v2831_v51, 16  ;;  %v2941_v34 = vshll.u32 %v2833_v30, 16  ;;  %v2902_v9 = vor.u32 %v5742_v53, %v5740_v42  ;;  %v5797_v51 = vrot.slane %v2919_v47, 5  ;;  %v5807_v53 = vld [vmem:[#allocation2 + $0x4c] sm:$0x1] }
  0xd4   :  { %4385 = vmatprep.subr.bf16.mxu0 %v4653_v16  ;;  %v2940_v55 = vrot.slane %v2938_v5, 4  ;;  %v2975_v5 = vshll.u32 %v5801_v17, 16  ;;  %v2894_v47 = vsel %vm4900_vm9, %v5778_v19, %v5760_v44 }
  0xd5   :  { %4262 = vmatpush3.bf16.msra.mxu1 %v4658_v15  ;;  %v2905_v15 = vshll.u32 %v5731_v48, 16  ;;  %v2929_v46 = vrot.slane %v2927_v10, 5  ;;  %v5793_v43 = vrot.slane %v2902_v9, 4 }
  0xd6   :  { %4263 = vmatprep.subr.bf16.mxu1 %v4660_v50 }
  0xd7   :  { %4386 = vmatpush3.bf16.msra.mxu0 %v4653_v16  ;;  %v2933_v16 = vshll.u32 %v5749_v25, 16  ;;  %v5780_v63 = vrot.slane %v2905_v15, 5 }
  0xd8   :  { %4387 = vmatprep.subr.bf16.mxu0 %v4656_v2  ;;  %4248 = vmatmul.mubr.bf16.gmra.mrb[8].mxu1 %v3764_v18  ;;  %v2912_v18 = vrot.slane %v2910_v62, 4 }
  0xd9   :  { %4264 = vmatpush3.bf16.msra.mxu1 %v4660_v50  ;;  %4251 = vmatprep.mubr.bf16.mxu1 %v3765_v24  ;;  %v5754_v24 = vrot.slane %v2874_v3, 4  ;;  %v2955_v50 = vshll.u32 %v2835_v38, 16  ;;  %v4676_v3 = vld [vmem:[#allocation2 + $0x28] ss:$8 sps:$4 sm:$0xff]  }
  0xda   :  { %4372 = vmatmul.mubr.bf16.gmra.mrb[4].mxu0 %v4657_v36  ;;  %4265 = vmatprep.subr.bf16.mxu1 %v4664_v41  ;;  %v2916_v12 = vor.u32 %v2915_v20, %v2912_v18  ;;  %v2983_v36 = vshll.u32 %v2839_v23, 16  ;;  %v2968_v18 = vrot.slane %v2966_v45, 4  ;;  %v2971_v20 = vrot.slane %v2969_v32, 5 }
  0xdb   :  { %4388 = vmatpush3.bf16.msra.mxu0 %v4656_v2  ;;  %4375 = vmatprep.mubr.bf16.mxu0 %v4661_v54  ;;  %v2952_v2 = vshrl.u32 %v2835_v38, 16  ;;  %v2980_v54 = vshrl.u32 %v2839_v23, 16  ;;  %v2957_v7 = vrot.slane %v2955_v50, 5  ;;  %v2880_v42 = vsel %vm4900_vm9, %v5754_v24, %v5727_v40  ;;  %v2841_v38 = vld [vmem:[#allocation2 + $0x70] sm:$0xf]  ;;  %v5818_v40 = vld [vmem:[%s6123_s3 + $0x208] sm:$0xff]  }
  0xdc   :  { %4389 = vmatprep.subr.bf16.mxu0 %v4659_v11  ;;  %v5795_v49 = vrot.slane %v2916_v12, 4  ;;  %v2985_v10 = vrot.slane %v2983_v36, 5  ;;  %v5820_v24 = vrot.slane %v2947_v57, 5  ;;  %v2997_v44 = vshll.u32 %v2841_v38, 16  ;;  %v2845_v23 = vld [vmem:[#allocation2 + $0x80] sm:$0xf] }
  0xdd   :  { %4266 = vmatpush3.bf16.msra.mxu1 %v4664_v41  ;;  %v2943_v41 = vrot.slane %v2941_v34, 5  ;;  %v2954_v62 = vrot.slane %v2952_v2, 4  ;;  %v2982_v60 = vrot.slane %v2980_v54, 4  ;;  %v3935_v34 = vcombine.low %v2866_v39, %v2880_v42  ;;  %v2847_v39 = vld [vmem:[#allocation2 + $0x88] sm:$0xf] }
  0xde   :  { %4267 = vmatprep.subr.bf16.mxu1 %v4666_v0  ;;  %v2972_v2 = vor.u32 %v2971_v20, %v2968_v18  ;;  %v4678_v12 = vld [vmem:[#allocation2 + $0x38] ss:$8 sps:$4 sm:$0xff]   ;;  %v3008_v45 = vshrl.u32 %v2843_v22, 16  ;;  %v3011_v32 = vshll.u32 %v2843_v22, 16  ;;  %v2922_v19 = vsel %vm4900_vm9, %v5795_v49, %v5797_v51  ;;  %v5857_v36 = vld [vmem:[#allocation2 + $0x74] sm:$0x1] }
  0xdf   :  { %4390 = vmatpush3.bf16.msra.mxu0 %v4659_v11  ;;  %v5785_v11 = vld [vmem:[%s6123_s3 + $0x1f0] sm:$0xff]   ;;  %v2944_v30 = vor.u32 %v2943_v41, %v2940_v55  ;;  %v2958_v15 = vor.u32 %v2957_v7, %v2954_v62  ;;  %v2986_v50 = vor.u32 %v2985_v10, %v2982_v60  ;;  %v5845_v41 = vrot.slane %v2975_v5, 5  ;;  %v4680_v62 = vld [vmem:[#allocation2 + $0x58] ss:$8 sps:$4 sm:$0xff]   ;;  %v5866_v42 = vld [vmem:[#allocation2 + $0x7c] sm:$0x1] }
  0xe0   :  { %4391 = vmatprep.subr.bf16.mxu0 %v4662_v26  ;;  %4252 = vmatmul.mubr.bf16.gmra.mrb[12].mxu1 %v3766_v1  ;;  %v2930_v1 = vor.u32 %v2929_v46, %v2926_v8  ;;  %v2994_v8 = vshrl.u32 %v2841_v38, 16  ;;  %v156_v46 = vld [vmem:[#allocation2 + $0x9c] sm:$0x1]  ;;  %v3036_v57 = vshrl.u32 %v2847_v39, 16  ;;  %v2973_v7 = vrot.slane %v2972_v2, 4 }
  0xe1   :  { %4268 = vmatpush3.bf16.msra.mxu1 %v4666_v0  ;;  %4271 = vmatprep.mubr.bf16.mxu1 %v4672_v31  ;;  %v5799_v0 = vrot.slane %v2933_v16, 5  ;;  %v2908_v16 = vsel %vm4900_vm9, %v5793_v43, %v5780_v63  ;;  %v157_v9 = vsel %vm4785_vm4, 0, %v156_v46  ;;  %v2959_v55 = vrot.slane %v2958_v15, 4  ;;  %v5875_v38 = vld [vmem:[#allocation2 + $0x84] sm:$0x1] }
  0xe2   :  { %4376 = vmatmul.mubr.bf16.gmra.mrb[8].mxu0 %v4663_v27  ;;  %4269 = vmatprep.subr.bf16.mxu1 %v4670_v52  ;;  %v4671_v27 = vld [vmem:[%s6123_s3 + $0x1f8] sm:$0xff]   ;;  %v2931_v31 = vrot.slane %v2930_v1, 4  ;;  %158 = vst [vmem:[#allocation2 + $0x9c] sm:$0x1] %v157_v9  ;;  %v3025_v1 = vshll.u32 %v2845_v23, 16  ;;  %v2987_v43 = vrot.slane %v2986_v50, 4  ;;  %v3936_v51 = vcombine.low %v2894_v47, %v2908_v16 }
  0xe3   :  { %4392 = vmatpush3.bf16.msra.mxu0 %v4662_v26  ;;  %4379 = vmatprep.mubr.bf16.mxu0 %v4667_v35  ;;  %v5809_v26 = vld [vmem:[#allocation2 + $0x6c] sm:$0x1]  ;;  %v2961_v35 = vshll.u32 %v5807_v53, 16  ;;  %v2999_v49 = vrot.slane %v2997_v44, 5  ;;  %v3013_v18 = vrot.slane %v3011_v32, 5  ;;  %v3003_v10 = vshll.u32 %v5857_v36, 16 }
  0xe4   :  { %4393 = vmatprep.subr.bf16.mxu0 %v4665_v29  ;;  %v2936_v14 = vsel %vm4900_vm9, %v2931_v31, %v5799_v0  ;;  %v5864_v0 = vld [vmem:[%s6123_s3 + $0x218] sm:$0xff]   ;;  %v2849_v31 = vld [vmem:[#allocation2 + $0x90] sm:$0xf]  ;;  %v3369_v15 = vrot.slane %v5801_v17, 5  ;;  %v3017_v16 = vshll.u32 %v5866_v42, 16  ;;  %v3031_v2 = vshll.u32 %v5875_v38, 16 }
  0xe5   :  { %4270 = vmatpush3.bf16.msra.mxu1 %v4670_v52  ;;  %v2989_v52 = vshll.u32 %v5809_v26, 16  ;;  %v2963_v63 = vrot.slane %v2961_v35, 5  ;;  %v3050_v50 = vshrl.u32 %v2849_v31, 16  ;;  %v3053_v44 = vshll.u32 %v2849_v31, 16  ;;  %v4684_v32 = vld [vmem:[#allocation2 + $0x78] ss:$8 sps:$4 sm:$0xff]  }
  0xe6   :  { %4447 = vmatprep.subr.bf16.mxu1 %v5790_v21  ;;  %v3381_v17 = vrot.slane %v5866_v42, 5  ;;  %v5945_v42 = vld [vmem:[%s6123_s3 + $0x238] sm:$0xff]  }
  0xe7   :  { %4394 = vmatpush3.bf16.msra.mxu0 %v4665_v29  ;;  %v5839_v29 = vrot.slane %v2944_v30, 4  ;;  %v5855_v54 = vrot.slane %v2989_v52, 5  ;;  %v3010_v30 = vrot.slane %v3008_v45, 4  ;;  %v2964_v60 = vsel %vm4900_vm9, %v2959_v55, %v2963_v63  ;;  %v2851_v52 = vld [vmem:[#allocation2 + $0x98] sm:$0xf] }
  0xe8   :  { %4395 = vmatprep.subr.bf16.mxu0 %v5785_v11  ;;  %4272 = vmatmul.mubr.bf16.vlgmr.msra.gmra.mrb[0].mxu1 %v4674_v59  ;;  %v3022_v59 = vshrl.u32 %v2845_v23, 16  ;;  %v3067_v9 = vshll.u32 %v2851_v52, 16  ;;  %v3296_v55 = vld [vmem:[#allocation2 + $0x68] sm:$0xe]  ;;  %v3005_v45 = vrot.slane %v3003_v10, 5 }
  0xe9   :  { %4455 = vmatpush3.bf16.msra.mxu1 %v5790_v21  ;;  %4275 = vmatprep.mubr.bf16.mxu1 %v4676_v3  ;;  %v2996_v3 = vrot.slane %v2994_v8, 4  ;;  %v2950_v20 = vsel %vm4900_vm9, %v5839_v29, %v5820_v24  ;;  %v2978_v24 = vsel %vm4900_vm9, %v2973_v7, %v5845_v41  ;;  %v2992_v22 = vsel %vm4900_vm9, %v2987_v43, %v5855_v54  ;;  %v5887_v29 = vld [vmem:[#allocation2 + $0x8c] sm:$0x1]  ;;  %v5893_v8 = vld [vmem:[%s6123_s3 + $0x220] sm:$0xff]   ;;  %v4682_v41 = vld [vmem:[#allocation2 + $0x68] ss:$8 sps:$4 sm:$0xff]  }
  0xea   :  { %4380 = vmatmul.mubr.bf16.gmra.mrb[12].mxu0 %v4669_v4  ;;  %4448 = vmatprep.subr.bf16.mxu1 %v5818_v40  ;;  %v3937_v4 = vcombine.low %v2922_v19, %v2936_v14  ;;  %v3024_v5 = vrot.slane %v3022_v59, 4  ;;  %v3014_v46 = vor.u32 %v3013_v18, %v3010_v30  ;;  %v3938_v23 = vcombine.low %v2950_v20, %v2964_v60  ;;  %v5911_v60 = vld [vmem:[#allocation2 + $0x9c] sm:$0x1] }
  0xeb   :  { %4396 = vmatpush3.bf16.msra.mxu0 %v5785_v11  ;;  %4399 = vmatprep.mubr.bf16.mxu0 %v3935_v34  ;;  %v3039_v11 = vshll.u32 %v2847_v39, 16  ;;  %v3038_v34 = vrot.slane %v3036_v57, 4  ;;  %v3000_v47 = vor.u32 %v2999_v49, %v2996_v3  ;;  %v3064_v39 = vshrl.u32 %v2851_v52, 16  ;;  %v3298_v52 = vld [vmem:[#allocation2 + $0x78] sm:$0xe] }
  0xec   :  { %4397 = vmatprep.subr.bf16.mxu0 %v4671_v27  ;;  %v3045_v63 = vshll.u32 %v5887_v29, 16  ;;  %v3939_v54 = vcombine.low %v2978_v24, %v2992_v22  ;;  %v3373_v57 = vrot.slane %v5809_v26, 5  ;;  %v3033_v7 = vrot.slane %v3031_v2, 5  ;;  %v3300_v2 = vld [vmem:[#allocation2 + $0x88] sm:$0xe] }
  0xed   :  { %4456 = vmatpush3.bf16.msra.mxu1 %v5818_v40  ;;  %v3041_v35 = vrot.slane %v3039_v11, 5  ;;  %v3001_v59 = vrot.slane %v3000_v47, 4  ;;  %v3015_v11 = vrot.slane %v3014_v46, 4  ;;  %v3960_v3 = vrot.slane %v3296_v55, 9  ;;  %v3299_v46 = vld [vmem:[#allocation2 + $0x80] sm:$0xe] }
  0xee   :  { %4449 = vmatprep.subr.bf16.mxu1 %v5837_v13  ;;  %v3052_v49 = vrot.slane %v3050_v50, 4  ;;  %v3069_v30 = vrot.slane %v3067_v9, 5  ;;  %v3047_v20 = vrot.slane %v3045_v63, 5  ;;  %v3377_v24 = vrot.slane %v5857_v36, 5  ;;  %v3287_v36 = vld [vmem:[#allocation2 + $0x10] sm:$0xe] }
  0xef   :  { %4398 = vmatpush3.bf16.msra.mxu0 %v4671_v27  ;;  %v3027_v27 = vrot.slane %v3025_v1, 5  ;;  %v3042_v14 = vor.u32 %v3041_v35, %v3038_v34  ;;  %v5900_v1 = vld [vmem:[#allocation2 + $0x94] sm:$0x1]  ;;  %v3006_v31 = vsel %vm4900_vm9, %v3001_v59, %v3005_v45  ;;  %v3374_v34 = vsel %vm5393_vm12, %v3960_v3, %v3373_v57  ;;  %v3297_v35 = vld [vmem:[#allocation2 + $0x70] sm:$0xe] }
  0xf0   :  { %4415 = vmatprep.subr.bf16.mxu0 %v5790_v21  ;;  %4276 = vmatmul.mubr.bf16.gmra.mrb[4].mxu1 %v4678_v12  ;;  %v3295_v12 = vld [vmem:[#allocation2 + $0x60] sm:$0xe]  ;;  %v3059_v10 = vshll.u32 %v5900_v1, 16  ;;  %v3962_v55 = vrot.slane %v3298_v52, 9  ;;  %v3385_v45 = vrot.slane %v5875_v38, 5  ;;  %v3337_v57 = vrot.slane %v5700_v56, 5 }
  0xf1   :  { %4457 = vmatpush3.bf16.msra.mxu1 %v5837_v13  ;;  %4279 = vmatprep.mubr.bf16.mxu1 %v4680_v62  ;;  %v3028_v19 = vor.u32 %v3027_v27, %v3024_v5  ;;  %v5907_v62 = vld [vmem:[%s6123_s3 + $0x228] sm:$0xff]   ;;  %v3959_v43 = vrot.slane %v3295_v12, 9  ;;  %v3043_v18 = vrot.slane %v3042_v14, 4  ;;  %v5923_v5 = vld [vmem:[%s6123_s3 + $0x230] sm:$0xff]   ;;  %v3961_v12 = vrot.slane %v3297_v35, 9 }
  0xf2   :  { %4400 = vmatmul.mubr.bf16.vlgmr.msra.gmra.mrb[0].mxu0 %v3936_v51  ;;  %4450 = vmatprep.subr.bf16.mxu1 %v5864_v0  ;;  %v3055_v51 = vrot.slane %v3053_v44, 5  ;;  %v3061_v44 = vrot.slane %v3059_v10, 5  ;;  %v3291_v10 = vld [vmem:[#allocation2 + $0x30] sm:$0xe]  ;;  %v3353_v52 = vrot.slane %v5747_v58, 5 }
  0xf3   :  { %4416 = vmatpush3.bf16.msra.mxu0 %v5790_v21  ;;  %4403 = vmatprep.mubr.bf16.mxu0 %v3937_v4  ;;  %v3019_v21 = vrot.slane %v3017_v16, 5  ;;  %v3066_v4 = vrot.slane %v3064_v39, 4  ;;  %v3029_v26 = vrot.slane %v3028_v19, 4  ;;  %v3370_v27 = vsel %vm5393_vm12, %v3959_v43, %v3369_v15  ;;  %v3288_v39 = vld [vmem:[#allocation2 + $0x18] sm:$0xe] }
  0xf4   :  { %4417 = vmatprep.subr.bf16.mxu0 %v5818_v40  ;;  %v3056_v22 = vor.u32 %v3055_v51, %v3052_v49  ;;  %v3073_v16 = vshll.u32 %v5911_v60, 16  ;;  %v3048_v50 = vsel %vm4900_vm9, %v3043_v18, %v3047_v20  ;;  %v3987_v9 = vcombine.low %v3370_v27, %v3374_v34  ;;  %v3289_v51 = vld [vmem:[#allocation2 + $0x20] sm:$0xe] }
  0xf5   :  { %4458 = vmatpush3.bf16.msra.mxu1 %v5864_v0  ;;  %v3070_v47 = vor.u32 %v3069_v30, %v3066_v4  ;;  %v3034_v15 = vsel %vm4900_vm9, %v3029_v26, %v3033_v7  ;;  %v3389_v19 = vrot.slane %v5887_v29, 5  ;;  %v3341_v7 = vrot.slane %v5702_v6, 5  ;;  %v3301_v29 = vld [vmem:[#allocation2 + $0x90] sm:$0xe]  ;;  %v3302_v6 = vld [vmem:[#allocation2 + $0x98] sm:$0xe] }
  0xf6   :  { %4451 = vmatprep.subr.bf16.mxu1 %v5893_v8  ;;  %v3941_v14 = vcombine.low %v3034_v15, %v3048_v50  ;;  %v3057_v63 = vrot.slane %v3056_v22, 4  ;;  %v3075_v59 = vrot.slane %v3073_v16, 5  ;;  %v3378_v38 = vsel %vm5393_vm12, %v3961_v12, %v3377_v24  ;;  %v3290_v4 = vld [vmem:[#allocation2 + $0x28] sm:$0xe] }
  0xf7   :  { %4418 = vmatpush3.bf16.msra.mxu0 %v5818_v40  ;;  %v3020_v40 = vsel %vm4900_vm9, %v3015_v11, %v3019_v21  ;;  %v3951_v21 = vrot.slane %v3287_v36, 9  ;;  %v3952_v11 = vrot.slane %v3288_v39, 9  ;;  %v3345_v30 = vrot.slane %v5717_v28, 5  ;;  %v3294_v15 = vld [vmem:[#allocation2 + $0x48] sm:$0xe] }
  0xf8   :  { %4419 = vmatprep.subr.bf16.mxu0 %v5837_v13  ;;  %4280 = vmatmul.mubr.bf16.gmra.mrb[8].mxu1 %v4682_v41  ;;  %v3963_v41 = vrot.slane %v3299_v46, 9  ;;  %v3062_v3 = vsel %vm4900_vm9, %v3057_v63, %v3061_v44  ;;  %v3349_v26 = vrot.slane %v5731_v48, 5  ;;  %v3393_v27 = vrot.slane %v5900_v1, 5 }
  0xf9   :  { %4459 = vmatpush3.bf16.msra.mxu1 %v5893_v8  ;;  %4283 = vmatprep.mubr.bf16.mxu1 %v4684_v32  ;;  %v3964_v32 = vrot.slane %v3300_v2, 9  ;;  %v3338_v18 = vsel %vm5393_vm12, %v3951_v21, %v3337_v57  ;;  %v3966_v28 = vrot.slane %v3302_v6, 9  ;;  %v3397_v48 = vrot.slane %v5911_v60, 5 }
  0xfa   :  { %4404 = vmatmul.mubr.bf16.gmra.mrb[4].mxu0 %v3938_v23  ;;  %4452 = vmatprep.subr.bf16.mxu1 %v5907_v62  ;;  %v3940_v23 = vcombine.low %v3006_v31, %v3020_v40  ;;  %v3386_v43 = vsel %vm5393_vm12, %v3963_v41, %v3385_v45  ;;  %v3292_v31 = vld [vmem:[#allocation2 + $0x38] sm:$0xe]  ;;  %v3965_v40 = vrot.slane %v3301_v29, 9  ;;  %v3953_v35 = vrot.slane %v3289_v51, 9 }
  0xfb   :  { %4420 = vmatpush3.bf16.msra.mxu0 %v5837_v13  ;;  %4407 = vmatprep.mubr.bf16.mxu0 %v3939_v54  ;;  %v4686_v13 = vld [vmem:[#allocation2 + $0x88] ss:$8 sps:$4 sm:$0xff]   ;;  %v3071_v54 = vrot.slane %v3070_v47, 4  ;;  %v3390_v56 = vsel %vm5393_vm12, %v3964_v32, %v3389_v19  ;;  %v3357_v24 = vrot.slane %v5749_v25, 5  ;;  %v3954_v47 = vrot.slane %v3290_v4, 9 }
  0xfc   :  { %4421 = vmatprep.subr.bf16.mxu0 %v5864_v0  ;;  %v3989_v61 = vcombine.low %v3386_v43, %v3390_v56  ;;  %v3955_v16 = vrot.slane %v3291_v10, 9  ;;  %v3956_v46 = vrot.slane %v3292_v31, 9  ;;  %v3394_v1 = vsel %vm5393_vm12, %v3965_v40, %v3393_v27  ;;  %v3619_v4 = vld [vmem:[%s6127_s4 + $0x50] sm:$0xff]  ;;  %v3620_v31 = vld [vmem:[%s6127_s4 + $0x58] sm:$0xff] }
  0xfd   :  { %4460 = vmatpush3.bf16.msra.mxu1 %v5907_v62  ;;  %v3076_v49 = vsel %vm4900_vm9, %v3071_v54, %v3075_v59  ;;  %v3398_v60 = vsel %vm5393_vm12, %v3966_v28, %v3397_v48  ;;  %v3346_v58 = vsel %vm5393_vm12, %v3953_v35, %v3345_v30  ;;  %v3350_v25 = vsel %vm5393_vm12, %v3954_v47, %v3349_v26 }
  0xfe   :  { %4453 = vmatprep.subr.bf16.mxu1 %v5923_v5  ;;  %v3942_v34 = vcombine.low %v3062_v3, %v3076_v49  ;;  %v3358_v2 = vsel %vm5393_vm12, %v3956_v46, %v3357_v24  ;;  %v3990_v50 = vcombine.low %v3394_v1, %v3398_v60  ;;  %v3958_v36 = vrot.slane %v3294_v15, 9 }
  0xff   :  { %4422 = vmatpush3.bf16.msra.mxu0 %v5864_v0  ;;  %v3382_v0 = vsel %vm5393_vm12, %v3962_v55, %v3381_v17  ;;  %v3293_v17 = vld [vmem:[#allocation2 + $0x40] sm:$0xe]  ;;  %v3365_v39 = vrot.slane %v5807_v53, 5 }
 0x100   :  { %4423 = vmatprep.subr.bf16.mxu0 %v5893_v8  ;;  %4284 = vmatmul.mubr.bf16.gmra.mrb[12].mxu1 %v4686_v13  ;;  %v3988_v20 = vcombine.low %v3378_v38, %v3382_v0  ;;  %v3984_v13 = vcombine.low %v3346_v58, %v3350_v25  ;;  %v3623_v25 = vld [vmem:[%s6127_s4 + $0x70] sm:$0xff] }
 0x101   :  { %4461 = vmatpush3.bf16.msra.mxu1 %v5923_v5  ;;  %4439 = vmatprep.mubr.bf16.mxu1 %v3987_v9  ;;  %v3366_v12 = vsel %vm5393_vm12, %v3958_v36, %v3365_v39  ;;  %v3609_v39 = vld [vmem:[%s6127_s4] sm:$0xff] }
 0x102   :  { %4408 = vmatmul.mubr.bf16.gmra.mrb[8].mxu0 %v3940_v23  ;;  %4454 = vmatprep.subr.bf16.mxu1 %v5945_v42  ;;  %v3361_v23 = vrot.slane %v5773_v33, 5 }
 0x103   :  { %4424 = vmatpush3.bf16.msra.mxu0 %v5893_v8  ;;  %4411 = vmatprep.mubr.bf16.mxu0 %v3941_v14  ;;  %v3342_v8 = vsel %vm5393_vm12, %v3952_v11, %v3341_v7 }
 0x104   :  { %4425 = vmatprep.subr.bf16.mxu0 %v5907_v62  ;;  %v3983_v22 = vcombine.low %v3338_v18, %v3342_v8  ;;  %v3617_v18 = vld [vmem:[%s6127_s4 + $0x40] sm:$0xff] }
 0x105   :  { %4462 = vmatpush3.bf16.msra.mxu1 %v5945_v42 }
 0x107   :  { %4426 = vmatpush3.bf16.msra.mxu0 %v5907_v62  ;;  %v3354_v62 = vsel %vm5393_vm12, %v3955_v16, %v3353_v52 }
 0x108   :  { %4427 = vmatprep.subr.bf16.mxu0 %v5923_v5  ;;  %4440 = vmatmul.mubr.bf16.vlgmr.msra.gmra.mrb[16].mxu1 %v3988_v20  ;;  %v3985_v44 = vcombine.low %v3354_v62, %v3358_v2 }
 0x109   :  { %4443 = vmatprep.mubr.bf16.mxu1 %v3989_v61 }
 0x10a   :  { %4412 = vmatmul.mubr.bf16.gmra.mrb[12].mxu0 %v3942_v34  ;;  %v3618_v34 = vld [vmem:[%s6127_s4 + $0x48] sm:$0xff] }
 0x10b   :  { %4428 = vmatpush3.bf16.msra.mxu0 %v5923_v5  ;;  %4431 = vmatprep.mubr.bf16.mxu0 %v3983_v22  ;;  %v3957_v5 = vrot.slane %v3293_v17, 9  ;;  %v3621_v17 = vld [vmem:[%s6127_s4 + $0x60] sm:$0xff] }
 0x10c   :  { %4429 = vmatprep.subr.bf16.mxu0 %v5945_v42 }
 0x10d   :  { %v3362_v9 = vsel %vm5393_vm12, %v3957_v5, %v3361_v23  ;;  %v3624_v5 = vld [vmem:[%s6127_s4 + $0x78] sm:$0xff] }
 0x10e   :  { %v3986_v55 = vcombine.low %v3362_v9, %v3366_v12 }
 0x10f   :  { %4430 = vmatpush3.bf16.msra.mxu0 %v5945_v42 }
 0x110   :  { %4444 = vmatmul.mubr.bf16.gmra.mrb[20].mxu1 %v3990_v50  ;;  %v3611_v50 = vld [vmem:[%s6127_s4 + $0x10] sm:$0xff] }
 0x112   :  { %4432 = vmatmul.mubr.bf16.vlgmr.msra.gmra.mrb[0].mxu0 %v3984_v13 }
 0x113   :  { %4435 = vmatprep.mubr.bf16.mxu0 %v3985_v44 }
 0x11a   :  { %4436 = vmatmul.mubr.bf16.gmra.mrb[4].mxu0 %v3986_v55 }
 0x1bb   :  { %v6003_v41 = vpop.f32.mrb[0].mxu1 }
 0x1bc   :  { %v6005_v42 = vpop.f32.mrb[1].mxu1 }
 0x1bd   :  { %v6007_v45 = vpop.f32.mrb[2].mxu1 }
 0x1be   :  { %v6009_v33 = vpop.f32.mrb[3].mxu1 }
 0x1c3   :  { %v6011_v53 = vpop.f32.mrb[4].mxu1 }
 0x1c4   :  { %v6013_v32 = vpop.f32.mrb[5].mxu1 }
 0x1c5   :  { %v6015_v19 = vpop.f32.mrb[6].mxu1 }
 0x1c6   :  { %v6017_v14 = vpop.f32.mrb[7].mxu1 }
 0x1cb   :  { %v4281_v37 = vpop.f32.mrb[8].mxu1 }
 0x1cc   :  { %v1743_v63 = vpop.f32.mrb[9].mxu1 }
 0x1cd   :  { %v4282_v54 = vpop.f32.mrb[10].mxu1 }
 0x1ce   :  { %v1746_v59 = vpop.f32.mrb[11].mxu1 }
 0x1d3   :  { %v4285_v21 = vpop.f32.mrb[12].mxu1 }
 0x1d4   :  { %v1759_v57 = vpop.f32.mrb[13].mxu1 }
 0x1d5   :  { %v4409_v11 = vpop.f32.mrb[8].mxu0  ;;  %v4286_v7 = vpop.f32.mrb[14].mxu1 }
 0x1d6   :  { %v4471_v38 = vadd.f32 %v4409_v11, %v4281_v37  ;;  %v3240_v0 = vpop.f32.mrb[9].mxu0  ;;  %v1762_v29 = vpop.f32.mrb[15].mxu1  ;;  %v3622_v37 = vld [vmem:[%s6127_s4 + $0x68] sm:$0xff] }
 0x1d7   :  { %v4473_v43 = vadd.f32 %v3240_v0, %v1743_v63  ;;  %v4410_v56 = vpop.f32.mrb[10].mxu0 }
 0x1d8   :  { %v4475_v6 = vadd.f32 %v4410_v56, %v4282_v54  ;;  %v3243_v3 = vpop.f32.mrb[11].mxu0 }
 0x1d9   :  { %v4477_v49 = vadd.f32 %v3243_v3, %v1746_v59  ;;  %v3612_v59 = vld [vmem:[%s6127_s4 + $0x18] sm:$0xff] }
 0x1db   :  { %v4441_v51 = vpop.f32.mrb[16].mxu1 }
 0x1dc   :  { %v4472_v30 = vadd.f32 %v4471_v38, %v4441_v51  ;;  %v3562_v26 = vpop.f32.mrb[17].mxu1  ;;  %v3610_v38 = vld [vmem:[%s6127_s4 + $0x8] sm:$0xff]  ;;  %v3613_v51 = vld [vmem:[%s6127_s4 + $0x20] sm:$0xff] }
 0x1dd   :  { %v4413_v8 = vpop.f32.mrb[12].mxu0  ;;  %v4474_v20 = vadd.f32 %v4473_v43, %v3562_v26  ;;  %v4442_v10 = vpop.f32.mrb[18].mxu1  ;;  %v3616_v26 = vld [vmem:[%s6127_s4 + $0x38] sm:$0xff] }
 0x1de   :  { %v4479_v40 = vadd.f32 %v4413_v8, %v4285_v21  ;;  %v3256_v61 = vpop.f32.mrb[13].mxu0  ;;  %v3635_v27 = vadd.f32 %v4472_v30, %v3619_v4  ;;  %v4476_v28 = vadd.f32 %v4475_v6, %v4442_v10  ;;  %v3565_v48 = vpop.f32.mrb[19].mxu1  ;;  %v3615_v6 = vld [vmem:[%s6127_s4 + $0x30] sm:$0xff] }
 0x1df   :  { %v4481_v35 = vadd.f32 %v3256_v61, %v1759_v57  ;;  %v4414_v52 = vpop.f32.mrb[14].mxu0  ;;  %v3633_v24 = vadd.f32 %v4474_v20, %v3617_v18  ;;  %v4478_v22 = vadd.f32 %v4477_v49, %v3565_v48 }
 0x1e0   :  { %v4483_v47 = vadd.f32 %v4414_v52, %v4286_v7  ;;  %v3259_v16 = vpop.f32.mrb[15].mxu0  ;;  %3651 = vst [vmem:[%s6128_s5 + $0x50] sm:$0xff] %v3635_v27  ;;  %v3636_v46 = vadd.f32 %v4476_v28, %v3620_v31 }
 0x1e1   :  { %v4485_v1 = vadd.f32 %v3259_v16, %v1762_v29  ;;  %3649 = vst [vmem:[%s6128_s5 + $0x40] sm:$0xff] %v3633_v24  ;;  %v3634_v60 = vadd.f32 %v4478_v22, %v3618_v34 }
 0x1e2   :  { %3652 = vst [vmem:[%s6128_s5 + $0x58] sm:$0xff] %v3636_v46 }
 0x1e3   :  { %3650 = vst [vmem:[%s6128_s5 + $0x48] sm:$0xff] %v3634_v60  ;;  %v4445_v58 = vpop.f32.mrb[20].mxu1 }
 0x1e4   :  { %v4480_v62 = vadd.f32 %v4479_v40, %v4445_v58  ;;  %v3578_v2 = vpop.f32.mrb[21].mxu1 }
 0x1e5   :  { %v4433_v15 = vpop.f32.mrb[0].mxu0  ;;  %v4482_v13 = vadd.f32 %v4481_v35, %v3578_v2  ;;  %v4446_v44 = vpop.f32.mrb[22].mxu1 }
 0x1e6   :  { %v4463_v23 = vadd.f32 %v4433_v15, %v6003_v41  ;;  %v3530_v36 = vpop.f32.mrb[1].mxu0  ;;  %v3639_v9 = vadd.f32 %v4480_v62, %v3623_v25  ;;  %v4484_v12 = vadd.f32 %v4483_v47, %v4446_v44  ;;  %v3581_v55 = vpop.f32.mrb[23].mxu1 }
 0x1e7   :  { %v4464_v63 = vadd.f32 %v3530_v36, %v6005_v42  ;;  %v4434_v54 = vpop.f32.mrb[2].mxu0  ;;  %v3637_v41 = vadd.f32 %v4482_v13, %v3621_v17  ;;  %v4486_v21 = vadd.f32 %v4485_v1, %v3581_v55 }
 0x1e8   :  { %v3627_v57 = vadd.f32 %v4463_v23, %v3611_v50  ;;  %v4465_v11 = vadd.f32 %v4434_v54, %v6007_v45  ;;  %v3533_v7 = vpop.f32.mrb[3].mxu0  ;;  %3655 = vst [vmem:[%s6128_s5 + $0x70] sm:$0xff] %v3639_v9  ;;  %v3640_v42 = vadd.f32 %v4484_v12, %v3624_v5 }
 0x1e9   :  { %v3625_v0 = vadd.f32 %v4464_v63, %v3609_v39  ;;  %v4466_v29 = vadd.f32 %v3533_v7, %v6009_v33  ;;  %3653 = vst [vmem:[%s6128_s5 + $0x60] sm:$0xff] %v3637_v41  ;;  %v3638_v43 = vadd.f32 %v4486_v21, %v3622_v37 }
 0x1ea   :  { %3643 = vst [vmem:[%s6128_s5 + $0x10] sm:$0xff] %v3627_v57  ;;  %v3628_v45 = vadd.f32 %v4465_v11, %v3612_v59  ;;  %3656 = vst [vmem:[%s6128_s5 + $0x78] sm:$0xff] %v3640_v42 }
 0x1eb   :  { %3641 = vst [vmem:[%s6128_s5] sm:$0xff] %v3625_v0  ;;  %v3626_v56 = vadd.f32 %v4466_v29, %v3610_v38  ;;  %3654 = vst [vmem:[%s6128_s5 + $0x68] sm:$0xff] %v3638_v43 }
 0x1ec   :  { %3644 = vst [vmem:[%s6128_s5 + $0x18] sm:$0xff] %v3628_v45 }
 0x1ed   :  { %3642 = vst [vmem:[%s6128_s5 + $0x8] sm:$0xff] %v3626_v56  ;;  %v4437_v33 = vpop.f32.mrb[4].mxu0 }
 0x1ee   :  { %v4467_v3 = vadd.f32 %v4437_v33, %v6011_v53  ;;  %v3546_v49 = vpop.f32.mrb[5].mxu0  ;;  %v3614_v53 = vld [vmem:[%s6127_s4 + $0x28] sm:$0xff] }
 0x1ef   :  { %v4468_v4 = vadd.f32 %v3546_v49, %v6013_v32  ;;  %v4438_v30 = vpop.f32.mrb[6].mxu0 }
 0x1f0   :  { %v3631_v18 = vadd.f32 %v4467_v3, %v3615_v6  ;;  %v4469_v8 = vadd.f32 %v4438_v30, %v6015_v19  ;;  %v3549_v20 = vpop.f32.mrb[7].mxu0 }
 0x1f1   :  { %v3629_v10 = vadd.f32 %v4468_v4, %v3613_v51  ;;  %v4470_v31 = vadd.f32 %v3549_v20, %v6017_v14 }
 0x1f2   :  { %3647 = vst [vmem:[%s6128_s5 + $0x30] sm:$0xff] %v3631_v18  ;;  %v3632_v32 = vadd.f32 %v4469_v8, %v3616_v26 }
 0x1f3   :  { %3645 = vst [vmem:[%s6128_s5 + $0x20] sm:$0xff] %v3629_v10  ;;  %v3630_v40 = vadd.f32 %v4470_v31, %v3614_v53 }
 0x1f4   :  { %3648 = vst [vmem:[%s6128_s5 + $0x38] sm:$0xff] %v3632_v32 }
 0x1f5   :  { %3646 = vst [vmem:[%s6128_s5 + $0x28] sm:$0xff] %v3630_v40 }

// kernel: _lambda_.7
= control target key start
LH: loop header
LB: loop body
LE: loop exit
PB: predicated region body
PF: predicated region fallthrough
CT: control target
= control target key end

     0   :  { %v4784_v1 = vmov 0   ;;  %vm38_vm0 = vsmask.f32 256  ;;  %v43_v10 = vld [vmem:[#allocation2 + $0x8] sm:$0x1]  ;;  %vm37_vm1 = vcmask 1040384   ;;  %s6148_s3 = inlined_call_operand.vmem [shape: bf16[3,3,128,128], index: 3, kind: input, shape index: {}]   ;;  %s6149_s0 = inlined_call_operand.vmem [shape: f32[2,8,8,128], index: 0, kind: input, shape index: {}]   ;;  %s6150_s1 = inlined_call_operand.vmem [shape: f32[1,128], index: 1, kind: input, shape index: {}]   ;;  %s6151_s2 = inlined_call_operand.vmem [shape: f32[1,128], index: 2, kind: input, shape index: {}]   ;;  %s6152_s4 = inlined_call_operand.vmem [shape: f32[2,8,8,128], index: 4, kind: input, shape index: {}]   ;;  %s6153_s5 = inlined_call_operand.vmem [shape: f32[2,8,8,128], index: 5, kind: output, shape index: {0}]   ;;  %s6154_s6 = inlined_call_operand.vmem [shape: f32[1,1,1,128], index: 6, kind: output, shape index: {1}]   ;;  %s6155_s7 = inlined_call_operand.vmem [shape: f32[1,1,1,128], index: 7, kind: output, shape index: {2}]  }
   0x1   :  { %v4663_v0 = vld [vmem:[%s6148_s3 + $0x100] sm:$0xff]   ;;  %28 = vst [vmem:[#allocation2] sm:$0xf] %v4784_v1  ;;  %29 = vst [vmem:[#allocation2 + $0x4] sm:$0x1] %v4784_v1  ;;  %v4665_v3 = vld [vmem:[%s6148_s3 + $0x108] sm:$0xff]  }
   0x2   :  { %30 = vst [vmem:[#allocation2 + $0x50] sm:$0xf] %v4784_v1  ;;  %31 = vst [vmem:[#allocation2 + $0x54] sm:$0x1] %v4784_v1  ;;  %v4664_v2 = vld [vmem:[%s6148_s3 + $0x40] sm:$0xff]   ;;  %4358 = vmatprep.subr.bf16.mxu0 %v4663_v0  ;;  %v4666_v4 = vld [vmem:[%s6148_s3 + $0x48] sm:$0xff]  }
   0x3   :  { %33 = vst [vmem:[#allocation2 + $0x48] sm:$0xf] %v4784_v1  ;;  %34 = vst [vmem:[#allocation2 + $0x4c] sm:$0x1] %v4784_v1  ;;  %4230 = vmatprep.subr.bf16.mxu1 %v4664_v2  ;;  %4359 = vmatpush3.bf16.msra.mxu0 %v4663_v0  ;;  %v4667_v5 = vld [vmem:[%s6148_s3 + $0x110] sm:$0xff]   ;;  %v4669_v7 = vld [vmem:[%s6148_s3 + $0x118] sm:$0xff]  }
   0x4   :  { %35 = vst [vmem:[#allocation2 + $0x98] sm:$0xf] %v4784_v1  ;;  %36 = vst [vmem:[#allocation2 + $0x9c] sm:$0x1] %v4784_v1  ;;  %4231 = vmatpush3.bf16.msra.mxu1 %v4664_v2  ;;  %4360 = vmatprep.subr.bf16.mxu0 %v4665_v3  ;;  %v4668_v6 = vld [vmem:[%s6148_s3 + $0x50] sm:$0xff]   ;;  %v4670_v8 = vld [vmem:[%s6148_s3 + $0x58] sm:$0xff]  }
   0x5   :  { %4232 = vmatprep.subr.bf16.mxu1 %v4666_v4  ;;  %v4671_v9 = vld [vmem:[%s6148_s3 + $0x120] sm:$0xff]   ;;  %v4673_v12 = vld [vmem:[%s6148_s3 + $0x128] sm:$0xff]   ;;  %vm4863_vm2 = vmand %vm37_vm1, %vm38_vm0  ;;  %vm100_vm3 = vsmask.f32 7938  ;;  %vm465_vm5 = vcmask 1043456   ;;  %vm1273_vm10 = vcmask 1042432  }
   0x6   :  { %v4672_v11 = vld [vmem:[%s6148_s3 + $0x60] sm:$0xff]   ;;  %v4674_v13 = vld [vmem:[%s6148_s3 + $0x68] sm:$0xff]   ;;  %v44_v18 = vsel %vm4863_vm2, 0, %v43_v10  ;;  %vm4873_vm4 = vmand %vm37_vm1, %vm100_vm3  ;;  %vm611_vm6 = vsmask.f32 3328  ;;  %vm1274_vm11 = vcmask 1046532  }
   0x7   :  { %4361 = vmatpush3.bf16.msra.mxu0 %v4665_v3  ;;  %v105_v20 = vld [vmem:[#allocation2 + $0xc] sm:$0x1]  ;;  %v162_v21 = vld [vmem:[%s6149_s0] sm:$0xff]  ;;  %45 = vst [vmem:[#allocation2 + $0x8] sm:$0x1] %v44_v18  ;;  %v4675_v28 = vld [vmem:[%s6148_s3 + $0x130] sm:$0xff]  }
   0x8   :  { %4233 = vmatpush3.bf16.msra.mxu1 %v4666_v4  ;;  %4362 = vmatprep.subr.bf16.mxu0 %v4667_v5  ;;  %v40_v15 = vld [vmem:[#allocation2] sm:$0x1]  ;;  %v102_v16 = vld [vmem:[#allocation2 + $0x4] sm:$0x1]  ;;  %v106_v23 = vsel %vm4873_vm4, 0, %v105_v20  ;;  %v163_v31 = vld [vmem:[%s6149_s0 + $0x8] sm:$0xff] }
   0x9   :  { %4234 = vmatprep.subr.bf16.mxu1 %v4668_v6  ;;  %v41_v17 = vsel %vm4863_vm2, 0, %v40_v15  ;;  %v103_v22 = vsel %vm4873_vm4, 0, %v102_v16  ;;  %v4887_v24 = vld [vmem:[%s6150_s1] ss:$0 sm:$0xff]  ;;  %107 = vst [vmem:[#allocation2 + $0xc] sm:$0x1] %v106_v23  ;;  %vm4951_vm8 = vmand %vm465_vm5, %vm100_vm3 }
   0xa   :  { %42 = vst [vmem:[#allocation2] sm:$0x1] %v41_v17  ;;  %v4892_v25 = vld [vmem:[%s6151_s2] ss:$0 sm:$0xff]  ;;  %104 = vst [vmem:[#allocation2 + $0x4] sm:$0x1] %v103_v22  ;;  %v186_v26 = vmul.f32 %v4887_v24, %v162_v21  ;;  %v187_v35 = vmul.f32 %v4887_v24, %v163_v31 }
   0xb   :  { %4363 = vmatpush3.bf16.msra.mxu0 %v4667_v5  ;;  %v46_v27 = vld [vmem:[#allocation2 + $0x10] sm:$0x1]  ;;  %v108_v30 = vld [vmem:[#allocation2 + $0x14] sm:$0x1]  ;;  %v49_v36 = vld [vmem:[#allocation2 + $0x18] sm:$0x1] }
   0xc   :  { %4235 = vmatpush3.bf16.msra.mxu1 %v4668_v6  ;;  %4364 = vmatprep.subr.bf16.mxu0 %v4669_v7  ;;  %v47_v29 = vsel %vm4863_vm2, 0, %v46_v27  ;;  %v4676_v32 = vld [vmem:[%s6148_s3 + $0x70] sm:$0xff]   ;;  %v208_v33 = vadd.f32 %v4892_v25, %v186_v26  ;;  %v109_v34 = vsel %vm4873_vm4, 0, %v108_v30  ;;  %v111_v37 = vld [vmem:[#allocation2 + $0x1c] sm:$0x1]  ;;  %v209_v40 = vadd.f32 %v4892_v25, %v187_v35  ;;  %v4931_v59 = vld [vmem:[%s6148_s3 + $0x140] sm:$0xff]  }
   0xd   :  { %4236 = vmatprep.subr.bf16.mxu1 %v4670_v8  ;;  %48 = vst [vmem:[#allocation2 + $0x10] sm:$0x1] %v47_v29  ;;  %110 = vst [vmem:[#allocation2 + $0x14] sm:$0x1] %v109_v34  ;;  %v164_v38 = vld [vmem:[%s6149_s0 + $0x10] sm:$0xff]  ;;  %v50_v41 = vsel %vm4863_vm2, 0, %v49_v36 }
   0xe   :  { %v224_v39 = vmax.f32 %v208_v33, 0.0  ;;  %v112_v42 = vsel %vm4873_vm4, 0, %v111_v37  ;;  %v4677_v43 = vld [vmem:[%s6148_s3 + $0x138] sm:$0xff]   ;;  %51 = vst [vmem:[#allocation2 + $0x18] sm:$0x1] %v50_v41  ;;  %v188_v44 = vmul.f32 %v4887_v24, %v164_v38  ;;  %v225_v49 = vmax.f32 %v209_v40, 0.0  ;;  %vm5416_vm12 = vmor %vm1273_vm10, %vm1274_vm11 }
   0xf   :  { %4365 = vmatpush3.bf16.msra.mxu0 %v4669_v7  ;;  %113 = vst [vmem:[#allocation2 + $0x1c] sm:$0x1] %v112_v42  ;;  %v52_v45 = vld [vmem:[#allocation2 + $0x20] sm:$0x1]  ;;  %v4678_v46 = vld [vmem:[%s6148_s3 + $0x78] sm:$0xff]   ;;  %v4714_v14 = vld [vmem:[%s6148_s3 + $0x1b0] sm:$0xff]  }
  0x10   :  { %4237 = vmatpush3.bf16.msra.mxu1 %v4670_v8  ;;  %4366 = vmatprep.subr.bf16.mxu0 %v4671_v9  ;;  %v4070_v47 = vpack.c.bf16 %v224_v39, %v224_v39  ;;  %v53_v50 = vsel %vm4863_vm2, 0, %v52_v45  ;;  %v210_v54 = vadd.f32 %v4892_v25, %v188_v44  ;;  %v114_v55 = vld [vmem:[#allocation2 + $0x24] sm:$0x1]  ;;  %vm612_vm7 = vsmask.f32 7440  ;;  %v165_v60 = vld [vmem:[%s6149_s0 + $0x18] sm:$0xff] }
  0x11   :  { %4238 = vmatprep.subr.bf16.mxu1 %v4672_v11  ;;  %v563_v48 = vld [vmem:[#allocation2] sm:$0xf]  ;;  %v595_v51 = vld [vmem:[#allocation2 + $0x4] sm:$0x1]  ;;  %54 = vst [vmem:[#allocation2 + $0x20] sm:$0x1] %v53_v50  ;;  %v4071_v0 = vpack.c.bf16 %v225_v49, %v225_v49  ;;  %v189_v7 = vmul.f32 %v4887_v24, %v165_v60  ;;  %vm4983_vm9 = vmor %vm611_vm6, %vm612_vm7 }
  0x12   :  { %v615_v52 = vshrl.u32 %v563_v48, 16  ;;  %v618_v53 = vshll.u32 %v563_v48, 16  ;;  %v305_v56 = vshrl.u32 %v4070_v47, 16  ;;  %v308_v57 = vshll.u32 %v4070_v47, 16  ;;  %v467_v61 = vld [vmem:[#allocation2 + $0x8] sm:$0xf] }
  0x13   :  { %4367 = vmatpush3.bf16.msra.mxu0 %v4671_v9  ;;  %v624_v58 = vshll.u32 %v595_v51, 16  ;;  %v226_v1 = vmax.f32 %v210_v54, 0.0  ;;  %v4939_v2 = vld [vmem:[%s6148_s3] sm:$0xff]   ;;  %v470_v4 = vld [vmem:[#allocation2 + $0xc] sm:$0x1]  ;;  %v115_v6 = vsel %vm4873_vm4, 0, %v114_v55  ;;  %v211_v18 = vadd.f32 %v4892_v25, %v189_v7 }
  0x14   :  { %4239 = vmatpush3.bf16.msra.mxu1 %v4672_v11  ;;  %4368 = vmatprep.subr.bf16.mxu0 %v4673_v12  ;;  %v617_v62 = vrot.slane %v615_v52, 4  ;;  %v620_v63 = vrot.slane %v618_v53, 5  ;;  %v307_v3 = vrot.slane %v305_v56, 7  ;;  %v166_v8 = vld [vmem:[%s6149_s0 + $0x20] sm:$0xff]  ;;  %v313_v10 = vshrl.u32 %v4071_v0, 16 }
  0x15   :  { %4240 = vmatprep.subr.bf16.mxu1 %v4674_v13  ;;  %v4941_v5 = vrot.slane %v624_v58, 5  ;;  %v316_v11 = vshll.u32 %v4071_v0, 16  ;;  %116 = vst [vmem:[#allocation2 + $0x24] sm:$0x1] %v115_v6  ;;  %v473_v16 = vld [vmem:[#allocation2 + $0x10] sm:$0xf]  ;;  %v190_v20 = vmul.f32 %v4887_v24, %v166_v8 }
  0x16   :  { %v311_v15 = vrot.slane %v307_v3, 4  ;;  %v476_v17 = vld [vmem:[#allocation2 + $0x14] sm:$0x1]  ;;  %v621_v21 = vor.u32 %v620_v63, %v617_v62  ;;  %v315_v22 = vrot.slane %v313_v10, 7  ;;  %v479_v29 = vld [vmem:[#allocation2 + $0x18] sm:$0xf] }
  0x17   :  { %4369 = vmatpush3.bf16.msra.mxu0 %v4673_v12  ;;  %v4072_v12 = vpack.c.bf16 %v226_v1, %v226_v1  ;;  %v482_v30 = vld [vmem:[#allocation2 + $0x1c] sm:$0x1]  ;;  %v227_v31 = vmax.f32 %v211_v18, 0.0  ;;  %v55_v36 = vld [vmem:[#allocation2 + $0x28] sm:$0x1]  ;;  %v168_v1 = vld [vmem:[%s6149_s0 + $0x30] sm:$0xff] }
  0x18   :  { %4241 = vmatpush3.bf16.msra.mxu1 %v4674_v13  ;;  %4370 = vmatprep.subr.bf16.mxu0 %v4675_v28  ;;  %v310_v13 = vor.u32 %v308_v57, %v307_v3  ;;  %v318_v33 = vor.u32 %v316_v11, %v315_v22  ;;  %v319_v34 = vrot.slane %v315_v22, 4  ;;  %v117_v37 = vld [vmem:[#allocation2 + $0x2c] sm:$0x1]  ;;  %v56_v39 = vsel %vm4863_vm2, 0, %v55_v36  ;;  %v58_v42 = vld [vmem:[#allocation2 + $0x30] sm:$0x1] }
  0x19   :  { %4242 = vmatprep.subr.bf16.mxu1 %v4676_v32  ;;  %v321_v23 = vshrl.u32 %v4072_v12, 16  ;;  %v324_v26 = vshll.u32 %v4072_v12, 16  ;;  %v4073_v38 = vpack.c.bf16 %v227_v31, %v227_v31  ;;  %v118_v40 = vsel %vm4873_vm4, 0, %v117_v37  ;;  %57 = vst [vmem:[#allocation2 + $0x28] sm:$0x1] %v56_v39 }
  0x1a   :  { %v468_v27 = vsel %vm4951_vm8, %v310_v13, %v467_v61  ;;  %v474_v44 = vsel %vm4951_vm8, %v318_v33, %v473_v16  ;;  %v477_v45 = vsel %vm4863_vm2, %v319_v34, %v476_v17  ;;  %119 = vst [vmem:[#allocation2 + $0x2c] sm:$0x1] %v118_v40  ;;  %v120_v48 = vld [vmem:[#allocation2 + $0x34] sm:$0x1]  ;;  %v4975_v49 = vrot.slane %v621_v21, 4 }
  0x1b   :  { %4371 = vmatpush3.bf16.msra.mxu0 %v4675_v28  ;;  %v471_v28 = vsel %vm4863_vm2, %v311_v15, %v470_v4  ;;  %469 = vst [vmem:[#allocation2 + $0x8] sm:$0xf] %v468_v27  ;;  %v323_v35 = vrot.slane %v321_v23, 7  ;;  %475 = vst [vmem:[#allocation2 + $0x10] sm:$0xf] %v474_v44  ;;  %v329_v50 = vshrl.u32 %v4073_v38, 16 }
  0x1c   :  { %4243 = vmatpush3.bf16.msra.mxu1 %v4676_v32  ;;  %4372 = vmatprep.subr.bf16.mxu0 %v4677_v43  ;;  %v212_v32 = vadd.f32 %v4892_v25, %v190_v20  ;;  %472 = vst [vmem:[#allocation2 + $0xc] sm:$0x1] %v471_v28  ;;  %478 = vst [vmem:[#allocation2 + $0x14] sm:$0x1] %v477_v45  ;;  %v59_v52 = vsel %vm4863_vm2, 0, %v58_v42  ;;  %v121_v56 = vsel %vm4873_vm4, 0, %v120_v48 }
  0x1d   :  { %4244 = vmatprep.subr.bf16.mxu1 %v4678_v46  ;;  %v327_v47 = vrot.slane %v323_v35, 4  ;;  %60 = vst [vmem:[#allocation2 + $0x30] sm:$0x1] %v59_v52  ;;  %v61_v58 = vld [vmem:[#allocation2 + $0x38] sm:$0x1]  ;;  %v4994_v60 = vrot.slane %v329_v50, 7  ;;  %v627_v8 = vsel %vm4983_vm9, %v4975_v49, %v4941_v5  ;;  %v5017_v28 = vmul.f32 %v4887_v24, %v168_v1 }
  0x1e   :  { %v228_v41 = vmax.f32 %v212_v32, 0.0  ;;  %v332_v61 = vshll.u32 %v4073_v38, 16  ;;  %122 = vst [vmem:[#allocation2 + $0x34] sm:$0x1] %v121_v56  ;;  %v62_v63 = vsel %vm4863_vm2, 0, %v61_v58 }
  0x1f   :  { %4373 = vmatpush3.bf16.msra.mxu0 %v4677_v43  ;;  %v167_v43 = vld [vmem:[%s6149_s0 + $0x28] sm:$0xff]  ;;  %v483_v55 = vsel %vm4863_vm2, %v327_v47, %v482_v30  ;;  %v123_v0 = vld [vmem:[#allocation2 + $0x3c] sm:$0x1]  ;;  %63 = vst [vmem:[#allocation2 + $0x38] sm:$0x1] %v62_v63  ;;  %v335_v33 = vrot.slane %v4994_v60, 4 }
  0x20   :  { %4245 = vmatpush3.bf16.msra.mxu1 %v4678_v46  ;;  %4390 = vmatprep.subr.bf16.mxu0 %v4931_v59  ;;  %v326_v46 = vor.u32 %v324_v26, %v323_v35  ;;  %v4977_v51 = vpack.c.bf16 %v228_v41, %v228_v41  ;;  %v191_v57 = vmul.f32 %v4887_v24, %v167_v43  ;;  %v124_v4 = vsel %vm4873_vm4, 0, %v123_v0  ;;  %v485_v22 = vld [vmem:[#allocation2 + $0x20] sm:$0xf]  ;;  %v488_v49 = vld [vmem:[#allocation2 + $0x24] sm:$0x1]  ;;  %v169_v0 = vld [vmem:[%s6149_s0 + $0x38] sm:$0xff] }
  0x21   :  { %4262 = vmatprep.subr.bf16.mxu1 %v4939_v2  ;;  %484 = vst [vmem:[#allocation2 + $0x1c] sm:$0x1] %v483_v55  ;;  %125 = vst [vmem:[#allocation2 + $0x3c] sm:$0x1] %v124_v4  ;;  %v334_v21 = vor.u32 %v332_v61, %v4994_v60 }
  0x22   :  { %v480_v54 = vsel %vm4951_vm8, %v326_v46, %v479_v29  ;;  %v337_v62 = vshrl.u32 %v4977_v51, 16  ;;  %v340_v3 = vshll.u32 %v4977_v51, 16  ;;  %v564_v6 = vld [vmem:[#allocation2 + $0x8] sm:$0xf]  ;;  %v5012_v16 = vadd.f32 %v4892_v25, %v191_v57  ;;  %v1795_v27 = vld [vmem:[#allocation2 + $0x10] sm:$0xf] }
  0x23   :  { %481 = vst [vmem:[#allocation2 + $0x18] sm:$0xf] %v480_v54  ;;  %v596_v7 = vld [vmem:[#allocation2 + $0xc] sm:$0x1]  ;;  %v1793_v10 = vld [vmem:[#allocation2 + $0x8] sm:$0xf]  ;;  %v486_v44 = vsel %vm4951_vm8, %v334_v21, %v485_v22  ;;  %v214_v51 = vadd.f32 %v4892_v25, %v5017_v28 }
  0x24   :  { %v629_v11 = vshrl.u32 %v564_v6, 16  ;;  %v632_v12 = vshll.u32 %v564_v6, 16  ;;  %v638_v13 = vshll.u32 %v596_v7, 16  ;;  %v5009_v15 = vld [vmem:[#allocation2 + $0xc] sm:$0x1]  ;;  %v1826_v17 = vshrl.u32 %v1793_v10, 16 }
  0x25   :  { %v1829_v18 = vshll.u32 %v1793_v10, 16  ;;  %v1835_v20 = vshll.u32 %v5009_v15, 16  ;;  %v5019_v29 = vld [vmem:[#allocation2 + $0x14] sm:$0x1]  ;;  %v1840_v32 = vshrl.u32 %v1795_v27, 16  ;;  %v1843_v36 = vshll.u32 %v1795_v27, 16 }
  0x26   :  { %v631_v23 = vrot.slane %v629_v11, 4  ;;  %v634_v26 = vrot.slane %v632_v12, 5  ;;  %v640_v5 = vrot.slane %v638_v13, 5  ;;  %v1828_v30 = vrot.slane %v1826_v17, 4  ;;  %v565_v38 = vld [vmem:[#allocation2 + $0x10] sm:$0xf] }
  0x27   :  { %v1831_v31 = vrot.slane %v1829_v18, 5  ;;  %v1837_v35 = vrot.slane %v1835_v20, 5  ;;  %v1849_v37 = vshll.u32 %v5019_v29, 16  ;;  %v1842_v40 = vrot.slane %v1840_v32, 4  ;;  %v597_v42 = vld [vmem:[#allocation2 + $0x14] sm:$0x1] }
  0x28   :  { %v635_v34 = vor.u32 %v634_v26, %v631_v23  ;;  %v643_v43 = vshrl.u32 %v565_v38, 16  ;;  %v1845_v46 = vrot.slane %v1843_v36, 5  ;;  %v646_v48 = vshll.u32 %v565_v38, 16  ;;  %487 = vst [vmem:[#allocation2 + $0x20] sm:$0xf] %v486_v44  ;;  %v4684_v28 = vld [vmem:[%s6148_s3 + $0x10] sm:$0xff]  }
  0x29   :  { %v1832_v39 = vor.u32 %v1831_v31, %v1828_v30  ;;  %v1851_v47 = vrot.slane %v1849_v37, 5  ;;  %v598_v52 = vld [vmem:[#allocation2 + $0x1c] sm:$0x1]  ;;  %v652_v55 = vshll.u32 %v597_v42, 16  ;;  %v2309_v18 = vrot.slane %v5009_v15, 5 }
  0x2a   :  { %v566_v41 = vld [vmem:[#allocation2 + $0x18] sm:$0xf]  ;;  %v636_v45 = vrot.slane %v635_v34, 4  ;;  %v645_v54 = vrot.slane %v643_v43, 4  ;;  %v1846_v58 = vor.u32 %v1845_v46, %v1842_v40  ;;  %v648_v60 = vrot.slane %v646_v48, 5 }
  0x2b   :  { %v1833_v50 = vrot.slane %v1832_v39, 4  ;;  %v657_v56 = vshrl.u32 %v566_v41, 16  ;;  %v660_v61 = vshll.u32 %v566_v41, 16  ;;  %v1797_v63 = vld [vmem:[#allocation2 + $0x18] sm:$0xf]  ;;  %v654_v6 = vrot.slane %v652_v55, 5 }
  0x2c   :  { %v641_v57 = vsel %vm4983_vm9, %v636_v45, %v640_v5  ;;  %v1847_v10 = vrot.slane %v1846_v58, 4  ;;  %v649_v11 = vor.u32 %v648_v60, %v645_v54  ;;  %v666_v13 = vshll.u32 %v598_v52, 16  ;;  %v5032_v17 = vld [vmem:[#allocation2 + $0x1c] sm:$0x1]  ;;  %v491_v38 = vld [vmem:[#allocation2 + $0x28] sm:$0xf] }
  0x2d   :  { %v3766_v1 = vcombine.low %v627_v8, %v641_v57  ;;  %v1838_v4 = vsel %vm4983_vm9, %v1833_v50, %v1837_v35  ;;  %v659_v7 = vrot.slane %v657_v56, 4  ;;  %v662_v12 = vrot.slane %v660_v61, 5  ;;  %v494_v39 = vld [vmem:[#allocation2 + $0x2c] sm:$0x1]  ;;  %v64_v56 = vld [vmem:[#allocation2 + $0x40] sm:$0x1] }
  0x2e   :  { %v489_v20 = vsel %vm4863_vm2, %v335_v33, %v488_v49  ;;  %v1854_v21 = vshrl.u32 %v1797_v63, 16  ;;  %v5038_v8 = vmul.f32 %v4887_v24, %v169_v0  ;;  %v1852_v22 = vsel %vm4983_vm9, %v1847_v10, %v1851_v47  ;;  %v4682_v52 = vld [vmem:[%s6148_s3 + $0x8] sm:$0xff]   ;;  %v126_v61 = vld [vmem:[#allocation2 + $0x44] sm:$0x1] }
  0x2f   :  { %4246 = vmatprep.mubr.bf16.mxu1 %v3766_v1  ;;  %v650_v23 = vrot.slane %v649_v11, 4  ;;  %v663_v26 = vor.u32 %v662_v12, %v659_v7  ;;  %v668_v5 = vrot.slane %v666_v13, 5  ;;  %490 = vst [vmem:[#allocation2 + $0x24] sm:$0x1] %v489_v20  ;;  %v3894_v27 = vcombine.low %v1838_v4, %v1852_v22  ;;  %v1799_v30 = vld [vmem:[#allocation2 + $0x20] sm:$0xf] }
  0x30   :  { %v1856_v31 = vrot.slane %v1854_v21, 4  ;;  %v1857_v32 = vshll.u32 %v1797_v63, 16  ;;  %v1863_v34 = vshll.u32 %v5032_v17, 16  ;;  %v1868_v36 = vshrl.u32 %v1799_v30, 16  ;;  %v567_v40 = vld [vmem:[#allocation2 + $0x20] sm:$0xf] }
  0x31   :  { %v655_v33 = vsel %vm4983_vm9, %v650_v23, %v654_v6  ;;  %v664_v35 = vrot.slane %v663_v26, 4  ;;  %v1871_v37 = vshll.u32 %v1799_v30, 16  ;;  %4374 = vmatprep.mubr.bf16.mxu0 %v3894_v27  ;;  %v2313_v41 = vrot.slane %v5019_v29, 5  ;;  %v70_v21 = vld [vmem:[#allocation2 + $0x50] sm:$0x1]  ;;  %v5076_v27 = vld [vmem:[%s6148_s3 + $0x148] sm:$0xff]  }
  0x32   :  { %v1859_v42 = vrot.slane %v1857_v32, 5  ;;  %v1865_v43 = vrot.slane %v1863_v34, 5  ;;  %v339_v44 = vrot.slane %v337_v62, 7  ;;  %v1870_v46 = vrot.slane %v1868_v36, 4 }
  0x33   :  { %v669_v45 = vsel %vm4983_vm9, %v664_v35, %v668_v5  ;;  %v1873_v47 = vrot.slane %v1871_v37, 5  ;;  %v671_v48 = vshrl.u32 %v567_v40, 16  ;;  %v674_v62 = vshll.u32 %v567_v40, 16  ;;  %v73_v5 = vld [vmem:[#allocation2 + $0x58] sm:$0x1]  ;;  %v170_v35 = vld [vmem:[%s6149_s0 + $0x40] sm:$0xff] }
  0x34   :  { %v3767_v49 = vcombine.low %v655_v33, %v669_v45  ;;  %v1860_v50 = vor.u32 %v1859_v42, %v1856_v31  ;;  %v342_v54 = vor.u32 %v340_v3, %v339_v44  ;;  %v343_v55 = vrot.slane %v339_v44, 4  ;;  %v132_v33 = vld [vmem:[#allocation2 + $0x54] sm:$0x1] }
  0x35   :  { %v1874_v57 = vor.u32 %v1873_v47, %v1870_v46  ;;  %v673_v58 = vrot.slane %v671_v48, 4  ;;  %v229_v60 = vmax.f32 %v5012_v16, 0.0  ;;  %v2317_v10 = vrot.slane %v5032_v17, 5  ;;  %v4686_v46 = vld [vmem:[%s6148_s3 + $0x18] sm:$0xff]  }
  0x36   :  { %4247 = vmatmul.mubr.bf16.vlgmr.msra.gmra.mrb[0].mxu1 %v3767_v49  ;;  %v1800_v63 = vld [vmem:[#allocation2 + $0x24] sm:$0x1]  ;;  %v1861_v0 = vrot.slane %v1860_v50, 4  ;;  %v492_v1 = vsel %vm4951_vm8, %v342_v54, %v491_v38  ;;  %v495_v4 = vsel %vm4863_vm2, %v343_v55, %v494_v39  ;;  %v676_v16 = vrot.slane %v674_v62, 5 }
  0x37   :  { %v599_v6 = vld [vmem:[#allocation2 + $0x24] sm:$0x1]  ;;  %v1875_v3 = vrot.slane %v1874_v57, 4  ;;  %v1877_v7 = vshll.u32 %v1800_v63, 16  ;;  %4263 = vmatpush3.bf16.msra.mxu1 %v4939_v2  ;;  %493 = vst [vmem:[#allocation2 + $0x28] sm:$0xf] %v492_v1  ;;  %v4075_v13 = vpack.c.bf16 %v229_v60, %v229_v60  ;;  %v215_v38 = vadd.f32 %v4892_v25, %v5038_v8 }
  0x38   :  { %496 = vst [vmem:[#allocation2 + $0x2c] sm:$0x1] %v495_v4  ;;  %v1866_v11 = vsel %vm4983_vm9, %v1861_v0, %v1865_v43  ;;  %4264 = vmatprep.subr.bf16.mxu1 %v4682_v52  ;;  %v680_v12 = vshll.u32 %v599_v6, 16  ;;  %v230_v20 = vmax.f32 %v214_v51, 0.0  ;;  %v677_v23 = vor.u32 %v676_v16, %v673_v58  ;;  %v497_v43 = vld [vmem:[#allocation2 + $0x30] sm:$0xf] }
  0x39   :  { %v1879_v22 = vrot.slane %v1877_v7, 5  ;;  %v65_v2 = vsel %vm4863_vm2, 0, %v64_v56  ;;  %v127_v26 = vsel %vm4873_vm4, 0, %v126_v61  ;;  %v345_v31 = vshrl.u32 %v4075_v13, 16  ;;  %v500_v8 = vld [vmem:[#allocation2 + $0x34] sm:$0x1] }
  0x3a   :  { %v5078_v30 = vrot.slane %v680_v12, 5  ;;  %v348_v32 = vshll.u32 %v4075_v13, 16  ;;  %v4076_v34 = vpack.c.bf16 %v230_v20, %v230_v20  ;;  %66 = vst [vmem:[#allocation2 + $0x40] sm:$0x1] %v65_v2  ;;  %128 = vst [vmem:[#allocation2 + $0x44] sm:$0x1] %v127_v26  ;;  %v194_v62 = vmul.f32 %v4887_v24, %v170_v35 }
  0x3b   :  { %v1880_v36 = vsel %vm4983_vm9, %v1875_v3, %v1879_v22  ;;  %4265 = vmatpush3.bf16.msra.mxu1 %v4682_v52  ;;  %v5085_v37 = vrot.slane %v677_v23, 4  ;;  %v71_v39 = vsel %vm4863_vm2, 0, %v70_v21  ;;  %v347_v42 = vrot.slane %v345_v31, 7  ;;  %v5105_v57 = vld [vmem:[%s6148_s3 + $0x150] sm:$0xff]   ;;  %v503_v1 = vld [vmem:[#allocation2 + $0x38] sm:$0xf] }
  0x3c   :  { %v3895_v40 = vcombine.low %v1866_v11, %v1880_v36  ;;  %v353_v44 = vshrl.u32 %v4076_v34, 16  ;;  %v356_v45 = vshll.u32 %v4076_v34, 16  ;;  %4266 = vmatprep.subr.bf16.mxu1 %v4684_v28  ;;  %72 = vst [vmem:[#allocation2 + $0x50] sm:$0x1] %v71_v39  ;;  %v231_v48 = vmax.f32 %v215_v38, 0.0  ;;  %v4688_v51 = vld [vmem:[%s6148_s3 + $0x20] sm:$0xff]  }
  0x3d   :  { %v683_v47 = vsel %vm4983_vm9, %v5085_v37, %v5078_v30  ;;  %v74_v49 = vsel %vm4863_vm2, 0, %v73_v5  ;;  %v133_v50 = vsel %vm4873_vm4, 0, %v132_v33  ;;  %v350_v55 = vor.u32 %v348_v32, %v347_v42  ;;  %v506_v4 = vld [vmem:[#allocation2 + $0x3c] sm:$0x1]  ;;  %v171_v5 = vld [vmem:[%s6149_s0 + $0x48] sm:$0xff] }
  0x3e   :  { %4375 = vmatmul.mubr.bf16.vlgmr.msra.gmra.mrb[0].mxu0 %v3895_v40  ;;  %v568_v52 = vld [vmem:[#allocation2 + $0x28] sm:$0xf]  ;;  %v351_v56 = vrot.slane %v347_v42, 4  ;;  %v355_v58 = vrot.slane %v353_v44, 7  ;;  %75 = vst [vmem:[#allocation2 + $0x58] sm:$0x1] %v74_v49  ;;  %v4077_v6 = vpack.c.bf16 %v231_v48, %v231_v48  ;;  %v195_v49 = vmul.f32 %v4887_v24, %v171_v5 }
  0x3f   :  { %v600_v54 = vld [vmem:[#allocation2 + $0x2c] sm:$0x1]  ;;  %134 = vst [vmem:[#allocation2 + $0x54] sm:$0x1] %v133_v50  ;;  %4391 = vmatpush3.bf16.msra.mxu0 %v4931_v59  ;;  %v685_v60 = vshrl.u32 %v568_v52, 16  ;;  %v688_v61 = vshll.u32 %v568_v52, 16  ;;  %4267 = vmatpush3.bf16.msra.mxu1 %v4684_v28  ;;  %v498_v3 = vsel %vm4951_vm8, %v350_v55, %v497_v43 }
  0x40   :  { %v694_v63 = vshll.u32 %v600_v54, 16  ;;  %v1801_v0 = vld [vmem:[#allocation2 + $0x28] sm:$0xf]  ;;  %4392 = vmatprep.subr.bf16.mxu0 %v5076_v27  ;;  %v501_v59 = vsel %vm4863_vm2, %v351_v56, %v500_v8  ;;  %v1802_v7 = vld [vmem:[#allocation2 + $0x2c] sm:$0x1]  ;;  %4268 = vmatprep.subr.bf16.mxu1 %v4686_v46  ;;  %v358_v2 = vor.u32 %v356_v45, %v355_v58  ;;  %v359_v26 = vrot.slane %v355_v58, 4 }
  0x41   :  { %v1882_v16 = vshrl.u32 %v1801_v0, 16  ;;  %v1885_v11 = vshll.u32 %v1801_v0, 16  ;;  %v687_v12 = vrot.slane %v685_v60, 4  ;;  %v690_v13 = vrot.slane %v688_v61, 5  ;;  %499 = vst [vmem:[#allocation2 + $0x30] sm:$0xf] %v498_v3 }
  0x42   :  { %v696_v20 = vrot.slane %v694_v63, 5  ;;  %502 = vst [vmem:[#allocation2 + $0x34] sm:$0x1] %v501_v59  ;;  %v1891_v28 = vshll.u32 %v1802_v7, 16  ;;  %v135_v21 = vld [vmem:[#allocation2 + $0x5c] sm:$0x1]  ;;  %v504_v39 = vsel %vm4951_vm8, %v358_v2, %v503_v1  ;;  %v216_v8 = vadd.f32 %v4892_v25, %v194_v62 }
  0x43   :  { %v1884_v22 = vrot.slane %v1882_v16, 4  ;;  %v1887_v23 = vrot.slane %v1885_v11, 5  ;;  %4393 = vmatpush3.bf16.msra.mxu0 %v5076_v27  ;;  %v691_v31 = vor.u32 %v690_v13, %v687_v12  ;;  %v361_v34 = vshrl.u32 %v4077_v6, 16  ;;  %v4685_v35 = vld [vmem:[%s6148_s3 + $0x158] sm:$0xff]   ;;  %4269 = vmatpush3.bf16.msra.mxu1 %v4686_v46  ;;  %v5126_v36 = vld [vmem:[#allocation2 + $0x50] sm:$0xf] }
  0x44   :  { %v5121_v32 = vrot.slane %v1891_v28, 5  ;;  %v364_v33 = vshll.u32 %v4077_v6, 16  ;;  %4394 = vmatprep.subr.bf16.mxu0 %v5105_v57  ;;  %v507_v27 = vsel %vm4863_vm2, %v359_v26, %v506_v4  ;;  %v136_v40 = vsel %vm4873_vm4, 0, %v135_v21  ;;  %v172_v42 = vld [vmem:[%s6149_s0 + $0x50] sm:$0xff]  ;;  %4270 = vmatprep.subr.bf16.mxu1 %v4688_v51  ;;  %v4690_v43 = vld [vmem:[%s6148_s3 + $0x28] sm:$0xff]   ;;  %v4687_v58 = vld [vmem:[%s6148_s3 + $0x160] sm:$0xff]  }
  0x45   :  { %v1888_v38 = vor.u32 %v1887_v23, %v1884_v22  ;;  %v692_v44 = vrot.slane %v691_v31, 4  ;;  %505 = vst [vmem:[#allocation2 + $0x38] sm:$0xf] %v504_v39  ;;  %508 = vst [vmem:[#allocation2 + $0x3c] sm:$0x1] %v507_v27  ;;  %v363_v45 = vrot.slane %v361_v34, 7  ;;  %v5169_v7 = vadd.f32 %v4892_v25, %v195_v49 }
  0x46   :  { %v509_v46 = vld [vmem:[#allocation2 + $0x40] sm:$0xf]  ;;  %137 = vst [vmem:[#allocation2 + $0x5c] sm:$0x1] %v136_v40  ;;  %v5142_v48 = vld [vmem:[#allocation2 + $0x54] sm:$0x1] }
  0x47   :  { %v5145_v50 = vrot.slane %v1888_v38, 4  ;;  %v512_v52 = vld [vmem:[#allocation2 + $0x44] sm:$0x1]  ;;  %v727_v54 = vshrl.u32 %v5126_v36, 16  ;;  %v730_v55 = vshll.u32 %v5126_v36, 16  ;;  %v736_v56 = vshll.u32 %v5142_v48, 16  ;;  %4395 = vmatpush3.bf16.msra.mxu0 %v5105_v57  ;;  %4271 = vmatpush3.bf16.msra.mxu1 %v4688_v51 }
  0x48   :  { %v4692_v62 = vld [vmem:[%s6148_s3 + $0x30] sm:$0xff]   ;;  %v697_v60 = vsel %vm4983_vm9, %v692_v44, %v696_v20  ;;  %v366_v61 = vor.u32 %v364_v33, %v363_v45  ;;  %v367_v63 = vrot.slane %v363_v45, 4  ;;  %v232_v0 = vmax.f32 %v216_v8, 0.0  ;;  %4396 = vmatprep.subr.bf16.mxu0 %v4685_v35  ;;  %4272 = vmatprep.subr.bf16.mxu1 %v4690_v43  ;;  %v4694_v2 = vld [vmem:[%s6148_s3 + $0x38] sm:$0xff]  }
  0x49   :  { %v3768_v1 = vcombine.low %v683_v47, %v697_v60  ;;  %v1803_v4 = vld [vmem:[#allocation2 + $0x30] sm:$0xf]  ;;  %v1804_v6 = vld [vmem:[#allocation2 + $0x34] sm:$0x1]  ;;  %v1894_v3 = vsel %vm4983_vm9, %v5145_v50, %v5121_v32  ;;  %v196_v57 = vmul.f32 %v4887_v24, %v172_v42  ;;  %v4689_v24 = vld [vmem:[%s6148_s3 + $0x168] sm:$0xff]  }
  0x4a   :  { %v569_v59 = vld [vmem:[#allocation2 + $0x30] sm:$0xf]  ;;  %v1896_v51 = vshrl.u32 %v1803_v4, 16  ;;  %v1899_v16 = vshll.u32 %v1803_v4, 16  ;;  %v1905_v11 = vshll.u32 %v1804_v6, 16  ;;  %v510_v13 = vsel %vm4951_vm8, %v366_v61, %v509_v46 }
  0x4b   :  { %v601_v12 = vld [vmem:[#allocation2 + $0x34] sm:$0x1]  ;;  %v699_v30 = vshrl.u32 %v569_v59, 16  ;;  %4250 = vmatprep.mubr.bf16.mxu1 %v3768_v1  ;;  %v702_v37 = vshll.u32 %v569_v59, 16  ;;  %v513_v20 = vsel %vm4863_vm2, %v367_v63, %v512_v52  ;;  %511 = vst [vmem:[#allocation2 + $0x40] sm:$0xf] %v510_v13  ;;  %4397 = vmatpush3.bf16.msra.mxu0 %v4685_v35  ;;  %v4078_v33 = vpack.c.bf16 %v232_v0, %v232_v0 }
  0x4c   :  { %v708_v47 = vshll.u32 %v601_v12, 16  ;;  %v1898_v28 = vrot.slane %v1896_v51, 4  ;;  %v1901_v21 = vrot.slane %v1899_v16, 5  ;;  %v1907_v22 = vrot.slane %v1905_v11, 5  ;;  %514 = vst [vmem:[#allocation2 + $0x44] sm:$0x1] %v513_v20  ;;  %4273 = vmatpush3.bf16.msra.mxu1 %v4690_v43  ;;  %4398 = vmatprep.subr.bf16.mxu0 %v4687_v58 }
  0x4d   :  { %v701_v23 = vrot.slane %v699_v30, 4  ;;  %v570_v26 = vld [vmem:[#allocation2 + $0x38] sm:$0xf]  ;;  %v602_v5 = vld [vmem:[#allocation2 + $0x3c] sm:$0x1]  ;;  %v704_v31 = vrot.slane %v702_v37, 5  ;;  %v5185_v38 = vadd.f32 %v4892_v25, %v196_v57  ;;  %4274 = vmatprep.subr.bf16.mxu1 %v4692_v62 }
  0x4e   :  { %v5182_v34 = vrot.slane %v708_v47, 5  ;;  %v1902_v35 = vor.u32 %v1901_v21, %v1898_v28  ;;  %v713_v39 = vshrl.u32 %v570_v26, 16  ;;  %v716_v27 = vshll.u32 %v570_v26, 16  ;;  %v1805_v42 = vld [vmem:[#allocation2 + $0x38] sm:$0xf]  ;;  %v4691_v4 = vld [vmem:[%s6148_s3 + $0x170] sm:$0xff]  }
  0x4f   :  { %v722_v40 = vshll.u32 %v602_v5, 16  ;;  %v705_v43 = vor.u32 %v704_v31, %v701_v23  ;;  %v1806_v44 = vld [vmem:[#allocation2 + $0x3c] sm:$0x1]  ;;  %v1910_v45 = vshrl.u32 %v1805_v42, 16  ;;  %v1913_v46 = vshll.u32 %v1805_v42, 16  ;;  %4399 = vmatpush3.bf16.msra.mxu0 %v4687_v58  ;;  %v5195_v58 = vld [vmem:[%s6148_s3 + $0x80] sm:$0xff]  }
  0x50   :  { %v369_v8 = vshrl.u32 %v4078_v33, 16  ;;  %v1903_v49 = vrot.slane %v1902_v35, 4  ;;  %v715_v52 = vrot.slane %v713_v39, 4  ;;  %v718_v60 = vrot.slane %v716_v27, 5  ;;  %4275 = vmatpush3.bf16.msra.mxu1 %v4692_v62  ;;  %4400 = vmatprep.subr.bf16.mxu0 %v4689_v24  ;;  %v515_v16 = vld [vmem:[#allocation2 + $0x58] sm:$0xf] }
  0x51   :  { %v724_v61 = vrot.slane %v722_v40, 5  ;;  %v706_v63 = vrot.slane %v705_v43, 4  ;;  %v1912_v25 = vrot.slane %v1910_v45, 4  ;;  %v1915_v0 = vrot.slane %v1913_v46, 5  ;;  %4276 = vmatprep.subr.bf16.mxu1 %v4694_v2  ;;  %v518_v11 = vld [vmem:[#allocation2 + $0x5c] sm:$0x1] }
  0x52   :  { %v1919_v1 = vshll.u32 %v1806_v44, 16  ;;  %v1908_v6 = vsel %vm4983_vm9, %v1903_v49, %v1907_v22  ;;  %v719_v59 = vor.u32 %v718_v60, %v715_v52  ;;  %v371_v57 = vrot.slane %v369_v8, 7  ;;  %v1807_v30 = vld [vmem:[#allocation2 + $0x40] sm:$0xf]  ;;  %v138_v26 = vld [vmem:[#allocation2 + $0x64] sm:$0x1] }
  0x53   :  { %v372_v51 = vshll.u32 %v4078_v33, 16  ;;  %v3896_v62 = vcombine.low %v1894_v3, %v1908_v6  ;;  %v711_v12 = vsel %vm4983_vm9, %v706_v63, %v5182_v34  ;;  %v5205_v37 = vld [vmem:[#allocation2 + $0x44] sm:$0x1]  ;;  %v1916_v47 = vor.u32 %v1915_v0, %v1912_v25  ;;  %v76_v20 = vld [vmem:[#allocation2 + $0x60] sm:$0x1]  ;;  %4401 = vmatpush3.bf16.msra.mxu0 %v4689_v24  ;;  %v4693_v33 = vld [vmem:[%s6148_s3 + $0x178] sm:$0xff]  }
  0x54   :  { %v5207_v13 = vrot.slane %v1919_v1, 5  ;;  %v720_v28 = vrot.slane %v719_v59, 4  ;;  %v1924_v21 = vshrl.u32 %v1807_v30, 16  ;;  %v1927_v22 = vshll.u32 %v1807_v30, 16  ;;  %v79_v5 = vld [vmem:[#allocation2 + $0x68] sm:$0x1]  ;;  %4277 = vmatpush3.bf16.msra.mxu1 %v4694_v2  ;;  %4402 = vmatprep.subr.bf16.mxu0 %v4691_v4 }
  0x55   :  { %v1933_v23 = vshll.u32 %v5205_v37, 16  ;;  %v141_v32 = vld [vmem:[#allocation2 + $0x6c] sm:$0x1]  ;;  %4378 = vmatprep.mubr.bf16.mxu0 %v3896_v62  ;;  %v1917_v50 = vrot.slane %v1916_v47, 4  ;;  %v374_v3 = vor.u32 %v372_v51, %v371_v57  ;;  %v375_v31 = vrot.slane %v371_v57, 4  ;;  %v173_v2 = vld [vmem:[%s6149_s0 + $0x58] sm:$0xff]  ;;  %4294 = vmatprep.subr.bf16.mxu1 %v5195_v58 }
  0x56   :  { %v729_v34 = vrot.slane %v727_v54, 4  ;;  %v725_v35 = vsel %vm4983_vm9, %v720_v28, %v724_v61  ;;  %v1926_v39 = vrot.slane %v1924_v21, 4  ;;  %v1929_v27 = vrot.slane %v1927_v22, 5  ;;  %v82_v24 = vld [vmem:[#allocation2 + $0x70] sm:$0x1]  ;;  %v5239_v61 = vld [vmem:[%s6148_s3 + $0x180] sm:$0xff]  }
  0x57   :  { %v1935_v40 = vrot.slane %v1933_v23, 5  ;;  %v3769_v42 = vcombine.low %v711_v12, %v725_v35  ;;  %v1922_v54 = vsel %vm4983_vm9, %v1917_v50, %v5207_v13  ;;  %v516_v43 = vsel %vm4951_vm8, %v374_v3, %v515_v16  ;;  %v144_v45 = vld [vmem:[#allocation2 + $0x74] sm:$0x1]  ;;  %v85_v60 = vld [vmem:[#allocation2 + $0x78] sm:$0x1]  ;;  %4403 = vmatpush3.bf16.msra.mxu0 %v4691_v4  ;;  %v175_v30 = vld [vmem:[%s6149_s0 + $0x68] sm:$0xff] }
  0x58   :  { %v519_v44 = vsel %vm4863_vm2, %v375_v31, %v518_v11  ;;  %v1930_v46 = vor.u32 %v1929_v27, %v1926_v39  ;;  %517 = vst [vmem:[#allocation2 + $0x58] sm:$0xf] %v516_v43  ;;  %v732_v8 = vrot.slane %v730_v55, 5  ;;  %v5232_v49 = vrot.slane %v736_v56, 5  ;;  %v147_v63 = vld [vmem:[#allocation2 + $0x7c] sm:$0x1]  ;;  %4404 = vmatprep.subr.bf16.mxu0 %v4693_v33 }
  0x59   :  { %520 = vst [vmem:[#allocation2 + $0x5c] sm:$0x1] %v519_v44  ;;  %v77_v52 = vsel %vm4863_vm2, 0, %v76_v20  ;;  %4251 = vmatmul.mubr.bf16.gmra.mrb[4].mxu1 %v3769_v42  ;;  %v139_v36 = vsel %vm4873_vm4, 0, %v138_v26  ;;  %v233_v55 = vmax.f32 %v5169_v7, 0.0  ;;  %v80_v48 = vsel %vm4863_vm2, 0, %v79_v5 }
  0x5a   :  { %78 = vst [vmem:[#allocation2 + $0x60] sm:$0x1] %v77_v52  ;;  %v142_v56 = vsel %vm4873_vm4, 0, %v141_v32  ;;  %v1931_v25 = vrot.slane %v1930_v46, 4  ;;  %v733_v0 = vor.u32 %v732_v8, %v729_v34  ;;  %140 = vst [vmem:[#allocation2 + $0x64] sm:$0x1] %v139_v36 }
  0x5b   :  { %81 = vst [vmem:[#allocation2 + $0x68] sm:$0x1] %v80_v48  ;;  %143 = vst [vmem:[#allocation2 + $0x6c] sm:$0x1] %v142_v56  ;;  %v234_v1 = vmax.f32 %v5185_v38, 0.0  ;;  %v83_v4 = vsel %vm4863_vm2, 0, %v82_v24  ;;  %v4079_v6 = vpack.c.bf16 %v233_v55, %v233_v55  ;;  %4405 = vmatpush3.bf16.msra.mxu0 %v4693_v33 }
  0x5c   :  { %v174_v7 = vld [vmem:[%s6149_s0 + $0x60] sm:$0xff]  ;;  %84 = vst [vmem:[#allocation2 + $0x70] sm:$0x1] %v83_v4  ;;  %v145_v59 = vsel %vm4873_vm4, 0, %v144_v45  ;;  %v86_v38 = vsel %vm4863_vm2, 0, %v85_v60  ;;  %v1936_v16 = vsel %vm4983_vm9, %v1931_v25, %v1935_v40  ;;  %v5266_v11 = vrot.slane %v733_v0, 4  ;;  %4422 = vmatprep.subr.bf16.mxu0 %v5239_v61 }
  0x5d   :  { %v5259_v57 = vld [vmem:[%s6150_s1] ss:$0 sm:$0xff]  ;;  %v4080_v62 = vpack.c.bf16 %v234_v1, %v234_v1  ;;  %146 = vst [vmem:[#allocation2 + $0x74] sm:$0x1] %v145_v59  ;;  %87 = vst [vmem:[#allocation2 + $0x78] sm:$0x1] %v86_v38  ;;  %v3897_v13 = vcombine.low %v1922_v54, %v1936_v16 }
  0x5e   :  { %v197_v51 = vmul.f32 %v5259_v57, %v173_v2  ;;  %v148_v12 = vsel %vm4873_vm4, 0, %v147_v63  ;;  %v176_v47 = vld [vmem:[%s6149_s0 + $0x70] sm:$0xff]  ;;  %v377_v20 = vshrl.u32 %v4079_v6, 16  ;;  %v380_v28 = vshll.u32 %v4079_v6, 16  ;;  %v5279_v21 = vld [vmem:[%s6151_s2] ss:$0 sm:$0xff] }
  0x5f   :  { %149 = vst [vmem:[#allocation2 + $0x7c] sm:$0x1] %v148_v12  ;;  %v739_v23 = vsel %vm4983_vm9, %v5266_v11, %v5232_v49  ;;  %v385_v26 = vshrl.u32 %v4080_v62, 16  ;;  %v388_v5 = vshll.u32 %v4080_v62, 16  ;;  %v198_v32 = vmul.f32 %v5259_v57, %v174_v7  ;;  %4379 = vmatmul.mubr.bf16.gmra.mrb[4].mxu0 %v3897_v13  ;;  %v5288_v50 = vld [vmem:[#allocation2 + $0x58] sm:$0xf] }
  0x60   :  { %v219_v22 = vadd.f32 %v5279_v21, %v197_v51  ;;  %v604_v3 = vld [vmem:[#allocation2 + $0x5c] sm:$0x1]  ;;  %v379_v31 = vrot.slane %v377_v20, 7  ;;  %v199_v33 = vmul.f32 %v5259_v57, %v175_v30  ;;  %v5292_v35 = vmul.f32 %v5259_v57, %v176_v47  ;;  %v1809_v44 = vld [vmem:[#allocation2 + $0x58] sm:$0xf] }
  0x61   :  { %v741_v39 = vshrl.u32 %v5288_v50, 16  ;;  %v744_v27 = vshll.u32 %v5288_v50, 16  ;;  %v750_v40 = vshll.u32 %v604_v3, 16  ;;  %v521_v24 = vld [vmem:[#allocation2 + $0x60] sm:$0xf]  ;;  %v387_v2 = vrot.slane %v385_v26, 7 }
  0x62   :  { %v235_v34 = vmax.f32 %v219_v22, 0.0  ;;  %v382_v42 = vor.u32 %v380_v28, %v379_v31  ;;  %v383_v54 = vrot.slane %v379_v31, 4  ;;  %v524_v43 = vld [vmem:[#allocation2 + $0x64] sm:$0x1]  ;;  %v220_v46 = vadd.f32 %v5279_v21, %v198_v32  ;;  %v5297_v36 = vld [vmem:[#allocation2 + $0x5c] sm:$0x1] }
  0x63   :  { %v743_v8 = vrot.slane %v741_v39, 4  ;;  %v746_v52 = vrot.slane %v744_v27, 5  ;;  %v752_v60 = vrot.slane %v750_v40, 5  ;;  %v1938_v55 = vshrl.u32 %v1809_v44, 16  ;;  %v527_v0 = vld [vmem:[#allocation2 + $0x68] sm:$0xf] }
  0x64   :  { %v4081_v45 = vpack.c.bf16 %v235_v34, %v235_v34  ;;  %v522_v48 = vsel %vm4951_vm8, %v382_v42, %v521_v24  ;;  %v525_v56 = vsel %vm4863_vm2, %v383_v54, %v524_v43  ;;  %v1941_v63 = vshll.u32 %v1809_v44, 16  ;;  %v530_v1 = vld [vmem:[#allocation2 + $0x6c] sm:$0x1]  ;;  %v88_v51 = vld [vmem:[#allocation2 + $0x80] sm:$0x1] }
  0x65   :  { %v1947_v25 = vshll.u32 %v5297_v36, 16  ;;  %v747_v4 = vor.u32 %v746_v52, %v743_v8  ;;  %523 = vst [vmem:[#allocation2 + $0x60] sm:$0xf] %v522_v48  ;;  %526 = vst [vmem:[#allocation2 + $0x64] sm:$0x1] %v525_v56  ;;  %v1940_v7 = vrot.slane %v1938_v55, 4  ;;  %v390_v6 = vor.u32 %v388_v5, %v387_v2 }
  0x66   :  { %v391_v59 = vrot.slane %v387_v2, 4  ;;  %v150_v38 = vld [vmem:[#allocation2 + $0x84] sm:$0x1]  ;;  %v1943_v16 = vrot.slane %v1941_v63, 5  ;;  %v393_v12 = vshrl.u32 %v4081_v45, 16  ;;  %v396_v30 = vshll.u32 %v4081_v45, 16 }
  0x67   :  { %v5304_v62 = vrot.slane %v1947_v25, 5  ;;  %v91_v47 = vld [vmem:[#allocation2 + $0x88] sm:$0x1]  ;;  %v748_v13 = vrot.slane %v747_v4, 4  ;;  %v528_v20 = vsel %vm4951_vm8, %v390_v6, %v527_v0  ;;  %v236_v22 = vmax.f32 %v220_v46, 0.0 }
  0x68   :  { %v531_v28 = vsel %vm4863_vm2, %v391_v59, %v530_v1  ;;  %v153_v26 = vld [vmem:[#allocation2 + $0x8c] sm:$0x1]  ;;  %v1944_v32 = vor.u32 %v1943_v16, %v1940_v7  ;;  %529 = vst [vmem:[#allocation2 + $0x68] sm:$0xf] %v528_v20  ;;  %v395_v5 = vrot.slane %v393_v12, 7  ;;  %v89_v31 = vsel %vm4863_vm2, 0, %v88_v51 }
  0x69   :  { %532 = vst [vmem:[#allocation2 + $0x6c] sm:$0x1] %v531_v28  ;;  %v533_v3 = vld [vmem:[#allocation2 + $0x70] sm:$0xf]  ;;  %v151_v34 = vsel %vm4873_vm4, 0, %v150_v38  ;;  %v753_v39 = vsel %vm4983_vm9, %v748_v13, %v752_v60  ;;  %v4082_v40 = vpack.c.bf16 %v236_v22, %v236_v22  ;;  %v221_v24 = vadd.f32 %v5279_v21, %v199_v33 }
  0x6a   :  { %v536_v27 = vld [vmem:[#allocation2 + $0x74] sm:$0x1]  ;;  %90 = vst [vmem:[#allocation2 + $0x80] sm:$0x1] %v89_v31  ;;  %152 = vst [vmem:[#allocation2 + $0x84] sm:$0x1] %v151_v34  ;;  %v3770_v42 = vcombine.low %v739_v23, %v753_v39  ;;  %v398_v43 = vor.u32 %v396_v30, %v395_v5  ;;  %v5342_v48 = vadd.f32 %v5279_v21, %v5292_v35 }
  0x6b   :  { %v92_v2 = vsel %vm4863_vm2, 0, %v91_v47  ;;  %v5324_v54 = vrot.slane %v1944_v32, 4  ;;  %v399_v44 = vrot.slane %v395_v5, 4  ;;  %v401_v45 = vshrl.u32 %v4082_v40, 16  ;;  %v539_v12 = vld [vmem:[#allocation2 + $0x78] sm:$0xf] }
  0x6c   :  { %93 = vst [vmem:[#allocation2 + $0x88] sm:$0x1] %v92_v2  ;;  %v404_v46 = vshll.u32 %v4082_v40, 16  ;;  %v237_v8 = vmax.f32 %v221_v24, 0.0  ;;  %v154_v33 = vsel %vm4873_vm4, 0, %v153_v26  ;;  %4254 = vmatprep.mubr.bf16.mxu1 %v3770_v42  ;;  %v534_v23 = vsel %vm4951_vm8, %v398_v43, %v533_v3 }
  0x6d   :  { %v1811_v52 = vld [vmem:[#allocation2 + $0x60] sm:$0xf]  ;;  %v5328_v60 = vld [vmem:[#allocation2 + $0x64] sm:$0x1]  ;;  %v1950_v49 = vsel %vm4983_vm9, %v5324_v54, %v5304_v62  ;;  %v537_v55 = vsel %vm4863_vm2, %v399_v44, %v536_v27  ;;  %155 = vst [vmem:[#allocation2 + $0x8c] sm:$0x1] %v154_v33 }
  0x6e   :  { %v5334_v11 = vld [vmem:[#allocation2 + $0x60] sm:$0xf]  ;;  %v1952_v56 = vshrl.u32 %v1811_v52, 16  ;;  %v1955_v63 = vshll.u32 %v1811_v52, 16  ;;  %v1961_v25 = vshll.u32 %v5328_v60, 16  ;;  %v403_v6 = vrot.slane %v401_v45, 7 }
  0x6f   :  { %v5345_v0 = vld [vmem:[#allocation2 + $0x64] sm:$0x1]  ;;  %v755_v1 = vshrl.u32 %v5334_v11, 16  ;;  %535 = vst [vmem:[#allocation2 + $0x70] sm:$0xf] %v534_v23  ;;  %v758_v4 = vshll.u32 %v5334_v11, 16  ;;  %v5350_v59 = vpack.c.bf16 %v237_v8, %v237_v8 }
  0x70   :  { %538 = vst [vmem:[#allocation2 + $0x74] sm:$0x1] %v537_v55  ;;  %v764_v7 = vshll.u32 %v5345_v0, 16  ;;  %v1954_v51 = vrot.slane %v1952_v56, 4  ;;  %v1957_v35 = vrot.slane %v1955_v63, 5  ;;  %v1963_v38 = vrot.slane %v1961_v25, 5 }
  0x71   :  { %v5352_v16 = vld [vmem:[#allocation2 + $0x68] sm:$0xf]  ;;  %v757_v62 = vrot.slane %v755_v1, 4  ;;  %v5354_v30 = vld [vmem:[#allocation2 + $0x6c] sm:$0x1]  ;;  %v760_v47 = vrot.slane %v758_v4, 5  ;;  %v406_v3 = vor.u32 %v404_v46, %v403_v6 }
  0x72   :  { %v766_v13 = vrot.slane %v764_v7, 5  ;;  %v769_v20 = vshrl.u32 %v5352_v16, 16  ;;  %v772_v28 = vshll.u32 %v5352_v16, 16  ;;  %v1958_v22 = vor.u32 %v1957_v35, %v1954_v51  ;;  %v1813_v32 = vld [vmem:[#allocation2 + $0x68] sm:$0xf] }
  0x73   :  { %v778_v26 = vshll.u32 %v5354_v30, 16  ;;  %v5359_v5 = vld [vmem:[#allocation2 + $0x6c] sm:$0x1]  ;;  %v407_v31 = vrot.slane %v403_v6, 4  ;;  %v761_v34 = vor.u32 %v760_v47, %v757_v62  ;;  %v1966_v40 = vshrl.u32 %v1813_v32, 16 }
  0x74   :  { %v771_v39 = vrot.slane %v769_v20, 4  ;;  %v774_v27 = vrot.slane %v772_v28, 5  ;;  %v1959_v24 = vrot.slane %v1958_v22, 4  ;;  %v1969_v42 = vshll.u32 %v1813_v32, 16  ;;  %v542_v43 = vld [vmem:[#allocation2 + $0x7c] sm:$0x1] }
  0x75   :  { %v780_v2 = vrot.slane %v778_v26, 5  ;;  %v1975_v54 = vshll.u32 %v5359_v5, 16  ;;  %v762_v44 = vrot.slane %v761_v34, 4  ;;  %v1968_v52 = vrot.slane %v1966_v40, 4 }
  0x76   :  { %v775_v45 = vor.u32 %v774_v27, %v771_v39  ;;  %v1815_v8 = vld [vmem:[#allocation2 + $0x70] sm:$0xf]  ;;  %v540_v46 = vsel %vm4951_vm8, %v406_v3, %v539_v12  ;;  %v1964_v23 = vsel %vm4983_vm9, %v1959_v24, %v1963_v38  ;;  %v1971_v55 = vrot.slane %v1969_v42, 5  ;;  %v545_v24 = vld [vmem:[#allocation2 + $0x80] sm:$0xf]  ;;  %v177_v42 = vld [vmem:[%s6149_s0 + $0x78] sm:$0xff] }
  0x77   :  { %v5362_v33 = vld [vmem:[#allocation2 + $0x74] sm:$0x1]  ;;  %v1977_v56 = vrot.slane %v1975_v54, 5  ;;  %v1980_v63 = vshrl.u32 %v1815_v8, 16  ;;  %541 = vst [vmem:[#allocation2 + $0x78] sm:$0xf] %v540_v46  ;;  %v3898_v1 = vcombine.low %v1950_v49, %v1964_v23  ;;  %v767_v4 = vsel %vm4983_vm9, %v762_v44, %v766_v13 }
  0x78   :  { %v5368_v25 = vld [vmem:[#allocation2 + $0x70] sm:$0xf]  ;;  %v776_v7 = vrot.slane %v775_v45, 4  ;;  %v1983_v6 = vshll.u32 %v1815_v8, 16  ;;  %v5372_v51 = vld [vmem:[#allocation2 + $0x74] sm:$0x1]  ;;  %v1972_v35 = vor.u32 %v1971_v55, %v1968_v52  ;;  %v543_v38 = vsel %vm4863_vm2, %v407_v31, %v542_v43 }
  0x79   :  { %v1982_v62 = vrot.slane %v1980_v63, 4  ;;  %v1989_v12 = vshll.u32 %v5362_v33, 16  ;;  %4382 = vmatprep.mubr.bf16.mxu0 %v3898_v1  ;;  %544 = vst [vmem:[#allocation2 + $0x7c] sm:$0x1] %v543_v38  ;;  %v783_v49 = vshrl.u32 %v5368_v25, 16  ;;  %v786_v13 = vshll.u32 %v5368_v25, 16 }
  0x7a   :  { %v781_v47 = vsel %vm4983_vm9, %v776_v7, %v780_v2  ;;  %v1985_v20 = vrot.slane %v1983_v6, 5  ;;  %v1973_v22 = vrot.slane %v1972_v35, 4  ;;  %v792_v32 = vshll.u32 %v5372_v51, 16  ;;  %v548_v23 = vld [vmem:[#allocation2 + $0x84] sm:$0x1] }
  0x7b   :  { %v3771_v28 = vcombine.low %v767_v4, %v781_v47  ;;  %v1991_v26 = vrot.slane %v1989_v12, 5  ;;  %v785_v34 = vrot.slane %v783_v49, 4  ;;  %v788_v39 = vrot.slane %v786_v13, 5  ;;  %v94_v63 = vld [vmem:[#allocation2 + $0x90] sm:$0x1] }
  0x7c   :  { %v1986_v3 = vor.u32 %v1985_v20, %v1982_v62  ;;  %v409_v31 = vshrl.u32 %v5350_v59, 16  ;;  %v794_v27 = vrot.slane %v792_v32, 5  ;;  %v412_v40 = vshll.u32 %v5350_v59, 16  ;;  %v156_v6 = vld [vmem:[#allocation2 + $0x94] sm:$0x1] }
  0x7d   :  { %4255 = vmatmul.mubr.bf16.gmra.mrb[8].mxu1 %v3771_v28  ;;  %v238_v2 = vmax.f32 %v5342_v48, 0.0  ;;  %v1978_v54 = vsel %vm4983_vm9, %v1973_v22, %v1977_v56  ;;  %v789_v45 = vor.u32 %v788_v39, %v785_v34  ;;  %v201_v22 = vmul.f32 %v5259_v57, %v177_v42  ;;  %v2259_v39 = vld [vmem:[#allocation2 + $0x8] sm:$0xe] }
  0x7e   :  { %v1987_v43 = vrot.slane %v1986_v3, 4  ;;  %v5390_v44 = vld [vmem:[#allocation2 + $0x78] sm:$0xf]  ;;  %v411_v8 = vrot.slane %v409_v31, 7  ;;  %v551_v42 = vld [vmem:[#allocation2 + $0x88] sm:$0xf] }
  0x7f   :  { %v1817_v52 = vld [vmem:[#allocation2 + $0x78] sm:$0xf]  ;;  %v797_v46 = vshrl.u32 %v5390_v44, 16  ;;  %v800_v59 = vshll.u32 %v5390_v44, 16  ;;  %v790_v4 = vrot.slane %v789_v45, 4  ;;  %v4084_v20 = vpack.c.bf16 %v238_v2, %v238_v2 }
  0x80   :  { %v1994_v55 = vshrl.u32 %v1817_v52, 16  ;;  %v1997_v48 = vshll.u32 %v1817_v52, 16  ;;  %v1992_v1 = vsel %vm4983_vm9, %v1987_v43, %v1991_v26  ;;  %v414_v7 = vor.u32 %v412_v40, %v411_v8  ;;  %v5396_v62 = vld [vmem:[#allocation2 + $0x7c] sm:$0x1] }
  0x81   :  { %v415_v56 = vrot.slane %v411_v8, 4  ;;  %v3899_v35 = vcombine.low %v1978_v54, %v1992_v1  ;;  %v799_v12 = vrot.slane %v797_v46, 4  ;;  %v802_v38 = vrot.slane %v800_v59, 5  ;;  %v5398_v47 = vld [vmem:[#allocation2 + $0x7c] sm:$0x1] }
  0x82   :  { %v806_v49 = vshll.u32 %v5396_v62, 16  ;;  %v546_v13 = vsel %vm4951_vm8, %v414_v7, %v545_v24  ;;  %v795_v26 = vsel %vm4983_vm9, %v790_v4, %v794_v27  ;;  %v1996_v3 = vrot.slane %v1994_v55, 4  ;;  %v2260_v54 = vld [vmem:[#allocation2 + $0x10] sm:$0xe]  ;;  %v554_v59 = vld [vmem:[#allocation2 + $0x8c] sm:$0x1] }
  0x83   :  { %v549_v28 = vsel %vm4863_vm2, %v415_v56, %v548_v23  ;;  %4383 = vmatmul.mubr.bf16.gmra.mrb[8].mxu0 %v3899_v35  ;;  %v803_v32 = vor.u32 %v802_v38, %v799_v12  ;;  %547 = vst [vmem:[#allocation2 + $0x80] sm:$0xf] %v546_v13  ;;  %v1999_v34 = vrot.slane %v1997_v48, 5  ;;  %v417_v40 = vshrl.u32 %v4084_v20, 16  ;;  %v4761_v4 = vld [vmem:[#allocation2 + $0x24] sm:$0x1] }
  0x84   :  { %550 = vst [vmem:[#allocation2 + $0x84] sm:$0x1] %v549_v28  ;;  %v808_v31 = vrot.slane %v806_v49, 5  ;;  %v420_v2 = vshll.u32 %v4084_v20, 16  ;;  %v95_v24 = vsel %vm4863_vm2, 0, %v94_v63  ;;  %v2003_v57 = vshll.u32 %v5398_v47, 16 }
  0x85   :  { %v804_v43 = vrot.slane %v803_v32, 4  ;;  %v2000_v45 = vor.u32 %v1999_v34, %v1996_v3  ;;  %96 = vst [vmem:[#allocation2 + $0x90] sm:$0x1] %v95_v24  ;;  %v157_v27 = vsel %vm4873_vm4, 0, %v156_v6  ;;  %v419_v8 = vrot.slane %v417_v40, 7 }
  0x86   :  { %158 = vst [vmem:[#allocation2 + $0x94] sm:$0x1] %v157_v27  ;;  %v223_v52 = vadd.f32 %v5279_v21, %v201_v22  ;;  %v3910_v23 = vrot.slane %v2259_v39, 9  ;;  %v2321_v7 = vrot.slane %v4761_v4, 5  ;;  %v2005_v35 = vrot.slane %v2003_v57, 5 }
  0x87   :  { %v809_v46 = vsel %vm4983_vm9, %v804_v43, %v808_v31  ;;  %v422_v48 = vor.u32 %v420_v2, %v419_v8  ;;  %v423_v63 = vrot.slane %v419_v8, 4  ;;  %v2001_v56 = vrot.slane %v2000_v45, 4  ;;  %v2261_v22 = vld [vmem:[#allocation2 + $0x18] sm:$0xe]  ;;  %v2262_v39 = vld [vmem:[#allocation2 + $0x20] sm:$0xe] }
  0x88   :  { %v3772_v55 = vcombine.low %v795_v26, %v809_v46  ;;  %v239_v1 = vmax.f32 %v223_v52, 0.0  ;;  %v3911_v21 = vrot.slane %v2260_v54, 9  ;;  %v5437_v54 = vsel %vm5416_vm12, %v3910_v23, %v2309_v18 }
  0x89   :  { %v552_v20 = vsel %vm4951_vm8, %v422_v48, %v551_v42  ;;  %v555_v49 = vsel %vm4863_vm2, %v423_v63, %v554_v59  ;;  %v3912_v18 = vrot.slane %v2261_v22, 9  ;;  %v3913_v23 = vrot.slane %v2262_v39, 9 }
  0x8a   :  { %4258 = vmatprep.mubr.bf16.mxu1 %v3772_v55  ;;  %v1819_v12 = vld [vmem:[#allocation2 + $0x80] sm:$0xf]  ;;  %v4085_v28 = vpack.c.bf16 %v239_v1, %v239_v1  ;;  %553 = vst [vmem:[#allocation2 + $0x88] sm:$0xf] %v552_v20  ;;  %556 = vst [vmem:[#allocation2 + $0x8c] sm:$0x1] %v555_v49  ;;  %v5443_v59 = vsel %vm5416_vm12, %v3911_v21, %v2313_v41  ;;  %v2006_v48 = vsel %vm4983_vm9, %v2001_v56, %v2005_v35 }
  0x8b   :  { %v5420_v38 = vld [vmem:[#allocation2 + $0x84] sm:$0x1]  ;;  %v5426_v13 = vld [vmem:[#allocation2 + $0x80] sm:$0xf]  ;;  %v2008_v26 = vshrl.u32 %v1819_v12, 16  ;;  %v2011_v32 = vshll.u32 %v1819_v12, 16  ;;  %v3942_v15 = vcombine.low %v5437_v54, %v5443_v59  ;;  %v5454_v29 = vsel %vm5416_vm12, %v3912_v18, %v2317_v10 }
  0x8c   :  { %v2017_v3 = vshll.u32 %v5420_v38, 16  ;;  %v811_v34 = vshrl.u32 %v5426_v13, 16  ;;  %v5430_v31 = vld [vmem:[#allocation2 + $0x84] sm:$0x1]  ;;  %v814_v40 = vshll.u32 %v5426_v13, 16  ;;  %v425_v2 = vshrl.u32 %v4085_v28, 16 }
  0x8d   :  { %v428_v24 = vshll.u32 %v4085_v28, 16  ;;  %v2010_v43 = vrot.slane %v2008_v26, 4  ;;  %v2013_v45 = vrot.slane %v2011_v32, 5  ;;  %v557_v27 = vld [vmem:[#allocation2 + $0x90] sm:$0xf]  ;;  %v820_v63 = vshll.u32 %v5430_v31, 16 }
  0x8e   :  { %v2019_v57 = vrot.slane %v2017_v3, 5  ;;  %v813_v42 = vrot.slane %v811_v34, 4  ;;  %v816_v8 = vrot.slane %v814_v40, 5  ;;  %v427_v52 = vrot.slane %v425_v2, 7  ;;  %v560_v46 = vld [vmem:[#allocation2 + $0x94] sm:$0x1] }
  0x8f   :  { %v2014_v55 = vor.u32 %v2013_v45, %v2010_v43  ;;  %v5458_v41 = vsel %vm5416_vm12, %v3913_v23, %v2321_v7  ;;  %v822_v39 = vrot.slane %v820_v63, 5  ;;  %v4762_v23 = vld [vmem:[#allocation2] sm:$0xf] }
  0x90   :  { %v430_v1 = vor.u32 %v428_v24, %v427_v52  ;;  %v431_v4 = vrot.slane %v427_v52, 4  ;;  %v817_v20 = vor.u32 %v816_v8, %v813_v42  ;;  %v2268_v59 = vld [vmem:[#allocation2 + $0x60] sm:$0xe] }
  0x91   :  { %v2015_v12 = vrot.slane %v2014_v55, 4  ;;  %v5460_v21 = vld [vmem:[#allocation2 + $0x88] sm:$0xf]  ;;  %v5462_v49 = vld [vmem:[#allocation2 + $0x8c] sm:$0x1] }
  0x92   :  { %v558_v56 = vsel %vm4951_vm8, %v430_v1, %v557_v27  ;;  %v561_v35 = vsel %vm4863_vm2, %v431_v4, %v560_v46  ;;  %v825_v28 = vshrl.u32 %v5460_v21, 16  ;;  %v828_v7 = vshll.u32 %v5460_v21, 16  ;;  %v1821_v26 = vld [vmem:[#allocation2 + $0x88] sm:$0xf]  ;;  %v5475_v24 = vld [vmem:[#allocation2 + $0x8c] sm:$0x1] }
  0x93   :  { %v2020_v10 = vsel %vm4983_vm9, %v2015_v12, %v2019_v57  ;;  %v834_v22 = vshll.u32 %v5462_v49, 16  ;;  %559 = vst [vmem:[#allocation2 + $0x90] sm:$0xf] %v558_v56  ;;  %562 = vst [vmem:[#allocation2 + $0x94] sm:$0x1] %v561_v35  ;;  %v2022_v32 = vshrl.u32 %v1821_v26, 16 }
  0x94   :  { %v3900_v9 = vcombine.low %v2006_v48, %v2020_v10  ;;  %v2025_v3 = vshll.u32 %v1821_v26, 16  ;;  %v818_v34 = vrot.slane %v817_v20, 4  ;;  %v827_v40 = vrot.slane %v825_v28, 4  ;;  %v4763_v48 = vld [vmem:[#allocation2 + $0x8] sm:$0xf] }
  0x95   :  { %v830_v2 = vrot.slane %v828_v7, 5  ;;  %v2024_v43 = vrot.slane %v2022_v32, 4  ;;  %v836_v42 = vrot.slane %v834_v22, 5  ;;  %v2031_v46 = vshll.u32 %v5475_v24, 16  ;;  %v2263_v35 = vld [vmem:[#allocation2 + $0x28] sm:$0xe] }
  0x96   :  { %4386 = vmatprep.mubr.bf16.mxu0 %v3900_v9  ;;  %v2027_v45 = vrot.slane %v2025_v3, 5  ;;  %v823_v27 = vsel %vm4983_vm9, %v818_v34, %v822_v39  ;;  %v3782_v63 = vcombine.low %v4762_v23, %v4763_v48  ;;  %v4764_v9 = vld [vmem:[#allocation2 + $0x4] sm:$0x1]  ;;  %v4765_v3 = vld [vmem:[#allocation2 + $0xc] sm:$0x1] }
  0x97   :  { %v831_v57 = vor.u32 %v830_v2, %v827_v40  ;;  %v2033_v28 = vrot.slane %v2031_v46, 5  ;;  %v1278_v32 = vrot.slane %v4764_v9, 5  ;;  %v1282_v34 = vrot.slane %v4765_v3, 5  ;;  %v4766_v2 = vld [vmem:[#allocation2 + $0x14] sm:$0x1] }
  0x98   :  { %v2028_v52 = vor.u32 %v2027_v45, %v2024_v43  ;;  %v1286_v43 = vrot.slane %v4766_v2, 5  ;;  %v2264_v45 = vld [vmem:[#allocation2 + $0x30] sm:$0xe]  ;;  %v4769_v23 = vld [vmem:[#allocation2 + $0x18] sm:$0xf] }
  0x99   :  { %v832_v8 = vrot.slane %v831_v57, 4  ;;  %v3914_v57 = vrot.slane %v2263_v35, 9  ;;  %v4770_v35 = vld [vmem:[#allocation2 + $0x20] sm:$0xf]  ;;  %v4773_v3 = vld [vmem:[#allocation2 + $0x1c] sm:$0x1] }
  0x9a   :  { %v1823_v55 = vld [vmem:[#allocation2 + $0x90] sm:$0xf]  ;;  %v5480_v18 = vld [vmem:[#allocation2 + $0x94] sm:$0x1]  ;;  %v2029_v10 = vrot.slane %v2028_v52, 4 }
  0x9b   :  { %v837_v1 = vsel %vm4983_vm9, %v832_v8, %v836_v42  ;;  %v2036_v4 = vshrl.u32 %v1823_v55, 16  ;;  %v2039_v12 = vshll.u32 %v1823_v55, 16  ;;  %v2045_v20 = vshll.u32 %v5480_v18, 16  ;;  %v1225_v42 = vld [vmem:[#allocation2] sm:$0xe] }
  0x9c   :  { %v3773_v56 = vcombine.low %v823_v27, %v837_v1  ;;  %v2034_v27 = vsel %vm4983_vm9, %v2029_v10, %v2033_v28  ;;  %v4767_v52 = vld [vmem:[#allocation2 + $0x2c] sm:$0x1]  ;;  %v4768_v55 = vld [vmem:[#allocation2 + $0x10] sm:$0xf]  ;;  %v3915_v28 = vrot.slane %v2264_v45, 9  ;;  %v3798_v2 = vrot.slane %v1225_v42, 9 }
  0x9d   :  { %v2038_v7 = vrot.slane %v2036_v4, 4  ;;  %v2041_v22 = vrot.slane %v2039_v12, 5  ;;  %v2047_v40 = vrot.slane %v2045_v20, 5  ;;  %v2325_v46 = vrot.slane %v4767_v52, 5  ;;  %v4700_v1 = vld [vmem:[%s6148_s3 + $0x88] sm:$0xff]  }
  0x9e   :  { %4259 = vmatmul.mubr.bf16.gmra.mrb[12].mxu1 %v3773_v56  ;;  %v3783_v48 = vcombine.low %v4768_v55, %v4769_v23  ;;  %v1226_v4 = vld [vmem:[#allocation2 + $0x8] sm:$0xe]  ;;  %v1227_v12 = vld [vmem:[#allocation2 + $0x10] sm:$0xe]  ;;  %v1228_v20 = vld [vmem:[#allocation2 + $0x18] sm:$0xe]  ;;  %v5502_v42 = vsel %vm5416_vm12, %v3798_v2, %v1278_v32 }
  0x9f   :  { %v2042_v39 = vor.u32 %v2041_v22, %v2038_v7  ;;  %4278 = vmatprep.mubr.bf16.mxu1 %v3782_v63  ;;  %v4771_v7 = vld [vmem:[#allocation2 + $0x28] sm:$0xf]  ;;  %v4772_v22 = vld [vmem:[#allocation2 + $0x34] sm:$0x1]  ;;  %v3799_v52 = vrot.slane %v1226_v4, 9  ;;  %v3800_v26 = vrot.slane %v1227_v12, 9 }
  0xa0   :  { %v3784_v10 = vcombine.low %v4770_v35, %v4771_v7  ;;  %v2329_v9 = vrot.slane %v4772_v22, 5  ;;  %v2265_v55 = vld [vmem:[#allocation2 + $0x38] sm:$0xe]  ;;  %v2266_v23 = vld [vmem:[#allocation2 + $0x40] sm:$0xe]  ;;  %v3801_v17 = vrot.slane %v1228_v20, 9 }
  0xa1   :  { %v2043_v8 = vrot.slane %v2042_v39, 4  ;;  %v1290_v39 = vrot.slane %v4773_v3, 5  ;;  %v2267_v45 = vld [vmem:[#allocation2 + $0x58] sm:$0xe]  ;;  %v5517_v32 = vsel %vm5416_vm12, %v3800_v26, %v1286_v43  ;;  %v4699_v20 = vld [vmem:[%s6148_s3 + $0x188] sm:$0xff]   ;;  %v2337_v26 = vrot.slane %v5205_v37, 5 }
  0xa2   :  { %v2330_v54 = vsel %vm5416_vm12, %v3915_v28, %v2329_v9  ;;  %v3918_v43 = vrot.slane %v2267_v45, 9  ;;  %v5529_v35 = vld [vmem:[#allocation2 + $0x70] sm:$0xe]  ;;  %v2341_v28 = vrot.slane %v5297_v36, 5  ;;  %v3919_v22 = vrot.slane %v2268_v59, 9 }
  0xa3   :  { %v2048_v63 = vsel %vm4983_vm9, %v2043_v8, %v2047_v40  ;;  %v2326_v40 = vsel %vm5416_vm12, %v3914_v57, %v2325_v46  ;;  %v4774_v57 = vld [vmem:[#allocation2 + $0x30] sm:$0xf]  ;;  %v3916_v46 = vrot.slane %v2265_v55, 9  ;;  %v5523_v12 = vsel %vm5416_vm12, %v3801_v17, %v1290_v39  ;;  %v4706_v17 = vld [vmem:[%s6148_s3 + $0x98] sm:$0xff]   ;;  %v67_v3 = vld [vmem:[#allocation2 + $0x48] sm:$0x1] }
  0xa4   :  { %v3901_v56 = vcombine.low %v2034_v27, %v2048_v63  ;;  %v5506_v27 = vsel %vm5416_vm12, %v3799_v52, %v1282_v34  ;;  %v4775_v34 = vld [vmem:[#allocation2 + $0x38] sm:$0xf]  ;;  %v5519_v63 = vld [vmem:[#allocation2 + $0x68] sm:$0xe]  ;;  %v3831_v7 = vcombine.low %v5517_v32, %v5523_v12  ;;  %v2345_v37 = vrot.slane %v5328_v60, 5  ;;  %v4702_v36 = vld [vmem:[%s6148_s3 + $0x190] sm:$0xff]  }
  0xa5   :  { %v3785_v8 = vcombine.low %v4774_v57, %v4775_v34  ;;  %v5537_v9 = vld [vmem:[#allocation2 + $0x78] sm:$0xe]  ;;  %v68_v39 = vsel %vm4863_vm2, 0, %v67_v3  ;;  %v4777_v2 = vld [vmem:[#allocation2 + $0x50] sm:$0xf]  ;;  %v6166_v52 = vcombine.low %v5454_v29, %v5458_v41  ;;  %v3920_v55 = vrot.slane %v5519_v63, 9 }
  0xa6   :  { %4387 = vmatmul.mubr.bf16.gmra.mrb[12].mxu0 %v3901_v56  ;;  %4279 = vmatmul.mubr.bf16.vlgmr.msra.gmra.mrb[0].mxu1 %v3783_v48  ;;  %v4776_v48 = vld [vmem:[#allocation2 + $0x3c] sm:$0x1]  ;;  %v3917_v56 = vrot.slane %v2266_v23, 9  ;;  %69 = vst [vmem:[#allocation2 + $0x48] sm:$0x1] %v68_v39  ;;  %v2349_v60 = vrot.slane %v5359_v5, 5  ;;  %v2346_v5 = vsel %vm5416_vm12, %v3919_v22, %v2345_v37  ;;  %v6167_v22 = vcombine.low %v5334_v11, %v5352_v16 }
  0xa7   :  { %4406 = vmatprep.mubr.bf16.mxu0 %v3942_v15  ;;  %4295 = vmatpush3.bf16.msra.mxu1 %v5195_v58  ;;  %v4704_v58 = vld [vmem:[%s6148_s3 + $0x90] sm:$0xff]   ;;  %v3830_v15 = vcombine.low %v5502_v42, %v5506_v27  ;;  %v2333_v4 = vrot.slane %v4776_v48, 5  ;;  %v2272_v23 = vld [vmem:[#allocation2 + $0x80] sm:$0xe]  ;;  %v2353_v45 = vrot.slane %v5362_v33, 5  ;;  %v3922_v59 = vrot.slane %v5537_v9, 9 }
  0xa8   :  { %4296 = vmatprep.subr.bf16.mxu1 %v4700_v1  ;;  %4282 = vmatprep.mubr.bf16.mxu1 %v3784_v10  ;;  %v3944_v10 = vcombine.low %v2326_v40, %v2330_v54  ;;  %v2338_v29 = vsel %vm5416_vm12, %v3917_v56, %v2337_v26  ;;  %v4710_v41 = vld [vmem:[%s6148_s3 + $0xa0] sm:$0xff]   ;;  %v3921_v40 = vrot.slane %v5529_v35, 9  ;;  %v5561_v54 = vld [vmem:[#allocation2 + $0x88] sm:$0xe]  ;;  %v1318_v57 = vrot.slane %v5345_v0, 5  ;;  %v4716_v11 = vld [vmem:[%s6148_s3 + $0xb0] sm:$0xff]  }
  0xa9   :  { %v2357_v34 = vrot.slane %v5398_v47, 5  ;;  %v1236_v33 = vld [vmem:[#allocation2 + $0x68] sm:$0xe]  ;;  %v3923_v26 = vrot.slane %v2272_v23, 9  ;;  %v2361_v47 = vrot.slane %v5420_v38, 5  ;;  %v3788_v38 = vcombine.low %v5368_v25, %v5390_v44  ;;  %v4727_v32 = vld [vmem:[%s6148_s3 + $0xd0] sm:$0xff]  }
  0xaa   :  { %v3809_v63 = vrot.slane %v1236_v33, 9  ;;  %v4712_v0 = vld [vmem:[%s6148_s3 + $0xa8] sm:$0xff]   ;;  %v2350_v9 = vsel %vm5416_vm12, %v3920_v55, %v2349_v60  ;;  %v1237_v3 = vld [vmem:[#allocation2 + $0x70] sm:$0xe]  ;;  %v1238_v37 = vld [vmem:[#allocation2 + $0x78] sm:$0xe]  ;;  %v2354_v44 = vsel %vm5416_vm12, %v3921_v40, %v2353_v45  ;;  %v3789_v39 = vcombine.low %v5426_v13, %v5460_v21 }
  0xab   :  { %4297 = vmatpush3.bf16.msra.mxu1 %v4700_v1  ;;  %v3786_v1 = vcombine.low %v4777_v2, %v5288_v50  ;;  %v2334_v50 = vsel %vm5416_vm12, %v3916_v46, %v2333_v4  ;;  %v1322_v46 = vrot.slane %v5354_v30, 5  ;;  %v3924_v30 = vrot.slane %v5561_v54, 9  ;;  %v1229_v21 = vld [vmem:[#allocation2 + $0x20] sm:$0xe]  ;;  %v4780_v27 = vld [vmem:[#allocation2 + $0x34] sm:$0x1] }
  0xac   :  { %4298 = vmatprep.subr.bf16.mxu1 %v4704_v58  ;;  %v3945_v48 = vcombine.low %v2334_v50, %v2338_v29  ;;  %v1330_v25 = vrot.slane %v5396_v62, 5  ;;  %v3810_v16 = vrot.slane %v1237_v3, 9  ;;  %v3811_v2 = vrot.slane %v1238_v37, 9  ;;  %v1239_v23 = vld [vmem:[#allocation2 + $0x80] sm:$0xe]  ;;  %v4724_v3 = vld [vmem:[%s6148_s3 + $0xc8] sm:$0xff]  }
  0xad   :  { %v2362_v62 = vsel %vm5416_vm12, %v3923_v26, %v2361_v47  ;;  %v2369_v13 = vrot.slane %v5480_v18, 5  ;;  %v1240_v50 = vld [vmem:[#allocation2 + $0x88] sm:$0xe]  ;;  %v1338_v29 = vrot.slane %v5462_v49, 5  ;;  %v3812_v40 = vrot.slane %v1239_v23, 9  ;;  %v4721_v26 = vld [vmem:[%s6148_s3 + $0xc0] sm:$0xff]  }
  0xae   :  { %4407 = vmatmul.mubr.bf16.vlgmr.msra.gmra.mrb[0].mxu0 %v6166_v52  ;;  %4283 = vmatmul.mubr.bf16.gmra.mrb[4].mxu1 %v3785_v8  ;;  %v1235_v8 = vld [vmem:[#allocation2 + $0x60] sm:$0xe]  ;;  %v1334_v52 = vrot.slane %v5430_v31, 5  ;;  %v5624_v60 = vsel %vm5416_vm12, %v3811_v2, %v1330_v25  ;;  %v4711_v31 = vld [vmem:[%s6148_s3 + $0x1a8] sm:$0xff]   ;;  %v3813_v45 = vrot.slane %v1240_v50, 9  ;;  %v3802_v33 = vrot.slane %v1229_v21, 9 }
  0xaf   :  { %4423 = vmatpush3.bf16.msra.mxu0 %v5239_v61  ;;  %4410 = vmatprep.mubr.bf16.mxu0 %v3944_v10  ;;  %v2342_v61 = vsel %vm5416_vm12, %v3918_v43, %v2341_v28  ;;  %v3808_v4 = vrot.slane %v1235_v8, 9  ;;  %v5578_v43 = vld [vmem:[#allocation2 + $0x90] sm:$0xe]  ;;  %v1326_v10 = vrot.slane %v5372_v51, 5  ;;  %v2365_v51 = vrot.slane %v5475_v24, 5 }
  0xb0   :  { %4424 = vmatprep.subr.bf16.mxu0 %v4699_v20  ;;  %4299 = vmatpush3.bf16.msra.mxu1 %v4704_v58  ;;  %v4705_v58 = vld [vmem:[%s6148_s3 + $0x198] sm:$0xff]   ;;  %v3946_v56 = vcombine.low %v2342_v61, %v2346_v5  ;;  %v2358_v24 = vsel %vm5416_vm12, %v3922_v59, %v2357_v34  ;;  %v5637_v49 = vsel %vm5416_vm12, %v3812_v40, %v1334_v52  ;;  %v1231_v47 = vld [vmem:[#allocation2 + $0x30] sm:$0xe] }
  0xb1   :  { %4300 = vmatprep.subr.bf16.mxu1 %v4706_v17  ;;  %4286 = vmatprep.mubr.bf16.mxu1 %v3786_v1  ;;  %v5583_v35 = vsel %vm5416_vm12, %v3808_v4, %v1318_v57  ;;  %v3925_v1 = vrot.slane %v5578_v43, 9  ;;  %v5620_v55 = vsel %vm5416_vm12, %v3810_v16, %v1326_v10  ;;  %v3948_v61 = vcombine.low %v2358_v24, %v2362_v62  ;;  %v97_v5 = vld [vmem:[#allocation2 + $0x98] sm:$0x1]  ;;  %v4779_v4 = vld [vmem:[#allocation2 + $0x2c] sm:$0x1] }
  0xb2   :  { %v3836_v18 = vcombine.low %v5620_v55, %v5624_v60  ;;  %v4718_v59 = vld [vmem:[%s6148_s3 + $0xb8] sm:$0xff]   ;;  %v5641_v57 = vsel %vm5416_vm12, %v3813_v45, %v1338_v29  ;;  %v98_v34 = vsel %vm4863_vm2, 0, %v97_v5  ;;  %v3804_v42 = vrot.slane %v1231_v47, 9  ;;  %v4722_v29 = vld [vmem:[#allocation2 + $0x20] ss:$8 sps:$4 sm:$0xff]  }
  0xb3   :  { %4425 = vmatpush3.bf16.msra.mxu0 %v4699_v20  ;;  %v5587_v20 = vsel %vm5416_vm12, %v3809_v63, %v1322_v46  ;;  %v3837_v8 = vcombine.low %v5637_v49, %v5641_v57  ;;  %99 = vst [vmem:[#allocation2 + $0x98] sm:$0x1] %v98_v34  ;;  %v4778_v46 = vld [vmem:[#allocation2 + $0x24] sm:$0x1]  ;;  %v1298_v63 = vrot.slane %v4779_v4, 5 }
  0xb4   :  { %4426 = vmatprep.subr.bf16.mxu0 %v4702_v36  ;;  %4301 = vmatpush3.bf16.msra.mxu1 %v4706_v17  ;;  %v3835_v28 = vcombine.low %v5583_v35, %v5587_v20  ;;  %v4708_v17 = vld [vmem:[%s6148_s3 + $0x1a0] sm:$0xff]   ;;  %v1232_v43 = vld [vmem:[#allocation2 + $0x38] sm:$0xe]  ;;  %v4781_v25 = vld [vmem:[#allocation2 + $0x3c] sm:$0x1] }
  0xb5   :  { %4302 = vmatprep.subr.bf16.mxu1 %v4710_v41  ;;  %v4783_v16 = vld [vmem:[#allocation2 + $0x5c] sm:$0x1]  ;;  %v2826_v52 = vld [vmem:[#allocation2 + $0x18] sm:$0xf]  ;;  %v2830_v4 = vld [vmem:[#allocation2 + $0x28] sm:$0xf] }
  0xb6   :  { %4411 = vmatmul.mubr.bf16.gmra.mrb[4].mxu0 %v3945_v48  ;;  %4287 = vmatmul.mubr.bf16.gmra.mrb[8].mxu1 %v6167_v22  ;;  %v1294_v48 = vrot.slane %v4778_v46, 5  ;;  %v1234_v22 = vld [vmem:[#allocation2 + $0x58] sm:$0xe]  ;;  %v1314_v2 = vrot.slane %v4783_v16, 5  ;;  %v2874_v40 = vshll.u32 %v2826_v52, 16 }
  0xb7   :  { %4427 = vmatpush3.bf16.msra.mxu0 %v4702_v36  ;;  %4414 = vmatprep.mubr.bf16.mxu0 %v3946_v56  ;;  %v1230_v36 = vld [vmem:[#allocation2 + $0x28] sm:$0xe]  ;;  %v2366_v56 = vsel %vm5416_vm12, %v3924_v30, %v2365_v51  ;;  %v3805_v51 = vrot.slane %v1232_v43, 9  ;;  %v3807_v62 = vrot.slane %v1234_v22, 9  ;;  %v4725_v45 = vld [vmem:[#allocation2 + $0x30] ss:$8 sps:$4 sm:$0xff]  }
  0xb8   :  { %4428 = vmatprep.subr.bf16.mxu0 %v4705_v58  ;;  %4303 = vmatpush3.bf16.msra.mxu1 %v4710_v41  ;;  %v3947_v41 = vcombine.low %v2350_v9, %v2354_v44  ;;  %v1295_v30 = vsel %vm5416_vm12, %v3802_v33, %v1294_v48  ;;  %v4717_v9 = vld [vmem:[%s6148_s3 + $0x1b8] sm:$0xff]   ;;  %v1306_v44 = vrot.slane %v4781_v25, 5  ;;  %v2828_v33 = vld [vmem:[#allocation2 + $0x20] sm:$0xf]  ;;  %v2832_v25 = vld [vmem:[#allocation2 + $0x30] sm:$0xf] }
  0xb9   :  { %4304 = vmatprep.subr.bf16.mxu1 %v4712_v0  ;;  %4290 = vmatprep.mubr.bf16.mxu1 %v3788_v38  ;;  %v4719_v38 = vld [vmem:[#allocation2 + $0x10] ss:$8 sps:$4 sm:$0xff]   ;;  %v5697_v34 = vld [vmem:[#allocation2 + $0x1c] sm:$0x1]  ;;  %v2885_v47 = vshrl.u32 %v2828_v33, 16  ;;  %v2888_v43 = vshll.u32 %v2828_v33, 16 }
  0xba   :  { %v4739_v33 = vld [vmem:[%s6148_s3 + $0xf0] sm:$0xff]   ;;  %v2840_v60 = vld [vmem:[#allocation2 + $0x60] sm:$0xf] }
  0xbb   :  { %4429 = vmatpush3.bf16.msra.mxu0 %v4705_v58  ;;  %v3803_v58 = vrot.slane %v1230_v36, 9  ;;  %v1307_v36 = vsel %vm5416_vm12, %v3805_v51, %v1306_v44  ;;  %v4729_v51 = vld [vmem:[%s6148_s3 + $0x1d8] sm:$0xff]   ;;  %v2890_v16 = vrot.slane %v2888_v43, 5 }
  0xbc   :  { %4430 = vmatprep.subr.bf16.mxu0 %v4708_v17  ;;  %4305 = vmatpush3.bf16.msra.mxu1 %v4712_v0  ;;  %v2370_v0 = vsel %vm5416_vm12, %v3925_v1, %v2369_v13  ;;  %v2824_v1 = vld [vmem:[#allocation2 + $0x10] sm:$0xf]  ;;  %v4720_v13 = vld [vmem:[%s6148_s3 + $0x1c0] sm:$0xff]   ;;  %v2834_v44 = vld [vmem:[#allocation2 + $0x38] sm:$0xf] }
  0xbd   :  { %4306 = vmatprep.subr.bf16.mxu1 %v4716_v11  ;;  %v3949_v54 = vcombine.low %v2366_v56, %v2370_v0  ;;  %v1299_v10 = vsel %vm5416_vm12, %v3803_v58, %v1298_v63  ;;  %v2857_v23 = vshrl.u32 %v2824_v1, 16  ;;  %v2860_v50 = vshll.u32 %v2824_v1, 16  ;;  %v5699_v56 = vld [vmem:[#allocation2 + $0x24] sm:$0x1]  ;;  %v4726_v0 = vld [vmem:[%s6148_s3 + $0x1d0] sm:$0xff]  }
  0xbe   :  { %4415 = vmatmul.mubr.bf16.gmra.mrb[8].mxu0 %v3947_v41  ;;  %4291 = vmatmul.mubr.bf16.gmra.mrb[12].mxu1 %v3789_v39  ;;  %v3832_v37 = vcombine.low %v1295_v30, %v1299_v10  ;;  %v4782_v39 = vld [vmem:[#allocation2 + $0x54] sm:$0x1]  ;;  %v4723_v41 = vld [vmem:[%s6148_s3 + $0x1c8] sm:$0xff]   ;;  %v4733_v30 = vld [vmem:[%s6148_s3 + $0xe0] sm:$0xff]  }
  0xbf   :  { %4431 = vmatpush3.bf16.msra.mxu0 %v4708_v17  ;;  %4418 = vmatprep.mubr.bf16.mxu0 %v3948_v61  ;;  %v1233_v17 = vld [vmem:[#allocation2 + $0x50] sm:$0xe]  ;;  %v5692_v61 = vld [vmem:[#allocation2 + $0x14] sm:$0x1]  ;;  %v2859_v48 = vrot.slane %v2857_v23, 4  ;;  %v2862_v58 = vrot.slane %v2860_v50, 5 }
  0xc0   :  { %4432 = vmatprep.subr.bf16.mxu0 %v4711_v31  ;;  %4307 = vmatpush3.bf16.msra.mxu1 %v4716_v11  ;;  %v1310_v11 = vrot.slane %v4782_v39, 5  ;;  %v3806_v24 = vrot.slane %v1233_v17, 9  ;;  %v5708_v10 = vld [vmem:[#allocation2 + $0x2c] sm:$0x1]  ;;  %v2902_v17 = vshll.u32 %v2830_v4, 16 }
  0xc1   :  { %4308 = vmatprep.subr.bf16.mxu1 %v4718_v59  ;;  %4310 = vmatprep.mubr.bf16.mxu1 %v3830_v15  ;;  %v1302_v15 = vrot.slane %v4780_v27, 5  ;;  %v2880_v27 = vshll.u32 %v5697_v34, 16  ;;  %v2836_v1 = vld [vmem:[#allocation2 + $0x40] sm:$0xf]  ;;  %v2838_v23 = vld [vmem:[#allocation2 + $0x48] sm:$0xf] }
  0xc2   :  { %v1311_v12 = vsel %vm5416_vm12, %v3806_v24, %v1310_v11  ;;  %v2887_v11 = vrot.slane %v2885_v47, 4  ;;  %v4736_v50 = vld [vmem:[%s6148_s3 + $0xe8] sm:$0xff]  }
  0xc3   :  { %4433 = vmatpush3.bf16.msra.mxu0 %v4711_v31  ;;  %v1303_v21 = vsel %vm5416_vm12, %v3804_v42, %v1302_v15  ;;  %v2871_v31 = vshrl.u32 %v2826_v52, 16  ;;  %v4731_v42 = vld [vmem:[#allocation2 + $0x60] ss:$8 sps:$4 sm:$0xff]   ;;  %v2894_v15 = vshll.u32 %v5699_v56, 16  ;;  %v2913_v52 = vshrl.u32 %v2832_v25, 16 }
  0xc4   :  { %4434 = vmatprep.subr.bf16.mxu0 %v4714_v14  ;;  %4309 = vmatpush3.bf16.msra.mxu1 %v4718_v59  ;;  %v3833_v5 = vcombine.low %v1303_v21, %v1307_v36  ;;  %v4730_v59 = vld [vmem:[%s6148_s3 + $0xd8] sm:$0xff]   ;;  %v2927_v21 = vshrl.u32 %v2834_v44, 16  ;;  %v2930_v36 = vshll.u32 %v2834_v44, 16  ;;  %v2972_v44 = vshll.u32 %v2840_v60, 16 }
  0xc5   :  { %4326 = vmatprep.subr.bf16.mxu1 %v4721_v26  ;;  %v2873_v63 = vrot.slane %v2871_v31, 4  ;;  %v2891_v31 = vor.u32 %v2890_v16, %v2887_v11  ;;  %v2915_v35 = vrot.slane %v2913_v52, 4  ;;  %v4738_v16 = vld [vmem:[%s6148_s3 + $0x1f0] sm:$0xff]  }
  0xc6   :  { %4419 = vmatmul.mubr.bf16.gmra.mrb[12].mxu0 %v3949_v54  ;;  %v129_v54 = vld [vmem:[#allocation2 + $0x4c] sm:$0x1] }
  0xc7   :  { %4435 = vmatpush3.bf16.msra.mxu0 %v4714_v14  ;;  %4438 = vmatprep.mubr.bf16.mxu0 %v4719_v38  ;;  %v2876_v14 = vrot.slane %v2874_v40, 5  ;;  %v2899_v38 = vshrl.u32 %v2830_v4, 16  ;;  %v130_v22 = vsel %vm4873_vm4, 0, %v129_v54  ;;  %v2955_v4 = vshrl.u32 %v2838_v23, 16 }
  0xc8   :  { %4436 = vmatprep.subr.bf16.mxu0 %v4717_v9  ;;  %4311 = vmatmul.mubr.bf16.vlgmr.msra.gmra.mrb[0].mxu1 %v3831_v7  ;;  %v1315_v7 = vsel %vm5416_vm12, %v3807_v62, %v1314_v2  ;;  %131 = vst [vmem:[#allocation2 + $0x4c] sm:$0x1] %v130_v22  ;;  %v2908_v2 = vshll.u32 %v5708_v10, 16  ;;  %v2904_v62 = vrot.slane %v2902_v17, 5 }
  0xc9   :  { %4327 = vmatpush3.bf16.msra.mxu1 %v4721_v26  ;;  %4314 = vmatprep.mubr.bf16.mxu1 %v3832_v37  ;;  %v3834_v46 = vcombine.low %v1311_v12, %v1315_v7  ;;  %v2866_v26 = vshll.u32 %v5692_v61, 16  ;;  %v2877_v37 = vor.u32 %v2876_v14, %v2873_v63  ;;  %v2901_v24 = vrot.slane %v2899_v38, 4  ;;  %v4732_v7 = vld [vmem:[%s6148_s3 + $0x1e0] sm:$0xff]   ;;  %v2842_v38 = vld [vmem:[#allocation2 + $0x68] sm:$0xf] }
  0xca   :  { %4328 = vmatprep.subr.bf16.mxu1 %v4724_v3  ;;  %v5729_v12 = vrot.slane %v2894_v15, 5  ;;  %v5734_v40 = vrot.slane %v2908_v2, 5  ;;  %v2958_v63 = vshll.u32 %v2838_v23, 16  ;;  %v4737_v14 = vld [vmem:[#allocation2 + $0x80] ss:$8 sps:$4 sm:$0xff]   ;;  %v4742_v15 = vld [vmem:[%s6148_s3 + $0xf8] sm:$0xff]  }
  0xcb   :  { %4437 = vmatpush3.bf16.msra.mxu0 %v4717_v9  ;;  %v4728_v9 = vld [vmem:[#allocation2 + $0x40] ss:$8 sps:$4 sm:$0xff]   ;;  %v5717_v39 = vrot.slane %v2866_v26, 5  ;;  %v2986_v11 = vshll.u32 %v2842_v38, 16  ;;  %v5784_v23 = vld [vmem:[#allocation2 + $0x6c] sm:$0x1] }
  0xcc   :  { %4454 = vmatprep.subr.bf16.mxu0 %v4720_v13  ;;  %v4735_v26 = vld [vmem:[%s6148_s3 + $0x1e8] sm:$0xff]  }
  0xcd   :  { %4329 = vmatpush3.bf16.msra.mxu1 %v4724_v3  ;;  %v2863_v3 = vor.u32 %v2862_v58, %v2859_v48  ;;  %v5742_v48 = vld [vmem:[#allocation2 + $0x34] sm:$0x1]  ;;  %v5744_v58 = vld [vmem:[#allocation2 + $0x3c] sm:$0x1] }
  0xce   :  { %4439 = vmatmul.mubr.bf16.vlgmr.msra.gmra.mrb[0].mxu0 %v4722_v29  ;;  %4330 = vmatprep.subr.bf16.mxu1 %v4727_v32  ;;  %v2922_v43 = vshll.u32 %v5742_v48, 16  ;;  %v2936_v22 = vshll.u32 %v5744_v58, 16 }
  0xcf   :  { %4455 = vmatpush3.bf16.msra.mxu0 %v4720_v13  ;;  %4442 = vmatprep.mubr.bf16.mxu0 %v4725_v45  ;;  %v2916_v13 = vshll.u32 %v2832_v25, 16  ;;  %v5723_v29 = vrot.slane %v2863_v3, 4  ;;  %v2941_v45 = vshrl.u32 %v2836_v1, 16  ;;  %v2969_v25 = vshrl.u32 %v2840_v60, 16  ;;  %v5818_v60 = vld [vmem:[%s6148_s3 + $0x208] sm:$0xff]  }
  0xd0   :  { %4456 = vmatprep.subr.bf16.mxu0 %v4723_v41  ;;  %4315 = vmatmul.mubr.bf16.gmra.mrb[4].mxu1 %v3833_v5  ;;  %v2944_v5 = vshll.u32 %v2836_v1, 16  ;;  %v5772_v2 = vrot.slane %v2922_v43, 5  ;;  %v4740_v1 = vld [vmem:[#allocation2 + $0x90] ss:$8 sps:$4 sm:$0xff]  }
  0xd1   :  { %4331 = vmatpush3.bf16.msra.mxu1 %v4727_v32  ;;  %4318 = vmatprep.mubr.bf16.mxu1 %v3834_v46  ;;  %v5727_v32 = vrot.slane %v2880_v27, 5  ;;  %v2905_v46 = vor.u32 %v2904_v62, %v2901_v24  ;;  %v2918_v20 = vrot.slane %v2916_v13, 5  ;;  %v2869_v47 = vsel %vm4983_vm9, %v5723_v29, %v5717_v39 }
  0xd2   :  { %4332 = vmatprep.subr.bf16.mxu1 %v4730_v59  ;;  %v2943_v54 = vrot.slane %v2941_v45, 4  ;;  %v2960_v27 = vrot.slane %v2958_v63, 5  ;;  %v2983_v39 = vshrl.u32 %v2842_v38, 16  ;;  %v5798_v29 = vrot.slane %v2936_v22, 5 }
  0xd3   :  { %4457 = vmatpush3.bf16.msra.mxu0 %v4723_v41  ;;  %v5725_v41 = vrot.slane %v2877_v37, 4  ;;  %v2906_v17 = vrot.slane %v2905_v46, 4  ;;  %v2919_v3 = vor.u32 %v2918_v20, %v2915_v35  ;;  %v2992_v63 = vshll.u32 %v5784_v23, 16 }
  0xd4   :  { %4458 = vmatprep.subr.bf16.mxu0 %v4726_v0  ;;  %v2985_v45 = vrot.slane %v2983_v39, 4 }
  0xd5   :  { %4333 = vmatpush3.bf16.msra.mxu1 %v4730_v59  ;;  %v4734_v59 = vld [vmem:[#allocation2 + $0x70] ss:$8 sps:$4 sm:$0xff]   ;;  %v2883_v55 = vsel %vm4983_vm9, %v5725_v41, %v5727_v32  ;;  %v2911_v49 = vsel %vm4983_vm9, %v2906_v17, %v5734_v40  ;;  %v5794_v57 = vrot.slane %v2919_v3, 4  ;;  %v5800_v41 = vld [vmem:[#allocation2 + $0x4c] sm:$0x1]  ;;  %v5838_v39 = vrot.slane %v2992_v63, 5 }
  0xd6   :  { %4443 = vmatmul.mubr.bf16.gmra.mrb[4].mxu0 %v4728_v9  ;;  %4334 = vmatprep.subr.bf16.mxu1 %v4733_v30  ;;  %v5764_v9 = vld [vmem:[#allocation2 + $0x44] sm:$0x1]  ;;  %v4006_v52 = vcombine.low %v2869_v47, %v2883_v55  ;;  %v4741_v32 = vld [vmem:[%s6148_s3 + $0x1f8] sm:$0xff]   ;;  %v4747_v40 = vld [vmem:[#allocation2 + $0x28] ss:$8 sps:$4 sm:$0xff]   ;;  %v2964_v20 = vshll.u32 %v5800_v41, 16 }
  0xd7   :  { %4459 = vmatpush3.bf16.msra.mxu0 %v4726_v0  ;;  %4446 = vmatprep.mubr.bf16.mxu0 %v4731_v42  ;;  %v2932_v0 = vrot.slane %v2930_v36, 5  ;;  %v2957_v42 = vrot.slane %v2955_v4, 4  ;;  %v2950_v62 = vshll.u32 %v5764_v9, 16  ;;  %v5782_v36 = vld [vmem:[#allocation2 + $0x64] sm:$0x1]  ;;  %v2925_v38 = vsel %vm4983_vm9, %v5794_v57, %v5772_v2  ;;  %v5863_v63 = vld [vmem:[%s6148_s3 + $0x218] sm:$0xff]  }
  0xd8   :  { %4460 = vmatprep.subr.bf16.mxu0 %v4729_v51  ;;  %4319 = vmatmul.mubr.bf16.gmra.mrb[8].mxu1 %v3835_v28  ;;  %v2929_v28 = vrot.slane %v2927_v21, 4  ;;  %v2978_v4 = vshll.u32 %v5782_v36, 16  ;;  %v2850_v55 = vld [vmem:[#allocation2 + $0x88] sm:$0xf]  ;;  %v2852_v57 = vld [vmem:[#allocation2 + $0x90] sm:$0xf] }
  0xd9   :  { %4335 = vmatpush3.bf16.msra.mxu1 %v4733_v30  ;;  %4322 = vmatprep.mubr.bf16.mxu1 %v3836_v18  ;;  %v5760_v18 = vrot.slane %v2891_v31, 4  ;;  %v2946_v30 = vrot.slane %v2944_v5, 5  ;;  %v2961_v21 = vor.u32 %v2960_v27, %v2957_v42  ;;  %v2974_v31 = vrot.slane %v2972_v44, 5  ;;  %v159_v27 = vld [vmem:[#allocation2 + $0x9c] sm:$0x1] }
  0xda   :  { %4336 = vmatprep.subr.bf16.mxu1 %v4736_v50  ;;  %v2933_v37 = vor.u32 %v2932_v0, %v2929_v28  ;;  %v2988_v5 = vrot.slane %v2986_v11, 5  ;;  %v5807_v46 = vrot.slane %v2950_v62, 5  ;;  %v2848_v28 = vld [vmem:[#allocation2 + $0x80] sm:$0xf]  ;;  %v5828_v22 = vrot.slane %v2978_v4, 5 }
  0xdb   :  { %4461 = vmatpush3.bf16.msra.mxu0 %v4729_v51  ;;  %v4743_v51 = vld [vmem:[#allocation2 + $0x8] ss:$8 sps:$4 sm:$0xff]   ;;  %v2947_v24 = vor.u32 %v2946_v30, %v2943_v54  ;;  %v2897_v13 = vsel %vm4983_vm9, %v5760_v18, %v5729_v12  ;;  %v4745_v12 = vld [vmem:[#allocation2 + $0x18] ss:$8 sps:$4 sm:$0xff]   ;;  %v5811_v35 = vrot.slane %v2961_v21, 4  ;;  %v3025_v42 = vshrl.u32 %v2848_v28, 16 }
  0xdc   :  { %4462 = vmatprep.subr.bf16.mxu0 %v4732_v7  ;;  %v4007_v0 = vcombine.low %v2897_v13, %v2911_v49  ;;  %v2989_v43 = vor.u32 %v2988_v5, %v2985_v45  ;;  %v3039_v3 = vshrl.u32 %v2850_v55, 16  ;;  %v2966_v44 = vrot.slane %v2964_v20, 5  ;;  %v5840_v11 = vld [vmem:[#allocation2 + $0x74] sm:$0x1]  ;;  %v4751_v21 = vld [vmem:[#allocation2 + $0x58] ss:$8 sps:$4 sm:$0xff]  }
  0xdd   :  { %4337 = vmatpush3.bf16.msra.mxu1 %v4736_v50  ;;  %v5789_v50 = vld [vmem:[%s6148_s3 + $0x200] sm:$0xff]   ;;  %v5843_v49 = vld [vmem:[#allocation2 + $0x7c] sm:$0x1]  ;;  %v5857_v4 = vld [vmem:[#allocation2 + $0x8c] sm:$0x1] }
  0xde   :  { %4447 = vmatmul.mubr.bf16.gmra.mrb[8].mxu0 %v4734_v59  ;;  %4338 = vmatprep.subr.bf16.mxu1 %v4739_v33  ;;  %v2844_v59 = vld [vmem:[#allocation2 + $0x70] sm:$0xf] }
  0xdf   :  { %4463 = vmatpush3.bf16.msra.mxu0 %v4732_v7  ;;  %4450 = vmatprep.mubr.bf16.mxu0 %v4737_v14  ;;  %v2971_v7 = vrot.slane %v2969_v25, 4  ;;  %v2846_v14 = vld [vmem:[#allocation2 + $0x78] sm:$0xf]  ;;  %v2997_v47 = vshrl.u32 %v2844_v59, 16  ;;  %v160_v25 = vsel %vm4873_vm4, 0, %v159_v27 }
  0xe0   :  { %4464 = vmatprep.subr.bf16.mxu0 %v4735_v26  ;;  %4323 = vmatmul.mubr.bf16.gmra.mrb[12].mxu1 %v3837_v8  ;;  %v5796_v8 = vrot.slane %v2933_v37, 4  ;;  %v3011_v54 = vshrl.u32 %v2846_v14, 16  ;;  %v3014_v30 = vshll.u32 %v2846_v14, 16  ;;  %v3042_v37 = vshll.u32 %v2850_v55, 16  ;;  %161 = vst [vmem:[#allocation2 + $0x9c] sm:$0x1] %v160_v25 }
  0xe1   :  { %4339 = vmatpush3.bf16.msra.mxu1 %v4739_v33  ;;  %4342 = vmatprep.mubr.bf16.mxu1 %v4743_v51  ;;  %v5805_v33 = vrot.slane %v2947_v24, 4  ;;  %v2975_v18 = vor.u32 %v2974_v31, %v2971_v7  ;;  %v3028_v51 = vshll.u32 %v2848_v28, 16  ;;  %v4749_v24 = vld [vmem:[#allocation2 + $0x38] ss:$8 sps:$4 sm:$0xff]   ;;  %v3053_v14 = vshrl.u32 %v2852_v57, 16 }
  0xe2   :  { %4340 = vmatprep.subr.bf16.mxu1 %v4742_v15  ;;  %v2939_v17 = vsel %vm4983_vm9, %v5796_v8, %v5798_v29  ;;  %v3016_v13 = vrot.slane %v3014_v30, 5  ;;  %v3027_v8 = vrot.slane %v3025_v42, 4  ;;  %v3044_v7 = vrot.slane %v3042_v37, 5  ;;  %v2854_v31 = vld [vmem:[#allocation2 + $0x98] sm:$0xf] }
  0xe3   :  { %4465 = vmatpush3.bf16.msra.mxu0 %v4735_v26  ;;  %v3000_v26 = vshll.u32 %v2844_v59, 16  ;;  %v2976_v62 = vrot.slane %v2975_v18, 4  ;;  %v4008_v19 = vcombine.low %v2925_v38, %v2939_v17  ;;  %v3030_v29 = vrot.slane %v3028_v51, 5  ;;  %v4753_v17 = vld [vmem:[#allocation2 + $0x68] ss:$8 sps:$4 sm:$0xff]  }
  0xe4   :  { %4466 = vmatprep.subr.bf16.mxu0 %v4738_v16  ;;  %v2953_v45 = vsel %vm4983_vm9, %v5805_v33, %v5807_v46  ;;  %v3006_v59 = vshll.u32 %v5840_v11, 16  ;;  %v3020_v46 = vshll.u32 %v5843_v49, 16  ;;  %v5883_v27 = vld [vmem:[#allocation2 + $0x94] sm:$0x1]  ;;  %v3055_v51 = vrot.slane %v3053_v14, 4 }
  0xe5   :  { %4341 = vmatpush3.bf16.msra.mxu1 %v4742_v15  ;;  %v5833_v15 = vld [vmem:[%s6148_s3 + $0x210] sm:$0xff]   ;;  %v3002_v2 = vrot.slane %v3000_v26, 5  ;;  %v2981_v20 = vsel %vm4983_vm9, %v2976_v62, %v5828_v22  ;;  %v3031_v26 = vor.u32 %v3030_v29, %v3027_v8  ;;  %v5901_v29 = vld [vmem:[%s6148_s3 + $0x228] sm:$0xff]  }
  0xe6   :  { %4451 = vmatmul.mubr.bf16.gmra.mrb[12].mxu0 %v4740_v1  ;;  %4518 = vmatprep.subr.bf16.mxu1 %v5789_v50  ;;  %v2990_v1 = vrot.slane %v2989_v43, 4  ;;  %v3008_v38 = vrot.slane %v3006_v59, 5  ;;  %v3022_v42 = vrot.slane %v3020_v46, 5 }
  0xe7   :  { %4467 = vmatpush3.bf16.msra.mxu0 %v4738_v16  ;;  %4470 = vmatprep.mubr.bf16.mxu0 %v4006_v52  ;;  %v2999_v16 = vrot.slane %v2997_v47, 4  ;;  %v3013_v52 = vrot.slane %v3011_v54, 4  ;;  %v3070_v47 = vshll.u32 %v2854_v31, 16  ;;  %v5880_v54 = vld [vmem:[%s6148_s3 + $0x220] sm:$0xff]  }
  0xe8   :  { %4468 = vmatprep.subr.bf16.mxu0 %v4741_v32  ;;  %4343 = vmatmul.mubr.bf16.vlgmr.msra.gmra.mrb[0].mxu1 %v4745_v12  ;;  %v3041_v12 = vrot.slane %v3039_v3, 4  ;;  %v2995_v28 = vsel %vm4983_vm9, %v2990_v1, %v5838_v39  ;;  %v3298_v39 = vld [vmem:[#allocation2 + $0x60] sm:$0xe] }
  0xe9   :  { %4526 = vmatpush3.bf16.msra.mxu1 %v5789_v50  ;;  %4346 = vmatprep.mubr.bf16.mxu1 %v4747_v40  ;;  %v3003_v5 = vor.u32 %v3002_v2, %v2999_v16  ;;  %v5855_v40 = vld [vmem:[#allocation2 + $0x84] sm:$0x1]  ;;  %v3017_v33 = vor.u32 %v3016_v13, %v3013_v52  ;;  %v4010_v37 = vcombine.low %v2981_v20, %v2995_v28  ;;  %v3299_v16 = vld [vmem:[#allocation2 + $0x68] sm:$0xe]  ;;  %v3032_v2 = vrot.slane %v3031_v26, 4 }
  0xea   :  { %4519 = vmatprep.subr.bf16.mxu1 %v5818_v60  ;;  %v3034_v55 = vshll.u32 %v5855_v40, 16  ;;  %v3045_v18 = vor.u32 %v3044_v7, %v3041_v12  ;;  %v5887_v52 = vld [vmem:[#allocation2 + $0x9c] sm:$0x1]  ;;  %v3290_v7 = vld [vmem:[#allocation2 + $0x10] sm:$0xe]  ;;  %v3344_v20 = vrot.slane %v5697_v34, 5 }
  0xeb   :  { %4469 = vmatpush3.bf16.msra.mxu0 %v4741_v32  ;;  %v2967_v32 = vsel %vm4983_vm9, %v5811_v35, %v2966_v44  ;;  %v3056_v35 = vshll.u32 %v2852_v57, 16  ;;  %v3004_v30 = vrot.slane %v3003_v5, 4  ;;  %v3018_v22 = vrot.slane %v3017_v33, 4  ;;  %v3300_v26 = vld [vmem:[#allocation2 + $0x70] sm:$0xe] }
  0xec   :  { %4486 = vmatprep.subr.bf16.mxu0 %v5789_v50  ;;  %v4009_v43 = vcombine.low %v2953_v45, %v2967_v32  ;;  %v3072_v44 = vrot.slane %v3070_v47, 5  ;;  %v3046_v62 = vrot.slane %v3045_v18, 4  ;;  %v3376_v57 = vrot.slane %v5784_v23, 5  ;;  %v3291_v32 = vld [vmem:[#allocation2 + $0x18] sm:$0xe] }
  0xed   :  { %4527 = vmatpush3.bf16.msra.mxu1 %v5818_v60  ;;  %v3058_v3 = vrot.slane %v3056_v35, 5  ;;  %v3009_v13 = vsel %vm4983_vm9, %v3004_v30, %v3008_v38  ;;  %v3023_v8 = vsel %vm4983_vm9, %v3018_v22, %v3022_v42  ;;  %v4031_v45 = vrot.slane %v3299_v16, 9  ;;  %v3302_v30 = vld [vmem:[#allocation2 + $0x80] sm:$0xe]  ;;  %v3303_v38 = vld [vmem:[#allocation2 + $0x88] sm:$0xe] }
  0xee   :  { %4471 = vmatmul.mubr.bf16.vlgmr.msra.gmra.mrb[0].mxu0 %v4007_v0  ;;  %4520 = vmatprep.subr.bf16.mxu1 %v5833_v15  ;;  %v3067_v0 = vshrl.u32 %v2854_v31, 16  ;;  %v4030_v31 = vrot.slane %v3298_v39, 9  ;;  %v3076_v23 = vshll.u32 %v5887_v52, 16  ;;  %v3340_v33 = vrot.slane %v5692_v61, 5  ;;  %v4757_v22 = vld [vmem:[#allocation2 + $0x88] ss:$8 sps:$4 sm:$0xff]  }
  0xef   :  { %4487 = vmatpush3.bf16.msra.mxu0 %v5789_v50  ;;  %4474 = vmatprep.mubr.bf16.mxu0 %v4008_v19  ;;  %v3048_v50 = vshll.u32 %v5857_v4, 16  ;;  %v4755_v19 = vld [vmem:[#allocation2 + $0x78] ss:$8 sps:$4 sm:$0xff]   ;;  %v3059_v12 = vor.u32 %v3058_v3, %v3055_v51  ;;  %v4011_v46 = vcombine.low %v3009_v13, %v3023_v8  ;;  %v4022_v35 = vrot.slane %v3290_v7, 9 }
  0xf0   :  { %4488 = vmatprep.subr.bf16.mxu0 %v5818_v60  ;;  %4347 = vmatmul.mubr.bf16.gmra.mrb[4].mxu1 %v4749_v24  ;;  %v3069_v25 = vrot.slane %v3067_v0, 4  ;;  %v3036_v24 = vrot.slane %v3034_v55, 5  ;;  %v4023_v0 = vrot.slane %v3291_v32, 9  ;;  %v3377_v47 = vsel %vm5416_vm12, %v4031_v45, %v3376_v57  ;;  %v3301_v55 = vld [vmem:[#allocation2 + $0x78] sm:$0xe] }
  0xf1   :  { %4528 = vmatpush3.bf16.msra.mxu1 %v5833_v15  ;;  %4350 = vmatprep.mubr.bf16.mxu1 %v4751_v21  ;;  %v3050_v1 = vrot.slane %v3048_v50, 5  ;;  %v3372_v21 = vrot.slane %v5782_v36, 5  ;;  %v3060_v28 = vrot.slane %v3059_v12, 4  ;;  %v3380_v34 = vrot.slane %v5840_v11, 5  ;;  %v3292_v11 = vld [vmem:[#allocation2 + $0x20] sm:$0xe] }
  0xf2   :  { %4521 = vmatprep.subr.bf16.mxu1 %v5863_v63  ;;  %v3073_v36 = vor.u32 %v3072_v44, %v3069_v25  ;;  %v3037_v5 = vsel %vm4983_vm9, %v3032_v2, %v3036_v24  ;;  %v3348_v42 = vrot.slane %v5699_v56, 5  ;;  %v3341_v51 = vsel %vm5416_vm12, %v4022_v35, %v3340_v33  ;;  %v3305_v12 = vld [vmem:[#allocation2 + $0x98] sm:$0xe] }
  0xf3   :  { %4489 = vmatpush3.bf16.msra.mxu0 %v5818_v60  ;;  %v3062_v60 = vshll.u32 %v5883_v27, 16  ;;  %v3051_v59 = vsel %vm4983_vm9, %v3046_v62, %v3050_v1  ;;  %v3373_v61 = vsel %vm5416_vm12, %v4030_v31, %v3372_v21  ;;  %v4033_v25 = vrot.slane %v3301_v55, 9  ;;  %v3294_v1 = vld [vmem:[#allocation2 + $0x30] sm:$0xe] }
  0xf4   :  { %4490 = vmatprep.subr.bf16.mxu0 %v5833_v15  ;;  %v4012_v18 = vcombine.low %v3037_v5, %v3051_v59  ;;  %v3074_v50 = vrot.slane %v3073_v36, 4  ;;  %v4058_v3 = vcombine.low %v3373_v61, %v3377_v47  ;;  %v3388_v56 = vrot.slane %v5855_v40, 5  ;;  %v3293_v40 = vld [vmem:[#allocation2 + $0x28] sm:$0xe] }
  0xf5   :  { %4529 = vmatpush3.bf16.msra.mxu1 %v5863_v63  ;;  %v3064_v14 = vrot.slane %v3062_v60, 5  ;;  %v4035_v44 = vrot.slane %v3303_v38, 9  ;;  %v3392_v39 = vrot.slane %v5857_v4, 5  ;;  %v3345_v24 = vsel %vm5416_vm12, %v4023_v0, %v3344_v20  ;;  %v3295_v4 = vld [vmem:[#allocation2 + $0x38] sm:$0xe] }
  0xf6   :  { %4475 = vmatmul.mubr.bf16.gmra.mrb[4].mxu0 %v4009_v43  ;;  %4522 = vmatprep.subr.bf16.mxu1 %v5880_v54  ;;  %v3078_v43 = vrot.slane %v3076_v23, 5  ;;  %v3352_v62 = vrot.slane %v5708_v10, 5  ;;  %v3304_v60 = vld [vmem:[#allocation2 + $0x90] sm:$0xe]  ;;  %v4054_v21 = vcombine.low %v3341_v51, %v3345_v24  ;;  %v4025_v7 = vrot.slane %v3293_v40, 9 }
  0xf7   :  { %4491 = vmatpush3.bf16.msra.mxu0 %v5833_v15  ;;  %4478 = vmatprep.mubr.bf16.mxu0 %v4010_v37  ;;  %v5915_v15 = vld [vmem:[%s6148_s3 + $0x230] sm:$0xff]   ;;  %v4032_v37 = vrot.slane %v3300_v26, 9  ;;  %v3065_v16 = vsel %vm4983_vm9, %v3060_v28, %v3064_v14  ;;  %v3393_v8 = vsel %vm5416_vm12, %v4035_v44, %v3392_v39  ;;  %v4026_v31 = vrot.slane %v3294_v1, 9 }
  0xf8   :  { %4492 = vmatprep.subr.bf16.mxu0 %v5863_v63  ;;  %4351 = vmatmul.mubr.bf16.gmra.mrb[8].mxu1 %v4753_v17  ;;  %v3384_v17 = vrot.slane %v5843_v49, 5  ;;  %v4034_v49 = vrot.slane %v3302_v30, 9  ;;  %v3079_v2 = vsel %vm4983_vm9, %v3074_v50, %v3078_v43  ;;  %v4027_v45 = vrot.slane %v3295_v4, 9 }
  0xf9   :  { %4530 = vmatpush3.bf16.msra.mxu1 %v5880_v54  ;;  %4354 = vmatprep.mubr.bf16.mxu1 %v4755_v19  ;;  %v3381_v13 = vsel %vm5416_vm12, %v4032_v37, %v3380_v34  ;;  %v3356_v19 = vrot.slane %v5742_v48, 5  ;;  %v4013_v10 = vcombine.low %v3065_v16, %v3079_v2  ;;  %v3360_v36 = vrot.slane %v5744_v58, 5 }
  0xfa   :  { %4523 = vmatprep.subr.bf16.mxu1 %v5901_v29  ;;  %v3385_v53 = vsel %vm5416_vm12, %v4033_v25, %v3384_v17  ;;  %v3389_v57 = vsel %vm5416_vm12, %v4034_v49, %v3388_v56  ;;  %v4036_v23 = vrot.slane %v3304_v60, 9  ;;  %v3396_v5 = vrot.slane %v5883_v27, 5  ;;  %v3296_v27 = vld [vmem:[#allocation2 + $0x40] sm:$0xe]  ;;  %v3622_v60 = vld [vmem:[%s6152_s4 + $0x50] sm:$0xff] }
  0xfb   :  { %4493 = vmatpush3.bf16.msra.mxu0 %v5863_v63  ;;  %v5932_v63 = vld [vmem:[%s6148_s3 + $0x238] sm:$0xff]   ;;  %v4059_v48 = vcombine.low %v3381_v13, %v3385_v53  ;;  %v4060_v32 = vcombine.low %v3389_v57, %v3393_v8  ;;  %v4037_v59 = vrot.slane %v3305_v12, 9  ;;  %v3400_v33 = vrot.slane %v5887_v52, 5  ;;  %v3297_v52 = vld [vmem:[#allocation2 + $0x48] sm:$0xe]  ;;  %v3620_v12 = vld [vmem:[%s6152_s4 + $0x40] sm:$0xff] }
  0xfc   :  { %4494 = vmatprep.subr.bf16.mxu0 %v5880_v54  ;;  %v3353_v58 = vsel %vm5416_vm12, %v4025_v7, %v3352_v62  ;;  %v3361_v14 = vsel %vm5416_vm12, %v4027_v45, %v3360_v36  ;;  %v3397_v35 = vsel %vm5416_vm12, %v4036_v23, %v3396_v5  ;;  %v4028_v0 = vrot.slane %v3296_v27, 9  ;;  %v3623_v36 = vld [vmem:[%s6152_s4 + $0x58] sm:$0xff]  ;;  %v3621_v5 = vld [vmem:[%s6152_s4 + $0x48] sm:$0xff] }
  0xfd   :  { %4531 = vmatpush3.bf16.msra.mxu1 %v5901_v29  ;;  %v3364_v61 = vrot.slane %v5764_v9, 5  ;;  %v4029_v47 = vrot.slane %v3297_v52, 9  ;;  %v3368_v26 = vrot.slane %v5800_v41, 5 }
  0xfe   :  { %4479 = vmatmul.mubr.bf16.gmra.mrb[8].mxu0 %v4011_v46  ;;  %4524 = vmatprep.subr.bf16.mxu1 %v5915_v15  ;;  %v3357_v46 = vsel %vm5416_vm12, %v4026_v31, %v3356_v19 }
  0xff   :  { %4495 = vmatpush3.bf16.msra.mxu0 %v5880_v54  ;;  %4482 = vmatprep.mubr.bf16.mxu0 %v4012_v18  ;;  %v4024_v54 = vrot.slane %v3292_v11, 9  ;;  %v4056_v28 = vcombine.low %v3357_v46, %v3361_v14  ;;  %v3365_v18 = vsel %vm5416_vm12, %v4028_v0, %v3364_v61  ;;  %v3369_v50 = vsel %vm5416_vm12, %v4029_v47, %v3368_v26  ;;  %v3614_v46 = vld [vmem:[%s6152_s4 + $0x10] sm:$0xff] }
 0x100   :  { %4496 = vmatprep.subr.bf16.mxu0 %v5901_v29  ;;  %4355 = vmatmul.mubr.bf16.gmra.mrb[12].mxu1 %v4757_v22  ;;  %v4057_v43 = vcombine.low %v3365_v18, %v3369_v50  ;;  %v3626_v61 = vld [vmem:[%s6152_s4 + $0x70] sm:$0xff]  ;;  %v3613_v18 = vld [vmem:[%s6152_s4 + $0x8] sm:$0xff] }
 0x101   :  { %4532 = vmatpush3.bf16.msra.mxu1 %v5915_v15  ;;  %4510 = vmatprep.mubr.bf16.mxu1 %v4058_v3 }
 0x102   :  { %4525 = vmatprep.subr.bf16.mxu1 %v5932_v63 }
 0x103   :  { %4497 = vmatpush3.bf16.msra.mxu0 %v5901_v29  ;;  %v3349_v29 = vsel %vm5416_vm12, %v4024_v54, %v3348_v42 }
 0x104   :  { %4498 = vmatprep.subr.bf16.mxu0 %v5915_v15  ;;  %v4055_v20 = vcombine.low %v3349_v29, %v3353_v58 }
 0x105   :  { %4533 = vmatpush3.bf16.msra.mxu1 %v5932_v63 }
 0x106   :  { %4483 = vmatmul.mubr.bf16.gmra.mrb[12].mxu0 %v4013_v10 }
 0x107   :  { %4499 = vmatpush3.bf16.msra.mxu0 %v5915_v15  ;;  %4502 = vmatprep.mubr.bf16.mxu0 %v4054_v21  ;;  %v3401_v15 = vsel %vm5416_vm12, %v4037_v59, %v3400_v33 }
 0x108   :  { %4500 = vmatprep.subr.bf16.mxu0 %v5932_v63  ;;  %4511 = vmatmul.mubr.bf16.vlgmr.msra.gmra.mrb[16].mxu1 %v4059_v48  ;;  %v4061_v55 = vcombine.low %v3397_v35, %v3401_v15  ;;  %v3612_v35 = vld [vmem:[%s6152_s4] sm:$0xff] }
 0x109   :  { %4514 = vmatprep.mubr.bf16.mxu1 %v4060_v32 }
 0x10b   :  { %4501 = vmatpush3.bf16.msra.mxu0 %v5932_v63 }
 0x10e   :  { %4503 = vmatmul.mubr.bf16.vlgmr.msra.gmra.mrb[0].mxu0 %v4055_v20 }
 0x10f   :  { %4506 = vmatprep.mubr.bf16.mxu0 %v4056_v28  ;;  %v3615_v28 = vld [vmem:[%s6152_s4 + $0x18] sm:$0xff] }
 0x110   :  { %4515 = vmatmul.mubr.bf16.gmra.mrb[20].mxu1 %v4061_v55 }
 0x116   :  { %4507 = vmatmul.mubr.bf16.gmra.mrb[4].mxu0 %v4057_v43 }
 0x1bb   :  { %v4344_v30 = vpop.f32.mrb[0].mxu1 }
 0x1bc   :  { %v1714_v38 = vpop.f32.mrb[1].mxu1 }
 0x1bd   :  { %v5986_v34 = vpop.f32.mrb[2].mxu1 }
 0x1be   :  { %v5988_v9 = vpop.f32.mrb[3].mxu1 }
 0x1c3   :  { %v5990_v17 = vpop.f32.mrb[4].mxu1 }
 0x1c4   :  { %v5992_v41 = vpop.f32.mrb[5].mxu1 }
 0x1c5   :  { %v5994_v22 = vpop.f32.mrb[6].mxu1 }
 0x1c6   :  { %v5996_v42 = vpop.f32.mrb[7].mxu1 }
 0x1cb   :  { %v4352_v63 = vpop.f32.mrb[8].mxu1 }
 0x1cc   :  { %v1746_v6 = vpop.f32.mrb[9].mxu1 }
 0x1cd   :  { %v4353_v51 = vpop.f32.mrb[10].mxu1 }
 0x1ce   :  { %v1749_v3 = vpop.f32.mrb[11].mxu1 }
 0x1d1   :  { %v4480_v37 = vpop.f32.mrb[8].mxu0 }
 0x1d2   :  { %v4542_v25 = vadd.f32 %v4480_v37, %v4352_v63  ;;  %v3243_v11 = vpop.f32.mrb[9].mxu0 }
 0x1d3   :  { %v4544_v49 = vadd.f32 %v3243_v11, %v1746_v6  ;;  %v4481_v56 = vpop.f32.mrb[10].mxu0  ;;  %v4356_v44 = vpop.f32.mrb[12].mxu1 }
 0x1d4   :  { %v4546_v39 = vadd.f32 %v4481_v56, %v4353_v51  ;;  %v3246_v16 = vpop.f32.mrb[11].mxu0  ;;  %v1762_v2 = vpop.f32.mrb[13].mxu1 }
 0x1d5   :  { %v4548_v24 = vadd.f32 %v3246_v16, %v1749_v3  ;;  %v4357_v62 = vpop.f32.mrb[14].mxu1 }
 0x1d6   :  { %v1765_v40 = vpop.f32.mrb[15].mxu1 }
 0x1d9   :  { %v4484_v1 = vpop.f32.mrb[12].mxu0 }
 0x1da   :  { %v4550_v4 = vadd.f32 %v4484_v1, %v4356_v44  ;;  %v3259_v54 = vpop.f32.mrb[13].mxu0 }
 0x1db   :  { %v4552_v13 = vadd.f32 %v3259_v54, %v1762_v2  ;;  %v4485_v53 = vpop.f32.mrb[14].mxu0  ;;  %v4512_v19 = vpop.f32.mrb[16].mxu1 }
 0x1dc   :  { %v4554_v10 = vadd.f32 %v4485_v53, %v4357_v62  ;;  %v3262_v21 = vpop.f32.mrb[15].mxu0  ;;  %v4543_v57 = vadd.f32 %v4542_v25, %v4512_v19  ;;  %v3565_v8 = vpop.f32.mrb[17].mxu1 }
 0x1dd   :  { %v4556_v7 = vadd.f32 %v3262_v21, %v1765_v40  ;;  %v4545_v31 = vadd.f32 %v4544_v49, %v3565_v8  ;;  %v4513_v45 = vpop.f32.mrb[18].mxu1  ;;  %v3625_v49 = vld [vmem:[%s6152_s4 + $0x68] sm:$0xff]  ;;  %v3618_v40 = vld [vmem:[%s6152_s4 + $0x30] sm:$0xff] }
 0x1de   :  { %v6007_v48 = vadd.f32 %v4543_v57, %v3622_v60  ;;  %v4547_v23 = vadd.f32 %v4546_v39, %v4513_v45  ;;  %v3568_v32 = vpop.f32.mrb[19].mxu1 }
 0x1df   :  { %v6012_v59 = vadd.f32 %v4545_v31, %v3620_v12  ;;  %v4549_v33 = vadd.f32 %v4548_v24, %v3568_v32  ;;  %v3617_v31 = vld [vmem:[%s6152_s4 + $0x28] sm:$0xff] }
 0x1e0   :  { %3654 = vst [vmem:[%s6153_s5 + $0x50] sm:$0xff] %v6007_v48  ;;  %v6018_v29 = vadd.f32 %v4547_v23, %v3623_v36 }
 0x1e1   :  { %v4504_v58 = vpop.f32.mrb[0].mxu0  ;;  %3652 = vst [vmem:[%s6153_s5 + $0x40] sm:$0xff] %v6012_v59  ;;  %v6027_v14 = vadd.f32 %v4549_v33, %v3621_v5 }
 0x1e2   :  { %v4534_v27 = vadd.f32 %v4504_v58, %v4344_v30  ;;  %v3533_v52 = vpop.f32.mrb[1].mxu0  ;;  %3655 = vst [vmem:[%s6153_s5 + $0x58] sm:$0xff] %v6018_v29  ;;  %v3624_v30 = vld [vmem:[%s6152_s4 + $0x60] sm:$0xff] }
 0x1e3   :  { %v4535_v15 = vadd.f32 %v3533_v52, %v1714_v38  ;;  %v4505_v20 = vpop.f32.mrb[2].mxu0  ;;  %3653 = vst [vmem:[%s6153_s5 + $0x48] sm:$0xff] %v6027_v14  ;;  %v4516_v0 = vpop.f32.mrb[20].mxu1 }
 0x1e4   :  { %v3630_v47 = vadd.f32 %v4534_v27, %v3614_v46  ;;  %v4536_v26 = vadd.f32 %v4505_v20, %v5986_v34  ;;  %v3536_v55 = vpop.f32.mrb[3].mxu0  ;;  %v4551_v50 = vadd.f32 %v4550_v4, %v4516_v0  ;;  %v3581_v43 = vpop.f32.mrb[21].mxu1  ;;  %v3627_v34 = vld [vmem:[%s6152_s4 + $0x78] sm:$0xff] }
 0x1e5   :  { %v3628_v38 = vadd.f32 %v4535_v15, %v3612_v35  ;;  %v4537_v63 = vadd.f32 %v3536_v55, %v5988_v9  ;;  %v4553_v6 = vadd.f32 %v4552_v13, %v3581_v43  ;;  %v4517_v51 = vpop.f32.mrb[22].mxu1  ;;  %v3616_v13 = vld [vmem:[%s6152_s4 + $0x20] sm:$0xff]  ;;  %v3691_v55 = vmul.f32 %v6027_v14, %v6027_v14 }
 0x1e6   :  { %3646 = vst [vmem:[%s6153_s5 + $0x10] sm:$0xff] %v3630_v47  ;;  %v3631_v3 = vadd.f32 %v4536_v26, %v3615_v28  ;;  %v6060_v37 = vadd.f32 %v4551_v50, %v3626_v61  ;;  %v4555_v25 = vadd.f32 %v4554_v10, %v4517_v51  ;;  %v3584_v11 = vpop.f32.mrb[23].mxu1  ;;  %v3684_v53 = vmul.f32 %v3630_v47, %v3630_v47 }
 0x1e7   :  { %3644 = vst [vmem:[%s6153_s5] sm:$0xff] %v3628_v38  ;;  %v3629_v9 = vadd.f32 %v4537_v63, %v3613_v18  ;;  %v6068_v56 = vadd.f32 %v4553_v6, %v3624_v30  ;;  %v4557_v44 = vadd.f32 %v4556_v7, %v3584_v11  ;;  %v3682_v16 = vmul.f32 %v3628_v38, %v3628_v38 }
 0x1e8   :  { %3647 = vst [vmem:[%s6153_s5 + $0x18] sm:$0xff] %v3631_v3  ;;  %3658 = vst [vmem:[%s6153_s5 + $0x70] sm:$0xff] %v6060_v37  ;;  %v6077_v39 = vadd.f32 %v4555_v25, %v3627_v34  ;;  %v3685_v57 = vmul.f32 %v3631_v3, %v3631_v3  ;;  %v3690_v61 = vmul.f32 %v6012_v59, %v6012_v59 }
 0x1e9   :  { %3645 = vst [vmem:[%s6153_s5 + $0x8] sm:$0xff] %v3629_v9  ;;  %v3660_v2 = vadd.f32 %v3629_v9, %v3628_v38  ;;  %v3683_v24 = vmul.f32 %v3629_v9, %v3629_v9  ;;  %v4508_v62 = vpop.f32.mrb[4].mxu0  ;;  %3656 = vst [vmem:[%s6153_s5 + $0x60] sm:$0xff] %v6068_v56  ;;  %v3641_v1 = vadd.f32 %v4557_v44, %v3625_v49 }
 0x1ea   :  { %v4538_v4 = vadd.f32 %v4508_v62, %v5990_v17  ;;  %v3549_v54 = vpop.f32.mrb[5].mxu0  ;;  %3659 = vst [vmem:[%s6153_s5 + $0x78] sm:$0xff] %v6077_v39  ;;  %v3619_v17 = vld [vmem:[%s6152_s4 + $0x38] sm:$0xff]  ;;  %v3692_v43 = vmul.f32 %v6007_v48, %v6007_v48  ;;  %v3693_v63 = vmul.f32 %v6018_v29, %v6018_v29  ;;  %v3696_v49 = vmul.f32 %v6060_v37, %v6060_v37 }
 0x1eb   :  { %v3661_v19 = vadd.f32 %v3660_v2, %v3630_v47  ;;  %v3698_v60 = vadd.f32 %v3683_v24, %v3682_v16  ;;  %v4539_v10 = vadd.f32 %v3549_v54, %v5992_v41  ;;  %v4509_v21 = vpop.f32.mrb[6].mxu0  ;;  %3657 = vst [vmem:[%s6153_s5 + $0x68] sm:$0xff] %v3641_v1  ;;  %v3697_v44 = vmul.f32 %v6077_v39, %v6077_v39 }
 0x1ec   :  { %v3634_v8 = vadd.f32 %v4538_v4, %v3618_v40  ;;  %v4540_v12 = vadd.f32 %v4509_v21, %v5994_v22  ;;  %v3552_v7 = vpop.f32.mrb[7].mxu0 }
 0x1ed   :  { %v3699_v45 = vadd.f32 %v3698_v60, %v3684_v53  ;;  %v3632_v41 = vadd.f32 %v4539_v10, %v3616_v13  ;;  %v3662_v36 = vadd.f32 %v3661_v19, %v3631_v3  ;;  %v4541_v23 = vadd.f32 %v3552_v7, %v5996_v42 }
 0x1ee   :  { %3650 = vst [vmem:[%s6153_s5 + $0x30] sm:$0xff] %v3634_v8  ;;  %v3635_v32 = vadd.f32 %v4540_v12, %v3619_v17  ;;  %v3688_v52 = vmul.f32 %v3634_v8, %v3634_v8 }
 0x1ef   :  { %3648 = vst [vmem:[%s6153_s5 + $0x20] sm:$0xff] %v3632_v41  ;;  %v3663_v22 = vadd.f32 %v3662_v36, %v3632_v41  ;;  %v3686_v5 = vmul.f32 %v3632_v41, %v3632_v41  ;;  %v3700_v33 = vadd.f32 %v3699_v45, %v3685_v57  ;;  %v3633_v58 = vadd.f32 %v4541_v23, %v3617_v31 }
 0x1f0   :  { %3651 = vst [vmem:[%s6153_s5 + $0x38] sm:$0xff] %v3635_v32  ;;  %v3689_v20 = vmul.f32 %v3635_v32, %v3635_v32 }
 0x1f1   :  { %v3701_v46 = vadd.f32 %v3700_v33, %v3686_v5  ;;  %3649 = vst [vmem:[%s6153_s5 + $0x28] sm:$0xff] %v3633_v58  ;;  %v3664_v42 = vadd.f32 %v3663_v22, %v3633_v58  ;;  %v3687_v27 = vmul.f32 %v3633_v58, %v3633_v58 }
 0x1f3   :  { %v3665_v35 = vadd.f32 %v3664_v42, %v3634_v8  ;;  %v3702_v15 = vadd.f32 %v3701_v46, %v3687_v27 }
 0x1f5   :  { %v3666_v28 = vadd.f32 %v3665_v35, %v3635_v32  ;;  %v3703_v0 = vadd.f32 %v3702_v15, %v3688_v52 }
 0x1f7   :  { %v3667_v47 = vadd.f32 %v3666_v28, %v6012_v59  ;;  %v3704_v26 = vadd.f32 %v3703_v0, %v3689_v20  ;;  %v3694_v59 = vmul.f32 %v6068_v56, %v6068_v56 }
 0x1f9   :  { %v3705_v18 = vadd.f32 %v3704_v26, %v3690_v61  ;;  %v3668_v50 = vadd.f32 %v3667_v47, %v6027_v14  ;;  %v3695_v14 = vmul.f32 %v3641_v1, %v3641_v1 }
 0x1fb   :  { %v3669_v30 = vadd.f32 %v3668_v50, %v6007_v48  ;;  %v3706_v38 = vadd.f32 %v3705_v18, %v3691_v55 }
 0x1fd   :  { %v3670_v6 = vadd.f32 %v3669_v30, %v6018_v29  ;;  %v3707_v51 = vadd.f32 %v3706_v38, %v3692_v43 }
 0x1ff   :  { %v3671_v34 = vadd.f32 %v3670_v6, %v6068_v56  ;;  %v3708_v3 = vadd.f32 %v3707_v51, %v3693_v63 }
 0x201   :  { %v3672_v25 = vadd.f32 %v3671_v34, %v3641_v1  ;;  %v3709_v11 = vadd.f32 %v3708_v3, %v3694_v59 }
 0x203   :  { %v3673_v48 = vadd.f32 %v3672_v25, %v6060_v37  ;;  %v3710_v9 = vadd.f32 %v3709_v11, %v3695_v14 }
 0x205   :  { %v3674_v29 = vadd.f32 %v3673_v48, %v6077_v39  ;;  %v3711_v16 = vadd.f32 %v3710_v9, %v3696_v49 }
 0x207   :  { %v3675_v2 = vrot.slane %v3674_v29, 4  ;;  %v3712_v24 = vadd.f32 %v3711_v16, %v3697_v44 }
 0x209   :  { %v3676_v62 = vadd.f32 %v3675_v2, %v3674_v29  ;;  %v3713_v56 = vrot.slane %v3712_v24, 4 }
 0x20b   :  { %v3677_v40 = vrot.slane %v3676_v62, 2  ;;  %v3714_v4 = vadd.f32 %v3713_v56, %v3712_v24 }
 0x20d   :  { %v3678_v1 = vadd.f32 %v3677_v40, %v3676_v62  ;;  %v3715_v54 = vrot.slane %v3714_v4, 2 }
 0x20f   :  { %v3679_v13 = vrot.slane %v3678_v1, 1  ;;  %v3716_v53 = vadd.f32 %v3715_v54, %v3714_v4 }
 0x211   :  { %v3680_v19 = vadd.f32 %v3679_v13, %v3678_v1  ;;  %v3717_v60 = vrot.slane %v3716_v53, 1 }
 0x213   :  { %3681 = vst [vmem:[%s6154_s6] sm:$0x1] %v3680_v19  ;;  %v3718_v37 = vadd.f32 %v3717_v60, %v3716_v53 }
 0x215   :  { %3719 = vst [vmem:[%s6155_s7] sm:$0x1] %v3718_v37 }

</bundles_post_ra>
